<compile_context>
chip_gen: v7x
topology: tpu7x:2x2x1
jax: 0.10.0
libtpu: 0.0.40
codegen_flags: <defaults>
</compile_context>

<pallas_src>
import functools

import jax
import jax.numpy as jnp
from jax.experimental import pallas as pl
from jax.experimental.pallas import tpu as pltpu


# ---------------------------------------------------------------------------
# Fused kernel: cv1 (1x1 conv + BN-folded bias + SiLU) -> SPP max-pool pyramid
#               -> concat (VMEM only) -> cv2 (1x1 conv + bias + SiLU)
# ---------------------------------------------------------------------------
def spp_fused_kernel(x_ref, w1_ref, b1_ref, w2_ref, b2_ref, o_ref,
                     xpad_ref, cat_ref, *, ks, pad, left):
    # x_ref   : (1, H, W, C1) f32      raw NHWC input tile (one image)
    # w1_ref  : (C1, C)  bf16          cv1 weight, BN scale folded in
    # b1_ref  : (1, C)   f32
    # w2_ref  : ((len(ks)+1)*C, C2) bf16   cv2 weight, BN scale folded in
    # b2_ref  : (1, C2)  f32
    # o_ref   : (1, H, W, C2) bf16
    # xpad_ref: VMEM scratch (H+2*pad, left+W+pad, C) bf16   -inf halo buffer
    # cat_ref : VMEM scratch (H*W, (len(ks)+1)*C) bf16       concat (never HBM)
    _, H, W, C1 = x_ref.shape
    C = w1_ref.shape[1]
    C2 = o_ref.shape[-1]
    Hp, Wp, _ = xpad_ref.shape
    delta = left - pad          # storage shift of the interior along W (sublane axis)

    # --- cv1: matmul (bf16 operands, f32 acc) + bias + SiLU; cast input in-kernel ---
    x2d = x_ref[0].reshape(H * W, C1).astype(jnp.bfloat16)
    y1 = jnp.dot(x2d, w1_ref[...], preferred_element_type=jnp.float32) + b1_ref[...]
    y1 = (y1 * jax.nn.sigmoid(y1)).astype(jnp.bfloat16)        # f32 epilogue, bf16 out

    cat_ref[:, 0:C] = y1                                       # identity branch

    # --- -inf halo: 4 band stores only (top/bottom full width, left/right columns) ---
    dt = xpad_ref.dtype
    xpad_ref[0:pad, :, :] = jnp.full((pad, Wp, C), -jnp.inf, dt)
    xpad_ref[pad + H:Hp, :, :] = jnp.full((Hp - pad - H, Wp, C), -jnp.inf, dt)
    xpad_ref[pad:pad + H, 0:left, :] = jnp.full((H, left, C), -jnp.inf, dt)
    xpad_ref[pad:pad + H, left + W:Wp, :] = jnp.full((H, Wp - left - W, C), -jnp.inf, dt)
    # interior store is sublane-aligned (left % 8 == 0, W % 8 == 0) -> unmasked vst
    xpad_ref[pad:pad + H, left:left + W, :] = y1.reshape(H, W, C)

    def cover(k):
        # starts of 5-wide blocks (stride 4) covering a centered k-window, in PADDED
        # coords (valid for k in {5, 9, 13, ...}: (k - 5) % 4 == 0)
        return [pad - k // 2 + j for j in range(0, k - 4, 4)]

    # --- column (W / sublane) pass: ONE shared base-5 running max for all k ---
    Wc = Wp - 4
    c5 = xpad_ref[:, 0:Wc, :]
    for d in range(1, 5):
        c5 = jnp.maximum(c5, xpad_ref[:, d:d + Wc, :])

    def col_max(k):                      # -> (Hp, W, C)
        offs = [o + delta for o in cover(k)]
        m = c5[:, offs[0]:offs[0] + W, :]
        for o in offs[1:]:
            m = jnp.maximum(m, c5[:, o:o + W, :])
        return m

    # --- row (H) pass: shifts along H are free address offsets; base-5 reuse again ---
    def row_max(ck, k):                  # -> (H, W, C)
        offs = cover(k)
        lo = offs[0]
        span = offs[-1] - lo + H
        r5 = ck[lo:lo + span]
        for d in range(1, 5):
            r5 = jnp.maximum(r5, ck[lo + d:lo + d + span])
        m = r5[0:H]
        for o in offs[1:]:
            m = jnp.maximum(m, r5[o - lo:o - lo + H])
        return m

    for i, k in enumerate(ks):
        cat_ref[:, (i + 1) * C:(i + 2) * C] = row_max(col_max(k), k).reshape(H * W, C)

    # --- cv2: ONE K=(len(ks)+1)*C matmul (fills the 256-deep MXU on v6e/v7x; no
    #     chained, vreg-spilled f32 accumulator adds), then bias + SiLU epilogue. ---
    y = jnp.dot(cat_ref[...], w2_ref[...], preferred_element_type=jnp.float32)
    y = y + b2_ref[...]
    o_ref[0] = (y * jax.nn.sigmoid(y)).reshape(H, W, C2).astype(o_ref.dtype)


def spp_pool_forward(x_nhwc, params, ks=(5, 9, 13)):
    """SPP block forward: NHWC f32 in -> NHWC bf16 out, one fused kernel per image."""
    w1, b1, w2, b2 = params
    N, H, W, C1 = x_nhwc.shape
    C = w1.shape[1]
    C2 = w2.shape[1]
    nb = len(ks) + 1
    assert w2.shape[0] == nb * C, (w2.shape, nb, C)
    # base-5 window-reuse decomposition needs k in {5, 9, 13, ...}
    assert all(k >= 5 and k % 2 == 1 and (k - 5) % 4 == 0 for k in ks), ks
    # Demo shapes keep W % 8 == 0 and C/C2 multiples of 128 so stores stay unmasked.
    # TODO(synk): for real YOLO 20x20 / 13x13 maps, pad W to a multiple of 8 in-kernel.
    pad = max(ks) // 2
    left = max(8, ((pad + 7) // 8) * 8)          # sublane-aligned interior W offset

    kern = functools.partial(spp_fused_kernel, ks=tuple(ks), pad=pad, left=left)
    return pl.pallas_call(
        kern,
        out_shape=jax.ShapeDtypeStruct((N, H, W, C2), jnp.bfloat16),
        grid=(N,),
        in_specs=[
            pl.BlockSpec((1, H, W, C1), lambda n: (n, 0, 0, 0)),
            pl.BlockSpec((C1, C), lambda n: (0, 0)),          # grid-invariant weights
            pl.BlockSpec((1, C), lambda n: (0, 0)),
            pl.BlockSpec((nb * C, C2), lambda n: (0, 0)),
            pl.BlockSpec((1, C2), lambda n: (0, 0)),
        ],
        out_specs=pl.BlockSpec((1, H, W, C2), lambda n: (n, 0, 0, 0)),
        scratch_shapes=[
            pltpu.VMEM((H + 2 * pad, left + W + pad, C), jnp.bfloat16),   # halo buf
            pltpu.VMEM((H * W, nb * C), jnp.bfloat16),                    # concat buf
        ],
        compiler_params=pltpu.CompilerParams(dimension_semantics=("parallel",)),
    )(x_nhwc, w1, b1, w2, b2)


# ---------------------------------------------------------------------------
# Parameter construction (deterministic, synthetic) + BN folding
# ---------------------------------------------------------------------------
def make_conv_params(key, cin, cout, eps=1e-3):
    """Conv(1x1)+BN folded: (W [cin,cout] bf16, BN scale folded in; bias [1,cout] f32)."""
    k_w, k_g, k_b, k_m, k_v = jax.random.split(key, 5)
    w = jax.random.normal(k_w, (cin, cout), jnp.float32) * 0.1
    gamma = 1.0 + 0.1 * jax.random.normal(k_g, (cout,), jnp.float32)
    beta = 0.1 * jax.random.normal(k_b, (cout,), jnp.float32)
    running_mean = 0.1 * jax.random.normal(k_m, (cout,), jnp.float32)
    running_var = 1.0 + 0.1 * jax.random.uniform(k_v, (cout,), jnp.float32)
    scale = gamma / jnp.sqrt(running_var + eps)
    bias = beta - running_mean * scale
    w_folded = (w * scale[None, :]).astype(jnp.bfloat16)      # scale folded offline
    return w_folded, bias[None, :].astype(jnp.float32)


# ---------------------------------------------------------------------------
# Pure-JAX reference (same bf16 operand casts; validation only)
# ---------------------------------------------------------------------------
def spp_reference(x_nhwc, params, ks=(5, 9, 13)):
    w1, b1, w2, b2 = params

    def cbs(x, w, b):
        y = jnp.einsum("nhwc,co->nhwo", x.astype(jnp.bfloat16), w,
                       preferred_element_type=jnp.float32) + b[0]
        return y * jax.nn.sigmoid(y)

    y1 = cbs(x_nhwc, w1, b1).astype(jnp.bfloat16)
    y1f = y1.astype(jnp.float32)          # max is exact: f32 pool == bf16 pool
    pools = [y1f]
    for k in ks:
        pools.append(jax.lax.reduce_window(
            y1f, -jnp.inf, jax.lax.max,
            window_dimensions=(1, k, k, 1),
            window_strides=(1, 1, 1, 1),
            padding="SAME"))
    cat = jnp.concatenate(pools, axis=-1).astype(jnp.bfloat16)
    return cbs(cat, w2, b2).astype(jnp.bfloat16)


if __name__ == "__main__":
    key = jax.random.PRNGKey(0)
    kx, k1, k2 = jax.random.split(key, 3)

    # Small but lane/sublane-dense demo shapes: channel dims multiples of 128 and
    # W a multiple of 8 so every store is unmasked and reshapes are relayout-free.
    N, H, W, C1 = 2, 16, 16, 256
    C = C1 // 2            # 128 hidden channels (cv1 output)
    C2 = 256               # cv2 output channels
    ks = (5, 9, 13)

    x = jax.random.normal(kx, (N, H, W, C1), jnp.float32)     # NHWC end-to-end
    w1, b1 = make_conv_params(k1, C1, C)
    w2, b2 = make_conv_params(k2, C * (len(ks) + 1), C2)
    params = (w1, b1, w2, b2)

    out = jax.block_until_ready(spp_pool_forward(x, params, ks))
    ref = spp_reference(x, params, ks)

    assert out.shape == (N, H, W, C2), out.shape
    o32 = out.astype(jnp.float32)
    r32 = ref.astype(jnp.float32)
    err = float(jnp.max(jnp.abs(o32 - r32)))
    # bf16 matmul operands + bf16 output rounding on both sides -> modest tolerance.
    assert jnp.allclose(o32, r32, atol=2e-2, rtol=2e-2), err
    print("KERNEL_OK")
</pallas_src>

<mosaic_0001>
module attributes {stable_mosaic.version = 11 : i64} {
  func.func @spp_fused_kernel(%arg0: i32, %arg1: memref<1x16x16x256xf32, #tpu.memory_space<vmem>>, %arg2: memref<256x128xbf16, #tpu.memory_space<vmem>>, %arg3: memref<1x128xf32, #tpu.memory_space<vmem>>, %arg4: memref<512x256xbf16, #tpu.memory_space<vmem>>, %arg5: memref<1x256xf32, #tpu.memory_space<vmem>>, %arg6: memref<1x16x16x256xbf16, #tpu.memory_space<vmem>>, %arg7: memref<28x30x128xbf16, #tpu.memory_space<vmem>>, %arg8: memref<256x512xbf16, #tpu.memory_space<vmem>>) attributes {dimension_semantics = [#tpu.dimension_semantics<parallel>], iteration_bounds = array<i64: 2>, scalar_prefetch = 0 : i64, scratch_operands = 2 : i64, tpu.core_type = #tpu.core_type<tc>, window_params = [{transform_indices = @transform_0, window_bounds = array<i64: 1, 16, 16, 256>}, {pipeline_mode = #tpu.pipeline_mode<synchronous>, transform_indices = @transform_1, window_bounds = array<i64: 256, 128>}, {pipeline_mode = #tpu.pipeline_mode<synchronous>, transform_indices = @transform_2, window_bounds = array<i64: 1, 128>}, {pipeline_mode = #tpu.pipeline_mode<synchronous>, transform_indices = @transform_3, window_bounds = array<i64: 512, 256>}, {pipeline_mode = #tpu.pipeline_mode<synchronous>, transform_indices = @transform_4, window_bounds = array<i64: 1, 256>}, {transform_indices = @transform_5, window_bounds = array<i64: 1, 16, 16, 256>}]} {
    %c0 = arith.constant 0 : index
    %c0_0 = arith.constant 0 : index
    %c0_1 = arith.constant 0 : index
    %c0_2 = arith.constant 0 : index
    %0 = vector.load %arg1[%c0, %c0_0, %c0_1, %c0_2] : memref<1x16x16x256xf32, #tpu.memory_space<vmem>>, vector<1x16x16x256xf32>
    %1 = vector.shape_cast %0 : vector<1x16x16x256xf32> to vector<16x16x256xf32>
    %2 = vector.shape_cast %1 : vector<16x16x256xf32> to vector<256x256xf32>
    %3 = arith.truncf %2 : vector<256x256xf32> to vector<256x256xbf16>
    %c0_3 = arith.constant 0 : index
    %c0_4 = arith.constant 0 : index
    %4 = vector.load %arg2[%c0_3, %c0_4] : memref<256x128xbf16, #tpu.memory_space<vmem>>, vector<256x128xbf16>
    %cst = arith.constant dense<0.000000e+00> : vector<256x128xf32>
    %5 = tpu.matmul %3, %4, %cst {dimension_numbers = #tpu.dot_dimension_numbers<[1], [0], [0], [1], [0, 0, 1, 1], [], []>} : vector<256x256xbf16>, vector<256x128xbf16>, vector<256x128xf32> -> vector<256x128xf32>
    %c0_5 = arith.constant 0 : index
    %c0_6 = arith.constant 0 : index
    %6 = vector.load %arg3[%c0_5, %c0_6] : memref<1x128xf32, #tpu.memory_space<vmem>>, vector<1x128xf32>
    %7 = vector.broadcast %6 : vector<1x128xf32> to vector<256x128xf32>
    %8 = arith.addf %5, %7 : vector<256x128xf32>
    %9 = arith.negf %8 : vector<256x128xf32>
    %10 = math.exp %9 : vector<256x128xf32>
    %cst_7 = arith.constant 1.000000e+00 : f32
    %11 = vector.broadcast %cst_7 : f32 to vector<256x128xf32>
    %12 = arith.addf %11, %10 : vector<256x128xf32>
    %13 = arith.divf %11, %12 : vector<256x128xf32>
    %14 = arith.mulf %8, %13 : vector<256x128xf32>
    %15 = arith.truncf %14 : vector<256x128xf32> to vector<256x128xbf16>
    %c0_8 = arith.constant 0 : index
    %c0_9 = arith.constant 0 : index
    %16 = vector.load %arg8[%c0_8, %c0_9] : memref<256x512xbf16, #tpu.memory_space<vmem>>, vector<256x128xbf16>
    tpu.vector_store %arg8[%c0_8, %c0_9], %15 {strides = array<i32>} : memref<256x512xbf16, #tpu.memory_space<vmem>>, vector<256x128xbf16>,
    %cst_10 = arith.constant 0xFF80 : bf16
    %17 = vector.broadcast %cst_10 : bf16 to vector<6x30x128xbf16>
    %c0_11 = arith.constant 0 : index
    %c0_12 = arith.constant 0 : index
    %c0_13 = arith.constant 0 : index
    %18 = vector.load %arg7[%c0_11, %c0_12, %c0_13] : memref<28x30x128xbf16, #tpu.memory_space<vmem>>, vector<6x30x128xbf16>
    tpu.vector_store %arg7[%c0_11, %c0_12, %c0_13], %17 {strides = array<i32>} : memref<28x30x128xbf16, #tpu.memory_space<vmem>>, vector<6x30x128xbf16>,
    %cst_14 = arith.constant 0xFF80 : bf16
    %19 = vector.broadcast %cst_14 : bf16 to vector<6x30x128xbf16>
    %c22 = arith.constant 22 : index
    %c0_15 = arith.constant 0 : index
    %c0_16 = arith.constant 0 : index
    %20 = vector.load %arg7[%c22, %c0_15, %c0_16] : memref<28x30x128xbf16, #tpu.memory_space<vmem>>, vector<6x30x128xbf16>
    tpu.vector_store %arg7[%c22, %c0_15, %c0_16], %19 {strides = array<i32>} : memref<28x30x128xbf16, #tpu.memory_space<vmem>>, vector<6x30x128xbf16>,
    %cst_17 = arith.constant 0xFF80 : bf16
    %21 = vector.broadcast %cst_17 : bf16 to vector<16x8x128xbf16>
    %c6 = arith.constant 6 : index
    %c0_18 = arith.constant 0 : index
    %c0_19 = arith.constant 0 : index
    %22 = vector.load %arg7[%c6, %c0_18, %c0_19] : memref<28x30x128xbf16, #tpu.memory_space<vmem>>, vector<16x8x128xbf16>
    tpu.vector_store %arg7[%c6, %c0_18, %c0_19], %21 {strides = array<i32>} : memref<28x30x128xbf16, #tpu.memory_space<vmem>>, vector<16x8x128xbf16>,
    %cst_20 = arith.constant 0xFF80 : bf16
    %23 = vector.broadcast %cst_20 : bf16 to vector<16x6x128xbf16>
    %c6_21 = arith.constant 6 : index
    %c24 = arith.constant 24 : index
    %c0_22 = arith.constant 0 : index
    %24 = vector.load %arg7[%c6_21, %c24, %c0_22] : memref<28x30x128xbf16, #tpu.memory_space<vmem>>, vector<16x6x128xbf16>
    tpu.vector_store %arg7[%c6_21, %c24, %c0_22], %23 {strides = array<i32>} : memref<28x30x128xbf16, #tpu.memory_space<vmem>>, vector<16x6x128xbf16>,
    %25 = vector.shape_cast %15 : vector<256x128xbf16> to vector<16x16x128xbf16>
    %c6_23 = arith.constant 6 : index
    %c8 = arith.constant 8 : index
    %c0_24 = arith.constant 0 : index
    %26 = vector.load %arg7[%c6_23, %c8, %c0_24] : memref<28x30x128xbf16, #tpu.memory_space<vmem>>, vector<16x16x128xbf16>
    tpu.vector_store %arg7[%c6_23, %c8, %c0_24], %25 {strides = array<i32>} : memref<28x30x128xbf16, #tpu.memory_space<vmem>>, vector<16x16x128xbf16>,
    %c0_25 = arith.constant 0 : index
    %c0_26 = arith.constant 0 : index
    %c0_27 = arith.constant 0 : index
    %27 = vector.load %arg7[%c0_25, %c0_26, %c0_27] : memref<28x30x128xbf16, #tpu.memory_space<vmem>>, vector<28x26x128xbf16>
    %c0_28 = arith.constant 0 : index
    %c1 = arith.constant 1 : index
    %c0_29 = arith.constant 0 : index
    %28 = vector.load %arg7[%c0_28, %c1, %c0_29] : memref<28x30x128xbf16, #tpu.memory_space<vmem>>, vector<28x26x128xbf16>
    %29 = arith.maximumf %27, %28 : vector<28x26x128xbf16>
    %c0_30 = arith.constant 0 : index
    %c2 = arith.constant 2 : index
    %c0_31 = arith.constant 0 : index
    %30 = vector.load %arg7[%c0_30, %c2, %c0_31] : memref<28x30x128xbf16, #tpu.memory_space<vmem>>, vector<28x26x128xbf16>
    %31 = arith.maximumf %29, %30 : vector<28x26x128xbf16>
    %c0_32 = arith.constant 0 : index
    %c3 = arith.constant 3 : index
    %c0_33 = arith.constant 0 : index
    %32 = vector.load %arg7[%c0_32, %c3, %c0_33] : memref<28x30x128xbf16, #tpu.memory_space<vmem>>, vector<28x26x128xbf16>
    %33 = arith.maximumf %31, %32 : vector<28x26x128xbf16>
    %c0_34 = arith.constant 0 : index
    %c4 = arith.constant 4 : index
    %c0_35 = arith.constant 0 : index
    %34 = vector.load %arg7[%c0_34, %c4, %c0_35] : memref<28x30x128xbf16, #tpu.memory_space<vmem>>, vector<28x26x128xbf16>
    %35 = arith.maximumf %33, %34 : vector<28x26x128xbf16>
    %36 = vector.extract_strided_slice %35 {offsets = [0, 6, 0], sizes = [28, 16, 128], strides = [1, 1, 1]} : vector<28x26x128xbf16> to vector<28x16x128xbf16>
    %37 = vector.extract_strided_slice %36 {offsets = [4, 0, 0], sizes = [16, 16, 128], strides = [1, 1, 1]} : vector<28x16x128xbf16> to vector<16x16x128xbf16>
    %38 = vector.extract_strided_slice %36 {offsets = [5, 0, 0], sizes = [16, 16, 128], strides = [1, 1, 1]} : vector<28x16x128xbf16> to vector<16x16x128xbf16>
    %39 = arith.maximumf %37, %38 : vector<16x16x128xbf16>
    %40 = vector.extract_strided_slice %36 {offsets = [6, 0, 0], sizes = [16, 16, 128], strides = [1, 1, 1]} : vector<28x16x128xbf16> to vector<16x16x128xbf16>
    %41 = arith.maximumf %39, %40 : vector<16x16x128xbf16>
    %42 = vector.extract_strided_slice %36 {offsets = [7, 0, 0], sizes = [16, 16, 128], strides = [1, 1, 1]} : vector<28x16x128xbf16> to vector<16x16x128xbf16>
    %43 = arith.maximumf %41, %42 : vector<16x16x128xbf16>
    %44 = vector.extract_strided_slice %36 {offsets = [8, 0, 0], sizes = [16, 16, 128], strides = [1, 1, 1]} : vector<28x16x128xbf16> to vector<16x16x128xbf16>
    %45 = arith.maximumf %43, %44 : vector<16x16x128xbf16>
    %46 = vector.shape_cast %45 : vector<16x16x128xbf16> to vector<256x128xbf16>
    %c0_36 = arith.constant 0 : index
    %c128 = arith.constant 128 : index
    %47 = vector.load %arg8[%c0_36, %c128] : memref<256x512xbf16, #tpu.memory_space<vmem>>, vector<256x128xbf16>
    tpu.vector_store %arg8[%c0_36, %c128], %46 {strides = array<i32>} : memref<256x512xbf16, #tpu.memory_space<vmem>>, vector<256x128xbf16>,
    %48 = vector.extract_strided_slice %35 {offsets = [0, 4, 0], sizes = [28, 16, 128], strides = [1, 1, 1]} : vector<28x26x128xbf16> to vector<28x16x128xbf16>
    %49 = vector.extract_strided_slice %35 {offsets = [0, 8, 0], sizes = [28, 16, 128], strides = [1, 1, 1]} : vector<28x26x128xbf16> to vector<28x16x128xbf16>
    %50 = arith.maximumf %48, %49 : vector<28x16x128xbf16>
    %51 = vector.extract_strided_slice %50 {offsets = [2, 0, 0], sizes = [20, 16, 128], strides = [1, 1, 1]} : vector<28x16x128xbf16> to vector<20x16x128xbf16>
    %52 = vector.extract_strided_slice %50 {offsets = [3, 0, 0], sizes = [20, 16, 128], strides = [1, 1, 1]} : vector<28x16x128xbf16> to vector<20x16x128xbf16>
    %53 = arith.maximumf %51, %52 : vector<20x16x128xbf16>
    %54 = vector.extract_strided_slice %50 {offsets = [4, 0, 0], sizes = [20, 16, 128], strides = [1, 1, 1]} : vector<28x16x128xbf16> to vector<20x16x128xbf16>
    %55 = arith.maximumf %53, %54 : vector<20x16x128xbf16>
    %56 = vector.extract_strided_slice %50 {offsets = [5, 0, 0], sizes = [20, 16, 128], strides = [1, 1, 1]} : vector<28x16x128xbf16> to vector<20x16x128xbf16>
    %57 = arith.maximumf %55, %56 : vector<20x16x128xbf16>
    %58 = vector.extract_strided_slice %50 {offsets = [6, 0, 0], sizes = [20, 16, 128], strides = [1, 1, 1]} : vector<28x16x128xbf16> to vector<20x16x128xbf16>
    %59 = arith.maximumf %57, %58 : vector<20x16x128xbf16>
    %60 = vector.extract_strided_slice %59 {offsets = [0, 0, 0], sizes = [16, 16, 128], strides = [1, 1, 1]} : vector<20x16x128xbf16> to vector<16x16x128xbf16>
    %61 = vector.extract_strided_slice %59 {offsets = [4, 0, 0], sizes = [16, 16, 128], strides = [1, 1, 1]} : vector<20x16x128xbf16> to vector<16x16x128xbf16>
    %62 = arith.maximumf %60, %61 : vector<16x16x128xbf16>
    %63 = vector.shape_cast %62 : vector<16x16x128xbf16> to vector<256x128xbf16>
    %c0_37 = arith.constant 0 : index
    %c256 = arith.constant 256 : index
    %64 = vector.load %arg8[%c0_37, %c256] : memref<256x512xbf16, #tpu.memory_space<vmem>>, vector<256x128xbf16>
    tpu.vector_store %arg8[%c0_37, %c256], %63 {strides = array<i32>} : memref<256x512xbf16, #tpu.memory_space<vmem>>, vector<256x128xbf16>,
    %65 = vector.extract_strided_slice %35 {offsets = [0, 2, 0], sizes = [28, 16, 128], strides = [1, 1, 1]} : vector<28x26x128xbf16> to vector<28x16x128xbf16>
    %66 = vector.extract_strided_slice %35 {offsets = [0, 6, 0], sizes = [28, 16, 128], strides = [1, 1, 1]} : vector<28x26x128xbf16> to vector<28x16x128xbf16>
    %67 = arith.maximumf %65, %66 : vector<28x16x128xbf16>
    %68 = vector.extract_strided_slice %35 {offsets = [0, 10, 0], sizes = [28, 16, 128], strides = [1, 1, 1]} : vector<28x26x128xbf16> to vector<28x16x128xbf16>
    %69 = arith.maximumf %67, %68 : vector<28x16x128xbf16>
    %70 = vector.extract_strided_slice %69 {offsets = [0, 0, 0], sizes = [24, 16, 128], strides = [1, 1, 1]} : vector<28x16x128xbf16> to vector<24x16x128xbf16>
    %71 = vector.extract_strided_slice %69 {offsets = [1, 0, 0], sizes = [24, 16, 128], strides = [1, 1, 1]} : vector<28x16x128xbf16> to vector<24x16x128xbf16>
    %72 = arith.maximumf %70, %71 : vector<24x16x128xbf16>
    %73 = vector.extract_strided_slice %69 {offsets = [2, 0, 0], sizes = [24, 16, 128], strides = [1, 1, 1]} : vector<28x16x128xbf16> to vector<24x16x128xbf16>
    %74 = arith.maximumf %72, %73 : vector<24x16x128xbf16>
    %75 = vector.extract_strided_slice %69 {offsets = [3, 0, 0], sizes = [24, 16, 128], strides = [1, 1, 1]} : vector<28x16x128xbf16> to vector<24x16x128xbf16>
    %76 = arith.maximumf %74, %75 : vector<24x16x128xbf16>
    %77 = vector.extract_strided_slice %69 {offsets = [4, 0, 0], sizes = [24, 16, 128], strides = [1, 1, 1]} : vector<28x16x128xbf16> to vector<24x16x128xbf16>
    %78 = arith.maximumf %76, %77 : vector<24x16x128xbf16>
    %79 = vector.extract_strided_slice %78 {offsets = [0, 0, 0], sizes = [16, 16, 128], strides = [1, 1, 1]} : vector<24x16x128xbf16> to vector<16x16x128xbf16>
    %80 = vector.extract_strided_slice %78 {offsets = [4, 0, 0], sizes = [16, 16, 128], strides = [1, 1, 1]} : vector<24x16x128xbf16> to vector<16x16x128xbf16>
    %81 = arith.maximumf %79, %80 : vector<16x16x128xbf16>
    %82 = vector.extract_strided_slice %78 {offsets = [8, 0, 0], sizes = [16, 16, 128], strides = [1, 1, 1]} : vector<24x16x128xbf16> to vector<16x16x128xbf16>
    %83 = arith.maximumf %81, %82 : vector<16x16x128xbf16>
    %84 = vector.shape_cast %83 : vector<16x16x128xbf16> to vector<256x128xbf16>
    %c0_38 = arith.constant 0 : index
    %c384 = arith.constant 384 : index
    %85 = vector.load %arg8[%c0_38, %c384] : memref<256x512xbf16, #tpu.memory_space<vmem>>, vector<256x128xbf16>
    tpu.vector_store %arg8[%c0_38, %c384], %84 {strides = array<i32>} : memref<256x512xbf16, #tpu.memory_space<vmem>>, vector<256x128xbf16>,
    %c0_39 = arith.constant 0 : index
    %c0_40 = arith.constant 0 : index
    %86 = vector.load %arg8[%c0_39, %c0_40] : memref<256x512xbf16, #tpu.memory_space<vmem>>, vector<256x512xbf16>
    %c0_41 = arith.constant 0 : index
    %c0_42 = arith.constant 0 : index
    %87 = vector.load %arg4[%c0_41, %c0_42] : memref<512x256xbf16, #tpu.memory_space<vmem>>, vector<512x256xbf16>
    %cst_43 = arith.constant dense<0.000000e+00> : vector<256x256xf32>
    %88 = tpu.matmul %86, %87, %cst_43 {dimension_numbers = #tpu.dot_dimension_numbers<[1], [0], [0], [1], [0, 0, 1, 1], [], []>} : vector<256x512xbf16>, vector<512x256xbf16>, vector<256x256xf32> -> vector<256x256xf32>
    %c0_44 = arith.constant 0 : index
    %c0_45 = arith.constant 0 : index
    %89 = vector.load %arg5[%c0_44, %c0_45] : memref<1x256xf32, #tpu.memory_space<vmem>>, vector<1x256xf32>
    %90 = vector.broadcast %89 : vector<1x256xf32> to vector<256x256xf32>
    %91 = arith.addf %88, %90 : vector<256x256xf32>
    %92 = arith.negf %91 : vector<256x256xf32>
    %93 = math.exp %92 : vector<256x256xf32>
    %cst_46 = arith.constant 1.000000e+00 : f32
    %94 = vector.broadcast %cst_46 : f32 to vector<256x256xf32>
    %95 = arith.addf %94, %93 : vector<256x256xf32>
    %96 = arith.divf %94, %95 : vector<256x256xf32>
    %97 = arith.mulf %91, %96 : vector<256x256xf32>
    %98 = vector.shape_cast %97 : vector<256x256xf32> to vector<16x16x256xf32>
    %99 = arith.truncf %98 : vector<16x16x256xf32> to vector<16x16x256xbf16>
    %c0_47 = arith.constant 0 : index
    %c0_48 = arith.constant 0 : index
    %c0_49 = arith.constant 0 : index
    %c0_50 = arith.constant 0 : index
    %100 = vector.load %arg6[%c0_47, %c0_48, %c0_49, %c0_50] : memref<1x16x16x256xbf16, #tpu.memory_space<vmem>>, vector<1x16x16x256xbf16>
    %101 = vector.shape_cast %100 : vector<1x16x16x256xbf16> to vector<16x16x256xbf16>
    %102 = vector.shape_cast %99 : vector<16x16x256xbf16> to vector<1x16x16x256xbf16>
    tpu.vector_store %arg6[%c0_47, %c0_48, %c0_49, %c0_50], %102 {strides = array<i32>} : memref<1x16x16x256xbf16, #tpu.memory_space<vmem>>, vector<1x16x16x256xbf16>,
    return
  }
  func.func @transform_0(%arg0: i32) -> (i32, i32, i32, i32) {
    %c0_i32 = arith.constant 0 : i32
    %c0_i32_0 = arith.constant 0 : i32
    %c0_i32_1 = arith.constant 0 : i32
    %c0_i32_2 = arith.constant 0 : i32
    return %arg0, %c0_i32, %c0_i32_0, %c0_i32_1 : i32, i32, i32, i32
  }
  func.func @transform_1(%arg0: i32) -> (i32, i32) {
    %c0_i32 = arith.constant 0 : i32
    %c0_i32_0 = arith.constant 0 : i32
    %c0_i32_1 = arith.constant 0 : i32
    return %c0_i32, %c0_i32_0 : i32, i32
  }
  func.func @transform_2(%arg0: i32) -> (i32, i32) {
    %c0_i32 = arith.constant 0 : i32
    %c0_i32_0 = arith.constant 0 : i32
    %c0_i32_1 = arith.constant 0 : i32
    return %c0_i32, %c0_i32_0 : i32, i32
  }
  func.func @transform_3(%arg0: i32) -> (i32, i32) {
    %c0_i32 = arith.constant 0 : i32
    %c0_i32_0 = arith.constant 0 : i32
    %c0_i32_1 = arith.constant 0 : i32
    return %c0_i32, %c0_i32_0 : i32, i32
  }
  func.func @transform_4(%arg0: i32) -> (i32, i32) {
    %c0_i32 = arith.constant 0 : i32
    %c0_i32_0 = arith.constant 0 : i32
    %c0_i32_1 = arith.constant 0 : i32
    return %c0_i32, %c0_i32_0 : i32, i32
  }
  func.func @transform_5(%arg0: i32) -> (i32, i32, i32, i32) {
    %c0_i32 = arith.constant 0 : i32
    %c0_i32_0 = arith.constant 0 : i32
    %c0_i32_1 = arith.constant 0 : i32
    %c0_i32_2 = arith.constant 0 : i32
    return %arg0, %c0_i32, %c0_i32_0, %c0_i32_1 : i32, i32, i32, i32
  }
}

</mosaic_0001>

<bundles_post_ra>
// kernel: tpu_custom_call.1
= control target key start
LH: loop header
LB: loop body
LE: loop exit
PB: predicated region body
PF: predicated region fallthrough
CT: control target
= control target key end

     0   :  { %10 = vsyncpa [#allocation5], 0  ;;  %s17680_s0 = inlined_call_operand.hbm [shape: f32[2,16,16,256], index: 0, kind: input, shape index: {}]   ;;  %s17681_s1 = inlined_call_operand.hbm [shape: bf16[256,128], index: 1, kind: input, shape index: {}]   ;;  %s17682_s2 = inlined_call_operand.vmem [shape: f32[1,128], index: 2, kind: input, shape index: {}]   ;;  %s17683_s3 = inlined_call_operand.hbm [shape: bf16[512,256], index: 3, kind: input, shape index: {}]   ;;  %s17684_s4 = inlined_call_operand.vmem [shape: f32[1,256], index: 4, kind: input, shape index: {}]   ;;  %s17685_s5 = inlined_call_operand.hbm [shape: bf16[2,16,16,256], index: 5, kind: output, shape index: {}]  }
   0x1   :  { %12 = vsyncpa [#allocation5 + $0x1], 0 }
   0x2   :  { %13 = vsyncpa [#allocation8], 0 }
   0x3   :  { %14 = vsyncpa [#allocation6], 0 }
   0x4   :  { %16 = vsyncpa [#allocation6 + $0x1], 0  ;;  %s10388_s18 = smov 0   ;;  %s10390_s19 = smov 0  }
   0x5   :  { %s10392_s20 = smov 0   ;;  %s10394_s21 = smov 0  }
   0x6 LB: > { %s10409_s22 = sadd.s32 4294967295, %s10343_s21   ;;  %s8787_s23 = sadd.s32 4294967294, %s10343_s21   ;;  %s10343_s21 = sphi %s10394_s21, %s20233_s21   ;;  %s10339_s20 = sphi %s10392_s20, %s20232_s20   ;;  %s10335_s19 = sphi %s10390_s19, %s20231_s19   ;;  %s10331_s18 = sphi %s10388_s18, %s20230_s18  }
   0x7   : > { %p42_p0 = scmp.ne.s32.totalorder %s10335_s19, %s10331_s18  ;;  %p17686_p1 = scmp.eq.s32.totalorder %s10409_s22, 0 }
   0x8   : > { %p156_p3 = scmp.eq.s32.totalorder %s8787_s23, 1  ;;  %p8788_p5 = scmp.ge.s32.totalorder %s10343_s21, 1 }
   0x9   : > { %p10418_p4 = por %p17686_p1, %p42_p0  ;;  %p163_p7 = scmp.lt.s32.totalorder %s10343_s21, 3 }
   0xa   : > { %p10423_p6 = por %p156_p3, %p42_p0  ;;  %s10345_s27 = smov [#allocation7]  }
   0xb   : > { %s18472_s24 = scalar_select %p10418_p4, 1, 0 }
   0xc   : > { %s18473_s25 = scalar_select %p10423_p6, 1, 0 }
   0xd   : > { %p10428_p8 = pnand %p8788_p5, %p163_p7  ;;  %s175_s28 = sshll.u32 %s10345_s27, 4  ;;  %s10432_s28 = int_to_ptr.vmem [resolvable:$true] %s175_s28 }
   0xe   : > { %s10346_s30 = smov [#allocation9]   ;;  %s10187_s9 = scalar_lea.hbm %s17681_s1, 2048 }
   0xf   : > { %p9576_p9 = pneg %p10428_p8  ;;  %s191_s6 = sshll.u32 %s10346_s30, 4  ;;  %s10443_s6 = int_to_ptr.vmem [resolvable:$true] %s191_s6 }
  0x10   : > { %p10188_p12 = scmp.ne.s32.totalorder %s17681_s1, %s10187_s9  ;;  %p10194_p5 = scmp.lt.u32.totalorder %s10187_s9, %s17681_s1 }
  0x11   : > { %p10439_p11 = pnand %p9576_p9, %p17686_p1 }
  0x13   : > { %p10189_p13 = pneg %p10439_p11 }
  0x15   : > { %p10190_p0 = pnand %p10189_p13, %p10188_p12 }
  0x17   : > { %p10191_p3 = pneg %p10190_p0 }
  0x19   : > { %p10196_p7 = pnand %p10194_p5, %p10191_p3 }
  0x1b   : > { %10199 = shalt.err (!%p10196_p7)
}
  0x1c   : > { %s10200_s14 = scalar_lea.vmem %s10432_s28, 2048  ;;  %p10208_p2 = scmp.lt.s32.totalorder %s10432_s28, %s10432_s28 }
  0x1d   : > { %p10201_p9 = scmp.ne.s32.totalorder %s10432_s28, %s10200_s14  ;;  %p10209_p12 = scmp.lt.s32.totalorder %s10200_s14, %s10200_s14 }
  0x1f   : > { %p10203_p10 = pnand %p10201_p9, %p10189_p13  ;;  %p10210_p0 = por %p10209_p12, %p10208_p2 }
  0x21   : > { %p10204_p1 = pneg %p10203_p10 }
  0x23   : > { %p10211_p6 = pnand %p10210_p0, %p10204_p1 }
  0x25   : > { %10214 = shalt.err (!%p10211_p6)
}
  0x26   : > { %s10347_s15 = smov 64   ;;  %s10348_s16 = smov 4  }
  0x27   : > { %9579 = dma.hbm_to_vmem [thread:$0]  (!%p10439_p11), %s17681_s1, 2048, %s10432_s28, [#allocation8], %s10347_s15, %s10347_s15, %s10348_s16  }
  0x28   : > { %s10215_s7 = scalar_lea.hbm %s17683_s3, 8192 }
  0x29   : > { %p10216_p2 = scmp.ne.s32.totalorder %s17683_s3, %s10215_s7  ;;  %p10222_p10 = scmp.lt.u32.totalorder %s10215_s7, %s17683_s3 }
  0x2b   : > { %p10218_p1 = pnand %p10216_p2, %p10189_p13 }
  0x2d   : > { %p10219_p6 = pneg %p10218_p1 }
  0x2f   : > { %p10224_p3 = pnand %p10222_p10, %p10219_p6 }
  0x31   : > { %10227 = shalt.err (!%p10224_p3)
}
  0x32   : > { %s10228_s28 = scalar_lea.vmem %s10443_s6, 8192  ;;  %p10236_p12 = scmp.lt.s32.totalorder %s10443_s6, %s10443_s6 }
  0x33   : > { %p10229_p5 = scmp.ne.s32.totalorder %s10443_s6, %s10228_s28  ;;  %p10237_p0 = scmp.lt.s32.totalorder %s10228_s28, %s10228_s28 }
  0x35   : > { %p10231_p7 = pnand %p10229_p5, %p10189_p13  ;;  %p10238_p2 = por %p10237_p0, %p10236_p12 }
  0x37   : > { %p10232_p9 = pneg %p10231_p7 }
  0x39   : > { %p10239_p1 = pnand %p10238_p2, %p10232_p9 }
  0x3b   : > { %10242 = shalt.err (!%p10239_p1)
}
  0x3c   : > { %s10349_s12 = smov 128   ;;  %s10350_s13 = smov 8  }
  0x3d   : > { %9582 = dma.hbm_to_vmem [thread:$0]  (!%p10439_p11), %s17683_s3, 8192, %s10443_s6, [#allocation8], %s10349_s12, %s10349_s12, %s10350_s13  }
  0x3e   : > { %s10498_s16 = sadd.s32 1, %s10343_s21   ;;  %s29_s23 = sadd.s32 1, %s10339_s20 }
  0x3f   : > { %s26_s17 = ssub.s32 %s10343_s21, %s10498_s16  ;;  %p36_p6 = scmp.ne.s32.totalorder %s10339_s20, %s10335_s19 }
  0x40   : > { %p27_p13 = scmp.eq.s32.totalorder %s26_s17, 0  ;;  %p37_p10 = scmp.eq.s32.totalorder %s10343_s21, 0 }
  0x41   : > { %p18476_p5 = scmp.eq.s32.totalorder %s10409_s22, 1  ;;  %p9593_p9 = scmp.lt.s32.totalorder %s10343_s21, 2 }
  0x42   : > { %s10507_s27 = scalar_select %p27_p13, %s10339_s20, %s29_s23  }
  0x43   : > { %p38_p3 = por %p37_p10, %p36_p6  ;;  %p10511_p7 = por %p18476_p5, %p36_p6 }
  0x44   : > { %s208_s29 = sand.u32 1, %s10339_s20   ;;  %s9226_s6 = sshll.u32 %s10343_s21, 13 }
  0x45   : > { %s18477_s30 = scalar_select %p10511_p7, 1, 0 }
  0x46   : > { %s8792_s7 = sshll.u32 %s208_s29, 9  ;;  %s10521_s10 = scalar_lea.hbm %s17680_s0, %s9226_s6 }
  0x47   : > { %s212_s11 = scalar_lea.vmem [#allocation4], %s8792_s7  ;;  %p10525_p11 = pnand %p9593_p9, %p38_p3 }
  0x48   : > { %s219_s28 = sshll.u32 %s212_s11, 4  ;;  %s10529_s13 = scalar_lea.sflag [#allocation5], %s208_s29  ;;  %s10523_s28 = int_to_ptr.vmem [resolvable:$true] %s219_s28 }
  0x49   : > { %s10243_s14 = scalar_lea.hbm %s10521_s10, 8192  ;;  %p10245_p0 = pneg %p10525_p11 }
  0x4a   : > { %p10244_p12 = scmp.ne.s32.totalorder %s10521_s10, %s10243_s14  ;;  %s10248_s23 = scalar_lea.hbm %s17680_s0, 16384 }
  0x4b   : > { %p10249_p13 = scmp.lt.u32.totalorder %s10521_s10, %s17680_s0  ;;  %p10250_p6 = scmp.lt.u32.totalorder %s10248_s23, %s10243_s14 }
  0x4c   : > { %p10246_p2 = pnand %p10245_p0, %p10244_p12  ;;  %p10252_p3 = scmp.lt.u32.totalorder %s10243_s14, %s10521_s10 }
  0x4d   : > { %p10251_p10 = por %p10250_p6, %p10249_p13 }
  0x4e   : > { %p10247_p1 = pneg %p10246_p2 }
  0x4f   : > { %p10253_p5 = por %p10252_p3, %p10251_p10 }
  0x51   : > { %p10254_p9 = pnand %p10253_p5, %p10247_p1 }
  0x53   : > { %10257 = shalt.err (!%p10254_p9)
}
  0x54   : > { %s10258_s29 = scalar_lea.vmem %s10523_s28, 8192  ;;  %s10351_s8 = smov [#allocation4]  }
  0x55   : > { %p10259_p12 = scmp.ne.s32.totalorder %s10523_s28, %s10258_s29  ;;  %s10263_s9 = sshll.u32 %s10351_s8, 4  ;;  %s10264_s9 = int_to_ptr.vmem [resolvable:$false] %s10263_s9 }
  0x56   : > { %s10265_s11 = scalar_lea.vmem %s10264_s9, 16384  ;;  %p10266_p4 = scmp.lt.s32.totalorder %s10523_s28, %s10264_s9 }
  0x57   : > { %p10261_p2 = pnand %p10259_p12, %p10245_p0  ;;  %p10267_p13 = scmp.lt.s32.totalorder %s10265_s11, %s10258_s29 }
  0x59   : > { %p10262_p7 = pneg %p10261_p2  ;;  %p10268_p6 = por %p10267_p13, %p10266_p4 }
  0x5b   : > { %p10269_p10 = pnand %p10268_p6, %p10262_p7 }
  0x5d   : > { %10272 = shalt.err (!%p10269_p10)
}
  0x5e   : > { %s10352_s14 = smov 256   ;;  %s10353_s15 = smov 16  }
  0x5f   : > { %9586 = dma.hbm_to_vmem [thread:$0]  (!%p10525_p11), %s10521_s10, 8192, %s10523_s28, %s10529_s13, %s10352_s14, %s10352_s14, %s10353_s15  }
  0x60   : > { %231 = sbr.rel (%p10428_p8) target bundleno = 1715 (0x6b3), region = 40 }
  0x67   : > { %s10560_s17 = sand.u32 1, %s10335_s19   ;;  %p18479_p4 = scmp.ne.s32.totalorder %s18472_s24, 0 }
  0x68   : > { %s8796_s23 = sshll.u32 %s10560_s17, 9  ;;  %s234_s7 = scalar_lea.sflag [#allocation5], %s10560_s17 }
  0x69   : > { %s10564_s6 = scalar_lea.vmem [#allocation4], %s8796_s23 }
  0x6a   : > { %10318 = dma.done.wait (%p18479_p4), %s234_s7, 8192  }
  0x6b   : > { %10320 = vsyncadd (%p18479_p4), %s234_s7, 4294959104  ;;  %p18480_p7 = scmp.eq.s32.totalorder %s10409_s22, 0 }
  0x6d   : > { %10322 = dma.done.wait (%p18480_p7), [#allocation8], 10240   ;;  %p18481_p8 = pmov %p18480_p7 }
  0x6e   : > { %v9640_v0 = vld [vmem:[#allocation7 + $0x40] sm:$0xff]   ;;  %v9642_v2 = vld [vmem:[#allocation7 + $0x48] sm:$0xff]   ;;  %v9644_v4 = vld [vmem:[#allocation7 + $0x50] sm:$0xff]   ;;  %vm1288_vm0 = vsmask.f32 3328  ;;  %vm2747_vm3 = vcmask 1042432  }
  0x6f   : > { %10324 = vsyncadd (%p18481_p8), [#allocation8], 4294957056  ;;  %v9641_v1 = vld [vmem:[#allocation7] sm:$0xff]   ;;  %9292 = vmatprep.subr.bf16.mxu0 %v9640_v0  ;;  %v9643_v3 = vld [vmem:[#allocation7 + $0x8] sm:$0xff]   ;;  %vm1289_vm1 = vsmask.f32 7440 }
  0x70   : > { %9293 = vmatpush3.bf16.msra.mxu0 %v9641_v1  ;;  %v9645_v5 = vld [vmem:[#allocation7 + $0x10] sm:$0xff]   ;;  %v9646_v6 = vld [vmem:[#allocation7 + $0x58] sm:$0xff]   ;;  %v9648_v8 = vld [vmem:[#allocation7 + $0x60] sm:$0xff]   ;;  %vm2748_vm4 = vcmask 1046532   ;;  %vm3310_vm6 = vsmask.f32 2304 }
  0x71   : > { %9294 = vmatprep.subr.bf16.mxu0 %v9642_v2  ;;  %v9647_v7 = vld [vmem:[#allocation7 + $0x18] sm:$0xff]   ;;  %v9649_v9 = vld [vmem:[#allocation7 + $0x20] sm:$0xff]   ;;  %v9650_v10 = vld [vmem:[#allocation7 + $0x68] sm:$0xff]   ;;  %vm3311_vm7 = vsmask.f32 6416  ;;  %vm4433_vm9 = vcmask 1041408  }
  0x72   : > { %v275_v11 = vld [vmem:[%s10564_s6 + $0x8] sm:$0xff]  ;;  %v277_v12 = vld [vmem:[%s10564_s6 + $0x18] sm:$0xff]  ;;  %v9652_v15 = vld [vmem:[#allocation7 + $0x70] sm:$0xff]   ;;  %vm4434_vm10 = vcmask 1045508   ;;  %vm5208_vm12 = vcmask 1040384   ;;  %vm5209_vm13 = vcmask 1044484  }
  0x73   : > { %v339_v13 = vpack.c.bf16 %v277_v12, %v275_v11  ;;  %v9651_v14 = vld [vmem:[#allocation7 + $0x28] sm:$0xff]   ;;  %v9653_v16 = vld [vmem:[#allocation7 + $0x30] sm:$0xff]   ;;  %v9654_v17 = vld [vmem:[#allocation7 + $0x78] sm:$0xff]   ;;  %s8799_s9 = sshll.u32 %s10560_s17, 8  ;;  %s9291_s14 = sshll.u32 %s10409_s22, 12 }
  0x74   : > { %9295 = vmatpush3.bf16.msra.mxu0 %v9643_v3  ;;  %v9655_v18 = vld [vmem:[#allocation7 + $0x38] sm:$0xff]   ;;  %v274_v19 = vld [vmem:[%s10564_s6] sm:$0xff]  ;;  %v276_v20 = vld [vmem:[%s10564_s6 + $0x10] sm:$0xff]  ;;  %s17447_s11 = scalar_lea.vmem [#allocation10], %s8799_s9  ;;  %s8682_s24 = scalar_lea.sflag [#allocation6], %s10560_s17 }
  0x75   : > { %9296 = vmatprep.subr.bf16.mxu0 %v9644_v4  ;;  %537 = vmatprep.mubr.bf16.mxu0 %v339_v13  ;;  %v279_v21 = vld [vmem:[%s10564_s6 + $0x28] sm:$0xff]  ;;  %v281_v22 = vld [vmem:[%s10564_s6 + $0x38] sm:$0xff]  ;;  %v338_v23 = vpack.c.bf16 %v276_v20, %v274_v19  ;;  %v278_v25 = vld [vmem:[%s10564_s6 + $0x20] sm:$0xff]  ;;  %s8695_s15 = sshll.u32 %s17447_s11, 4  ;;  %p20227_p0 = scmp.ne.s32.totalorder %s18477_s30, 0  ;;  %s17634_s15 = int_to_ptr.vmem [resolvable:$true] %s8695_s15 }
  0x76   : > { %v341_v24 = vpack.c.bf16 %v281_v22, %v279_v21  ;;  %v280_v26 = vld [vmem:[%s10564_s6 + $0x30] sm:$0xff]  ;;  %v283_v27 = vld [vmem:[%s10564_s6 + $0x48] sm:$0xff]  ;;  %v285_v28 = vld [vmem:[%s10564_s6 + $0x58] sm:$0xff]  ;;  %s10273_s22 = scalar_lea.vmem %s17634_s15, 4096  ;;  %s10355_s26 = smov [#allocation10]  }
  0x77   : > { %v340_v29 = vpack.c.bf16 %v280_v26, %v278_v25  ;;  %v343_v30 = vpack.c.bf16 %v285_v28, %v283_v27  ;;  %v282_v31 = vld [vmem:[%s10564_s6 + $0x40] sm:$0xff]  ;;  %v284_v32 = vld [vmem:[%s10564_s6 + $0x50] sm:$0xff]  ;;  %v287_v33 = vld [vmem:[%s10564_s6 + $0x68] sm:$0xff]  ;;  %p10274_p11 = scmp.ne.s32.totalorder %s17634_s15, %s10273_s22  ;;  %s10277_s10 = sshll.u32 %s10355_s26, 4  ;;  %s10278_s10 = int_to_ptr.vmem [resolvable:$false] %s10277_s10 }
  0x78   : > { %9297 = vmatpush3.bf16.msra.mxu0 %v9645_v5  ;;  %v289_v34 = vld [vmem:[%s10564_s6 + $0x78] sm:$0xff]  ;;  %v342_v35 = vpack.c.bf16 %v284_v32, %v282_v31  ;;  %v286_v37 = vld [vmem:[%s10564_s6 + $0x60] sm:$0xff]  ;;  %v288_v38 = vld [vmem:[%s10564_s6 + $0x70] sm:$0xff]  ;;  %s10279_s28 = scalar_lea.vmem %s10278_s10, 8192  ;;  %p10280_p5 = scmp.lt.s32.totalorder %s17634_s15, %s10278_s10 }
  0x79   : > { %9298 = vmatprep.subr.bf16.mxu0 %v9646_v6  ;;  %v345_v36 = vpack.c.bf16 %v289_v34, %v287_v33  ;;  %v291_v39 = vld [vmem:[%s10564_s6 + $0x88] sm:$0xff]  ;;  %v293_v40 = vld [vmem:[%s10564_s6 + $0x98] sm:$0xff]  ;;  %v344_v41 = vpack.c.bf16 %v288_v38, %v286_v37  ;;  %v290_v43 = vld [vmem:[%s10564_s6 + $0x80] sm:$0xff]  ;;  %p10275_p1 = pnand %p10274_p11, %p20227_p0  ;;  %p10281_p9 = scmp.lt.s32.totalorder %s10279_s28, %s10273_s22 }
  0x7a   : > { %v347_v42 = vpack.c.bf16 %v293_v40, %v291_v39  ;;  %v292_v44 = vld [vmem:[%s10564_s6 + $0x90] sm:$0xff]  ;;  %v295_v45 = vld [vmem:[%s10564_s6 + $0xa8] sm:$0xff]  ;;  %v297_v46 = vld [vmem:[%s10564_s6 + $0xb8] sm:$0xff] }
  0x7b   : > { %v346_v47 = vpack.c.bf16 %v292_v44, %v290_v43  ;;  %v349_v48 = vpack.c.bf16 %v297_v46, %v295_v45  ;;  %v294_v49 = vld [vmem:[%s10564_s6 + $0xa0] sm:$0xff]  ;;  %v296_v50 = vld [vmem:[%s10564_s6 + $0xb0] sm:$0xff]  ;;  %v299_v51 = vld [vmem:[%s10564_s6 + $0xc8] sm:$0xff]  ;;  %p10276_p3 = pneg %p10275_p1  ;;  %p10282_p12 = por %p10281_p9, %p10280_p5 }
  0x7c   : > { %9299 = vmatpush3.bf16.msra.mxu0 %v9647_v7  ;;  %v301_v52 = vld [vmem:[%s10564_s6 + $0xd8] sm:$0xff]  ;;  %v348_v53 = vpack.c.bf16 %v296_v50, %v294_v49  ;;  %v298_v55 = vld [vmem:[%s10564_s6 + $0xc0] sm:$0xff]  ;;  %v300_v56 = vld [vmem:[%s10564_s6 + $0xd0] sm:$0xff] }
  0x7d   : > { %9300 = vmatprep.subr.bf16.mxu0 %v9648_v8  ;;  %v351_v54 = vpack.c.bf16 %v301_v52, %v299_v51  ;;  %v303_v57 = vld [vmem:[%s10564_s6 + $0xe8] sm:$0xff]  ;;  %v305_v58 = vld [vmem:[%s10564_s6 + $0xf8] sm:$0xff]  ;;  %v350_v59 = vpack.c.bf16 %v300_v56, %v298_v55  ;;  %v302_v61 = vld [vmem:[%s10564_s6 + $0xe0] sm:$0xff]  ;;  %v10354_v51 = vmov 4286644096   ;;  %p10283_p2 = pnand %p10282_p12, %p10276_p3 }
  0x7e   : > { %v353_v60 = vpack.c.bf16 %v305_v58, %v303_v57  ;;  %v304_v62 = vld [vmem:[%s10564_s6 + $0xf0] sm:$0xff]  ;;  %v307_v63 = vld [vmem:[%s10564_s6 + $0x108] sm:$0xff]  ;;  %v309_v0 = vld [vmem:[%s10564_s6 + $0x118] sm:$0xff]  ;;  %991 = vst [vmem:[#allocation2 + $0x9c] sm:$0x7] %v10354_v51 }
  0x7f   : > { %v352_v1 = vpack.c.bf16 %v304_v62, %v302_v61  ;;  %v355_v2 = vpack.c.bf16 %v309_v0, %v307_v63  ;;  %v306_v3 = vld [vmem:[%s10564_s6 + $0x100] sm:$0xff]  ;;  %v308_v4 = vld [vmem:[%s10564_s6 + $0x110] sm:$0xff]  ;;  %v311_v5 = vld [vmem:[%s10564_s6 + $0x128] sm:$0xff]  ;;  %922 = vst [vmem:[#allocation2] sm:$0xf] %v10354_v51 }
  0x80   : > { %9301 = vmatpush3.bf16.msra.mxu0 %v9649_v9  ;;  %v313_v6 = vld [vmem:[%s10564_s6 + $0x138] sm:$0xff]  ;;  %v354_v7 = vpack.c.bf16 %v308_v4, %v306_v3  ;;  %v310_v9 = vld [vmem:[%s10564_s6 + $0x120] sm:$0xff]  ;;  %v315_v11 = vld [vmem:[%s10564_s6 + $0x148] sm:$0xff]  ;;  %923 = vst [vmem:[#allocation2 + $0x4] sm:$0xf] %v10354_v51 }
  0x81   : > { %9302 = vmatprep.subr.bf16.mxu0 %v9650_v10  ;;  %v357_v8 = vpack.c.bf16 %v313_v6, %v311_v5  ;;  %v312_v10 = vld [vmem:[%s10564_s6 + $0x130] sm:$0xff]  ;;  %v317_v12 = vld [vmem:[%s10564_s6 + $0x158] sm:$0xff]  ;;  %v318_v21 = vld [vmem:[%s10564_s6 + $0x160] sm:$0xff]  ;;  %924 = vst [vmem:[#allocation2 + $0x8] sm:$0xf] %v10354_v51 }
  0x82   : > { %v356_v13 = vpack.c.bf16 %v312_v10, %v310_v9  ;;  %v320_v22 = vld [vmem:[%s10564_s6 + $0x170] sm:$0xff]  ;;  %v322_v27 = vld [vmem:[%s10564_s6 + $0x180] sm:$0xff]  ;;  %v337_v43 = vld [vmem:[%s10564_s6 + $0x1f8] sm:$0xff]  ;;  %925 = vst [vmem:[#allocation2 + $0xc] sm:$0x7] %v10354_v51 }
  0x83   : > { %v360_v25 = vpack.c.bf16 %v320_v22, %v318_v21  ;;  %v324_v28 = vld [vmem:[%s10564_s6 + $0x190] sm:$0xff]  ;;  %v326_v33 = vld [vmem:[%s10564_s6 + $0x1a0] sm:$0xff]  ;;  %926 = vst [vmem:[#allocation2 + $0x10] sm:$0xf] %v10354_v51  ;;  %927 = vst [vmem:[#allocation2 + $0x14] sm:$0xf] %v10354_v51 }
  0x84   : > { %9303 = vmatpush3.bf16.msra.mxu0 %v9651_v14  ;;  %v359_v14 = vpack.c.bf16 %v317_v12, %v315_v11  ;;  %v362_v31 = vpack.c.bf16 %v324_v28, %v322_v27  ;;  %v328_v34 = vld [vmem:[%s10564_s6 + $0x1b0] sm:$0xff]  ;;  %v330_v39 = vld [vmem:[%s10564_s6 + $0x1c0] sm:$0xff]  ;;  %928 = vst [vmem:[#allocation2 + $0x18] sm:$0xf] %v10354_v51  ;;  %929 = vst [vmem:[#allocation2 + $0x1c] sm:$0x7] %v10354_v51 }
  0x85   : > { %9304 = vmatprep.subr.bf16.mxu0 %v9652_v15  ;;  %v314_v15 = vld [vmem:[%s10564_s6 + $0x140] sm:$0xff]  ;;  %v364_v37 = vpack.c.bf16 %v328_v34, %v326_v33  ;;  %v332_v40 = vld [vmem:[%s10564_s6 + $0x1d0] sm:$0xff]  ;;  %930 = vst [vmem:[#allocation2 + $0x20] sm:$0xf] %v10354_v51  ;;  %931 = vst [vmem:[#allocation2 + $0x24] sm:$0xf] %v10354_v51 }
  0x86   : > { %v9658_v44 = vld [vmem:[#allocation9] ss:$8 sps:$4 sm:$0xff]   ;;  %v366_v45 = vpack.c.bf16 %v332_v40, %v330_v39  ;;  %v10640_v50 = vld [vmem:[%s10564_s6 + $0x1f0] sm:$0xff]  ;;  %932 = vst [vmem:[#allocation2 + $0x28] sm:$0xf] %v10354_v51  ;;  %vm10803_vm2 = vmor %vm1288_vm0, %vm1289_vm1 }
  0x87   : > { %v10637_v49 = vld [vmem:[%s10564_s6 + $0x1e0] sm:$0xff]  ;;  %933 = vst [vmem:[#allocation2 + $0x2c] sm:$0x7] %v10354_v51  ;;  %934 = vst [vmem:[#allocation2 + $0x30] sm:$0xf] %v10354_v51 }
  0x88   : > { %9305 = vmatpush3.bf16.msra.mxu0 %v9653_v16  ;;  %v316_v16 = vld [vmem:[%s10564_s6 + $0x150] sm:$0xff]  ;;  %935 = vst [vmem:[#allocation2 + $0x34] sm:$0xf] %v10354_v51  ;;  %936 = vst [vmem:[#allocation2 + $0x38] sm:$0xf] %v10354_v51 }
  0x89   : > { %9306 = vmatprep.subr.bf16.mxu0 %v9654_v17  ;;  %v319_v17 = vld [vmem:[%s10564_s6 + $0x168] sm:$0xff]  ;;  %v358_v19 = vpack.c.bf16 %v316_v16, %v314_v15  ;;  %937 = vst [vmem:[#allocation2 + $0x3c] sm:$0x7] %v10354_v51  ;;  %938 = vst [vmem:[#allocation2 + $0x40] sm:$0xf] %v10354_v51 }
  0x8a   : > { %939 = vst [vmem:[#allocation2 + $0x44] sm:$0xf] %v10354_v51  ;;  %940 = vst [vmem:[#allocation2 + $0x48] sm:$0xf] %v10354_v51  ;;  %v9662_v52 = vld [vmem:[#allocation9 + $0x24] ss:$8 sps:$4 sm:$0xff]  }
  0x8b   : > { %941 = vst [vmem:[#allocation2 + $0x4c] sm:$0x7] %v10354_v51  ;;  %942 = vst [vmem:[#allocation2 + $0x50] sm:$0xf] %v10354_v51  ;;  %v9665_v55 = vld [vmem:[#allocation9 + $0x34] ss:$8 sps:$4 sm:$0xff]  }
  0x8c   : > { %9307 = vmatpush3.bf16.msra.mxu0 %v9655_v18  ;;  %v321_v18 = vld [vmem:[%s10564_s6 + $0x178] sm:$0xff]  ;;  %943 = vst [vmem:[#allocation2 + $0x54] sm:$0xf] %v10354_v51  ;;  %944 = vst [vmem:[#allocation2 + $0x58] sm:$0xf] %v10354_v51 }
  0x8d   : > { %v361_v20 = vpack.c.bf16 %v321_v18, %v319_v17  ;;  %945 = vst [vmem:[#allocation2 + $0x5c] sm:$0x7] %v10354_v51  ;;  %947 = vst [vmem:[#allocation2 + $0x160] sm:$0xf] %v10354_v51  ;;  %v9667_v56 = vld [vmem:[#allocation9 + $0x30] ss:$8 sps:$4 sm:$0xff]  }
  0x8e   : > { %948 = vst [vmem:[#allocation2 + $0x164] sm:$0xf] %v10354_v51  ;;  %949 = vst [vmem:[#allocation2 + $0x168] sm:$0xf] %v10354_v51  ;;  %v9668_v57 = vld [vmem:[#allocation9 + $0x44] ss:$8 sps:$4 sm:$0xff]  }
  0x8f   : > { %538 = vmatmul.mubr.bf16.vlgmr.msra.gmra.mrb[0].mxu0 %v338_v23  ;;  %v323_v23 = vld [vmem:[%s10564_s6 + $0x188] sm:$0xff]  ;;  %950 = vst [vmem:[#allocation2 + $0x16c] sm:$0x7] %v10354_v51  ;;  %951 = vst [vmem:[#allocation2 + $0x170] sm:$0xf] %v10354_v51 }
  0x90   : > { %545 = vmatprep.mubr.bf16.mxu0 %v341_v24  ;;  %v325_v24 = vld [vmem:[%s10564_s6 + $0x198] sm:$0xff]  ;;  %952 = vst [vmem:[#allocation2 + $0x174] sm:$0xf] %v10354_v51  ;;  %953 = vst [vmem:[#allocation2 + $0x178] sm:$0xf] %v10354_v51 }
  0x91   : > { %v363_v26 = vpack.c.bf16 %v325_v24, %v323_v23  ;;  %954 = vst [vmem:[#allocation2 + $0x17c] sm:$0x7] %v10354_v51  ;;  %955 = vst [vmem:[#allocation2 + $0x180] sm:$0xf] %v10354_v51  ;;  %v9670_v58 = vld [vmem:[#allocation9 + $0x40] ss:$8 sps:$4 sm:$0xff]  }
  0x92   : > { %956 = vst [vmem:[#allocation2 + $0x184] sm:$0xf] %v10354_v51  ;;  %957 = vst [vmem:[#allocation2 + $0x188] sm:$0xf] %v10354_v51  ;;  %v9674_v61 = vld [vmem:[#allocation9 + $0x64] ss:$8 sps:$4 sm:$0xff]  }
  0x93   : > { %958 = vst [vmem:[#allocation2 + $0x18c] sm:$0x7] %v10354_v51  ;;  %959 = vst [vmem:[#allocation2 + $0x190] sm:$0xf] %v10354_v51  ;;  %v9676_v62 = vld [vmem:[#allocation9 + $0x60] ss:$8 sps:$4 sm:$0xff]  }
  0x94   : > { %960 = vst [vmem:[#allocation2 + $0x194] sm:$0xf] %v10354_v51  ;;  %961 = vst [vmem:[#allocation2 + $0x198] sm:$0xf] %v10354_v51  ;;  %v9677_v63 = vld [vmem:[#allocation9 + $0x74] ss:$8 sps:$4 sm:$0xff]  }
  0x95   : > { %962 = vst [vmem:[#allocation2 + $0x19c] sm:$0x7] %v10354_v51  ;;  %963 = vst [vmem:[#allocation2 + $0x1a0] sm:$0xf] %v10354_v51  ;;  %v9679_v0 = vld [vmem:[#allocation9 + $0x70] ss:$8 sps:$4 sm:$0xff]  }
  0x96   : > { %964 = vst [vmem:[#allocation2 + $0x1a4] sm:$0xf] %v10354_v51  ;;  %965 = vst [vmem:[#allocation2 + $0x1a8] sm:$0xf] %v10354_v51  ;;  %v9686_v3 = vld [vmem:[#allocation9 + $0x94] ss:$8 sps:$4 sm:$0xff]  }
  0x97   : > { %546 = vmatmul.mubr.bf16.gmra.mrb[4].mxu0 %v340_v29  ;;  %v327_v29 = vld [vmem:[%s10564_s6 + $0x1a8] sm:$0xff]  ;;  %966 = vst [vmem:[#allocation2 + $0x1ac] sm:$0x7] %v10354_v51  ;;  %967 = vst [vmem:[#allocation2 + $0x1b0] sm:$0xf] %v10354_v51 }
  0x98   : > { %553 = vmatprep.mubr.bf16.mxu0 %v343_v30  ;;  %v329_v30 = vld [vmem:[%s10564_s6 + $0x1b8] sm:$0xff]  ;;  %968 = vst [vmem:[#allocation2 + $0x1b4] sm:$0xf] %v10354_v51  ;;  %969 = vst [vmem:[#allocation2 + $0x1b8] sm:$0xf] %v10354_v51 }
  0x99   : > { %v365_v32 = vpack.c.bf16 %v329_v30, %v327_v29  ;;  %970 = vst [vmem:[#allocation2 + $0x1bc] sm:$0x7] %v10354_v51  ;;  %972 = vst [vmem:[#allocation2 + $0x60] sm:$0xf] %v10354_v51  ;;  %v10724_v4 = vld [vmem:[#allocation9 + $0x104] ss:$8 sps:$4 sm:$0xff]  }
  0x9a   : > { %973 = vst [vmem:[#allocation2 + $0x70] sm:$0xf] %v10354_v51  ;;  %974 = vst [vmem:[#allocation2 + $0x80] sm:$0xf] %v10354_v51  ;;  %v9682_v5 = vld [vmem:[#allocation9 + $0x100] ss:$8 sps:$4 sm:$0xff]   ;;  %7816 = vmatprep.subr.bf16.mxu0 %v10724_v4 }
  0x9b   : > { %975 = vst [vmem:[#allocation2 + $0x90] sm:$0xf] %v10354_v51  ;;  %976 = vst [vmem:[#allocation2 + $0xa0] sm:$0xf] %v10354_v51  ;;  %v9688_v6 = vld [vmem:[#allocation9 + $0x90] ss:$8 sps:$4 sm:$0xff]   ;;  %7817 = vmatpush1.bf16.msra.mxu0 %v9682_v5 }
  0x9c   : > { %977 = vst [vmem:[#allocation2 + $0xb0] sm:$0xf] %v10354_v51  ;;  %978 = vst [vmem:[#allocation2 + $0xc0] sm:$0xf] %v10354_v51  ;;  %v9694_v9 = vld [vmem:[#allocation9 + $0xa0] ss:$8 sps:$4 sm:$0xff]  }
  0x9d   : > { %979 = vst [vmem:[#allocation2 + $0xd0] sm:$0xf] %v10354_v51  ;;  %980 = vst [vmem:[#allocation2 + $0xe0] sm:$0xf] %v10354_v51  ;;  %v10729_v10 = vld [vmem:[#allocation2 + $0x5c] sm:$0x3] }
  0x9e   : > { %981 = vst [vmem:[#allocation2 + $0xf0] sm:$0xf] %v10354_v51  ;;  %982 = vst [vmem:[#allocation2 + $0x100] sm:$0xf] %v10354_v51  ;;  %v9695_v12 = vld [vmem:[#allocation9 + $0xb4] ss:$8 sps:$4 sm:$0xff]  }
  0x9f   : > { %554 = vmatmul.mubr.bf16.gmra.mrb[8].mxu0 %v342_v35  ;;  %v331_v35 = vld [vmem:[%s10564_s6 + $0x1c8] sm:$0xff]  ;;  %983 = vst [vmem:[#allocation2 + $0x110] sm:$0xf] %v10354_v51  ;;  %984 = vst [vmem:[#allocation2 + $0x120] sm:$0xf] %v10354_v51  ;;  %v1520_v17 = vshrl.u32 %v10729_v10, 16 }
  0xa0   : > { %561 = vmatprep.mubr.bf16.mxu0 %v345_v36  ;;  %v333_v36 = vld [vmem:[%s10564_s6 + $0x1d8] sm:$0xff]  ;;  %985 = vst [vmem:[#allocation2 + $0x130] sm:$0xf] %v10354_v51  ;;  %986 = vst [vmem:[#allocation2 + $0x140] sm:$0xf] %v10354_v51 }
  0xa1   : > { %v367_v38 = vpack.c.bf16 %v333_v36, %v331_v35  ;;  %987 = vst [vmem:[#allocation2 + $0x150] sm:$0xf] %v10354_v51  ;;  %988 = vst [vmem:[#allocation2 + $0x6c] sm:$0x7] %v10354_v51  ;;  %v9693_v18 = vld [vmem:[#allocation9 + $0x114] ss:$8 sps:$4 sm:$0xff]  }
  0xa2   : > { %989 = vst [vmem:[#allocation2 + $0x7c] sm:$0x7] %v10354_v51  ;;  %990 = vst [vmem:[#allocation2 + $0x8c] sm:$0x7] %v10354_v51  ;;  %v10745_v23 = vrot.slane %v1520_v17, 4  ;;  %7818 = vmatprep.subr.bf16.mxu0 %v9693_v18 }
  0xa3   : > { %992 = vst [vmem:[#allocation2 + $0xac] sm:$0x7] %v10354_v51  ;;  %993 = vst [vmem:[#allocation2 + $0xbc] sm:$0x7] %v10354_v51  ;;  %v10747_v24 = vld [vmem:[#allocation2 + $0x44] sm:$0xf] }
  0xa4   : > { %994 = vst [vmem:[#allocation2 + $0xcc] sm:$0x7] %v10354_v51  ;;  %995 = vst [vmem:[#allocation2 + $0xdc] sm:$0x7] %v10354_v51  ;;  %v10753_v28 = vld [vmem:[#allocation2 + $0x48] sm:$0xf] }
  0xa5   : > { %996 = vst [vmem:[#allocation2 + $0xec] sm:$0x7] %v10354_v51  ;;  %997 = vst [vmem:[#allocation2 + $0xfc] sm:$0x7] %v10354_v51  ;;  %v10755_v29 = vld [vmem:[#allocation2 + $0x50] sm:$0xf] }
  0xa6   : > { %998 = vst [vmem:[#allocation2 + $0x10c] sm:$0x7] %v10354_v51  ;;  %999 = vst [vmem:[#allocation2 + $0x11c] sm:$0x7] %v10354_v51  ;;  %v1457_v30 = vshll.u32 %v10747_v24, 16  ;;  %v1487_v39 = vshrl.u32 %v10755_v29, 16 }
  0xa7   : > { %562 = vmatmul.mubr.bf16.gmra.mrb[12].mxu0 %v344_v41  ;;  %v9656_v41 = vld [vmem:[#allocation9 + $0x4] ss:$8 sps:$4 sm:$0xff]   ;;  %1000 = vst [vmem:[#allocation2 + $0x12c] sm:$0x7] %v10354_v51  ;;  %1001 = vst [vmem:[#allocation2 + $0x13c] sm:$0x7] %v10354_v51 }
  0xa8   : > { %569 = vmatprep.mubr.bf16.mxu0 %v347_v42  ;;  %v335_v42 = vld [vmem:[%s10564_s6 + $0x1e8] sm:$0xff]  ;;  %7623 = vmatprep.subr.bf16.mxu1 %v9656_v41  ;;  %1002 = vst [vmem:[#allocation2 + $0x14c] sm:$0x7] %v10354_v51  ;;  %1003 = vst [vmem:[#allocation2 + $0x15c] sm:$0x7] %v10354_v51  ;;  %v1490_v40 = vshll.u32 %v10755_v29, 16  ;;  %s17632_s6 = scalar_lea.hbm %s17685_s5, %s9291_s14 }
  0xa9   : > { %7624 = vmatpush1.bf16.msra.mxu1 %v9658_v44  ;;  %v369_v46 = vpack.c.bf16 %v337_v43, %v335_v42  ;;  %v10759_v33 = vld [vmem:[#allocation2 + $0x54] sm:$0xf]  ;;  %v10761_v34 = vld [vmem:[#allocation2 + $0x58] sm:$0xf]  ;;  %v9698_v41 = vld [vmem:[#allocation9 + $0xc4] ss:$8 sps:$4 sm:$0xff]  }
  0xaa   : > { %v10769_v42 = vrot.slane %v1457_v30, 5  ;;  %v1496_v44 = vshll.u32 %v10759_v33, 16  ;;  %v9702_v51 = vld [vmem:[#allocation9 + $0x124] ss:$8 sps:$4 sm:$0xff]   ;;  %vm10899_vm5 = vmor %vm2747_vm3, %vm2748_vm4 }
  0xab   : > { %v10809_v17 = vld [vmem:[#allocation2 + $0x6c] sm:$0x3]  ;;  %vm10967_vm8 = vmor %vm3310_vm6, %vm3311_vm7 }
  0xac   : > { %18485 = vst [vmem:[#allocation15_spill] sm:$0xff] %v10809_v17  ;;  %vm11111_vm11 = vmor %vm4433_vm9, %vm4434_vm10 }
  0xad   : > { %vm12245_vm14 = vmor %vm5208_vm12, %vm5209_vm13 }
  0xaf   : > { %570 = vmatmul.mubr.bf16.gmra.mrb[16].mxu0 %v346_v47  ;;  %v9659_v47 = vld [vmem:[#allocation9 + $0x14] ss:$8 sps:$4 sm:$0xff]  }
  0xb0   : > { %577 = vmatprep.mubr.bf16.mxu0 %v349_v48  ;;  %7625 = vmatprep.subr.bf16.mxu1 %v9659_v47  ;;  %v9661_v48 = vld [vmem:[#allocation9 + $0x10] ss:$8 sps:$4 sm:$0xff]   ;;  %v17689_v47 = vshll.u32 %v10761_v34, 16 }
  0xb1   : > { %7626 = vmatpush1.bf16.msra.mxu1 %v9661_v48  ;;  %v17690_v48 = vshrl.u32 %v10761_v34, 16 }
  0xb2   : > { %7627 = vmatprep.subr.bf16.mxu1 %v9662_v52 }
  0xb7   : > { %578 = vmatmul.mubr.bf16.gmra.mrb[20].mxu0 %v348_v53  ;;  %v9664_v53 = vld [vmem:[#allocation9 + $0x20] ss:$8 sps:$4 sm:$0xff]  }
  0xb8   : > { %585 = vmatprep.mubr.bf16.mxu0 %v351_v54  ;;  %v368_v54 = vpack.c.bf16 %v10640_v50, %v10637_v49  ;;  %7628 = vmatpush1.bf16.msra.mxu1 %v9664_v53  ;;  %v10777_v49 = vld [vmem:[#allocation2 + $0x60] sm:$0xf] }
  0xb9   : > { %7629 = vmatprep.subr.bf16.mxu1 %v9665_v55  ;;  %v1492_v55 = vrot.slane %v1490_v40, 5  ;;  %v1270_v40 = vld [vmem:[#allocation2 + $0xac] sm:$0x3] }
  0xbc   : > { %7630 = vmatpush1.bf16.msra.mxu1 %v9667_v56  ;;  %v9700_v56 = vld [vmem:[#allocation9 + $0x120] ss:$8 sps:$4 sm:$0xff]  }
  0xbd   : > { %7631 = vmatprep.subr.bf16.mxu1 %v9668_v57 }
  0xbf   : > { %586 = vmatmul.mubr.bf16.gmra.mrb[24].mxu0 %v350_v59  ;;  %v9671_v59 = vld [vmem:[#allocation9 + $0x54] ss:$8 sps:$4 sm:$0xff]  }
  0xc0   : > { %593 = vmatprep.mubr.bf16.mxu0 %v353_v60  ;;  %7632 = vmatpush1.bf16.msra.mxu1 %v9670_v58  ;;  %v9673_v60 = vld [vmem:[#allocation9 + $0x50] ss:$8 sps:$4 sm:$0xff]   ;;  %v10788_v58 = vrot.slane %v1496_v44, 5 }
  0xc1   : > { %7633 = vmatprep.subr.bf16.mxu1 %v9671_v59 }
  0xc4   : > { %7634 = vmatpush1.bf16.msra.mxu1 %v9673_v60  ;;  %v10794_v60 = vrot.slane %v17689_v47, 5  ;;  %v18502_v47 = vmov 0 }
  0xc5   : > { %7635 = vmatprep.subr.bf16.mxu1 %v9674_v61  ;;  %v1512_v61 = vrot.slane %v17690_v48, 4  ;;  %v18503_v47 = vsel %vm10967_vm8, 4294967295, %v18502_v47 }
  0xc6   : > { %18504 = vst [vmem:[#allocation30_spill] sm:$0xff] %v18503_v47 }
  0xc7   : > { %594 = vmatmul.mubr.bf16.gmra.mrb[28].mxu0 %v352_v1  ;;  %v9680_v1 = vld [vmem:[#allocation9 + $0x84] ss:$8 sps:$4 sm:$0xff]  }
  0xc8   : > { %601 = vmatprep.mubr.bf16.mxu0 %v355_v2  ;;  %7636 = vmatpush1.bf16.msra.mxu1 %v9676_v62  ;;  %v9685_v2 = vld [vmem:[#allocation9 + $0x80] ss:$8 sps:$4 sm:$0xff]   ;;  %v1526_v62 = vshrl.u32 %v10777_v49, 16 }
  0xc9   : > { %7637 = vmatprep.subr.bf16.mxu1 %v9677_v63  ;;  %v1529_v63 = vshll.u32 %v10777_v49, 16 }
  0xcc   : > { %7638 = vmatpush1.bf16.msra.mxu1 %v9679_v0  ;;  %v1269_v0 = vld [vmem:[#allocation2 + $0x9c] sm:$0x3] }
  0xcd   : > { %7639 = vmatprep.subr.bf16.mxu1 %v9680_v1  ;;  %v1176_v1 = vld [vmem:[#allocation2 + $0x70] sm:$0xf] }
  0xce   : > { %v1565_v18 = vshrl.u32 %v1176_v1, 16 }
  0xcf   : > { %602 = vmatmul.mubr.bf16.gmra.mrb[32].mxu0 %v354_v7  ;;  %v9689_v7 = vld [vmem:[#allocation9 + $0xa4] ss:$8 sps:$4 sm:$0xff]  }
  0xd0   : > { %609 = vmatprep.mubr.bf16.mxu0 %v357_v8  ;;  %7640 = vmatpush1.bf16.msra.mxu1 %v9685_v2  ;;  %v10727_v8 = vld [vmem:[#allocation2 + $0x4c] sm:$0x3] }
  0xd1   : > { %7641 = vmatprep.subr.bf16.mxu1 %v9686_v3  ;;  %v1477_v11 = vshll.u32 %v10727_v8, 16 }
  0xd3   : > { %v10734_v15 = vrot.slane %v1477_v11, 5 }
  0xd4   : > { %7642 = vmatpush1.bf16.msra.mxu1 %v9688_v6  ;;  %v18482_v6 = vmov 0 }
  0xd5   : > { %7643 = vmatprep.subr.bf16.mxu1 %v9689_v7  ;;  %v18483_v6 = vsel %vm10803_vm2, 4294967295, %v18482_v6  ;;  %v1672_v7 = vshll.u32 %v1269_v0, 16 }
  0xd6   : > { %18484 = vst [vmem:[#allocation14_spill] sm:$0xff] %v18483_v6 }
  0xd7   : > { %610 = vmatmul.mubr.bf16.gmra.mrb[36].mxu0 %v356_v13  ;;  %v1481_v13 = vshrl.u32 %v10727_v8, 16 }
  0xd8   : > { %617 = vmatprep.mubr.bf16.mxu0 %v359_v14  ;;  %7644 = vmatpush1.bf16.msra.mxu1 %v9694_v9  ;;  %v1516_v14 = vshll.u32 %v10729_v10, 16 }
  0xd9   : > { %7645 = vmatprep.subr.bf16.mxu1 %v9695_v12  ;;  %v10736_v16 = vrot.slane %v1481_v13, 4  ;;  %v1513_v12 = vor.u32 %v1512_v61, %v10794_v60  ;;  %v1528_v13 = vrot.slane %v1526_v62, 4  ;;  %v9711_v62 = vld [vmem:[#allocation9 + $0x134] ss:$8 sps:$4 sm:$0xff]  }
  0xda   : > { %v10743_v22 = vrot.slane %v1516_v14, 5  ;;  %v1531_v14 = vrot.slane %v1529_v63, 5 }
  0xdb   : > { %v1484_v21 = vor.u32 %v10736_v16, %v10734_v15 }
  0xdc   : > { %v1523_v27 = vor.u32 %v10745_v23, %v10743_v22  ;;  %v10857_v23 = vld [vmem:[#allocation2 + $0x5c] sm:$0x1] }
  0xdd   : > { %v10829_v63 = vrot.slane %v1484_v21, 4 }
  0xdf   : > { %618 = vmatmul.mubr.bf16.gmra.mrb[40].mxu0 %v358_v19  ;;  %v10739_v19 = vld [vmem:[#allocation2 + $0x40] sm:$0xf]  ;;  %18488 = vst [vmem:[#allocation18_spill] sm:$0xff] %v10829_v63 }
  0xe0   : > { %625 = vmatprep.mubr.bf16.mxu0 %v361_v20  ;;  %v9691_v20 = vld [vmem:[#allocation9 + $0x110] ss:$8 sps:$4 sm:$0xff]  }
  0xe1   : > { %7819 = vmatpush1.bf16.msra.mxu0 %v9691_v20  ;;  %v1568_v20 = vshll.u32 %v1176_v1, 16 }
  0xe2   : > { %7820 = vmatprep.subr.bf16.mxu0 %v9702_v51  ;;  %v9706_v51 = vld [vmem:[#allocation9 + $0xd0] ss:$8 sps:$4 sm:$0xff]  }
  0xe5   : > { %7821 = vmatpush1.bf16.msra.mxu0 %v9700_v56  ;;  %v1567_v56 = vrot.slane %v1565_v18, 4  ;;  %v10862_v18 = vld [vmem:[#allocation2 + $0x60] sm:$0xe] }
  0xe6   : > { %7822 = vmatprep.subr.bf16.mxu0 %v9711_v62 }
  0xe7   : > { %626 = vmatmul.mubr.bf16.gmra.mrb[44].mxu0 %v360_v25  ;;  %v1448_v25 = vshrl.u32 %v10739_v19, 16 }
  0xe8   : > { %633 = vmatprep.mubr.bf16.mxu0 %v363_v26  ;;  %v1451_v26 = vshll.u32 %v10739_v19, 16 }
  0xe9   : > { %v1450_v35 = vrot.slane %v1448_v25, 4  ;;  %v9704_v25 = vld [vmem:[#allocation9 + $0xd4] ss:$8 sps:$4 sm:$0xff]  }
  0xea   : > { %v1453_v36 = vrot.slane %v1451_v26, 5  ;;  %v1180_v26 = vld [vmem:[#allocation2 + $0x80] sm:$0xf] }
  0xeb   : > { %v1607_v61 = vshll.u32 %v1180_v26, 16 }
  0xec   : > { %v1454_v50 = vor.u32 %v1453_v36, %v1450_v35 }
  0xee   : > { %v1455_v2 = vrot.slane %v1454_v50, 4  ;;  %v1711_v50 = vshll.u32 %v1270_v40, 16  ;;  %v9715_v40 = vld [vmem:[#allocation9 + $0x140] ss:$8 sps:$4 sm:$0xff]  }
  0xef   : > { %634 = vmatmul.mubr.bf16.gmra.mrb[48].mxu0 %v362_v31  ;;  %v1461_v31 = vshrl.u32 %v10747_v24, 16 }
  0xf0   : > { %641 = vmatprep.mubr.bf16.mxu0 %v365_v32  ;;  %v9697_v32 = vld [vmem:[#allocation9 + $0xb0] ss:$8 sps:$4 sm:$0xff]   ;;  %v10848_v21 = vrot.slane %v1711_v50, 5 }
  0xf1   : > { %7646 = vmatpush1.bf16.msra.mxu1 %v9697_v32  ;;  %v1463_v43 = vrot.slane %v1461_v31, 4  ;;  %v1460_v32 = vsel %vm10803_vm2, %v1455_v2, %v10769_v42  ;;  %v9707_v2 = vld [vmem:[#allocation9 + $0xe4] ss:$8 sps:$4 sm:$0xff]   ;;  %v9718_v50 = vld [vmem:[#allocation9 + $0xf0] ss:$8 sps:$4 sm:$0xff]  }
  0xf2   : > { %7647 = vmatprep.subr.bf16.mxu1 %v9698_v41  ;;  %v10846_v16 = vmax.bf16 %v1460_v32, %v10739_v19  ;;  %18490 = vst [vmem:[#allocation20_spill] sm:$0xff] %v10848_v21  ;;  %v1609_v19 = vrot.slane %v1607_v61, 5 }
  0xf3   : > { %v1464_v57 = vor.u32 %v1463_v43, %v10769_v42  ;;  %v10821_v42 = vld [vmem:[#allocation2 + $0x7c] sm:$0x3] }
  0xf4   : > { %18487 = vst [vmem:[#allocation17_spill] sm:$0xff] %v10821_v42  ;;  %v1594_v1 = vshll.u32 %v10821_v42, 16 }
  0xf5   : > { %v1465_v9 = vrot.slane %v1464_v57, 4  ;;  %v1570_v57 = vrot.slane %v1568_v20, 5  ;;  %v1271_v20 = vld [vmem:[#allocation2 + $0xbc] sm:$0x3] }
  0xf7   : > { %642 = vmatmul.mubr.bf16.gmra.mrb[52].mxu0 %v364_v37  ;;  %v1467_v37 = vshll.u32 %v10753_v28, 16 }
  0xf8   : > { %649 = vmatprep.mubr.bf16.mxu0 %v367_v38  ;;  %v1471_v38 = vshrl.u32 %v10753_v28, 16 }
  0xf9   : > { %v10781_v52 = vrot.slane %v1467_v37, 5 }
  0xfa   : > { %v1473_v53 = vrot.slane %v1471_v38, 4 }
  0xfb   : > { %v1470_v41 = vsel %vm10803_vm2, %v1465_v9, %v10781_v52 }
  0xfc   : > { %v1474_v3 = vor.u32 %v1473_v53, %v10781_v52  ;;  %v1514_v53 = vrot.slane %v1513_v12, 4 }
  0xfe   : > { %v1475_v35 = vrot.slane %v1474_v3, 4  ;;  %v9709_v3 = vld [vmem:[#allocation9 + $0x130] ss:$8 sps:$4 sm:$0xff]   ;;  %v1519_v9 = vsel %vm10803_vm2, %v1514_v53, %v10743_v22  ;;  %v9717_v22 = vld [vmem:[#allocation9 + $0x144] ss:$8 sps:$4 sm:$0xff]  }
  0xff   : > { %650 = vmatmul.mubr.bf16.gmra.mrb[56].mxu0 %v366_v45  ;;  %v1500_v45 = vshrl.u32 %v10759_v33, 16 }
 0x100   : > { %657 = vmatprep.mubr.bf16.mxu0 %v369_v46  ;;  %v9703_v46 = vld [vmem:[#allocation9 + $0xc0] ss:$8 sps:$4 sm:$0xff]   ;;  %v1480_v52 = vsel %vm10803_vm2, %v1475_v35, %v10734_v15  ;;  %7823 = vmatpush1.bf16.msra.mxu0 %v9709_v3  ;;  %v1750_v35 = vshll.u32 %v1271_v20, 16 }
 0x101   : > { %7648 = vmatpush1.bf16.msra.mxu1 %v9703_v46  ;;  %v1502_v59 = vrot.slane %v1500_v45, 4  ;;  %v1555_v46 = vshll.u32 %v10809_v17, 16  ;;  %7824 = vmatprep.subr.bf16.mxu0 %v9717_v22 }
 0x102   : > { %7649 = vmatprep.subr.bf16.mxu1 %v9704_v25  ;;  %v10864_v25 = vrot.slane %v1594_v1, 5  ;;  %v10887_v1 = vrot.slane %v1750_v35, 5  ;;  %v18495_v35 = vmov 0 }
 0x103   : > { %v1503_v11 = vor.u32 %v1502_v59, %v10788_v58  ;;  %v1604_v59 = vshrl.u32 %v1180_v26, 16  ;;  %v10843_v15 = vrot.slane %v1555_v46, 5  ;;  %v10867_v26 = vmax.bf16 %v1480_v52, %v10753_v28 }
 0x104   : > { %18492 = vst [vmem:[#allocation22_spill] sm:$0xff] %v10864_v25  ;;  %v2796_v46 = vrot.slane %v10747_v24, 5  ;;  %7825 = vmatpush1.bf16.msra.mxu0 %v9715_v40  ;;  %18493 = vst [vmem:[#allocation23_spill] sm:$0xff] %v10887_v1  ;;  %v18496_v35 = vsel %vm10899_vm5, 4294967295, %v18495_v35  ;;  %v3439_v40 = vrot.slane %v1457_v30, 6 }
 0x105   : > { %v1504_v43 = vrot.slane %v1503_v11, 4  ;;  %7650 = vmatpush1.bf16.msra.mxu1 %v9706_v51  ;;  %18489 = vst [vmem:[#allocation19_spill] sm:$0xff] %v10843_v15  ;;  %v1606_v12 = vrot.slane %v1604_v59, 4  ;;  %v2799_v51 = vrot.slane %v10753_v28, 5  ;;  %v2807_v59 = vrot.slane %v10759_v33, 5  ;;  %18497 = vst [vmem:[#allocation25_spill] sm:$0xff] %v18496_v35 }
 0x106   : > { %7651 = vmatprep.subr.bf16.mxu1 %v9707_v2  ;;  %v10889_v2 = vld [vmem:[#allocation2 + $0x8c] sm:$0x3]  ;;  %v2798_v3 = vrot.slane %v2796_v46, 4 }
 0x107   : > { %658 = vmatmul.mubr.bf16.gmra.mrb[60].mxu0 %v368_v54  ;;  %v1489_v54 = vrot.slane %v1487_v39, 4  ;;  %v10814_v39 = vrot.slane %v1672_v7, 5  ;;  %v10841_v7 = vrot.slane %v1523_v27, 4  ;;  %v1571_v27 = vor.u32 %v1570_v57, %v1567_v56  ;;  %v2612_v56 = vld [vmem:[#allocation2 + $0x50] sm:$0xe]  ;;  %18494 = vst [vmem:[#allocation24_spill] sm:$0xff] %v10889_v2 }
 0x108   : > { %v8886_v62 = vrot.slane %v2612_v56, 9  ;;  %v3462_v22 = vshll.u32 %v2612_v56, 16 }
 0x109   : > { %v1493_v5 = vor.u32 %v1492_v55, %v1489_v54  ;;  %18486 = vst [vmem:[#allocation16_spill] sm:$0xff] %v10814_v39  ;;  %v1532_v54 = vor.u32 %v1531_v14, %v1528_v13  ;;  %v1559_v55 = vshrl.u32 %v10809_v17, 16  ;;  %v10860_v13 = vmax.bf16 %v1470_v41, %v10747_v24  ;;  %v2611_v14 = vld [vmem:[#allocation2 + $0x40] sm:$0xe] }
 0x10a   : > { %v8885_v57 = vrot.slane %v2611_v14, 9  ;;  %v2518_v61 = vmax.bf16 %v10841_v7, %v10857_v23  ;;  %v3430_v52 = vshrl.u32 %v2611_v14, 16  ;;  %v2813_v7 = vrot.slane %v10729_v10, 5 }
 0x10b   : > { %v1494_v36 = vrot.slane %v1493_v5, 4  ;;  %v1509_v5 = vsel %vm10803_vm2, %v1504_v43, %v10794_v60  ;;  %v10853_v11 = vrot.slane %v1532_v54, 4  ;;  %v10855_v60 = vrot.slane %v1559_v55, 4 }
 0x10c   : > { %v10873_v41 = vmax.bf16 %v1509_v5, %v10759_v33  ;;  %v10876_v43 = vmax.bf16 %v1519_v9, %v10761_v34  ;;  %v10882_v54 = vrot.slane %v1571_v27, 4  ;;  %v1610_v55 = vor.u32 %v1609_v19, %v1606_v12  ;;  %v1272_v9 = vld [vmem:[#allocation2 + $0xcc] sm:$0x3] }
 0x10d   : > { %v1499_v0 = vsel %vm10803_vm2, %v1494_v36, %v10788_v58  ;;  %v9712_v58 = vld [vmem:[#allocation9 + $0xe0] ss:$8 sps:$4 sm:$0xff]   ;;  %18491 = vst [vmem:[#allocation21_spill] sm:$0xff] %v10855_v60  ;;  %v9713_v36 = vld [vmem:[#allocation9 + $0xf4] ss:$8 sps:$4 sm:$0xff]   ;;  %v2802_v5 = vrot.slane %v10727_v8, 5  ;;  %v10909_v10 = vsel %vm10899_vm5, %v8885_v57, %v2796_v46 }
 0x10e   : > { %7652 = vmatpush1.bf16.msra.mxu1 %v9712_v58  ;;  %v10870_v32 = vmax.bf16 %v1499_v0, %v10755_v29  ;;  %v2810_v29 = vrot.slane %v10761_v34, 5  ;;  %v3433_v0 = vshll.u32 %v2611_v14, 16  ;;  %v2809_v58 = vrot.slane %v2807_v59, 4 }
 0x10f   : > { %7653 = vmatprep.subr.bf16.mxu1 %v9713_v36  ;;  %v1633_v27 = vshll.u32 %v10889_v2, 16  ;;  %v2801_v12 = vrot.slane %v2799_v51, 4  ;;  %v1789_v23 = vshll.u32 %v1272_v9, 16  ;;  %v10895_v20 = vrot.slane %v1610_v55, 4 }
 0x110   : > { %v2812_v19 = vrot.slane %v2810_v29, 4  ;;  %v3459_v14 = vshrl.u32 %v2612_v56, 16  ;;  %v3432_v8 = vrot.slane %v3430_v52, 5  ;;  %v3438_v36 = vrot.slane %v1461_v31, 5 }
 0x111   : > { %v10917_v55 = vsel %vm10899_vm5, %v8886_v62, %v2807_v59  ;;  %v10921_v56 = vsel %vm10899_vm5, %v2809_v58, %v2810_v29  ;;  %v10923_v31 = vrot.slane %v1633_v27, 5  ;;  %v10927_v30 = vsel %vm10899_vm5, %v2801_v12, %v2802_v5  ;;  %v10943_v27 = vld [vmem:[#allocation2 + $0x70] sm:$0xe] }
 0x112   : > { %7654 = vmatpush1.bf16.msra.mxu1 %v9718_v50  ;;  %v10913_v50 = vsel %vm10899_vm5, %v2798_v3, %v2799_v51  ;;  %v10931_v46 = vsel %vm10899_vm5, %v2812_v19, %v2813_v7  ;;  %v10933_v51 = vld [vmem:[#allocation2 + $0x4c] sm:$0x7]  ;;  %v3488_v57 = vshrl.u32 %v10862_v18, 16  ;;  %v10936_v59 = vrot.slane %v1789_v23, 5  ;;  %18501 = vst [vmem:[#allocation29_spill] sm:$0xff] %v10943_v27 }
 0x113   : > { %9404 = vmatprep.subr.bf16.mxu1 %v10724_v4  ;;  %v3435_v4 = vrot.slane %v3433_v0, 6  ;;  %18498 = vst [vmem:[#allocation26_spill] sm:$0xff] %v10923_v31  ;;  %v10938_v62 = vrot.slane %v2802_v5, 4  ;;  %v3461_v29 = vrot.slane %v3459_v14, 5  ;;  %v3464_v52 = vrot.slane %v3462_v22, 6 }
 0x114   : > { %18499 = vst [vmem:[#allocation27_spill] sm:$0xff] %v10936_v59  ;;  %v2815_v0 = vrot.slane %v2813_v7, 4  ;;  %v10941_v9 = vor.u32 %v3439_v40, %v3438_v36  ;;  %v3443_v12 = vrot.slane %v1471_v38, 5  ;;  %v3444_v19 = vrot.slane %v1467_v37, 6  ;;  %v1273_v22 = vld [vmem:[#allocation2 + $0xdc] sm:$0x3] }
 0x115   : > { %18500 = vst [vmem:[#allocation28_spill] sm:$0xff] %v10938_v62  ;;  %v3436_v58 = vor.u32 %v3435_v4, %v3432_v8  ;;  %v3449_v23 = vshrl.u32 %v10933_v51, 16  ;;  %v3452_v5 = vshll.u32 %v10933_v51, 16  ;;  %v10951_v7 = vrot.slane %v3488_v57, 5  ;;  %v10963_v57 = vld [vmem:[#allocation2 + $0x5c] sm:$0x7] }
 0x116   : > { %v3491_v14 = vshll.u32 %v10862_v18, 16  ;;  %v3465_v37 = vor.u32 %v3464_v52, %v3461_v29  ;;  %v1828_v36 = vshll.u32 %v1273_v22, 16  ;;  %v10961_v3 = vmax.bf16 %v2815_v0, %v2518_v61 }
 0x117   : > { %v10965_v53 = vrot.slane %v3436_v58, 4  ;;  %v3442_v8 = vrot.slane %v10941_v9, 4  ;;  %v3445_v4 = vor.u32 %v3444_v19, %v3443_v12  ;;  %v3451_v48 = vrot.slane %v3449_v23, 5  ;;  %v10998_v12 = vld [vmem:[%s17682_s2] ss:$0 sm:$0xff] }
 0x118   : > { %v3454_v38 = vrot.slane %v3452_v5, 6  ;;  %v3467_v29 = vrot.slane %v1500_v45, 5  ;;  %v3468_v61 = vrot.slane %v1496_v44, 6  ;;  %v18505_v52 = vshrl.u32 %v10761_v34, 16 }
 0x119   : > { %v18506_v58 = vshll.u32 %v10761_v34, 16  ;;  %v3478_v19 = vshrl.u32 %v10963_v57, 16  ;;  %v3481_v23 = vshll.u32 %v10963_v57, 16  ;;  %v3493_v40 = vrot.slane %v3491_v14, 6 }
 0x11a   : > { %v3472_v0 = vrot.slane %v18505_v52, 5  ;;  %v10989_v52 = vld [vmem:[#allocation2 + $0x6c] sm:$0x7]  ;;  %v11000_v63 = vrot.slane %v1828_v36, 5  ;;  %v3447_v5 = vrot.slane %v3445_v4, 4  ;;  %v11002_v60 = vor.u32 %v3454_v38, %v3451_v48 }
 0x11b   : > { %v3473_v22 = vrot.slane %v18506_v58, 6  ;;  %18507 = vst [vmem:[#allocation31_spill] sm:$0xff] %v10989_v52  ;;  %v3441_v58 = vsel %vm10967_vm8, %v10965_v53, %v10941_v9  ;;  %v3466_v44 = vrot.slane %v3465_v37, 4  ;;  %v3446_v31 = vsel %vm10967_vm8, %v3442_v8, %v3445_v4  ;;  %v11011_v38 = vld [vmem:[#allocation2 + $0x80] sm:$0xe] }
 0x11c   : > { %18508 = vst [vmem:[#allocation32_spill] sm:$0xff] %v11000_v63  ;;  %18509 = vst [vmem:[#allocation33_spill] sm:$0xff] %v11002_v60  ;;  %v3469_v59 = vor.u32 %v3468_v61, %v3467_v29  ;;  %v3480_v14 = vrot.slane %v3478_v19, 5  ;;  %v3483_v1 = vrot.slane %v3481_v23, 6  ;;  %v3507_v21 = vshrl.u32 %v10989_v52, 16 }
 0x11d   : > { %v3474_v53 = vor.u32 %v3473_v22, %v3472_v0  ;;  %v3510_v39 = vshll.u32 %v10989_v52, 16  ;;  %v3494_v37 = vor.u32 %v3493_v40, %v10951_v7  ;;  %v3456_v4 = vsel %vm10967_vm8, %v3447_v5, %v11002_v60  ;;  %v11027_v40 = vld [vmem:[#allocation2 + $0x7c] sm:$0x7] }
 0x11e   : > { %v3517_v29 = vshrl.u32 %v10943_v27, 16  ;;  %v3520_v61 = vshll.u32 %v10943_v27, 16  ;;  %v3470_v7 = vsel %vm10967_vm8, %v3466_v44, %v3469_v59  ;;  %18510 = vst [vmem:[#allocation34_spill] sm:$0xff] %v11027_v40  ;;  %v3484_v19 = vor.u32 %v3483_v1, %v3480_v14 }
 0x11f   : > { %v3476_v22 = vrot.slane %v3474_v53, 4  ;;  %v3509_v23 = vrot.slane %v3507_v21, 5  ;;  %v3539_v21 = vshll.u32 %v11027_v40, 16 }
 0x120   : > { %v3486_v60 = vrot.slane %v3484_v19, 4  ;;  %v3522_v44 = vrot.slane %v3520_v61, 6 }
 0x162   : > { %v9308_v45 = vpop.f32.mrb[0].mxu0 }
 0x163   : > { %v9309_v62 = vpop.f32.mrb[1].mxu0 }
 0x164   : > { %v9310_v42 = vadd.f32 %v9309_v62, %v9308_v45  ;;  %v9311_v17 = vpop.f32.mrb[2].mxu0  ;;  %v3471_v62 = vrot.slane %v3469_v59, 4  ;;  %v3512_v45 = vrot.slane %v3510_v39, 6  ;;  %v3519_v59 = vrot.slane %v3517_v29, 5 }
 0x165   : > { %v9312_v9 = vpop.f32.mrb[3].mxu0  ;;  %v3536_v39 = vshrl.u32 %v11027_v40, 16  ;;  %v18513_v29 = vmax.bf16 %v10917_v55, %v10870_v32  ;;  %v18515_v32 = vmax.bf16 %v10913_v50, %v10860_v13  ;;  %v18519_v13 = vmax.bf16 %v10921_v56, %v10873_v41 }
 0x166   : > { %v11009_v36 = vadd.f32 %v9310_v42, %v10998_v12  ;;  %v9313_v48 = vadd.f32 %v9312_v9, %v9311_v17  ;;  %v3475_v8 = vsel %vm10967_vm8, %v3471_v62, %v3474_v53  ;;  %v11039_v53 = vor.u32 %v3512_v45, %v3509_v23 }
 0x167   : > { %v18512_v62 = vmax.bf16 %v10909_v10, %v10846_v16  ;;  %v3546_v17 = vshrl.u32 %v11011_v38, 16  ;;  %v3523_v10 = vor.u32 %v3522_v44, %v3519_v59  ;;  %v11061_v55 = vmax.bf16 %v3446_v31, %v18515_v32  ;;  %v4354_v32 = vld [vmem:[#allocation2 + $0x50] sm:$0xc] }
 0x168   : > { %v8817_v0 = vmul.f32 -1.442695, %v11009_v36  ;;  %v11022_v42 = vadd.f32 %v9313_v48, %v10998_v12  ;;  %v11032_v48 = vrot.slane %v3494_v37, 4  ;;  %18511 = vst [vmem:[#allocation35_spill] sm:$0xff] %v11039_v53  ;;  %v3538_v23 = vrot.slane %v3536_v39, 5 }
 0x169   : > { %v11044_v37 = vmax.bf16 %v3441_v58, %v18512_v62  ;;  %v3541_v45 = vrot.slane %v3539_v21, 6  ;;  %v18518_v59 = vmax.bf16 %v10927_v30, %v10867_v26  ;;  %v4482_v50 = vrot.slane %v10747_v24, 6  ;;  %v11123_v31 = vld [vmem:[#allocation2 + $0x70] sm:$0xc] }
 0x16a   : > { %9752 = vpow2.f32 %v8817_v0  ;;  %v8818_v5 = vmul.f32 -1.442695, %v11022_v42  ;;  %v9314_v9 = vpop.f32.mrb[4].mxu0  ;;  %v3485_v0 = vsel %vm10967_vm8, %v3476_v22, %v3484_v19  ;;  %v3549_v22 = vshll.u32 %v11011_v38, 16  ;;  %v11056_v19 = vld [vmem:[#allocation2 + $0x60] sm:$0xc] }
 0x16b   : > { %v9315_v63 = vpop.f32.mrb[5].mxu0  ;;  %18514 = vst [vmem:[#allocation36_spill] sm:$0xff] %v11056_v19  ;;  %v11075_v44 = vmax.bf16 %v3456_v4, %v18518_v59  ;;  %v3548_v21 = vrot.slane %v3546_v17, 5  ;;  %v11087_v26 = vrot.slane %v3523_v10, 4  ;;  %v18521_v41 = vmax.bf16 %v10931_v46, %v10876_v43  ;;  %18527 = vst [vmem:[#allocation43_spill] sm:$0xff] %v11123_v31 }
 0x16c   : > { %9754 = vpow2.f32 %v8818_v5  ;;  %v9316_v27 = vadd.f32 %v9315_v63, %v9314_v9  ;;  %v9317_v1 = vpop.f32.mrb[6].mxu0  ;;  %v11049_v63 = vmax.bf16 %v3470_v7, %v18513_v29  ;;  %v1274_v9 = vld [vmem:[#allocation2 + $0xec] sm:$0x3]  ;;  %v3551_v62 = vrot.slane %v3549_v22, 6 }
 0x16d   : > { %v9318_v14 = vpop.f32.mrb[7].mxu0  ;;  %v1867_v16 = vshll.u32 %v1274_v9, 16  ;;  %v11092_v56 = vmax.bf16 %v3485_v0, %v18521_v41  ;;  %v11094_v9 = vor.u32 %v3541_v45, %v3538_v23  ;;  %v4485_v17 = vrot.slane %v10753_v28, 6 }
 0x16e   : > { %v11052_v61 = vadd.f32 %v9316_v27, %v10998_v12  ;;  %v9319_v5 = vadd.f32 %v9318_v14, %v9317_v1  ;;  %v11064_v27 = vmax.bf16 %v3486_v60, %v10961_v3  ;;  %v4353_v1 = vld [vmem:[#allocation2 + $0x40] sm:$0xc]  ;;  %v11070_v14 = vld [vmem:[#allocation2 + $0x8c] sm:$0x7]  ;;  %v11080_v60 = vmax.bf16 %v3475_v8, %v18519_v13 }
 0x16f   : > { %18517 = vst [vmem:[#allocation38_spill] sm:$0xff] %v11070_v14  ;;  %v8913_v30 = vrot.slane %v4353_v1, 10  ;;  %18522 = vst [vmem:[#allocation40_spill] sm:$0xff] %v11094_v9  ;;  %v3565_v10 = vshrl.u32 %v11070_v14, 16  ;;  %v4488_v43 = vrot.slane %v10933_v51, 6  ;;  %v3552_v59 = vor.u32 %v3551_v62, %v3548_v21 }
 0x170   : > { %18516 = vst [vmem:[#allocation37_spill] sm:$0xff] %v11064_v27  ;;  %v8819_v58 = vmul.f32 -1.442695, %v11052_v61  ;;  %v11068_v7 = vadd.f32 %v9319_v5, %v10998_v12  ;;  %v11085_v5 = vrot.slane %v1867_v16, 5  ;;  %v4484_v13 = vrot.slane %v4482_v50, 4 }
 0x171   : > { %v4493_v45 = vrot.slane %v10759_v33, 6  ;;  %v4496_v28 = vrot.slane %v10761_v34, 6  ;;  %v8914_v51 = vrot.slane %v4354_v32, 10  ;;  %v3567_v41 = vrot.slane %v3565_v10, 5 }
 0x172   : > { %9756 = vpow2.f32 %v8819_v58  ;;  %v8820_v3 = vmul.f32 -1.442695, %v11068_v7  ;;  %v9320_v39 = vpop.f32.mrb[8].mxu0  ;;  %18520 = vst [vmem:[#allocation39_spill] sm:$0xff] %v11085_v5  ;;  %v3568_v58 = vshll.u32 %v11070_v14, 16  ;;  %v18523_v21 = vmov 0 }
 0x173   : > { %v9321_v29 = vpop.f32.mrb[9].mxu0  ;;  %v18524_v21 = vsel %vm11111_vm11, 4294967295, %v18523_v21  ;;  %v4495_v62 = vrot.slane %v4493_v45, 4  ;;  %v4486_v32 = vsel %vm11111_vm11, %v4484_v13, %v4485_v17  ;;  %v11120_v10 = vrot.slane %v3552_v59, 4  ;;  %v1276_v13 = vld [vmem:[#allocation2 + $0x10c] sm:$0x3] }
 0x174   : > { %v9753_v24 = vpop.eup %9752  ;;  %9758 = vpow2.f32 %v8820_v3  ;;  %v9322_v8 = vadd.f32 %v9321_v29, %v9320_v39  ;;  %v9323_v4 = vpop.f32.mrb[10].mxu0  ;;  %v4487_v29 = vrot.slane %v4485_v17, 4  ;;  %18525 = vst [vmem:[#allocation41_spill] sm:$0xff] %v18524_v21  ;;  %v1945_v5 = vshll.u32 %v1276_v13, 16 }
 0x175   : > { %v762_v22 = vadd.f32 1.0, %v9753_v24  ;;  %v9324_v16 = vpop.f32.mrb[11].mxu0  ;;  %v3570_v24 = vrot.slane %v3568_v58, 6  ;;  %18526 = vst [vmem:[#allocation42_spill] sm:$0xff] %v11120_v10  ;;  %v4498_v58 = vrot.slane %v4496_v28, 4  ;;  %v11163_v13 = vmax.bf16 %v4486_v32, %v11061_v55 }
 0x176   : > { %v9755_v46 = vpop.eup %9754  ;;  %v11101_v0 = vadd.f32 %v9322_v8, %v10998_v12  ;;  %v9325_v1 = vadd.f32 %v9324_v16, %v9323_v4  ;;  %v1275_v8 = vld [vmem:[#allocation2 + $0xfc] sm:$0x3]  ;;  %v4483_v4 = vsel %vm11111_vm11, %v8913_v30, %v4482_v50  ;;  %v4489_v19 = vsel %vm11111_vm11, %v4487_v29, %v4488_v43 }
 0x177   : > { %9760 = vrcp.f32 %v762_v22  ;;  %v763_v23 = vadd.f32 1.0, %v9755_v46  ;;  %v1906_v16 = vshll.u32 %v1275_v8, 16  ;;  %v4499_v46 = vrot.slane %v10963_v57, 6  ;;  %18536 = vst [vmem:[#allocation52_spill] sm:$0xff] %v11163_v13 }
 0x178   : > { %v8821_v3 = vmul.f32 -1.442695, %v11101_v0  ;;  %v11107_v39 = vadd.f32 %v9325_v1, %v10998_v12  ;;  %v4494_v50 = vsel %vm11111_vm11, %v8914_v51, %v4493_v45  ;;  %v11129_v59 = vor.u32 %v3570_v24, %v3567_v41 }
 0x179   : > { %9762 = vrcp.f32 %v763_v23  ;;  %v11131_v8 = vrot.slane %v4488_v43, 4  ;;  %v4497_v57 = vsel %vm11111_vm11, %v4495_v62, %v4496_v28  ;;  %v11138_v29 = vrot.slane %v4499_v46, 4 }
 0x17a   : > { %9764 = vpow2.f32 %v8821_v3  ;;  %v8822_v33 = vmul.f32 -1.442695, %v11107_v39  ;;  %v9326_v34 = vpop.f32.mrb[12].mxu0  ;;  %18528 = vst [vmem:[#allocation44_spill] sm:$0xff] %v11129_v59  ;;  %v11140_v51 = vrot.slane %v1906_v16, 5  ;;  %v4500_v41 = vsel %vm11111_vm11, %v4498_v58, %v4499_v46 }
 0x17b   : > { %v9327_v22 = vpop.f32.mrb[13].mxu0  ;;  %18529 = vst [vmem:[#allocation45_spill] sm:$0xff] %v11131_v8  ;;  %18530 = vst [vmem:[#allocation46_spill] sm:$0xff] %v11138_v29  ;;  %v11154_v16 = vmax.bf16 %v4483_v4, %v11044_v37  ;;  %v11169_v37 = vmax.bf16 %v4494_v50, %v11049_v63  ;;  %v11175_v4 = vmax.bf16 %v4500_v41, %v11092_v56 }
 0x17c   : > { %v9757_v1 = vpop.eup %9756  ;;  %9766 = vpow2.f32 %v8822_v33  ;;  %v9328_v23 = vadd.f32 %v9327_v22, %v9326_v34  ;;  %v9329_v3 = vpop.f32.mrb[14].mxu0  ;;  %18531 = vst [vmem:[#allocation47_spill] sm:$0xff] %v11140_v51 }
 0x17d   : > { %v764_v30 = vadd.f32 1.0, %v9757_v1  ;;  %v9330_v17 = vpop.f32.mrb[15].mxu0  ;;  %18533 = vst [vmem:[#allocation49_spill] sm:$0xff] %v11154_v16  ;;  %18538 = vst [vmem:[#allocation54_spill] sm:$0xff] %v11169_v37 }
 0x17e   : > { %v9759_v33 = vpop.eup %9758  ;;  %v11136_v34 = vadd.f32 %v9328_v23, %v10998_v12  ;;  %v9331_v22 = vadd.f32 %v9330_v17, %v9329_v3  ;;  %v11150_v23 = vrot.slane %v1945_v5, 5  ;;  %v11160_v17 = vld [vmem:[#allocation2 + $0x80] sm:$0xc]  ;;  %18540 = vst [vmem:[#allocation56_spill] sm:$0xff] %v11175_v4 }
 0x17f   : > { %9768 = vrcp.f32 %v764_v30  ;;  %v765_v45 = vadd.f32 1.0, %v9759_v33  ;;  %18535 = vst [vmem:[#allocation51_spill] sm:$0xff] %v11160_v17 }
 0x180   : > { %v8823_v43 = vmul.f32 -1.442695, %v11136_v34  ;;  %v11146_v24 = vadd.f32 %v9331_v22, %v10998_v12  ;;  %18532 = vst [vmem:[#allocation48_spill] sm:$0xff] %v11150_v23  ;;  %v11166_v22 = vmax.bf16 %v4489_v19, %v11075_v44 }
 0x181   : > { %v9761_v1 = vpop.eup %9760  ;;  %9770 = vrcp.f32 %v765_v45 }
 0x182   : > { %v11157_v58 = vmul.f32 %v9761_v1, %v11009_v36  ;;  %9772 = vpow2.f32 %v8823_v43  ;;  %v8824_v46 = vmul.f32 -1.442695, %v11146_v24  ;;  %v9332_v30 = vpop.f32.mrb[16].mxu0  ;;  %18537 = vst [vmem:[#allocation53_spill] sm:$0xff] %v11166_v22  ;;  %v11172_v36 = vmax.bf16 %v4497_v57, %v11080_v60 }
 0x183   : > { %v9763_v33 = vpop.eup %9762  ;;  %v9333_v5 = vpop.f32.mrb[17].mxu0 }
 0x184   : > { %18534 = vst [vmem:[#allocation50_spill] sm:$0xff] %v11157_v58  ;;  %18539 = vst [vmem:[#allocation55_spill] sm:$0xff] %v11172_v36  ;;  %v9765_v45 = vpop.eup %9764  ;;  %v9227_v43 = vpack.c.bf16 %v11157_v58, %v11157_v58  ;;  %v11180_v55 = vmul.f32 %v9763_v33, %v11022_v42  ;;  %9774 = vpow2.f32 %v8824_v46  ;;  %v9334_v32 = vadd.f32 %v9333_v5, %v9332_v30  ;;  %v9335_v19 = vpop.f32.mrb[18].mxu0 }
 0x185   : > { %v766_v44 = vadd.f32 1.0, %v9765_v45  ;;  %v9336_v1 = vpop.f32.mrb[19].mxu0 }
 0x186   : > { %18541 = vst [vmem:[#allocation57_spill] sm:$0xff] %v11180_v55  ;;  %v9767_v50 = vpop.eup %9766  ;;  %1116 = vst [vmem:[#allocation2 + $0x64] sm:$0xf] %v9227_v43  ;;  %v9228_v57 = vpack.c.bf16 %v11180_v55, %v11180_v55  ;;  %v11189_v42 = vadd.f32 %v9334_v32, %v10998_v12  ;;  %v9337_v41 = vadd.f32 %v9336_v1, %v9335_v19  ;;  %v11202_v32 = vrot.slane %v11163_v13, 6 }
 0x187   : > { %9776 = vrcp.f32 %v766_v44  ;;  %v767_v30 = vadd.f32 1.0, %v9767_v50  ;;  %v5463_v19 = vrot.slane %v11166_v22, 6  ;;  %v11206_v44 = vrot.slane %v11172_v36, 6 }
 0x188   : > { %1117 = vst [vmem:[#allocation2 + $0x68] sm:$0xf] %v9228_v57  ;;  %v8825_v45 = vmul.f32 -1.442695, %v11189_v42  ;;  %v11199_v43 = vadd.f32 %v9337_v41, %v10998_v12  ;;  %18542 = vst [vmem:[#allocation58_spill] sm:$0xff] %v11202_v32  ;;  %v5468_v50 = vrot.slane %v11175_v4, 6  ;;  %v11220_v28 = vmax.bf16 %v11202_v32, %v11154_v16 }
 0x189   : > { %v9769_v1 = vpop.eup %9768  ;;  %9778 = vrcp.f32 %v767_v30  ;;  %18543 = vst [vmem:[#allocation59_spill] sm:$0xff] %v11206_v44  ;;  %v5462_v33 = vrot.slane %v11202_v32, 4  ;;  %v5465_v3 = vrot.slane %v5463_v19, 4  ;;  %v5467_v30 = vrot.slane %v11206_v44, 4 }
 0x18a   : > { %v11211_v57 = vmul.f32 %v9769_v1, %v11052_v61  ;;  %9780 = vpow2.f32 %v8825_v45  ;;  %v8826_v41 = vmul.f32 -1.442695, %v11199_v43  ;;  %v9338_v5 = vpop.f32.mrb[20].mxu0  ;;  %v11216_v63 = vrot.slane %v5468_v50, 4  ;;  %18546 = vst [vmem:[#allocation62_spill] sm:$0xff] %v11220_v28 }
 0x18b   : > { %v9771_v46 = vpop.eup %9770  ;;  %v9339_v60 = vpop.f32.mrb[21].mxu0  ;;  %v11231_v44 = vsel %vm11111_vm11, %v5462_v33, %v5463_v19  ;;  %v11235_v28 = vsel %vm11111_vm11, %v5467_v30, %v5468_v50 }
 0x18c   : > { %18544 = vst [vmem:[#allocation60_spill] sm:$0xff] %v11211_v57  ;;  %18545 = vst [vmem:[#allocation61_spill] sm:$0xff] %v11216_v63  ;;  %v9773_v56 = vpop.eup %9772  ;;  %v9229_v61 = vpack.c.bf16 %v11211_v57, %v11211_v57  ;;  %v11225_v45 = vmul.f32 %v9771_v46, %v11068_v7  ;;  %9782 = vpow2.f32 %v8826_v41  ;;  %v9340_v1 = vadd.f32 %v9339_v60, %v9338_v5  ;;  %v9341_v62 = vpop.f32.mrb[22].mxu0 }
 0x18d   : > { %v768_v27 = vadd.f32 1.0, %v9773_v56  ;;  %v9342_v29 = vpop.f32.mrb[23].mxu0  ;;  %v11227_v8 = vld [vmem:[#allocation2 + $0x64] sm:$0xf]  ;;  %18548 = vst [vmem:[#allocation64_spill] sm:$0xff] %v11231_v44  ;;  %18549 = vst [vmem:[#allocation65_spill] sm:$0xff] %v11235_v28  ;;  %v11238_v57 = vmax.bf16 %v5465_v3, %v11166_v22 }
 0x18e   : > { %18547 = vst [vmem:[#allocation63_spill] sm:$0xff] %v11225_v45  ;;  %v9775_v7 = vpop.eup %9774  ;;  %1118 = vst [vmem:[#allocation2 + $0x74] sm:$0xf] %v9229_v61  ;;  %v9230_v60 = vpack.c.bf16 %v11225_v45, %v11225_v45  ;;  %v11243_v56 = vadd.f32 %v9340_v1, %v10998_v12  ;;  %v9343_v46 = vadd.f32 %v9342_v29, %v9341_v62  ;;  %v17717_v5 = vshll.u32 %v11227_v8, 16  ;;  %v9719_v62 = vld [vmem:[#allocation9 + $0x150] ss:$8 sps:$4 sm:$0xff]  }
 0x18f   : > { %18550 = vst [vmem:[#allocation66_spill] sm:$0xff] %v11238_v57  ;;  %9784 = vrcp.f32 %v768_v27  ;;  %v769_v33 = vadd.f32 1.0, %v9775_v7  ;;  %v11246_v19 = vld [vmem:[#allocation2 + $0x68] sm:$0xf]  ;;  %v17718_v50 = vshrl.u32 %v11227_v8, 16  ;;  %v2818_v3 = vrot.slane %v11227_v8, 5 }
 0x190   : > { %1119 = vst [vmem:[#allocation2 + $0x78] sm:$0xf] %v9230_v60  ;;  %v8827_v41 = vmul.f32 -1.442695, %v11243_v56  ;;  %v11252_v30 = vadd.f32 %v9343_v46, %v10998_v12  ;;  %v1537_v61 = vrot.slane %v17717_v5, 5  ;;  %v18551_v60 = vrot.slane %v10862_v18, 9 }
 0x191   : > { %v9777_v27 = vpop.eup %9776  ;;  %9786 = vrcp.f32 %v769_v33  ;;  %v1541_v1 = vrot.slane %v17718_v50, 4  ;;  %v9721_v46 = vld [vmem:[#allocation9 + $0x154] ss:$8 sps:$4 sm:$0xff]   ;;  %v18553_v18 = vshll.u32 %v11246_v19, 16 }
 0x192   : > { %v11264_v57 = vsel %vm10899_vm5, %v18551_v60, %v2818_v3  ;;  %v11267_v45 = vmul.f32 %v9777_v27, %v11101_v0  ;;  %9788 = vpow2.f32 %v8827_v41  ;;  %v8828_v5 = vmul.f32 -1.442695, %v11252_v30  ;;  %v9344_v29 = vpop.f32.mrb[24].mxu0  ;;  %7826 = vmatprep.subr.bf16.mxu0 %v9721_v46 }
 0x193   : > { %v1538_v33 = vsel %vm10803_vm2, %v10853_v11, %v1537_v61  ;;  %v9779_v50 = vpop.eup %9778  ;;  %v9345_v7 = vpop.f32.mrb[25].mxu0  ;;  %v1542_v55 = vor.u32 %v1541_v1, %v1537_v61  ;;  %v1547_v58 = vrot.slane %v18553_v18, 5  ;;  %v18554_v60 = vshrl.u32 %v11246_v19, 16  ;;  %7827 = vmatpush1.bf16.msra.mxu0 %v9719_v62 }
 0x194   : > { %18552 = vst [vmem:[#allocation67_spill] sm:$0xff] %v11267_v45  ;;  %v11278_v0 = vmax.bf16 %v1538_v33, %v10777_v49  ;;  %v9781_v41 = vpop.eup %9780  ;;  %v9231_v27 = vpack.c.bf16 %v11267_v45, %v11267_v45  ;;  %v11283_v63 = vmul.f32 %v9779_v50, %v11107_v39  ;;  %9790 = vpow2.f32 %v8828_v5  ;;  %v9347_v61 = vpop.f32.mrb[26].mxu0 }
 0x195   : > { %v1551_v32 = vrot.slane %v18554_v60, 4  ;;  %v9346_v11 = vadd.f32 %v9345_v7, %v9344_v29  ;;  %v11285_v1 = vld [vmem:[#allocation2 + $0x74] sm:$0xf]  ;;  %v770_v18 = vadd.f32 1.0, %v9781_v41  ;;  %v9348_v28 = vpop.f32.mrb[27].mxu0  ;;  %v1543_v60 = vrot.slane %v1542_v55, 4 }
 0x196   : > { %18555 = vst [vmem:[#allocation68_spill] sm:$0xff] %v11283_v63  ;;  %v11287_v49 = vrot.slane %v2818_v3, 4  ;;  %v9783_v46 = vpop.eup %9782  ;;  %1120 = vst [vmem:[#allocation2 + $0x84] sm:$0xf] %v9231_v27  ;;  %v9232_v33 = vpack.c.bf16 %v11283_v63, %v11283_v63  ;;  %v9349_v5 = vadd.f32 %v9348_v28, %v9347_v61  ;;  %v17724_v50 = vshll.u32 %v11285_v1, 16 }
 0x197   : > { %v1552_v22 = vor.u32 %v1551_v32, %v1547_v58  ;;  %v11292_v39 = vadd.f32 %v9346_v11, %v10998_v12  ;;  %v11295_v29 = vld [vmem:[#allocation2 + $0x78] sm:$0xf]  ;;  %9792 = vrcp.f32 %v770_v18  ;;  %v771_v62 = vadd.f32 1.0, %v9783_v46 }
 0x198   : > { %v1548_v55 = vsel %vm10803_vm2, %v1543_v60, %v1547_v58  ;;  %1121 = vst [vmem:[#allocation2 + $0x88] sm:$0xf] %v9232_v33  ;;  %v11301_v7 = vadd.f32 %v9349_v5, %v10998_v12  ;;  %v11305_v41 = vrot.slane %v17724_v50, 5  ;;  %v17726_v28 = vshrl.u32 %v11285_v1, 16 }
 0x199   : > { %v1553_v32 = vrot.slane %v1552_v22, 4  ;;  %v8829_v3 = vmul.f32 -1.442695, %v11292_v39  ;;  %v9785_v27 = vpop.eup %9784  ;;  %9794 = vrcp.f32 %v771_v62  ;;  %v17729_v58 = vshll.u32 %v11295_v29, 16 }
 0x19a   : > { %v17734_v22 = vshrl.u32 %v11295_v29, 16  ;;  %v11314_v61 = vmul.f32 %v9785_v27, %v11136_v34  ;;  %v8830_v18 = vmul.f32 -1.442695, %v11301_v7  ;;  %v9350_v60 = vpop.f32.mrb[28].mxu0  ;;  %v1580_v62 = vrot.slane %v17726_v28, 4 }
 0x19b   : > { %v1558_v11 = vsel %vm10803_vm2, %v1553_v32, %v10843_v15  ;;  %9796 = vpow2.f32 %v8829_v3  ;;  %v9787_v33 = vpop.eup %9786  ;;  %v9351_v5 = vpop.f32.mrb[29].mxu0  ;;  %v11325_v32 = vrot.slane %v17729_v58, 5  ;;  %v11330_v3 = vmax.bf16 %v1548_v55, %v11227_v8 }
 0x19c   : > { %18556 = vst [vmem:[#allocation69_spill] sm:$0xff] %v11314_v61  ;;  %v1590_v34 = vrot.slane %v17734_v22, 4  ;;  %v9789_v27 = vpop.eup %9788  ;;  %v9233_v50 = vpack.c.bf16 %v11314_v61, %v11314_v61  ;;  %v11335_v46 = vmul.f32 %v9787_v33, %v11146_v24  ;;  %9798 = vpow2.f32 %v8830_v18  ;;  %v9353_v28 = vpop.f32.mrb[30].mxu0 }
 0x19d   : > { %v9352_v15 = vadd.f32 %v9351_v5, %v9350_v60  ;;  %v11337_v63 = vld [vmem:[#allocation2 + $0x84] sm:$0xf]  ;;  %v772_v58 = vadd.f32 1.0, %v9789_v27  ;;  %v9354_v45 = vpop.f32.mrb[31].mxu0  ;;  %v1581_v4 = vor.u32 %v1580_v62, %v11305_v41  ;;  %v11342_v55 = vmax.bf16 %v1558_v11, %v11246_v19 }
 0x19e   : > { %18557 = vst [vmem:[#allocation70_spill] sm:$0xff] %v11335_v46  ;;  %v1591_v22 = vor.u32 %v1590_v34, %v11325_v32  ;;  %v9791_v36 = vpop.eup %9790  ;;  %v17741_v61 = vshll.u32 %v11337_v63, 16  ;;  %v17742_v24 = vshrl.u32 %v11337_v63, 16  ;;  %1122 = vst [vmem:[#allocation2 + $0x94] sm:$0xf] %v9233_v50  ;;  %v9234_v60 = vpack.c.bf16 %v11335_v46, %v11335_v46 }
 0x19f   : > { %v11349_v33 = vld [vmem:[#allocation2 + $0x88] sm:$0xf]  ;;  %9800 = vrcp.f32 %v772_v58  ;;  %v773_v5 = vadd.f32 1.0, %v9791_v36  ;;  %v11352_v62 = vadd.f32 %v9352_v15, %v10998_v12  ;;  %v9355_v11 = vadd.f32 %v9354_v45, %v9353_v28 }
 0x1a0   : > { %v11356_v34 = vrot.slane %v17741_v61, 5  ;;  %v11360_v27 = vrot.slane %v17742_v24, 4  ;;  %v17745_v50 = vshll.u32 %v11349_v33, 16  ;;  %v17746_v18 = vshrl.u32 %v11349_v33, 16  ;;  %1123 = vst [vmem:[#allocation2 + $0x98] sm:$0xf] %v9234_v60 }
 0x1a1   : > { %v9793_v46 = vpop.eup %9792  ;;  %9802 = vrcp.f32 %v773_v5  ;;  %v8831_v15 = vmul.f32 -1.442695, %v11352_v62  ;;  %v11367_v45 = vadd.f32 %v9355_v11, %v10998_v12  ;;  %v11380_v24 = vrot.slane %v1581_v4, 4 }
 0x1a2   : > { %v11371_v28 = vrot.slane %v17745_v50, 5  ;;  %v11375_v58 = vrot.slane %v17746_v18, 4  ;;  %v11378_v61 = vmul.f32 %v9793_v46, %v11189_v42  ;;  %v9356_v60 = vpop.f32.mrb[32].mxu0  ;;  %v11383_v16 = vrot.slane %v1591_v22, 4 }
 0x1a3   : > { %v9795_v5 = vpop.eup %9794  ;;  %9804 = vpow2.f32 %v8831_v15  ;;  %v8832_v36 = vmul.f32 -1.442695, %v11367_v45  ;;  %v9357_v11 = vpop.f32.mrb[33].mxu0 }
 0x1a4   : > { %18558 = vst [vmem:[#allocation71_spill] sm:$0xff] %v11378_v61  ;;  %v9235_v42 = vpack.c.bf16 %v11378_v61, %v11378_v61  ;;  %v11392_v46 = vmul.f32 %v9795_v5, %v11199_v43  ;;  %v9358_v4 = vadd.f32 %v9357_v11, %v9356_v60  ;;  %v9359_v37 = vpop.f32.mrb[34].mxu0 }
 0x1a5   : > { %v9797_v18 = vpop.eup %9796  ;;  %v11398_v15 = vld [vmem:[#allocation2 + $0x94] sm:$0xf]  ;;  %9806 = vpow2.f32 %v8832_v36  ;;  %v9360_v14 = vpop.f32.mrb[35].mxu0 }
 0x1a6   : > { %18559 = vst [vmem:[#allocation72_spill] sm:$0xff] %v11392_v46  ;;  %18560 = vst [vmem:[#allocation73_spill] sm:$0xff] %v11398_v15  ;;  %v774_v23 = vadd.f32 1.0, %v9797_v18  ;;  %v9799_v60 = vpop.eup %9798  ;;  %v1652_v5 = vshll.u32 %v11398_v15, 16  ;;  %v1656_v11 = vshrl.u32 %v11398_v15, 16  ;;  %v17765_v22 = vrot.slane %v11398_v15, 5 }
 0x1a7   : > { %1124 = vst [vmem:[#allocation2 + $0xa4] sm:$0xf] %v9235_v42  ;;  %v11410_v18 = vld [vmem:[#allocation2 + $0x98] sm:$0xf]  ;;  %v9236_v36 = vpack.c.bf16 %v11392_v46, %v11392_v46  ;;  %v775_v50 = vadd.f32 1.0, %v9799_v60  ;;  %v11415_v40 = vadd.f32 %v9358_v4, %v10998_v12 }
 0x1a8   : > { %18561 = vst [vmem:[#allocation74_spill] sm:$0xff] %v11410_v18  ;;  %9808 = vrcp.f32 %v774_v23  ;;  %v11417_v43 = vrot.slane %v1652_v5, 5  ;;  %v1658_v17 = vrot.slane %v1656_v11, 4  ;;  %v11421_v52 = vrot.slane %v17765_v22, 4 }
 0x1a9   : > { %v11423_v51 = vrot.slane %v1656_v11, 5  ;;  %v9801_v42 = vpop.eup %9800  ;;  %v11425_v61 = vrot.slane %v1652_v5, 6  ;;  %v1662_v31 = vshll.u32 %v11410_v18, 16  ;;  %v1666_v23 = vshrl.u32 %v11410_v18, 16  ;;  %1125 = vst [vmem:[#allocation2 + $0xa8] sm:$0xf] %v9236_v36 }
 0x1aa   : > { %18562 = vst [vmem:[#allocation75_spill] sm:$0xff] %v11417_v43  ;;  %18563 = vst [vmem:[#allocation76_spill] sm:$0xff] %v11421_v52  ;;  %v17769_v60 = vrot.slane %v11410_v18, 5  ;;  %v1659_v4 = vor.u32 %v1658_v17, %v11417_v43  ;;  %v11433_v15 = vmul.f32 %v9801_v42, %v11243_v56  ;;  %9810 = vrcp.f32 %v775_v50  ;;  %v9362_v11 = vpop.f32.mrb[36].mxu0 }
 0x1ab   : > { %18564 = vst [vmem:[#allocation77_spill] sm:$0xff] %v11423_v51  ;;  %18565 = vst [vmem:[#allocation78_spill] sm:$0xff] %v11425_v61  ;;  %v9803_v22 = vpop.eup %9802  ;;  %v11435_v51 = vrot.slane %v1662_v31, 5  ;;  %v1668_v5 = vrot.slane %v1666_v23, 4  ;;  %v11441_v52 = vrot.slane %v1666_v23, 5  ;;  %v9363_v36 = vpop.f32.mrb[37].mxu0 }
 0x1ac   : > { %18566 = vst [vmem:[#allocation79_spill] sm:$0xff] %v11433_v15  ;;  %v11439_v61 = vrot.slane %v17769_v60, 4  ;;  %v11443_v21 = vrot.slane %v1659_v4, 4  ;;  %v11445_v17 = vrot.slane %v1662_v31, 6  ;;  %v9237_v56 = vpack.c.bf16 %v11433_v15, %v11433_v15  ;;  %v11452_v42 = vpop.f32.mrb[38].mxu0 }
 0x1ad   : > { %18567 = vst [vmem:[#allocation80_spill] sm:$0xff] %v11435_v51  ;;  %18569 = vst [vmem:[#allocation82_spill] sm:$0xff] %v11441_v52  ;;  %v11450_v50 = vmul.f32 %v9803_v22, %v11252_v30  ;;  %v9805_v46 = vpop.eup %9804  ;;  %v1669_v43 = vor.u32 %v1668_v5, %v11435_v51  ;;  %v8833_v23 = vmul.f32 -1.442695, %v11415_v40  ;;  %v9361_v52 = vadd.f32 %v9360_v14, %v9359_v37  ;;  %v11460_v31 = vpop.f32.mrb[39].mxu0 }
 0x1ae   : > { %18568 = vst [vmem:[#allocation81_spill] sm:$0xff] %v11439_v61  ;;  %18570 = vst [vmem:[#allocation83_spill] sm:$0xff] %v11443_v21  ;;  %v11455_v60 = vld [vmem:[#allocation2 + $0xa4] sm:$0xf]  ;;  %v11458_v4 = vadd.f32 %v9363_v36, %v9362_v11  ;;  %v776_v51 = vadd.f32 1.0, %v9805_v46 }
 0x1af   : > { %18571 = vst [vmem:[#allocation84_spill] sm:$0xff] %v11445_v17  ;;  %18572 = vst [vmem:[#allocation85_spill] sm:$0xff] %v11450_v50  ;;  %v1691_v17 = vshll.u32 %v11455_v60, 16  ;;  %v1695_v15 = vshrl.u32 %v11455_v60, 16  ;;  %v17777_v30 = vrot.slane %v11455_v60, 5  ;;  %v9807_v61 = vpop.eup %9806  ;;  %v1670_v5 = vrot.slane %v1669_v43, 4 }
 0x1b0   : > { %18573 = vst [vmem:[#allocation86_spill] sm:$0xff] %v11455_v60  ;;  %1126 = vst [vmem:[#allocation2 + $0xb4] sm:$0xf] %v9237_v56  ;;  %v9238_v21 = vpack.c.bf16 %v11450_v50, %v11450_v50  ;;  %9812 = vpow2.f32 %v8833_v23  ;;  %v11476_v44 = vld [vmem:[#allocation2 + $0xa8] sm:$0xf]  ;;  %v18578_v56 = vld [vmem:[#allocation16_spill] sm:$0xff] }
 0x1b1   : > { %v11468_v14 = vrot.slane %v1691_v17, 5  ;;  %v1697_v37 = vrot.slane %v1695_v15, 4  ;;  %v11472_v11 = vrot.slane %v17777_v30, 4  ;;  %v11474_v36 = vrot.slane %v1695_v15, 5  ;;  %18577 = vst [vmem:[#allocation90_spill] sm:$0xff] %v11476_v44 }
 0x1b2   : > { %v9809_v22 = vpop.eup %9808  ;;  %v1675_v43 = vsel %vm10803_vm2, %v1670_v5, %v18578_v56  ;;  %v11481_v13 = vrot.slane %v1691_v17, 6  ;;  %v1701_v46 = vshll.u32 %v11476_v44, 16  ;;  %v1705_v23 = vshrl.u32 %v11476_v44, 16  ;;  %1127 = vst [vmem:[#allocation2 + $0xb8] sm:$0xf] %v9238_v21  ;;  %v11491_v60 = vpop.f32.mrb[40].mxu0 }
 0x1b3   : > { %18574 = vst [vmem:[#allocation87_spill] sm:$0xff] %v11468_v14  ;;  %18575 = vst [vmem:[#allocation88_spill] sm:$0xff] %v11472_v11  ;;  %v11486_v50 = vmax.bf16 %v1675_v43, %v11410_v18  ;;  %v1698_v15 = vor.u32 %v1697_v37, %v11468_v14  ;;  %v17782_v30 = vrot.slane %v11476_v44, 5  ;;  %v11506_v43 = vmul.f32 %v9809_v22, %v11292_v39  ;;  %v18593_v22 = vld [vmem:[#allocation20_spill] sm:$0xff] }
 0x1b4   : > { %18576 = vst [vmem:[#allocation89_spill] sm:$0xff] %v11474_v36  ;;  %18579 = vst [vmem:[#allocation91_spill] sm:$0xff] %v11481_v13  ;;  %v11493_v11 = vrot.slane %v1701_v46, 5  ;;  %v1707_v17 = vrot.slane %v1705_v23, 4  ;;  %v11495_v5 = vrot.slane %v1705_v23, 5  ;;  %v11497_v56 = vrot.slane %v1701_v46, 6  ;;  %v9811_v21 = vpop.eup %9810 }
 0x1b5   : > { %18580 = vst [vmem:[#allocation92_spill] sm:$0xff] %v11486_v50  ;;  %v9369_v13 = vpop.f32.mrb[41].mxu0  ;;  %v11499_v59 = vrot.slane %v1698_v15, 4  ;;  %v11503_v37 = vrot.slane %v17782_v30, 4  ;;  %18586 = vst [vmem:[#allocation98_spill] sm:$0xff] %v11506_v43  ;;  %9814 = vrcp.f32 %v776_v51  ;;  %v11512_v46 = vmul.f32 %v9811_v21, %v11301_v7 }
 0x1b6   : > { %18581 = vst [vmem:[#allocation93_spill] sm:$0xff] %v11493_v11  ;;  %18582 = vst [vmem:[#allocation94_spill] sm:$0xff] %v11495_v5  ;;  %v9371_v36 = vpop.f32.mrb[42].mxu0  ;;  %v1708_v14 = vor.u32 %v1707_v17, %v11493_v11  ;;  %v777_v23 = vadd.f32 1.0, %v9807_v61  ;;  %v11515_v15 = vadd.f32 %v9361_v52, %v10998_v12  ;;  %v9722_v5 = vld [vmem:[#allocation9 + $0x160] ss:$8 sps:$4 sm:$0xff]   ;;  %v9239_v7 = vpack.c.bf16 %v11506_v43, %v11506_v43 }
 0x1b7   : > { %18583 = vst [vmem:[#allocation95_spill] sm:$0xff] %v11497_v56  ;;  %18584 = vst [vmem:[#allocation96_spill] sm:$0xff] %v11499_v59  ;;  %v11509_v50 = vld [vmem:[#allocation2 + $0xb4] sm:$0xf]  ;;  %v9372_v56 = vpop.f32.mrb[43].mxu0  ;;  %v9240_v61 = vpack.c.bf16 %v11512_v46, %v11512_v46 }
 0x1b8   : > { %18585 = vst [vmem:[#allocation97_spill] sm:$0xff] %v11503_v37  ;;  %18587 = vst [vmem:[#allocation99_spill] sm:$0xff] %v11509_v50  ;;  %v1730_v30 = vshll.u32 %v11509_v50, 16  ;;  %v1734_v39 = vshrl.u32 %v11509_v50, 16  ;;  %v17788_v51 = vrot.slane %v11509_v50, 5  ;;  %v1709_v37 = vrot.slane %v1708_v14, 4 }
 0x1b9   : > { %18588 = vst [vmem:[#allocation100_spill] sm:$0xff] %v11512_v46  ;;  %v9724_v17 = vld [vmem:[#allocation9 + $0x164] ss:$8 sps:$4 sm:$0xff]   ;;  %9816 = vrcp.f32 %v777_v23  ;;  %v11533_v18 = vld [vmem:[#allocation2 + $0xb8] sm:$0xf] }
 0x1ba   : > { %v11525_v52 = vrot.slane %v1730_v30, 5  ;;  %v1736_v21 = vrot.slane %v1734_v39, 4  ;;  %v11529_v59 = vrot.slane %v17788_v51, 4  ;;  %v11531_v11 = vrot.slane %v1734_v39, 5  ;;  %18592 = vst [vmem:[#allocation104_spill] sm:$0xff] %v11533_v18  ;;  %7828 = vmatprep.subr.bf16.mxu0 %v9724_v17  ;;  %v9813_v14 = vpop.eup %9812 }
 0x1bb   : > { %v1714_v43 = vsel %vm10803_vm2, %v1709_v37, %v18593_v22  ;;  %v11538_v10 = vrot.slane %v1730_v30, 6  ;;  %v1740_v23 = vshll.u32 %v11533_v18, 16  ;;  %v1744_v46 = vshrl.u32 %v11533_v18, 16  ;;  %1128 = vst [vmem:[#allocation2 + $0xc4] sm:$0xf] %v9239_v7  ;;  %7829 = vmatpush1.bf16.msra.mxu0 %v9722_v5  ;;  %v11548_v37 = vpop.f32.mrb[44].mxu0 }
 0x1bc   : > { %18589 = vst [vmem:[#allocation101_spill] sm:$0xff] %v11525_v52  ;;  %18590 = vst [vmem:[#allocation102_spill] sm:$0xff] %v11529_v59  ;;  %v9725_v51 = vld [vmem:[#allocation9 + $0x170] ss:$8 sps:$4 sm:$0xff]   ;;  %v11543_v39 = vmax.bf16 %v1714_v43, %v11476_v44  ;;  %v1737_v17 = vor.u32 %v1736_v21, %v11525_v52  ;;  %v9727_v30 = vld [vmem:[#allocation9 + $0x174] ss:$8 sps:$4 sm:$0xff]  }
 0x1bd   : > { %18591 = vst [vmem:[#allocation103_spill] sm:$0xff] %v11531_v11  ;;  %18594 = vst [vmem:[#allocation105_spill] sm:$0xff] %v11538_v10  ;;  %v17792_v11 = vrot.slane %v11533_v18, 5  ;;  %v11550_v22 = vrot.slane %v1740_v23, 5  ;;  %v1746_v10 = vrot.slane %v1744_v46, 4  ;;  %v11552_v59 = vrot.slane %v1744_v46, 5  ;;  %7830 = vmatprep.subr.bf16.mxu0 %v9727_v30 }
 0x1be   : > { %1129 = vst [vmem:[#allocation2 + $0xc8] sm:$0xf] %v9240_v61  ;;  %18595 = vst [vmem:[#allocation106_spill] sm:$0xff] %v11543_v39  ;;  %v11554_v7 = vrot.slane %v1740_v23, 6  ;;  %v11556_v5 = vpop.f32.mrb[45].mxu0  ;;  %v11558_v43 = vrot.slane %v1737_v17, 4  ;;  %v11570_v46 = vadd.f32 %v11458_v4, %v10998_v12  ;;  %v9367_v23 = vadd.f32 %v11460_v31, %v11452_v42 }
 0x1bf   : > { %18596 = vst [vmem:[#allocation107_spill] sm:$0xff] %v11550_v22  ;;  %18597 = vst [vmem:[#allocation108_spill] sm:$0xff] %v11552_v59  ;;  %v11562_v61 = vrot.slane %v17792_v11, 4  ;;  %v778_v21 = vadd.f32 1.0, %v9813_v14  ;;  %v8834_v50 = vmul.f32 -1.442695, %v11515_v15  ;;  %v1747_v39 = vor.u32 %v1746_v10, %v11550_v22  ;;  %7831 = vmatpush1.bf16.msra.mxu0 %v9725_v51  ;;  %v9815_v14 = vpop.eup %9814 }
 0x1c0   : > { %18598 = vst [vmem:[#allocation109_spill] sm:$0xff] %v11554_v7  ;;  %18599 = vst [vmem:[#allocation110_spill] sm:$0xff] %v11558_v43  ;;  %v11565_v52 = vpop.f32.mrb[46].mxu0  ;;  %v9370_v17 = vadd.f32 %v9369_v13, %v11491_v60  ;;  %v9373_v11 = vadd.f32 %v9372_v56, %v9371_v36  ;;  %v18601_v30 = vor.u32 %v11360_v27, %v11356_v34  ;;  %v8835_v13 = vmul.f32 -1.442695, %v11570_v46 }
 0x1c1   : > { %18600 = vst [vmem:[#allocation111_spill] sm:$0xff] %v11562_v61  ;;  %v11575_v7 = vpop.f32.mrb[47].mxu0  ;;  %9818 = vrcp.f32 %v778_v21  ;;  %v1630_v10 = vor.u32 %v11375_v58, %v11371_v28  ;;  %v1748_v4 = vrot.slane %v1747_v39, 4  ;;  %v11585_v61 = vmul.f32 %v9815_v14, %v11352_v62 }
 0x1c2   : > { %v11580_v59 = vrot.slane %v18601_v30, 4  ;;  %9820 = vpow2.f32 %v8834_v50  ;;  %v11588_v60 = vld [vmem:[#allocation2 + $0xc4] sm:$0xf]  ;;  %v11593_v31 = vadd.f32 %v9367_v23, %v10998_v12  ;;  %v11596_v27 = vadd.f32 %v9370_v17, %v10998_v12  ;;  %v18605_v50 = vld [vmem:[#allocation23_spill] sm:$0xff] }
 0x1c3   : > { %18602 = vst [vmem:[#allocation112_spill] sm:$0xff] %v11585_v61  ;;  %18603 = vst [vmem:[#allocation113_spill] sm:$0xff] %v11588_v60  ;;  %v11599_v36 = vadd.f32 %v9373_v11, %v10998_v12  ;;  %v9817_v58 = vpop.eup %9816  ;;  %v1753_v56 = vsel %vm10803_vm2, %v1748_v4, %v18605_v50  ;;  %v1769_v51 = vshll.u32 %v11588_v60, 16  ;;  %v1773_v39 = vshrl.u32 %v11588_v60, 16 }
 0x1c4   : > { %v1626_v62 = vsel %vm10803_vm2, %v11580_v59, %v11371_v28  ;;  %v17799_v21 = vrot.slane %v11588_v60, 5  ;;  %v11612_v23 = vmax.bf16 %v1753_v56, %v11533_v18  ;;  %v11617_v28 = vpop.f32.mrb[48].mxu0  ;;  %9822 = vpow2.f32 %v8835_v13 }
 0x1c5   : > { %v11590_v42 = vld [vmem:[#allocation2 + $0xc8] sm:$0xf]  ;;  %v11619_v17 = vrot.slane %v1769_v51, 5  ;;  %v1775_v14 = vrot.slane %v1773_v39, 4  ;;  %v11625_v4 = vrot.slane %v1773_v39, 5  ;;  %v11627_v50 = vpop.f32.mrb[49].mxu0  ;;  %v18619_v13 = vsel %vm10803_vm2, %v10882_v54, %v11305_v41 }
 0x1c6   : > { %18604 = vst [vmem:[#allocation114_spill] sm:$0xff] %v11590_v42  ;;  %18606 = vst [vmem:[#allocation115_spill] sm:$0xff] %v11612_v23  ;;  %v1779_v11 = vshll.u32 %v11590_v42, 16  ;;  %v1783_v59 = vshrl.u32 %v11590_v42, 16  ;;  %v11623_v30 = vrot.slane %v17799_v21, 4  ;;  %v11629_v56 = vrot.slane %v1769_v51, 6 }
 0x1c7   : > { %18607 = vst [vmem:[#allocation116_spill] sm:$0xff] %v11619_v17  ;;  %18609 = vst [vmem:[#allocation118_spill] sm:$0xff] %v11625_v4  ;;  %v17802_v18 = vrot.slane %v11590_v42, 5  ;;  %v1776_v43 = vor.u32 %v1775_v14, %v11619_v17  ;;  %v9241_v51 = vpack.c.bf16 %v11585_v61, %v11585_v61  ;;  %v1631_v17 = vrot.slane %v1630_v10, 4  ;;  %v11681_v41 = vpop.f32.mrb[50].mxu0 }
 0x1c8   : > { %18608 = vst [vmem:[#allocation117_spill] sm:$0xff] %v11623_v30  ;;  %18610 = vst [vmem:[#allocation119_spill] sm:$0xff] %v11627_v50  ;;  %v11631_v12 = vrot.slane %v1779_v11, 5  ;;  %v1785_v23 = vrot.slane %v1783_v59, 4  ;;  %v11635_v22 = vrot.slane %v1783_v59, 5  ;;  %v11637_v44 = vrot.slane %v1779_v11, 6 }
 0x1c9   : > { %18611 = vst [vmem:[#allocation120_spill] sm:$0xff] %v11629_v56  ;;  %v11643_v4 = vrot.slane %v17802_v18, 4  ;;  %v11648_v56 = vmul.f32 %v9817_v58, %v11367_v45  ;;  %v11650_v60 = vrot.slane %v1776_v43, 4  ;;  %v8836_v11 = vmul.f32 -1.442695, %v11593_v31  ;;  %18623 = vst [vmem:[#allocation128_spill] sm:$0xff] %v11681_v41 }
 0x1ca   : > { %18612 = vst [vmem:[#allocation121_spill] sm:$0xff] %v11631_v12  ;;  %18613 = vst [vmem:[#allocation122_spill] sm:$0xff] %v11635_v22  ;;  %v1786_v39 = vor.u32 %v1785_v23, %v11631_v12  ;;  %v8837_v59 = vmul.f32 -1.442695, %v11596_v27  ;;  %v8838_v18 = vmul.f32 -1.442695, %v11599_v36 }
 0x1cb   : > { %18614 = vst [vmem:[#allocation123_spill] sm:$0xff] %v11637_v44  ;;  %18615 = vst [vmem:[#allocation124_spill] sm:$0xff] %v11643_v4  ;;  %v9819_v14 = vpop.eup %9818  ;;  %v9242_v23 = vpack.c.bf16 %v11648_v56, %v11648_v56  ;;  %9824 = vpow2.f32 %v8836_v11  ;;  %v10136_v43 = vld [vmem:[#allocation2 + $0x70] sm:$0xf]  ;;  %v18642_v44 = vrot.slane %v11349_v33, 5 }
 0x1cc   : > { %18616 = vst [vmem:[#allocation125_spill] sm:$0xff] %v11648_v56  ;;  %18617 = vst [vmem:[#allocation126_spill] sm:$0xff] %v11650_v60  ;;  %v1787_v21 = vrot.slane %v1786_v39, 4  ;;  %v9821_v61 = vpop.eup %9820  ;;  %v11658_v45 = vmul.f32 %v9819_v14, %v11415_v40  ;;  %v11665_v58 = vmax.bf16 %v10136_v43, %v18619_v13  ;;  %v18620_v39 = vsel %vm10803_vm2, %v11380_v24, %v11325_v32  ;;  %v18622_v14 = vld [vmem:[#allocation26_spill] sm:$0xff] }
 0x1cd   : > { %1130 = vst [vmem:[#allocation2 + $0xd4] sm:$0xf] %v9241_v51  ;;  %v11673_v10 = vmax.bf16 %v18620_v39, %v11285_v1  ;;  %v18621_v51 = vld [vmem:[#allocation27_spill] sm:$0xff]  ;;  %1131 = vst [vmem:[#allocation2 + $0xd8] sm:$0xf] %v9242_v23  ;;  %v779_v11 = vadd.f32 1.0, %v9821_v61  ;;  %9826 = vpow2.f32 %v8837_v59  ;;  %v1636_v54 = vsel %vm10803_vm2, %v1631_v17, %v18622_v14 }
 0x1ce   : > { %18618 = vst [vmem:[#allocation127_spill] sm:$0xff] %v11658_v45  ;;  %v1792_v40 = vsel %vm10803_vm2, %v1787_v21, %v18621_v51  ;;  %v9728_v43 = vld [vmem:[#allocation9 + $0x180] ss:$8 sps:$4 sm:$0xff]   ;;  %v11683_v13 = vld [vmem:[#allocation9 + $0x184] ss:$8 sps:$4 sm:$0xff]   ;;  %v9243_v24 = vpack.c.bf16 %v11658_v45, %v11658_v45  ;;  %9828 = vpow2.f32 %v8838_v18  ;;  %v18626_v61 = vsel %vm10803_vm2, %v11383_v16, %v10864_v25  ;;  %v11698_v17 = vpop.f32.mrb[51].mxu0 }
 0x1cf   : > { %18624 = vst [vmem:[#allocation129_spill] sm:$0xff] %v11683_v13  ;;  %v11686_v32 = vmax.bf16 %v1792_v40, %v11590_v42  ;;  %v11696_v21 = vmax.bf16 %v18626_v61, %v11295_v29  ;;  %18627 = vst [vmem:[#allocation131_spill] sm:$0xff] %v11698_v17  ;;  %9830 = vrcp.f32 %v779_v11  ;;  %v10137_v59 = vld [vmem:[#allocation2 + $0x80] sm:$0xf]  ;;  %v18628_v23 = vsel %vm10803_vm2, %v10895_v20, %v11356_v34  ;;  %v9731_v51 = vld [vmem:[#allocation9 + $0x190] ss:$8 sps:$4 sm:$0xff]  }
 0x1d0   : > { %v11705_v39 = vmax.bf16 %v10137_v59, %v18628_v23  ;;  %v11708_v18 = vmax.bf16 %v1626_v62, %v11337_v63  ;;  %v11711_v40 = vmax.bf16 %v1636_v54, %v11349_v33  ;;  %7832 = vmatprep.subr.bf16.mxu0 %v11683_v13  ;;  %1132 = vst [vmem:[#allocation2 + $0xe4] sm:$0xf] %v9243_v24  ;;  %v2821_v16 = vrot.slane %v11246_v19, 5  ;;  %v11750_v25 = vpop.f32.mrb[52].mxu0 }
 0x1d1   : > { %18625 = vst [vmem:[#allocation130_spill] sm:$0xff] %v11686_v32  ;;  %v2829_v11 = vrot.slane %v11285_v1, 5  ;;  %v2832_v61 = vrot.slane %v11295_v29, 5  ;;  %v18629_v45 = vrot.slane %v11337_v63, 5  ;;  %v18630_v20 = vrot.slane %v11011_v38, 9  ;;  %7833 = vmatpush1.bf16.msra.mxu0 %v9728_v43 }
 0x1d2   : > { %v18632_v24 = vrot.slane %v11349_v33, 5  ;;  %v11735_v38 = vld [vmem:[#allocation9 + $0x194] ss:$8 sps:$4 sm:$0xff]   ;;  %v2823_v43 = vrot.slane %v2821_v16, 4 }
 0x1d3   : > { %v11723_v34 = vsel %vm10899_vm5, %v18630_v20, %v18629_v45  ;;  %v18631_v62 = vmov %v18629_v45  ;;  %18633 = vst [vmem:[#allocation132_spill] sm:$0xff] %v11735_v38  ;;  %v11742_v45 = vsel %vm10899_vm5, %v11287_v49, %v2821_v16  ;;  %v18635_v20 = vld [vmem:[#allocation29_spill] sm:$0xff]  ;;  %v2831_v23 = vrot.slane %v2829_v11, 4  ;;  %7834 = vmatprep.subr.bf16.mxu0 %v11735_v38  ;;  %v11757_v49 = vpop.f32.mrb[53].mxu0  ;;  %v9823_v16 = vpop.eup %9822 }
 0x1d4   : > { %v2842_v54 = vrot.slane %v18631_v62, 4  ;;  %v11729_v59 = vrot.slane %v18632_v24, 4  ;;  %v11737_v14 = vld [vmem:[#allocation2 + $0xd4] sm:$0xf]  ;;  %v18636_v62 = vrot.slane %v18635_v20, 9  ;;  %18637 = vst [vmem:[#allocation29_spill] sm:$0xff] %v11750_v25 }
 0x1d5   : > { %18634 = vst [vmem:[#allocation133_spill] sm:$0xff] %v11737_v14  ;;  %v1808_v56 = vshll.u32 %v11737_v14, 16  ;;  %v1812_v32 = vshrl.u32 %v11737_v14, 16  ;;  %18638 = vst [vmem:[#allocation134_spill] sm:$0xff] %v11757_v49  ;;  %v11759_v20 = vld [vmem:[#allocation2 + $0xd8] sm:$0xf]  ;;  %v11769_v30 = vsel %vm10899_vm5, %v2831_v23, %v2832_v61  ;;  %7835 = vmatpush1.bf16.msra.mxu0 %v9731_v51 }
 0x1d6   : > { %v11748_v24 = vsel %vm10899_vm5, %v18636_v62, %v2829_v11  ;;  %18639 = vst [vmem:[#allocation135_spill] sm:$0xff] %v11759_v20  ;;  %v18640_v62 = vld [vmem:[#allocation15_spill] sm:$0xff]  ;;  %v2834_v4 = vrot.slane %v2832_v61, 4  ;;  %v11775_v42 = vsel %vm10899_vm5, %v2842_v54, %v18642_v44  ;;  %v1818_v61 = vshll.u32 %v11759_v20, 16 }
 0x1d7   : > { %v18641_v22 = vrot.slane %v18640_v62, 5  ;;  %v11777_v60 = vrot.slane %v1808_v56, 5  ;;  %v1814_v12 = vrot.slane %v1812_v32, 4  ;;  %v18644_v62 = vrot.slane %v11737_v14, 5  ;;  %v11792_v13 = vld [vmem:[#allocation2 + $0xe4] sm:$0xf] }
 0x1d8   : > { %v11785_v23 = vrot.slane %v1808_v56, 6  ;;  %v1822_v25 = vshrl.u32 %v11759_v20, 16  ;;  %v17816_v44 = vrot.slane %v11759_v20, 5  ;;  %18648 = vst [vmem:[#allocation140_spill] sm:$0xff] %v11792_v13  ;;  %v1847_v38 = vshll.u32 %v11792_v13, 16 }
 0x1d9   : > { %v11765_v11 = vsel %vm10899_vm5, %v2823_v43, %v18641_v22  ;;  %18643 = vst [vmem:[#allocation136_spill] sm:$0xff] %v11777_v60  ;;  %v11781_v49 = vrot.slane %v18644_v62, 4  ;;  %v11783_v22 = vrot.slane %v1812_v32, 5  ;;  %v9825_v43 = vpop.eup %9824  ;;  %v1815_v51 = vor.u32 %v1814_v12, %v11777_v60 }
 0x1da   : > { %18647 = vst [vmem:[#allocation139_spill] sm:$0xff] %v11785_v23  ;;  %v9827_v54 = vpop.eup %9826  ;;  %v780_v62 = vadd.f32 1.0, %v9823_v16  ;;  %v1824_v56 = vrot.slane %v1822_v25, 4  ;;  %v11798_v23 = vrot.slane %v17816_v44, 4  ;;  %v11800_v14 = vrot.slane %v1822_v25, 5 }
 0x1db   : > { %18645 = vst [vmem:[#allocation137_spill] sm:$0xff] %v11781_v49  ;;  %18646 = vst [vmem:[#allocation138_spill] sm:$0xff] %v11783_v22  ;;  %v781_v49 = vadd.f32 1.0, %v9825_v43  ;;  %v9829_v32 = vpop.eup %9828  ;;  %v11794_v22 = vrot.slane %v1818_v61, 5  ;;  %v11802_v41 = vrot.slane %v1815_v51, 4  ;;  %v11804_v12 = vrot.slane %v1818_v61, 6 }
 0x1dc   : > { %18650 = vst [vmem:[#allocation142_spill] sm:$0xff] %v11798_v23  ;;  %18651 = vst [vmem:[#allocation143_spill] sm:$0xff] %v11800_v14  ;;  %v9831_v17 = vpop.eup %9830  ;;  %v1851_v16 = vshrl.u32 %v11792_v13, 16  ;;  %v17817_v60 = vrot.slane %v11792_v13, 5  ;;  %v11814_v25 = vrot.slane %v1847_v38, 5  ;;  %v11818_v61 = vrot.slane %v1847_v38, 6 }
 0x1dd   : > { %18649 = vst [vmem:[#allocation141_spill] sm:$0xff] %v11794_v22  ;;  %18652 = vst [vmem:[#allocation144_spill] sm:$0xff] %v11802_v41  ;;  %v1825_v43 = vor.u32 %v1824_v56, %v11794_v22  ;;  %v11812_v44 = vmul.f32 %v9831_v17, %v11515_v15  ;;  %9832 = vrcp.f32 %v780_v62  ;;  %v782_v15 = vadd.f32 1.0, %v9827_v54  ;;  %v18659_v41 = vld [vmem:[#allocation32_spill] sm:$0xff]  ;;  %v18660_v38 = vld [vmem:[#allocation17_spill] sm:$0xff] }
 0x1de   : > { %18653 = vst [vmem:[#allocation145_spill] sm:$0xff] %v11804_v12  ;;  %18655 = vst [vmem:[#allocation147_spill] sm:$0xff] %v11814_v25  ;;  %v1853_v14 = vrot.slane %v1851_v16, 4  ;;  %v11816_v51 = vrot.slane %v1851_v16, 5  ;;  %v11822_v23 = vrot.slane %v17817_v60, 4  ;;  %9834 = vrcp.f32 %v781_v49 }
 0x1df   : > { %18654 = vst [vmem:[#allocation146_spill] sm:$0xff] %v11812_v44  ;;  %18657 = vst [vmem:[#allocation149_spill] sm:$0xff] %v11818_v61  ;;  %v1826_v12 = vrot.slane %v1825_v43, 4  ;;  %v9244_v56 = vpack.c.bf16 %v11812_v44, %v11812_v44  ;;  %v783_v17 = vadd.f32 1.0, %v9829_v32  ;;  %v18661_v43 = vrot.slane %v18660_v38, 5 }
 0x1e0   : > { %18656 = vst [vmem:[#allocation148_spill] sm:$0xff] %v11816_v51  ;;  %18658 = vst [vmem:[#allocation150_spill] sm:$0xff] %v11822_v23  ;;  %v1854_v50 = vor.u32 %v1853_v14, %v11814_v25  ;;  %v18662_v61 = vrot.slane %v10889_v2, 5  ;;  %9836 = vrcp.f32 %v782_v15  ;;  %v11899_v2 = vld [vmem:[#allocation9 + $0x1a0] ss:$8 sps:$4 sm:$0xff]  }
 0x1e1   : > { %v1831_v16 = vsel %vm10803_vm2, %v1826_v12, %v18659_v41  ;;  %1133 = vst [vmem:[#allocation2 + $0xe8] sm:$0xf] %v9244_v56  ;;  %v11834_v60 = vsel %vm10899_vm5, %v2834_v4, %v18661_v43  ;;  %9838 = vrcp.f32 %v783_v17  ;;  %v18665_v56 = vshrl.u32 %v11227_v8, 16  ;;  %18679 = vst [vmem:[#allocation155_spill] sm:$0xff] %v11899_v2 }
 0x1e2   : > { %v11841_v14 = vsel %vm10899_vm5, %v11729_v59, %v18662_v61  ;;  %v11846_v54 = vmax.bf16 %v1831_v16, %v11759_v20  ;;  %v11848_v62 = vrot.slane %v1854_v50, 4  ;;  %v18666_v17 = vshll.u32 %v11227_v8, 16 }
 0x1e3   : > { %v3496_v15 = vrot.slane %v18665_v56, 5  ;;  %v18667_v43 = vshrl.u32 %v11246_v19, 16  ;;  %v18668_v59 = vshll.u32 %v11246_v19, 16  ;;  %v18669_v12 = vshrl.u32 %v11285_v1, 16 }
 0x1e4   : > { %18663 = vst [vmem:[#allocation151_spill] sm:$0xff] %v11846_v54  ;;  %18664 = vst [vmem:[#allocation152_spill] sm:$0xff] %v11848_v62  ;;  %v3497_v16 = vrot.slane %v18666_v17, 6  ;;  %v18670_v61 = vshll.u32 %v11285_v1, 16  ;;  %v18671_v50 = vshrl.u32 %v11295_v29, 16  ;;  %v18672_v56 = vshll.u32 %v11295_v29, 16 }
 0x1e5   : > { %v3501_v32 = vrot.slane %v18667_v43, 5  ;;  %v3502_v4 = vrot.slane %v18668_v59, 6  ;;  %v3525_v49 = vrot.slane %v18669_v12, 5  ;;  %v18673_v17 = vshrl.u32 %v11337_v63, 16 }
 0x1e6   : > { %v3526_v44 = vrot.slane %v18670_v61, 6  ;;  %v3498_v41 = vor.u32 %v3497_v16, %v3496_v15  ;;  %v3530_v25 = vrot.slane %v18671_v50, 5  ;;  %v3531_v8 = vrot.slane %v18672_v56, 6 }
 0x1e7   : > { %v3554_v51 = vrot.slane %v18673_v17, 5  ;;  %v3503_v43 = vor.u32 %v3502_v4, %v3501_v32  ;;  %v18674_v59 = vshll.u32 %v11337_v63, 16  ;;  %v18675_v12 = vshrl.u32 %v11349_v33, 16  ;;  %v11893_v4 = vld [vmem:[#allocation9 + $0x1a4] ss:$8 sps:$4 sm:$0xff]  }
 0x1e8   : > { %v11880_v13 = vor.u32 %v3526_v44, %v3525_v49  ;;  %v11886_v61 = vld [vmem:[#allocation2 + $0xe8] sm:$0xf]  ;;  %v3499_v50 = vsel %vm10967_vm8, %v11032_v48, %v3498_v41  ;;  %v3500_v15 = vrot.slane %v3498_v41, 4  ;;  %v3532_v16 = vor.u32 %v3531_v8, %v3530_v25  ;;  %18678 = vst [vmem:[#allocation154_spill] sm:$0xff] %v11893_v4  ;;  %v9833_v44 = vpop.eup %9832  ;;  %7836 = vmatprep.subr.bf16.mxu0 %v11893_v4 }
 0x1e9   : > { %v3555_v23 = vrot.slane %v18674_v59, 6  ;;  %v3559_v62 = vrot.slane %v18675_v12, 5  ;;  %18676 = vst [vmem:[#allocation153_spill] sm:$0xff] %v11886_v61  ;;  %v18677_v56 = vshll.u32 %v11349_v33, 16  ;;  %v1857_v49 = vshll.u32 %v11886_v61, 16  ;;  %v9835_v38 = vpop.eup %9834  ;;  %7837 = vmatpush1.bf16.msra.mxu0 %v11899_v2 }
 0x1ea   : > { %v1861_v32 = vshrl.u32 %v11886_v61, 16  ;;  %v11902_v48 = vmul.f32 %v9833_v44, %v11570_v46  ;;  %v3504_v41 = vsel %vm10967_vm8, %v3500_v15, %v3503_v43  ;;  %v3505_v25 = vrot.slane %v3503_v43, 4  ;;  %v9837_v43 = vpop.eup %9836 }
 0x1eb   : > { %v3560_v17 = vrot.slane %v18677_v56, 6  ;;  %v3528_v8 = vsel %vm10967_vm8, %v11087_v26, %v11880_v13  ;;  %v11910_v56 = vpop.f32.mrb[54].mxu0  ;;  %v11913_v12 = vrot.slane %v1857_v49, 5  ;;  %v18682_v54 = vrot.slane %v11886_v61, 5 }
 0x1ec   : > { %18680 = vst [vmem:[#allocation156_spill] sm:$0xff] %v11902_v48  ;;  %v1863_v59 = vrot.slane %v1861_v32, 4  ;;  %v11919_v44 = vrot.slane %v1861_v32, 5  ;;  %v11921_v15 = vpop.f32.mrb[55].mxu0  ;;  %v11924_v20 = vrot.slane %v1857_v49, 6  ;;  %v9245_v26 = vpack.c.bf16 %v11902_v48, %v11902_v48 }
 0x1ed   : > { %18681 = vst [vmem:[#allocation157_spill] sm:$0xff] %v11913_v12  ;;  %v11917_v46 = vrot.slane %v18682_v54, 4  ;;  %v11929_v22 = vmul.f32 %v9835_v38, %v11593_v31  ;;  %v3514_v54 = vsel %vm10967_vm8, %v3505_v25, %v11039_v53  ;;  %v3529_v2 = vrot.slane %v11880_v13, 4  ;;  %v18817_v53 = vld [vmem:[#allocation93_spill] sm:$0xff] }
 0x1ee   : > { %18684 = vst [vmem:[#allocation159_spill] sm:$0xff] %v11919_v44  ;;  %18685 = vst [vmem:[#allocation160_spill] sm:$0xff] %v11924_v20  ;;  %v1864_v32 = vor.u32 %v1863_v59, %v11913_v12  ;;  %v11936_v44 = vmul.f32 %v9837_v43, %v11596_v27  ;;  %v3534_v49 = vrot.slane %v3532_v16, 4  ;;  %v3556_v38 = vor.u32 %v3555_v23, %v3554_v51  ;;  %v18689_v43 = vld [vmem:[#allocation42_spill] sm:$0xff] }
 0x1ef   : > { %18683 = vst [vmem:[#allocation158_spill] sm:$0xff] %v11917_v46  ;;  %18686 = vst [vmem:[#allocation161_spill] sm:$0xff] %v11929_v22  ;;  %v9839_v46 = vpop.eup %9838  ;;  %v9246_v48 = vpack.c.bf16 %v11929_v22, %v11929_v22  ;;  %v3561_v20 = vor.u32 %v3560_v17, %v3559_v62  ;;  %v3533_v27 = vsel %vm10967_vm8, %v3529_v2, %v3532_v16  ;;  %v18690_v62 = vld [vmem:[#allocation39_spill] sm:$0xff] }
 0x1f0   : > { %18687 = vst [vmem:[#allocation162_spill] sm:$0xff] %v11936_v44  ;;  %1134 = vst [vmem:[#allocation2 + $0xf4] sm:$0xf] %v9245_v26  ;;  %v11942_v31 = vmul.f32 %v9839_v46, %v11599_v36  ;;  %v1865_v4 = vrot.slane %v1864_v32, 4  ;;  %v9247_v25 = vpack.c.bf16 %v11936_v44, %v11936_v44  ;;  %v3543_v13 = vsel %vm10967_vm8, %v3534_v49, %v11094_v9  ;;  %v11974_v49 = vld [vmem:[#allocation9 + $0x1b0] ss:$8 sps:$4 sm:$0xff]  }
 0x1f1   : > { %1135 = vst [vmem:[#allocation2 + $0xf8] sm:$0xf] %v9246_v48  ;;  %v3557_v36 = vsel %vm10967_vm8, %v18689_v43, %v3556_v38  ;;  %v3558_v23 = vrot.slane %v3556_v38, 4  ;;  %v3563_v51 = vrot.slane %v3561_v20, 4  ;;  %v18691_v2 = vmax.bf16 %v11264_v57, %v11278_v0  ;;  %v11976_v38 = vld [vmem:[#allocation9 + $0x1b4] ss:$8 sps:$4 sm:$0xff]  }
 0x1f2   : > { %18688 = vst [vmem:[#allocation163_spill] sm:$0xff] %v11942_v31  ;;  %v9248_v59 = vpack.c.bf16 %v11942_v31, %v11942_v31  ;;  %v1870_v17 = vsel %vm10803_vm2, %v1865_v4, %v18690_v62  ;;  %1136 = vst [vmem:[#allocation2 + $0x104] sm:$0xf] %v9247_v25  ;;  %v18692_v48 = vmax.bf16 %v11742_v45, %v11330_v3  ;;  %v11978_v4 = vpop.f32.mrb[56].mxu0  ;;  %v18695_v3 = vld [vmem:[#allocation44_spill] sm:$0xff]  ;;  %7838 = vmatprep.subr.bf16.mxu0 %v11976_v38 }
 0x1f3   : > { %v11962_v16 = vmax.bf16 %v3499_v50, %v18691_v2  ;;  %v18693_v26 = vmax.bf16 %v11765_v11, %v11342_v55  ;;  %v11981_v57 = vmax.bf16 %v1870_v17, %v11886_v61  ;;  %v3562_v0 = vsel %vm10967_vm8, %v3558_v23, %v3561_v20  ;;  %v11993_v50 = vpop.f32.mrb[57].mxu0  ;;  %7839 = vmatpush1.bf16.msra.mxu0 %v11974_v49  ;;  %v18708_v17 = vld [vmem:[#allocation36_spill] sm:$0xff] }
 0x1f4   : > { %v11967_v46 = vmax.bf16 %v3504_v41, %v18692_v48  ;;  %1137 = vst [vmem:[#allocation2 + $0x108] sm:$0xf] %v9248_v59  ;;  %v3572_v45 = vsel %vm10967_vm8, %v3563_v51, %v18695_v3  ;;  %v18696_v55 = vmax.bf16 %v11748_v24, %v11665_v58  ;;  %18697 = vst [vmem:[#allocation164_spill] sm:$0xff] %v11993_v50  ;;  %v18709_v2 = vrot.slane %v18708_v17, 10  ;;  %v10143_v3 = vld [vmem:[#allocation9 + $0x114] ss:$8 sps:$4 sm:$0xff]  }
 0x1f5   : > { %v11972_v32 = vmax.bf16 %v3514_v54, %v18693_v26  ;;  %18694 = vst [vmem:[#allocation42_spill] sm:$0xff] %v11981_v57  ;;  %v18698_v41 = vmax.bf16 %v11769_v30, %v11673_v10  ;;  %v18699_v25 = vmax.bf16 %v11834_v60, %v11696_v21  ;;  %v18700_v59 = vmax.bf16 %v11723_v34, %v11705_v39  ;;  %v10138_v60 = vld [vmem:[#allocation2 + $0x64] sm:$0xf]  ;;  %v18828_v50 = vld [vmem:[#allocation97_spill] sm:$0xff] }
 0x1f6   : > { %v11991_v11 = vmax.bf16 %v3528_v8, %v18696_v55  ;;  %v18701_v58 = vmax.bf16 %v11775_v42, %v11708_v18  ;;  %v18702_v30 = vmax.bf16 %v11841_v14, %v11711_v40  ;;  %v4504_v21 = vrot.slane %v10138_v60, 6  ;;  %v18705_v40 = vld [vmem:[#allocation64_spill] sm:$0xff] }
 0x1f7   : > { %v11998_v54 = vmax.bf16 %v3533_v27, %v18698_v41  ;;  %v12003_v20 = vmax.bf16 %v3543_v13, %v18699_v25  ;;  %v12008_v43 = vmax.bf16 %v3557_v36, %v18700_v59  ;;  %v4507_v8 = vrot.slane %v11246_v19, 6  ;;  %v12024_v34 = vld [vmem:[#allocation2 + $0xf4] sm:$0xf] }
 0x1f8   : > { %v12013_v24 = vmax.bf16 %v3562_v0, %v18701_v58  ;;  %v12019_v10 = vmax.bf16 %v3572_v45, %v18702_v30  ;;  %v4515_v39 = vrot.slane %v11285_v1, 6  ;;  %18703 = vst [vmem:[#allocation165_spill] sm:$0xff] %v12024_v34  ;;  %v4526_v18 = vrot.slane %v11337_v63, 6  ;;  %v18704_v13 = vld [vmem:[#allocation52_spill] sm:$0xff]  ;;  %v12037_v51 = vld [vmem:[#allocation2 + $0xf8] sm:$0xf] }
 0x1f9   : > { %v12031_v14 = vmax.bf16 %v18705_v40, %v18704_v13  ;;  %v1886_v36 = vshll.u32 %v12024_v34, 16  ;;  %v1890_v19 = vshrl.u32 %v12024_v34, 16  ;;  %v17830_v1 = vrot.slane %v12024_v34, 5  ;;  %18707 = vst [vmem:[#allocation166_spill] sm:$0xff] %v12037_v51  ;;  %v18711_v45 = vld [vmem:[#allocation43_spill] sm:$0xff] }
 0x1fa   : > { %v4505_v63 = vsel %vm11111_vm11, %v18709_v2, %v4504_v21  ;;  %v4506_v26 = vrot.slane %v4504_v21, 4  ;;  %v4509_v0 = vrot.slane %v4507_v8, 4  ;;  %v18712_v55 = vrot.slane %v18711_v45, 10  ;;  %v12057_v60 = vld [vmem:[#allocation2 + $0x104] sm:$0xf] }
 0x1fb   : > { %18706 = vst [vmem:[#allocation64_spill] sm:$0xff] %v12031_v14  ;;  %v12049_v25 = vrot.slane %v1886_v36, 5  ;;  %v1892_v59 = vrot.slane %v1890_v19, 4  ;;  %v12053_v58 = vrot.slane %v17830_v1, 4  ;;  %v12055_v30 = vrot.slane %v1890_v19, 5  ;;  %18716 = vst [vmem:[#allocation168_spill] sm:$0xff] %v12057_v60 }
 0x1fc   : > { %v12047_v41 = vsel %vm11111_vm11, %v18712_v55, %v4515_v39  ;;  %v12059_v40 = vrot.slane %v1886_v36, 6  ;;  %v1896_v21 = vshll.u32 %v12037_v51, 16  ;;  %v1900_v17 = vshrl.u32 %v12037_v51, 16  ;;  %v12076_v31 = vld [vmem:[#allocation2 + $0x108] sm:$0xf]  ;;  %v18785_v14 = vld [vmem:[#allocation74_spill] sm:$0xff] }
 0x1fd   : > { %18713 = vst [vmem:[#allocation36_spill] sm:$0xff] %v12049_v25  ;;  %18714 = vst [vmem:[#allocation43_spill] sm:$0xff] %v12053_v58  ;;  %v17835_v2 = vrot.slane %v12037_v51, 5  ;;  %v1893_v45 = vor.u32 %v1892_v59, %v12049_v25  ;;  %v1925_v23 = vshll.u32 %v12057_v60, 16  ;;  %v1929_v1 = vshrl.u32 %v12057_v60, 16 }
 0x1fe   : > { %18715 = vst [vmem:[#allocation167_spill] sm:$0xff] %v12055_v30  ;;  %18717 = vst [vmem:[#allocation169_spill] sm:$0xff] %v12059_v40  ;;  %v12068_v19 = vrot.slane %v1896_v21, 5  ;;  %v1902_v27 = vrot.slane %v1900_v17, 4  ;;  %v12074_v42 = vrot.slane %v1900_v17, 5  ;;  %v12080_v59 = vrot.slane %v1896_v21, 6 }
 0x1ff   : > { %v12072_v36 = vrot.slane %v17835_v2, 4  ;;  %18721 = vst [vmem:[#allocation173_spill] sm:$0xff] %v12076_v31  ;;  %v12078_v44 = vrot.slane %v1893_v45, 4  ;;  %v12082_v55 = vrot.slane %v1925_v23, 5  ;;  %v1931_v22 = vrot.slane %v1929_v1, 4  ;;  %v18731_v2 = vld [vmem:[#allocation47_spill] sm:$0xff] }
 0x200   : > { %18718 = vst [vmem:[#allocation170_spill] sm:$0xff] %v12068_v19  ;;  %18720 = vst [vmem:[#allocation172_spill] sm:$0xff] %v12074_v42  ;;  %v1903_v62 = vor.u32 %v1902_v27, %v12068_v19  ;;  %v17837_v25 = vrot.slane %v12057_v60, 5  ;;  %v12086_v40 = vrot.slane %v1929_v1, 5  ;;  %v12088_v30 = vrot.slane %v1925_v23, 6 }
 0x201   : > { %18719 = vst [vmem:[#allocation171_spill] sm:$0xff] %v12072_v36  ;;  %18722 = vst [vmem:[#allocation174_spill] sm:$0xff] %v12078_v44  ;;  %v1932_v17 = vor.u32 %v1931_v22, %v12082_v55  ;;  %v1935_v45 = vshll.u32 %v12076_v31, 16  ;;  %v1939_v21 = vshrl.u32 %v12076_v31, 16  ;;  %v17840_v27 = vrot.slane %v12076_v31, 5 }
 0x202   : > { %18723 = vst [vmem:[#allocation175_spill] sm:$0xff] %v12080_v59  ;;  %18724 = vst [vmem:[#allocation176_spill] sm:$0xff] %v12082_v55  ;;  %v1904_v59 = vrot.slane %v1903_v62, 4  ;;  %v12096_v42 = vrot.slane %v17837_v25, 4  ;;  %v4508_v1 = vsel %vm11111_vm11, %v4506_v26, %v4507_v8  ;;  %v4528_v26 = vrot.slane %v4526_v18, 4 }
 0x203   : > { %18725 = vst [vmem:[#allocation177_spill] sm:$0xff] %v12086_v40  ;;  %18726 = vst [vmem:[#allocation178_spill] sm:$0xff] %v12088_v30  ;;  %v12100_v40 = vrot.slane %v1932_v17, 4  ;;  %v12102_v23 = vrot.slane %v1935_v45, 5  ;;  %v1941_v22 = vrot.slane %v1939_v21, 4  ;;  %v12104_v55 = vrot.slane %v1939_v21, 5 }
 0x204   : > { %18727 = vst [vmem:[#allocation179_spill] sm:$0xff] %v12096_v42  ;;  %v1909_v30 = vsel %vm10803_vm2, %v1904_v59, %v18731_v2  ;;  %v12111_v62 = vrot.slane %v17840_v27, 4  ;;  %v12113_v25 = vrot.slane %v1935_v45, 6  ;;  %v18735_v21 = vld [vmem:[#allocation31_spill] sm:$0xff]  ;;  %v4517_v59 = vrot.slane %v4515_v39, 4 }
 0x205   : > { %18728 = vst [vmem:[#allocation180_spill] sm:$0xff] %v12100_v40  ;;  %18729 = vst [vmem:[#allocation181_spill] sm:$0xff] %v12102_v23  ;;  %v12118_v17 = vmax.bf16 %v1909_v30, %v12037_v51  ;;  %v1942_v60 = vor.u32 %v1941_v22, %v12102_v23  ;;  %v18737_v27 = vrot.slane %v11295_v29, 6  ;;  %v18738_v2 = vld [vmem:[#allocation51_spill] sm:$0xff]  ;;  %v18740_v30 = vrot.slane %v11349_v33, 6  ;;  %v18747_v29 = vld [vmem:[#allocation38_spill] sm:$0xff] }
 0x206   : > { %18730 = vst [vmem:[#allocation182_spill] sm:$0xff] %v12104_v55  ;;  %18732 = vst [vmem:[#allocation183_spill] sm:$0xff] %v12111_v62  ;;  %v18736_v55 = vrot.slane %v18735_v21, 6  ;;  %v12221_v23 = vld [vmem:[#allocation9 + $0x1c0] ss:$8 sps:$4 sm:$0xff]  }
 0x207   : > { %18733 = vst [vmem:[#allocation184_spill] sm:$0xff] %v12113_v25  ;;  %18734 = vst [vmem:[#allocation185_spill] sm:$0xff] %v12118_v17  ;;  %v4520_v45 = vrot.slane %v18737_v27, 4  ;;  %v18739_v25 = vrot.slane %v18738_v2, 10  ;;  %v4531_v22 = vrot.slane %v18740_v30, 4  ;;  %v1943_v62 = vrot.slane %v1942_v60, 4 }
 0x208   : > { %v4511_v42 = vsel %vm11111_vm11, %v4509_v0, %v18736_v55  ;;  %v18741_v40 = vmov %v18737_v27  ;;  %v12138_v0 = vmax.bf16 %v4505_v63, %v11962_v16  ;;  %v12141_v55 = vmax.bf16 %v4508_v1, %v11967_v46  ;;  %v18744_v2 = vld [vmem:[#allocation34_spill] sm:$0xff]  ;;  %v18750_v46 = vld [vmem:[#allocation48_spill] sm:$0xff] }
 0x209   : > { %v4527_v8 = vsel %vm11111_vm11, %v18739_v25, %v4526_v18  ;;  %v4519_v39 = vsel %vm11111_vm11, %v4517_v59, %v18741_v40  ;;  %v18745_v27 = vrot.slane %v18744_v2, 6  ;;  %v18746_v25 = vmov %v18740_v30  ;;  %v18796_v21 = vld [vmem:[#allocation82_spill] sm:$0xff] }
 0x20a   : > { %18742 = vst [vmem:[#allocation51_spill] sm:$0xff] %v12138_v0  ;;  %18743 = vst [vmem:[#allocation186_spill] sm:$0xff] %v12141_v55  ;;  %v4530_v60 = vsel %vm11111_vm11, %v4528_v26, %v18746_v25  ;;  %v18748_v30 = vrot.slane %v18747_v29, 6  ;;  %v12156_v16 = vmax.bf16 %v4511_v42, %v11972_v32  ;;  %v1948_v63 = vsel %vm10803_vm2, %v1943_v62, %v18750_v46  ;;  %v4358_v29 = vld [vmem:[#allocation2 + $0x90] sm:$0xc] }
 0x20b   : > { %v4522_v18 = vsel %vm11111_vm11, %v4520_v45, %v18745_v27  ;;  %v12163_v1 = vmax.bf16 %v12047_v41, %v11991_v11  ;;  %v12166_v33 = vmax.bf16 %v4519_v39, %v11998_v54  ;;  %v12172_v45 = vmax.bf16 %v1948_v63, %v12076_v31  ;;  %v18758_v11 = vld [vmem:[#allocation54_spill] sm:$0xff]  ;;  %v18759_v41 = vld [vmem:[#allocation49_spill] sm:$0xff]  ;;  %v18763_v27 = vld [vmem:[#allocation56_spill] sm:$0xff] }
 0x20c   : > { %v4533_v40 = vsel %vm11111_vm11, %v4531_v22, %v18748_v30  ;;  %18749 = vst [vmem:[#allocation187_spill] sm:$0xff] %v12156_v16  ;;  %v12169_v59 = vmax.bf16 %v4522_v18, %v12003_v20  ;;  %v12175_v32 = vmax.bf16 %v4527_v8, %v12008_v43  ;;  %v12178_v42 = vmax.bf16 %v4530_v60, %v12013_v24  ;;  %v18761_v20 = vld [vmem:[#allocation55_spill] sm:$0xff]  ;;  %v18764_v43 = vld [vmem:[#allocation53_spill] sm:$0xff]  ;;  %v12219_v31 = vld [vmem:[#allocation2 + $0x90] sm:$0xf] }
 0x20d   : > { %18751 = vst [vmem:[#allocation188_spill] sm:$0xff] %v12163_v1  ;;  %18752 = vst [vmem:[#allocation189_spill] sm:$0xff] %v12166_v33  ;;  %v12181_v62 = vmax.bf16 %v4533_v40, %v12019_v10  ;;  %v18760_v54 = vmax.bf16 %v18758_v11, %v18759_v41  ;;  %v18762_v22 = vmax.bf16 %v18761_v20, %v18704_v13  ;;  %v18766_v10 = vld [vmem:[#allocation65_spill] sm:$0xff]  ;;  %v18770_v40 = vld [vmem:[#allocation58_spill] sm:$0xff]  ;;  %v18771_v63 = vrot.slane %v18759_v41, 10 }
 0x20e   : > { %18753 = vst [vmem:[#allocation190_spill] sm:$0xff] %v12169_v59  ;;  %18754 = vst [vmem:[#allocation191_spill] sm:$0xff] %v12172_v45  ;;  %v18765_v8 = vmax.bf16 %v18763_v27, %v18764_v43  ;;  %v12198_v25 = vmax.bf16 %v18766_v10, %v18761_v20  ;;  %v18768_v60 = vld [vmem:[#allocation61_spill] sm:$0xff]  ;;  %v1646_v51 = vshll.u32 %v12219_v31, 16  ;;  %v18786_v43 = vrot.slane %v18785_v14, 5 }
 0x20f   : > { %18755 = vst [vmem:[#allocation192_spill] sm:$0xff] %v12175_v32  ;;  %18756 = vst [vmem:[#allocation193_spill] sm:$0xff] %v12178_v42  ;;  %v5016_v26 = vmax.bf16 %v18760_v54, %v12138_v0  ;;  %v5017_v39 = vmax.bf16 %v18762_v22, %v12141_v55  ;;  %v12202_v30 = vmax.bf16 %v18768_v60, %v18763_v27  ;;  %v18773_v60 = vrot.slane %v12156_v16, 6  ;;  %v18775_v22 = vld [vmem:[#allocation57_spill] sm:$0xff] }
 0x210   : > { %18757 = vst [vmem:[#allocation194_spill] sm:$0xff] %v12181_v62  ;;  %v5018_v18 = vmax.bf16 %v18765_v8, %v12156_v16  ;;  %18767 = vst [vmem:[#allocation65_spill] sm:$0xff] %v12198_v25  ;;  %v12209_v54 = vsel %vm11111_vm11, %v18771_v63, %v18770_v40  ;;  %v12212_v8 = vld [vmem:[#allocation9 + $0x1c4] ss:$8 sps:$4 sm:$0xff]   ;;  %v1648_v12 = vrot.slane %v1646_v51, 5 }
 0x211   : > { %18769 = vst [vmem:[#allocation61_spill] sm:$0xff] %v12202_v30  ;;  %18772 = vst [vmem:[#allocation58_spill] sm:$0xff] %v12209_v54  ;;  %v5064_v24 = vmax.bf16 %v5016_v26, %v12163_v1  ;;  %v5065_v10 = vmax.bf16 %v5017_v39, %v12166_v33  ;;  %v5475_v45 = vrot.slane %v18773_v60, 4  ;;  %v18774_v63 = vld [vmem:[#allocation50_spill] sm:$0xff]  ;;  %v9376_v26 = vadd.f32 %v11556_v5, %v11548_v37 }
 0x212   : > { %v5066_v46 = vmax.bf16 %v5018_v18, %v12169_v59  ;;  %v890_v17 = vpack.c.bf16 %v18775_v22, %v18774_v63  ;;  %v9379_v39 = vadd.f32 %v11575_v7, %v11565_v52  ;;  %v12231_v18 = vpop.f32.mrb[58].mxu0  ;;  %7840 = vmatprep.subr.bf16.mxu0 %v12212_v8  ;;  %v1277_v22 = vld [vmem:[#allocation2 + $0x11c] sm:$0x3]  ;;  %v18779_v52 = vmov 0  ;;  %v12252_v37 = vld [vmem:[%s17682_s2] ss:$0 sm:$0xff] }
 0x213   : > { %18776 = vst [vmem:[#allocation50_spill] sm:$0xff] %v12231_v18  ;;  %v5112_v60 = vmax.bf16 %v5064_v24, %v12175_v32  ;;  %v5113_v36 = vmax.bf16 %v5065_v10, %v12178_v42  ;;  %v12238_v40 = vmax.bf16 %v5475_v45, %v12156_v16  ;;  %v12240_v63 = vpop.f32.mrb[59].mxu0  ;;  %7841 = vmatpush1.bf16.msra.mxu0 %v12221_v23  ;;  %v18780_v52 = vsel %vm12245_vm14, 4294967295, %v18779_v52 }
 0x214   : > { %v5114_v34 = vmax.bf16 %v5066_v46, %v12181_v62  ;;  %18778 = vst [vmem:[#allocation195_spill] sm:$0xff] %v12240_v63  ;;  %18781 = vst [vmem:[#allocation196_spill] sm:$0xff] %v18780_v52  ;;  %v12255_v7 = vadd.f32 %v12252_v37, %v9376_v26  ;;  %v12258_v5 = vadd.f32 %v12252_v37, %v9379_v39  ;;  %v1984_v46 = vshll.u32 %v1277_v22, 16  ;;  %v18783_v22 = vld [vmem:[#allocation80_spill] sm:$0xff] }
 0x215   : > { %18777 = vst [vmem:[#allocation57_spill] sm:$0xff] %v12238_v40  ;;  %v1643_v45 = vshrl.u32 %v12219_v31, 16  ;;  %v8937_v24 = vrot.slane %v5112_v60, 11  ;;  %v5213_v10 = vrot.slane %v5113_v36, 7  ;;  %v18784_v40 = vld [vmem:[#allocation83_spill] sm:$0xff] }
 0x216   : > { %v5216_v58 = vrot.slane %v5114_v34, 7  ;;  %v8839_v44 = vmul.f32 -1.442695, %v12255_v7  ;;  %v8840_v19 = vmul.f32 -1.442695, %v12258_v5  ;;  %v12264_v57 = vrot.slane %v1984_v46, 5 }
 0x217   : > { %v1645_v61 = vrot.slane %v1643_v45, 4  ;;  %v5214_v26 = vsel %vm12245_vm14, %v8937_v24, %v5213_v10  ;;  %v5215_v39 = vrot.slane %v5213_v10, 4  ;;  %v1665_v36 = vsel %vm10803_vm2, %v18784_v40, %v18783_v22  ;;  %v2616_v34 = vld [vmem:[#allocation2 + $0x90] sm:$0xe]  ;;  %v10140_v60 = vld [vmem:[#allocation2 + $0x94] sm:$0xf] }
 0x218   : > { %18782 = vst [vmem:[#allocation197_spill] sm:$0xff] %v12264_v57  ;;  %9840 = vpow2.f32 %v8839_v44  ;;  %v2532_v30 = vmax.bf16 %v10140_v60, %v1665_v36  ;;  %v8890_v25 = vrot.slane %v2616_v34, 9  ;;  %v18787_v46 = vld [vmem:[#allocation76_spill] sm:$0xff]  ;;  %v12279_v10 = vld [vmem:[#allocation2 + $0x9c] sm:$0x3]  ;;  %v3575_v13 = vshrl.u32 %v2616_v34, 16 }
 0x219   : > { %v2855_v45 = vsel %vm10899_vm5, %v18787_v46, %v18786_v43  ;;  %v5217_v24 = vsel %vm12245_vm14, %v5215_v39, %v5216_v58  ;;  %9842 = vpow2.f32 %v8840_v19  ;;  %v1649_v51 = vor.u32 %v1648_v12, %v1645_v61  ;;  %18788 = vst [vmem:[#allocation80_spill] sm:$0xff] %v12279_v10  ;;  %v12282_v22 = vld [vmem:[#allocation2 + $0x9c] sm:$0x7]  ;;  %v18794_v39 = vld [vmem:[#allocation78_spill] sm:$0xff] }
 0x21a   : > { %v17859_v40 = vrot.slane %v12279_v10, 5  ;;  %18789 = vst [vmem:[#allocation83_spill] sm:$0xff] %v12282_v22  ;;  %v8953_v44 = vcombine.low %v5214_v26, %v5217_v24  ;;  %v18790_v36 = vld [vmem:[#allocation73_spill] sm:$0xff]  ;;  %v3207_v54 = vmax.bf16 %v2855_v45, %v2532_v30  ;;  %v3578_v12 = vshll.u32 %v2616_v34, 16  ;;  %v18795_v26 = vld [vmem:[#allocation92_spill] sm:$0xff] }
 0x21b   : > { %v18791_v60 = vrot.slane %v18790_v36, 5  ;;  %v1650_v43 = vrot.slane %v1649_v51, 4  ;;  %v18792_v58 = vld [vmem:[#allocation81_spill] sm:$0xff]  ;;  %v3577_v2 = vrot.slane %v3575_v13, 5  ;;  %v3594_v45 = vshrl.u32 %v12282_v22, 16  ;;  %v18798_v51 = vld [vmem:[#allocation75_spill] sm:$0xff] }
 0x21c   : > { %v2858_v61 = vsel %vm10899_vm5, %v18792_v58, %v17859_v40  ;;  %v18793_v19 = vld [vmem:[#allocation77_spill] sm:$0xff]  ;;  %7655 = vmatprep.mubr.bf16.mxu1 %v8953_v44  ;;  %v3580_v58 = vrot.slane %v3578_v12, 6  ;;  %v3597_v40 = vshll.u32 %v12282_v22, 16  ;;  %v18800_v12 = vrot.slane %v18790_v36, 6  ;;  %v18818_v10 = vld [vmem:[#allocation96_spill] sm:$0xff] }
 0x21d   : > { %v2852_v41 = vsel %vm10899_vm5, %v8890_v25, %v18791_v60  ;;  %v3585_v46 = vor.u32 %v18794_v39, %v18793_v19  ;;  %v3208_v24 = vmax.bf16 %v2858_v61, %v18795_v26  ;;  %v18797_v25 = vld [vmem:[#allocation84_spill] sm:$0xff]  ;;  %7656 = vmatmul.mubr.bf16.vlgmr.msra.gmra.mrb[0].mxu1 %v890_v17  ;;  %v1655_v60 = vsel %vm10803_vm2, %v1650_v43, %v18798_v51  ;;  %v10142_v19 = vld [vmem:[#allocation9 + $0x100] ss:$8 sps:$4 sm:$0xff]  }
 0x21e   : > { %v3590_v30 = vor.u32 %v18797_v25, %v18796_v21  ;;  %9420 = vmatpush1.bf16.msra.mxu1 %v10142_v19  ;;  %v2531_v44 = vmax.bf16 %v1655_v60, %v12219_v31  ;;  %v3596_v13 = vrot.slane %v3594_v45, 5  ;;  %v8918_v39 = vrot.slane %v4358_v29, 10  ;;  %v12304_v26 = vld [vmem:[#allocation9 + $0x1d0] ss:$8 sps:$4 sm:$0xff]   ;;  %v12306_v21 = vpop.f32.mrb[60].mxu0 }
 0x21f   : > { %v3587_v34 = vrot.slane %v3585_v46, 4  ;;  %18799 = vst [vmem:[#allocation74_spill] sm:$0xff] %v12306_v21  ;;  %v3581_v17 = vor.u32 %v3580_v58, %v3577_v2  ;;  %v3599_v43 = vrot.slane %v3597_v40, 6  ;;  %v4539_v51 = vrot.slane %v18800_v12, 4  ;;  %9405 = vmatprep.subr.bf16.mxu1 %v10143_v3  ;;  %v12312_v19 = vld [vmem:[#allocation9 + $0x1d4] ss:$8 sps:$4 sm:$0xff]  }
 0x220   : > { %v3592_v61 = vrot.slane %v3590_v30, 4  ;;  %v12314_v31 = vpop.f32.mrb[61].mxu0  ;;  %v3206_v45 = vmax.bf16 %v2852_v41, %v2531_v44  ;;  %v18802_v60 = vmov %v18800_v12  ;;  %v18803_v58 = vrot.slane %v18785_v14, 6  ;;  %7842 = vmatprep.subr.bf16.mxu0 %v12312_v19  ;;  %v10144_v14 = vld [vmem:[#allocation9 + $0x110] ss:$8 sps:$4 sm:$0xff]   ;;  %v18826_v21 = vld [vmem:[#allocation87_spill] sm:$0xff] }
 0x221   : > { %v3591_v25 = vsel %vm10967_vm8, %v3587_v34, %v3590_v30  ;;  %18801 = vst [vmem:[#allocation76_spill] sm:$0xff] %v12314_v31  ;;  %v4538_v2 = vsel %vm11111_vm11, %v8918_v39, %v18802_v60  ;;  %v3582_v40 = vrot.slane %v3581_v17, 4  ;;  %v12322_v34 = vor.u32 %v3599_v43, %v3596_v13  ;;  %7843 = vmatpush1.bf16.msra.mxu0 %v12304_v26  ;;  %v12412_v31 = vld [vmem:[#allocation2 + $0xac] sm:$0x3] }
 0x222   : > { %v4274_v29 = vmax.bf16 %v3591_v25, %v3207_v54  ;;  %v4542_v30 = vrot.slane %v18803_v58, 4  ;;  %v18805_v12 = vmov %v18803_v58  ;;  %v17862_v9 = vrot.slane %v12282_v22, 6  ;;  %v9841_v41 = vpop.eup %9840  ;;  %9421 = vmatpush1.bf16.msra.mxu1 %v10144_v14  ;;  %18824 = vst [vmem:[#allocation75_spill] sm:$0xff] %v12412_v31 }
 0x223   : > { %18804 = vst [vmem:[#allocation73_spill] sm:$0xff] %v12322_v34  ;;  %v4541_v3 = vsel %vm11111_vm11, %v4539_v51, %v18805_v12  ;;  %v4971_v36 = vmax.bf16 %v12138_v0, %v18758_v11  ;;  %v4972_v44 = vmax.bf16 %v12141_v55, %v18761_v20  ;;  %v4973_v13 = vmax.bf16 %v12156_v16, %v18763_v27  ;;  %v9843_v39 = vpop.eup %9842  ;;  %v12353_v27 = vld [vmem:[#allocation2 + $0xa0] sm:$0xf]  ;;  %v10148_v11 = vld [vmem:[#allocation9 + $0x130] ss:$8 sps:$4 sm:$0xff]  }
 0x224   : > { %v12330_v54 = vmax.bf16 %v4541_v3, %v4274_v29  ;;  %v784_v17 = vadd.f32 1.0, %v9841_v41  ;;  %v3586_v25 = vsel %vm10967_vm8, %v3582_v40, %v3585_v46  ;;  %v3601_v43 = vsel %vm10967_vm8, %v3592_v61, %v12322_v34  ;;  %v10145_v29 = vld [vmem:[#allocation9 + $0x124] ss:$8 sps:$4 sm:$0xff]   ;;  %v18807_v61 = vld [vmem:[#allocation60_spill] sm:$0xff]  ;;  %v2617_v20 = vld [vmem:[#allocation2 + $0xa0] sm:$0xe] }
 0x225   : > { %v4544_v51 = vsel %vm11111_vm11, %v4542_v30, %v17862_v9  ;;  %9406 = vmatprep.subr.bf16.mxu1 %v10145_v29  ;;  %v785_v60 = vadd.f32 1.0, %v9843_v39  ;;  %v4273_v58 = vmax.bf16 %v3586_v25, %v3206_v45  ;;  %v4275_v12 = vmax.bf16 %v3601_v43, %v3208_v24  ;;  %v18808_v41 = vld [vmem:[#allocation63_spill] sm:$0xff]  ;;  %v18813_v43 = vld [vmem:[#allocation128_spill] sm:$0xff] }
 0x226   : > { %18806 = vst [vmem:[#allocation81_spill] sm:$0xff] %v12330_v54  ;;  %v5019_v3 = vmax.bf16 %v4971_v36, %v12163_v1  ;;  %9844 = vrcp.f32 %v784_v17  ;;  %v5020_v46 = vmax.bf16 %v4972_v44, %v12166_v33  ;;  %v5021_v40 = vmax.bf16 %v4973_v13, %v12169_v59  ;;  %v10146_v24 = vld [vmem:[#allocation9 + $0x120] ss:$8 sps:$4 sm:$0xff]   ;;  %v12360_v36 = vpop.f32.mrb[62].mxu0  ;;  %v12364_v44 = vld [vmem:[#allocation9 + $0x1e4] ss:$8 sps:$4 sm:$0xff]  }
 0x227   : > { %9846 = vrcp.f32 %v785_v60  ;;  %v12355_v30 = vmax.bf16 %v4538_v2, %v4273_v58  ;;  %v12357_v29 = vmax.bf16 %v4544_v51, %v4275_v12  ;;  %9422 = vmatpush1.bf16.msra.mxu1 %v10146_v24  ;;  %18811 = vst [vmem:[#allocation92_spill] sm:$0xff] %v12360_v36  ;;  %v12362_v39 = vld [vmem:[#allocation9 + $0x1e0] ss:$8 sps:$4 sm:$0xff]   ;;  %v1278_v58 = vld [vmem:[#allocation2 + $0x12c] sm:$0x3]  ;;  %v1682_v14 = vshrl.u32 %v12353_v27, 16  ;;  %7844 = vmatprep.subr.bf16.mxu0 %v12364_v44 }
 0x228   : > { %v5067_v45 = vmax.bf16 %v5019_v3, %v12175_v32  ;;  %v5068_v13 = vmax.bf16 %v5020_v46, %v12178_v42  ;;  %v5069_v17 = vmax.bf16 %v5021_v40, %v12181_v62  ;;  %v18812_v25 = vld [vmem:[#allocation119_spill] sm:$0xff]  ;;  %v10147_v12 = vld [vmem:[#allocation9 + $0x134] ss:$8 sps:$4 sm:$0xff]   ;;  %v12372_v3 = vpop.f32.mrb[63].mxu0  ;;  %v2023_v9 = vshll.u32 %v1278_v58, 16  ;;  %7845 = vmatpush1.bf16.msra.mxu0 %v12362_v39  ;;  %v18822_v36 = vld [vmem:[#allocation86_spill] sm:$0xff] }
 0x229   : > { %18809 = vst [vmem:[#allocation77_spill] sm:$0xff] %v12355_v30  ;;  %18810 = vst [vmem:[#allocation78_spill] sm:$0xff] %v12357_v29  ;;  %v9382_v2 = vadd.f32 %v18812_v25, %v11617_v28  ;;  %v18814_v51 = vld [vmem:[#allocation131_spill] sm:$0xff]  ;;  %9407 = vmatprep.subr.bf16.mxu1 %v10147_v12  ;;  %v1685_v46 = vshll.u32 %v12353_v27, 16  ;;  %v1684_v58 = vrot.slane %v1682_v14, 4  ;;  %v18819_v14 = vld [vmem:[#allocation90_spill] sm:$0xff] }
 0x22a   : > { %v9385_v60 = vadd.f32 %v18814_v51, %v18813_v43  ;;  %18815 = vst [vmem:[#allocation82_spill] sm:$0xff] %v12372_v3  ;;  %v5115_v24 = vmax.bf16 %v5067_v45, %v12355_v30  ;;  %v5116_v40 = vmax.bf16 %v5068_v13, %v12330_v54  ;;  %v5117_v28 = vmax.bf16 %v5069_v17, %v12357_v29  ;;  %v10149_v34 = vld [vmem:[#allocation9 + $0x144] ss:$8 sps:$4 sm:$0xff]   ;;  %v18821_v3 = vld [vmem:[#allocation88_spill] sm:$0xff] }
 0x22b   : > { %v12381_v25 = vadd.f32 %v12252_v37, %v9382_v2  ;;  %v12387_v51 = vrot.slane %v2023_v9, 5  ;;  %v1687_v12 = vrot.slane %v1685_v46, 5  ;;  %9423 = vmatpush1.bf16.msra.mxu1 %v10148_v11  ;;  %v1704_v9 = vsel %vm10803_vm2, %v18818_v10, %v18817_v53 }
 0x22c   : > { %v12384_v43 = vadd.f32 %v12252_v37, %v9385_v60  ;;  %v8938_v45 = vrot.slane %v5115_v24, 11  ;;  %v5220_v22 = vrot.slane %v5116_v40, 7  ;;  %v5223_v13 = vrot.slane %v5117_v28, 7  ;;  %9408 = vmatprep.subr.bf16.mxu1 %v10149_v34  ;;  %v10150_v34 = vld [vmem:[#allocation2 + $0xa4] sm:$0xf] }
 0x22d   : > { %18816 = vst [vmem:[#allocation84_spill] sm:$0xff] %v12387_v51  ;;  %v8841_v17 = vmul.f32 -1.442695, %v12381_v25  ;;  %v1688_v60 = vor.u32 %v1687_v12, %v1684_v58  ;;  %v8891_v24 = vrot.slane %v2617_v20, 9  ;;  %v18820_v46 = vrot.slane %v18819_v14, 5 }
 0x22e   : > { %v8842_v2 = vmul.f32 -1.442695, %v12384_v43  ;;  %v5221_v40 = vsel %vm12245_vm14, %v8938_v45, %v5220_v22  ;;  %v5222_v28 = vrot.slane %v5220_v22, 4  ;;  %v12404_v58 = vmax.bf16 %v10150_v34, %v1704_v9  ;;  %v12415_v45 = vld [vmem:[#allocation9 + $0x1f0] ss:$8 sps:$4 sm:$0xff]  }
 0x22f   : > { %v12400_v11 = vsel %vm10899_vm5, %v18821_v3, %v18820_v46  ;;  %9848 = vpow2.f32 %v8841_v17  ;;  %v1689_v12 = vrot.slane %v1688_v60, 4  ;;  %v18823_v53 = vrot.slane %v18822_v36, 5  ;;  %v10152_v46 = vld [vmem:[#allocation9 + $0x140] ss:$8 sps:$4 sm:$0xff]   ;;  %v12417_v22 = vld [vmem:[#allocation9 + $0x1f4] ss:$8 sps:$4 sm:$0xff]  }
 0x230   : > { %9850 = vpow2.f32 %v8842_v2  ;;  %9424 = vmatpush1.bf16.msra.mxu1 %v10152_v46  ;;  %v9845_v17 = vpop.eup %9844  ;;  %v5224_v2 = vsel %vm12245_vm14, %v5222_v28, %v5223_v13  ;;  %v3211_v60 = vmax.bf16 %v12400_v11, %v12404_v58  ;;  %v3604_v9 = vshrl.u32 %v2617_v20, 16  ;;  %v10153_v34 = vld [vmem:[#allocation9 + $0x154] ss:$8 sps:$4 sm:$0xff]   ;;  %v12434_v11 = vld [vmem:[#allocation2 + $0xac] sm:$0x7]  ;;  %7846 = vmatprep.subr.bf16.mxu0 %v12417_v22 }
 0x231   : > { %v12410_v10 = vsel %vm10899_vm5, %v8891_v24, %v18823_v53  ;;  %v3607_v24 = vshll.u32 %v2617_v20, 16  ;;  %9409 = vmatprep.subr.bf16.mxu1 %v10153_v34  ;;  %v9847_v53 = vpop.eup %9846  ;;  %v12424_v3 = vmul.f32 %v9845_v17, %v12255_v7  ;;  %v8954_v46 = vcombine.low %v5221_v40, %v5224_v2  ;;  %18829 = vst [vmem:[#allocation63_spill] sm:$0xff] %v12434_v11  ;;  %v18831_v40 = vld [vmem:[#allocation106_spill] sm:$0xff] }
 0x232   : > { %v1694_v63 = vsel %vm10803_vm2, %v1689_v12, %v18826_v21  ;;  %v18827_v18 = vrot.slane %v12412_v31, 5  ;;  %v12438_v20 = vmul.f32 %v9847_v53, %v12258_v5  ;;  %v3606_v58 = vrot.slane %v3604_v9, 5  ;;  %v4359_v17 = vld [vmem:[#allocation2 + $0xa0] sm:$0xc]  ;;  %7847 = vmatpush1.bf16.msra.mxu0 %v12415_v45  ;;  %v18833_v12 = vld [vmem:[#allocation91_spill] sm:$0xff] }
 0x233   : > { %18825 = vst [vmem:[#allocation60_spill] sm:$0xff] %v12424_v3  ;;  %v2535_v7 = vmax.bf16 %v1694_v63, %v12353_v27  ;;  %v9249_v21 = vpack.c.bf16 %v12424_v3, %v12424_v3  ;;  %7665 = vmatprep.mubr.bf16.mxu1 %v8954_v46  ;;  %v18834_v34 = vld [vmem:[#allocation94_spill] sm:$0xff]  ;;  %v18835_v31 = vld [vmem:[#allocation95_spill] sm:$0xff]  ;;  %v10154_v53 = vld [vmem:[#allocation9 + $0x150] ss:$8 sps:$4 sm:$0xff]   ;;  %v18836_v63 = vpack.c.bf16 %v18808_v41, %v18807_v61  ;;  %v3623_v46 = vshrl.u32 %v12434_v11, 16 }
 0x234   : > { %v2869_v13 = vsel %vm10899_vm5, %v18828_v50, %v18827_v18  ;;  %18830 = vst [vmem:[#allocation119_spill] sm:$0xff] %v12438_v20  ;;  %v3609_v50 = vrot.slane %v3607_v24, 6  ;;  %v18832_v18 = vld [vmem:[#allocation89_spill] sm:$0xff]  ;;  %v3619_v5 = vor.u32 %v18835_v31, %v18834_v34  ;;  %9425 = vmatpush1.bf16.msra.mxu1 %v10154_v53  ;;  %v9250_v27 = vpack.c.bf16 %v12438_v20, %v12438_v20 }
 0x235   : > { %v3212_v28 = vmax.bf16 %v2869_v13, %v18831_v40  ;;  %v3614_v2 = vor.u32 %v18833_v12, %v18832_v18  ;;  %7666 = vmatmul.mubr.bf16.gmra.mrb[4].mxu1 %v18836_v63  ;;  %v3210_v9 = vmax.bf16 %v12410_v10, %v2535_v7  ;;  %v3626_v24 = vshll.u32 %v12434_v11, 16  ;;  %v10155_v13 = vld [vmem:[#allocation9 + $0x164] ss:$8 sps:$4 sm:$0xff]   ;;  %1138 = vst [vmem:[#allocation2 + $0x114] sm:$0xf] %v9249_v21 }
 0x236   : > { %9410 = vmatprep.subr.bf16.mxu1 %v10155_v13  ;;  %v3610_v40 = vor.u32 %v3609_v50, %v3606_v58  ;;  %v3621_v18 = vrot.slane %v3619_v5, 4  ;;  %v8919_v12 = vrot.slane %v4359_v17, 10  ;;  %1139 = vst [vmem:[#allocation2 + $0x118] sm:$0xf] %v9250_v27  ;;  %v3625_v34 = vrot.slane %v3623_v46, 5 }
 0x237   : > { %v3616_v31 = vrot.slane %v3614_v2, 4  ;;  %v3628_v53 = vrot.slane %v3626_v24, 6  ;;  %v18837_v20 = vrot.slane %v18822_v36, 6  ;;  %v18838_v41 = vrot.slane %v18819_v14, 6  ;;  %v10156_v21 = vld [vmem:[#allocation9 + $0x160] ss:$8 sps:$4 sm:$0xff]  }
 0x238   : > { %v3611_v7 = vrot.slane %v3610_v40, 4  ;;  %v17871_v17 = vrot.slane %v12434_v11, 6  ;;  %9426 = vmatpush1.bf16.msra.mxu1 %v10156_v21  ;;  %v10157_v36 = vld [vmem:[#allocation9 + $0x174] ss:$8 sps:$4 sm:$0xff]   ;;  %v4975_v14 = vmax.bf16 %v12166_v33, %v12141_v55 }
 0x239   : > { %v4550_v61 = vrot.slane %v18837_v20, 4  ;;  %v4553_v10 = vrot.slane %v18838_v41, 4  ;;  %v3620_v63 = vsel %vm10967_vm8, %v3616_v31, %v3619_v5  ;;  %v18839_v13 = vmov %v18837_v20  ;;  %v9849_v50 = vpop.eup %9848  ;;  %9411 = vmatprep.subr.bf16.mxu1 %v10157_v36 }
 0x23a   : > { %v4549_v58 = vsel %vm11111_vm11, %v8919_v12, %v18839_v13  ;;  %v12468_v27 = vor.u32 %v3628_v53, %v3625_v34  ;;  %v4278_v20 = vmax.bf16 %v3620_v63, %v3211_v60  ;;  %v18841_v46 = vmov %v18838_v41  ;;  %v9851_v40 = vpop.eup %9850  ;;  %v10158_v13 = vld [vmem:[#allocation9 + $0x170] ss:$8 sps:$4 sm:$0xff]  }
 0x23b   : > { %v4552_v24 = vsel %vm11111_vm11, %v4550_v61, %v18841_v46  ;;  %v4974_v5 = vmax.bf16 %v12163_v1, %v12138_v0  ;;  %v786_v31 = vadd.f32 1.0, %v9849_v50  ;;  %v3615_v12 = vsel %vm10967_vm8, %v3611_v7, %v3614_v2  ;;  %v18847_v46 = vld [vmem:[#allocation129_spill] sm:$0xff] }
 0x23c   : > { %18840 = vst [vmem:[#allocation128_spill] sm:$0xff] %v12468_v27  ;;  %v4555_v60 = vsel %vm11111_vm11, %v4553_v10, %v17871_v17  ;;  %v787_v34 = vadd.f32 1.0, %v9851_v40  ;;  %v3630_v53 = vsel %vm10967_vm8, %v3621_v18, %v12468_v27  ;;  %v4277_v61 = vmax.bf16 %v3615_v12, %v3210_v9  ;;  %9427 = vmatpush1.bf16.msra.mxu1 %v10158_v13  ;;  %v12492_v10 = vld [vmem:[#allocation2 + $0x114] sm:$0xf]  ;;  %v18845_v18 = vld [vmem:[#allocation67_spill] sm:$0xff] }
 0x23d   : > { %v12487_v41 = vmax.bf16 %v4552_v24, %v4278_v20  ;;  %9852 = vrcp.f32 %v786_v31  ;;  %v4279_v63 = vmax.bf16 %v3630_v53, %v3212_v28  ;;  %v4976_v2 = vmax.bf16 %v12169_v59, %v12156_v16  ;;  %18843 = vst [vmem:[#allocation93_spill] sm:$0xff] %v12492_v10  ;;  %v18846_v9 = vld [vmem:[#allocation68_spill] sm:$0xff]  ;;  %9412 = vmatprep.subr.bf16.mxu1 %v18847_v46  ;;  %v12504_v40 = vld [vmem:[#allocation2 + $0x118] sm:$0xf]  ;;  %v10159_v46 = vld [vmem:[#allocation9 + $0x180] ss:$8 sps:$4 sm:$0xff]  }
 0x23e   : > { %v5022_v7 = vmax.bf16 %v4974_v5, %v12175_v32  ;;  %9854 = vrcp.f32 %v787_v34  ;;  %v12494_v21 = vmax.bf16 %v4549_v58, %v4277_v61  ;;  %v5023_v50 = vmax.bf16 %v4975_v14, %v12178_v42  ;;  %18848 = vst [vmem:[#allocation90_spill] sm:$0xff] %v12504_v40  ;;  %v18855_v14 = vld [vmem:[#allocation132_spill] sm:$0xff] }
 0x23f   : > { %18842 = vst [vmem:[#allocation131_spill] sm:$0xff] %v12487_v41  ;;  %v1964_v28 = vshll.u32 %v12492_v10, 16  ;;  %v1968_v24 = vshrl.u32 %v12492_v10, 16  ;;  %v17877_v5 = vrot.slane %v12492_v10, 5  ;;  %v1974_v58 = vshll.u32 %v12504_v40, 16 }
 0x240   : > { %18844 = vst [vmem:[#allocation96_spill] sm:$0xff] %v12494_v21  ;;  %v1978_v31 = vshrl.u32 %v12504_v40, 16  ;;  %v17878_v12 = vrot.slane %v12504_v40, 5  ;;  %9428 = vmatpush1.bf16.msra.mxu1 %v10159_v46  ;;  %v5024_v46 = vmax.bf16 %v4976_v2, %v12181_v62 }
 0x241   : > { %v12510_v34 = vrot.slane %v1964_v28, 5  ;;  %v1970_v53 = vrot.slane %v1968_v24, 4  ;;  %v12514_v61 = vrot.slane %v17877_v5, 4  ;;  %v12516_v13 = vrot.slane %v1968_v24, 5  ;;  %9413 = vmatprep.subr.bf16.mxu1 %v18855_v14 }
 0x242   : > { %v12518_v36 = vrot.slane %v1964_v28, 6  ;;  %v12520_v17 = vrot.slane %v1974_v58, 5  ;;  %v1980_v20 = vrot.slane %v1978_v31, 4  ;;  %v12524_v3 = vrot.slane %v17878_v12, 4  ;;  %v1279_v12 = vld [vmem:[#allocation2 + $0x13c] sm:$0x3] }
 0x243   : > { %18849 = vst [vmem:[#allocation88_spill] sm:$0xff] %v12510_v34  ;;  %18850 = vst [vmem:[#allocation86_spill] sm:$0xff] %v12514_v61  ;;  %v1971_v0 = vor.u32 %v1970_v53, %v12510_v34  ;;  %v12528_v10 = vrot.slane %v1978_v31, 5  ;;  %v12530_v5 = vrot.slane %v1974_v58, 6  ;;  %v12532_v24 = vmax.bf16 %v4555_v60, %v4279_v63  ;;  %v18860_v53 = vld [vmem:[#allocation29_spill] sm:$0xff]  ;;  %v18861_v31 = vld [vmem:[#allocation134_spill] sm:$0xff] }
 0x244   : > { %18851 = vst [vmem:[#allocation87_spill] sm:$0xff] %v12516_v13  ;;  %18852 = vst [vmem:[#allocation97_spill] sm:$0xff] %v12518_v36  ;;  %v1981_v28 = vor.u32 %v1980_v20, %v12520_v17  ;;  %v5070_v36 = vmax.bf16 %v5022_v7, %v12355_v30  ;;  %v5071_v13 = vmax.bf16 %v5023_v50, %v12330_v54  ;;  %v2062_v63 = vshll.u32 %v1279_v12, 16  ;;  %v10160_v58 = vld [vmem:[#allocation9 + $0x190] ss:$8 sps:$4 sm:$0xff]  }
 0x245   : > { %18853 = vst [vmem:[#allocation106_spill] sm:$0xff] %v12520_v17  ;;  %18854 = vst [vmem:[#allocation89_spill] sm:$0xff] %v12524_v3  ;;  %v12538_v3 = vld [vmem:[#allocation2 + $0xb0] sm:$0xf]  ;;  %v12540_v14 = vrot.slane %v1971_v0, 4  ;;  %v9388_v34 = vadd.f32 %v18861_v31, %v18860_v53  ;;  %v9391_v60 = vadd.f32 %v11921_v15, %v11910_v56  ;;  %9429 = vmatpush1.bf16.msra.mxu1 %v10160_v58  ;;  %v18882_v17 = vld [vmem:[#allocation109_spill] sm:$0xff] }
 0x246   : > { %18856 = vst [vmem:[#allocation91_spill] sm:$0xff] %v12528_v10  ;;  %18857 = vst [vmem:[#allocation94_spill] sm:$0xff] %v12530_v5  ;;  %v1982_v20 = vrot.slane %v1981_v28, 4  ;;  %v5072_v2 = vmax.bf16 %v5024_v46, %v12357_v29  ;;  %v5118_v7 = vmax.bf16 %v5070_v36, %v12494_v21  ;;  %v5119_v50 = vmax.bf16 %v5071_v13, %v12487_v41  ;;  %v18862_v5 = vld [vmem:[#allocation154_spill] sm:$0xff] }
 0x247   : > { %18858 = vst [vmem:[#allocation95_spill] sm:$0xff] %v12532_v24  ;;  %18859 = vst [vmem:[#allocation67_spill] sm:$0xff] %v12540_v14  ;;  %9414 = vmatprep.subr.bf16.mxu1 %v18862_v5  ;;  %v9853_v0 = vpop.eup %9852  ;;  %v12551_v10 = vadd.f32 %v12252_v37, %v9388_v34  ;;  %v12554_v53 = vadd.f32 %v12252_v37, %v9391_v60  ;;  %v12556_v56 = vrot.slane %v2062_v63, 5  ;;  %v1721_v15 = vshrl.u32 %v12538_v3, 16  ;;  %v18867_v63 = vld [vmem:[#allocation155_spill] sm:$0xff]  ;;  %v18881_v14 = vld [vmem:[#allocation108_spill] sm:$0xff] }
 0x248   : > { %v9855_v12 = vpop.eup %9854  ;;  %v1987_v36 = vsel %vm10803_vm2, %v1982_v20, %v12264_v57  ;;  %v12563_v13 = vmul.f32 %v9853_v0, %v12381_v25  ;;  %v5120_v5 = vmax.bf16 %v5072_v2, %v12532_v24  ;;  %v8939_v28 = vrot.slane %v5118_v7, 11 }
 0x249   : > { %18863 = vst [vmem:[#allocation68_spill] sm:$0xff] %v12556_v56  ;;  %v12567_v34 = vmax.bf16 %v1987_v36, %v12504_v40  ;;  %v12570_v46 = vmul.f32 %v9855_v12, %v12384_v43  ;;  %v5227_v31 = vrot.slane %v5119_v50, 7  ;;  %v8843_v60 = vmul.f32 -1.442695, %v12551_v10  ;;  %9430 = vmatpush1.bf16.msra.mxu1 %v18867_v63  ;;  %v2618_v50 = vld [vmem:[#allocation2 + $0xb0] sm:$0xe] }
 0x24a   : > { %18864 = vst [vmem:[#allocation129_spill] sm:$0xff] %v12563_v13  ;;  %v9251_v58 = vpack.c.bf16 %v12563_v13, %v12563_v13  ;;  %v5230_v20 = vrot.slane %v5120_v5, 7  ;;  %v8844_v25 = vmul.f32 -1.442695, %v12554_v53  ;;  %v1723_v0 = vrot.slane %v1721_v15, 4  ;;  %9415 = vmatprep.subr.bf16.mxu1 %v11976_v38  ;;  %v18868_v36 = vld [vmem:[#allocation107_spill] sm:$0xff] }
 0x24b   : > { %18865 = vst [vmem:[#allocation132_spill] sm:$0xff] %v12567_v34  ;;  %18866 = vst [vmem:[#allocation29_spill] sm:$0xff] %v12570_v46  ;;  %v9252_v2 = vpack.c.bf16 %v12570_v46, %v12570_v46  ;;  %v5228_v43 = vsel %vm12245_vm14, %v8939_v28, %v5227_v31  ;;  %v5229_v7 = vrot.slane %v5227_v31, 4  ;;  %9856 = vpow2.f32 %v8843_v60  ;;  %v18869_v5 = vld [vmem:[#allocation110_spill] sm:$0xff]  ;;  %v10161_v46 = vld [vmem:[#allocation2 + $0xb4] sm:$0xf] }
 0x24c   : > { %1140 = vst [vmem:[#allocation2 + $0x124] sm:$0xf] %v9251_v58  ;;  %9858 = vpow2.f32 %v8844_v25  ;;  %v1724_v12 = vshll.u32 %v12538_v3, 16  ;;  %v1743_v15 = vsel %vm10803_vm2, %v18869_v5, %v18868_v36  ;;  %v8892_v63 = vrot.slane %v2618_v50, 9  ;;  %v18870_v28 = vld [vmem:[#allocation104_spill] sm:$0xff]  ;;  %v18872_v60 = vld [vmem:[#allocation102_spill] sm:$0xff] }
 0x24d   : > { %1141 = vst [vmem:[#allocation2 + $0x128] sm:$0xf] %v9252_v2  ;;  %v5231_v38 = vsel %vm12245_vm14, %v5229_v7, %v5230_v20  ;;  %v12589_v13 = vmax.bf16 %v10161_v46, %v1743_v15  ;;  %v18871_v31 = vrot.slane %v18870_v28, 5  ;;  %v12598_v25 = vld [vmem:[#allocation2 + $0xbc] sm:$0x3]  ;;  %9431 = vmatpush1.bf16.msra.mxu1 %v11974_v49  ;;  %v18874_v5 = vld [vmem:[#allocation99_spill] sm:$0xff] }
 0x24e   : > { %18873 = vst [vmem:[#allocation134_spill] sm:$0xff] %v12598_v25  ;;  %v17886_v57 = vrot.slane %v12598_v25, 5  ;;  %v8955_v2 = vcombine.low %v5228_v43, %v5231_v38  ;;  %v1726_v36 = vrot.slane %v1724_v12, 5  ;;  %v18875_v20 = vrot.slane %v18874_v5, 5  ;;  %v12608_v7 = vld [vmem:[#allocation2 + $0xbc] sm:$0x7]  ;;  %9416 = vmatprep.subr.bf16.mxu1 %v12212_v8 }
 0x24f   : > { %v12596_v58 = vsel %vm10899_vm5, %v18872_v60, %v18871_v31  ;;  %18876 = vst [vmem:[#allocation154_spill] sm:$0xff] %v12608_v7  ;;  %v3633_v15 = vshrl.u32 %v2618_v50, 16  ;;  %v18877_v31 = vld [vmem:[#allocation111_spill] sm:$0xff]  ;;  %v3636_v43 = vshll.u32 %v2618_v50, 16  ;;  %v18879_v38 = vld [vmem:[#allocation105_spill] sm:$0xff] }
 0x250   : > { %v12606_v46 = vsel %vm10899_vm5, %v8892_v63, %v18875_v20  ;;  %v12616_v60 = vsel %vm10899_vm5, %v18877_v31, %v17886_v57  ;;  %v18878_v12 = vld [vmem:[#allocation103_spill] sm:$0xff]  ;;  %v12624_v20 = vld [vmem:[#allocation2 + $0xb0] sm:$0xc]  ;;  %7675 = vmatprep.mubr.bf16.mxu1 %v8955_v2  ;;  %v1727_v34 = vor.u32 %v1726_v36, %v1723_v0  ;;  %v3648_v31 = vor.u32 %v18882_v17, %v18881_v14 }
 0x251   : > { %v12622_v63 = vor.u32 %v18879_v38, %v18878_v12  ;;  %v18880_v8 = vld [vmem:[#allocation115_spill] sm:$0xff]  ;;  %v3635_v40 = vrot.slane %v3633_v15, 5  ;;  %v18883_v57 = vpack.c.bf16 %v18846_v9, %v18845_v18  ;;  %v3638_v50 = vrot.slane %v3636_v43, 6  ;;  %9432 = vmatpush1.bf16.msra.mxu1 %v12221_v23 }
 0x252   : > { %v3652_v12 = vshrl.u32 %v12608_v7, 16  ;;  %v3655_v38 = vshll.u32 %v12608_v7, 16  ;;  %v1728_v2 = vrot.slane %v1727_v34, 4  ;;  %v3650_v0 = vrot.slane %v3648_v31, 4  ;;  %9417 = vmatprep.subr.bf16.mxu1 %v12312_v19 }
 0x253   : > { %7676 = vmatmul.mubr.bf16.gmra.mrb[8].mxu1 %v18883_v57  ;;  %v3645_v49 = vrot.slane %v12622_v63, 4  ;;  %v8920_v36 = vrot.slane %v12624_v20, 10  ;;  %v18884_v15 = vrot.slane %v18874_v5, 6  ;;  %v12640_v17 = vld [vmem:[#allocation2 + $0x124] sm:$0xf]  ;;  %v3639_v18 = vor.u32 %v3638_v50, %v3635_v40 }
 0x254   : > { %18885 = vst [vmem:[#allocation155_spill] sm:$0xff] %v12640_v17  ;;  %v3654_v9 = vrot.slane %v3652_v12, 5  ;;  %v3657_v14 = vrot.slane %v3655_v38, 6  ;;  %v2003_v34 = vshll.u32 %v12640_v17, 16  ;;  %v2007_v43 = vshrl.u32 %v12640_v17, 16 }
 0x255   : > { %v4561_v61 = vrot.slane %v18884_v15, 4  ;;  %v3649_v57 = vsel %vm10967_vm8, %v3645_v49, %v3648_v31  ;;  %v17897_v20 = vrot.slane %v12640_v17, 5  ;;  %v12649_v16 = vld [vmem:[#allocation2 + $0x128] sm:$0xf]  ;;  %v9857_v23 = vpop.eup %9856  ;;  %9433 = vmatpush1.bf16.msra.mxu1 %v12304_v26 }
 0x256   : > { %18886 = vst [vmem:[#allocation107_spill] sm:$0xff] %v12649_v16  ;;  %v2013_v40 = vshll.u32 %v12649_v16, 16  ;;  %v2017_v50 = vshrl.u32 %v12649_v16, 16  ;;  %v17900_v49 = vrot.slane %v12649_v16, 5  ;;  %v9859_v19 = vpop.eup %9858  ;;  %v12655_v12 = vrot.slane %v2003_v34, 5  ;;  %9418 = vmatprep.subr.bf16.mxu1 %v12364_v44 }
 0x257   : > { %v2009_v38 = vrot.slane %v2007_v43, 4  ;;  %v12659_v55 = vrot.slane %v17897_v20, 4  ;;  %v12661_v15 = vrot.slane %v2007_v43, 5  ;;  %v12664_v11 = vrot.slane %v2003_v34, 6 }
 0x258   : > { %18887 = vst [vmem:[#allocation110_spill] sm:$0xff] %v12655_v12  ;;  %v12666_v27 = vrot.slane %v2013_v40, 5  ;;  %v2019_v25 = vrot.slane %v2017_v50, 4  ;;  %v12670_v31 = vrot.slane %v17900_v49, 4  ;;  %v12674_v17 = vrot.slane %v2017_v50, 5 }
 0x259   : > { %18888 = vst [vmem:[#allocation104_spill] sm:$0xff] %v12659_v55  ;;  %18889 = vst [vmem:[#allocation102_spill] sm:$0xff] %v12661_v15  ;;  %v2010_v56 = vor.u32 %v2009_v38, %v12655_v12  ;;  %v12676_v20 = vrot.slane %v2013_v40, 6  ;;  %v788_v43 = vadd.f32 1.0, %v9857_v23  ;;  %v789_v34 = vadd.f32 1.0, %v9859_v19  ;;  %9434 = vmatpush1.bf16.msra.mxu1 %v12362_v39 }
 0x25a   : > { %18890 = vst [vmem:[#allocation99_spill] sm:$0xff] %v12664_v11  ;;  %18891 = vst [vmem:[#allocation111_spill] sm:$0xff] %v12666_v27  ;;  %v2020_v26 = vor.u32 %v2019_v25, %v12666_v27  ;;  %v18895_v11 = vld [vmem:[#allocation101_spill] sm:$0xff]  ;;  %v3640_v55 = vrot.slane %v3639_v18, 4  ;;  %v12685_v49 = vor.u32 %v3657_v14, %v3654_v9  ;;  %v18898_v23 = vmax.bf16 %v12596_v58, %v12589_v13  ;;  %v12723_v9 = vld [vmem:[#allocation2 + $0x140] sm:$0xf] }
 0x25b   : > { %18892 = vst [vmem:[#allocation103_spill] sm:$0xff] %v12670_v31  ;;  %18893 = vst [vmem:[#allocation105_spill] sm:$0xff] %v12674_v17  ;;  %v1733_v15 = vsel %vm10803_vm2, %v1728_v2, %v18895_v11  ;;  %v12682_v35 = vrot.slane %v2010_v56, 4  ;;  %9860 = vrcp.f32 %v788_v43  ;;  %9419 = vmatprep.subr.bf16.mxu1 %v12417_v22  ;;  %v18899_v39 = vrot.slane %v18874_v5, 6  ;;  %v18905_v14 = vld [vmem:[#allocation69_spill] sm:$0xff] }
 0x25c   : > { %18894 = vst [vmem:[#allocation115_spill] sm:$0xff] %v12676_v20  ;;  %v2539_v44 = vmax.bf16 %v1733_v15, %v12538_v3  ;;  %18897 = vst [vmem:[#allocation109_spill] sm:$0xff] %v12685_v49  ;;  %v2021_v40 = vrot.slane %v2020_v26, 4  ;;  %9862 = vrcp.f32 %v789_v34  ;;  %v3644_v25 = vsel %vm10967_vm8, %v3640_v55, %v12622_v63  ;;  %v18906_v15 = vld [vmem:[#allocation70_spill] sm:$0xff]  ;;  %v18909_v26 = vld [vmem:[#allocation164_spill] sm:$0xff] }
 0x25d   : > { %18896 = vst [vmem:[#allocation108_spill] sm:$0xff] %v12682_v35  ;;  %v4282_v11 = vmax.bf16 %v3649_v57, %v18898_v23  ;;  %v3659_v3 = vsel %vm10967_vm8, %v3650_v0, %v12685_v49  ;;  %v4560_v2 = vsel %vm11111_vm11, %v8920_v36, %v18899_v39  ;;  %v18900_v18 = vrot.slane %v18870_v28, 6  ;;  %9435 = vmatpush1.bf16.msra.mxu1 %v12415_v45  ;;  %v12736_v19 = vld [vmem:[#allocation2 + $0x140] sm:$0xe] }
 0x25e   : > { %v3214_v56 = vmax.bf16 %v12606_v46, %v2539_v44  ;;  %v2026_v22 = vsel %vm10803_vm2, %v2021_v40, %v12387_v51  ;;  %v18901_v13 = vmax.bf16 %v12616_v60, %v18880_v8  ;;  %v17901_v5 = vrot.slane %v12608_v7, 6  ;;  %v18932_v51 = vld [vmem:[#allocation123_spill] sm:$0xff] }
 0x25f   : > { %v4563_v55 = vsel %vm11111_vm11, %v4561_v61, %v18900_v18  ;;  %v18902_v46 = vmov %v18900_v18  ;;  %v12717_v0 = vmax.bf16 %v2026_v22, %v12649_v16  ;;  %v4977_v61 = vmax.bf16 %v12175_v32, %v12163_v1 }
 0x260   : > { %v4283_v58 = vmax.bf16 %v3659_v3, %v18901_v13  ;;  %v4564_v63 = vrot.slane %v18902_v46, 4  ;;  %v4281_v36 = vmax.bf16 %v3644_v25, %v3214_v56  ;;  %v12719_v57 = vmax.bf16 %v4563_v55, %v4282_v11  ;;  %v18918_v3 = vld [vmem:[#allocation126_spill] sm:$0xff] }
 0x261   : > { %18903 = vst [vmem:[#allocation101_spill] sm:$0xff] %v12717_v0  ;;  %v4978_v60 = vmax.bf16 %v12178_v42, %v12166_v33  ;;  %v4979_v8 = vmax.bf16 %v12181_v62, %v12169_v59  ;;  %v5025_v45 = vmax.bf16 %v4977_v61, %v12355_v30  ;;  %v9394_v34 = vadd.f32 %v18909_v26, %v11978_v4 }
 0x262   : > { %18904 = vst [vmem:[#allocation198_spill] sm:$0xff] %v12719_v57  ;;  %v4566_v28 = vsel %vm11111_vm11, %v4564_v63, %v17901_v5  ;;  %v12738_v38 = vmax.bf16 %v4560_v2, %v4281_v36  ;;  %v2072_v25 = vshrl.u32 %v12723_v9, 16  ;;  %v2075_v23 = vshll.u32 %v12723_v9, 16 }
 0x263   : > { %v12740_v43 = vmax.bf16 %v4566_v28, %v4283_v58  ;;  %v5026_v44 = vmax.bf16 %v4978_v60, %v12330_v54  ;;  %v5027_v40 = vmax.bf16 %v4979_v8, %v12357_v29  ;;  %v5073_v11 = vmax.bf16 %v5025_v45, %v12494_v21  ;;  %v12765_v45 = vld [vmem:[#allocation2 + $0x140] sm:$0xc] }
 0x264   : > { %18907 = vst [vmem:[#allocation69_spill] sm:$0xff] %v12738_v38  ;;  %v12751_v56 = vadd.f32 %v12252_v37, %v9394_v34  ;;  %v3894_v39 = vshrl.u32 %v12736_v19, 16  ;;  %v2074_v18 = vrot.slane %v2072_v25, 4  ;;  %v2077_v55 = vrot.slane %v2075_v23, 5 }
 0x265   : > { %18908 = vst [vmem:[#allocation70_spill] sm:$0xff] %v12740_v43  ;;  %v5074_v2 = vmax.bf16 %v5026_v44, %v12487_v41  ;;  %v5075_v4 = vmax.bf16 %v5027_v40, %v12532_v24  ;;  %v9861_v22 = vpop.eup %9860  ;;  %v5121_v13 = vmax.bf16 %v5073_v11, %v12738_v38  ;;  %v3897_v63 = vshll.u32 %v12736_v19, 16  ;;  %v12770_v40 = vld [vmem:[#allocation2 + $0x14c] sm:$0x3] }
 0x266   : > { %v8845_v58 = vmul.f32 -1.442695, %v12751_v56  ;;  %v3896_v46 = vrot.slane %v3894_v39, 5  ;;  %v9863_v36 = vpop.eup %9862  ;;  %v12761_v61 = vmul.f32 %v9861_v22, %v12551_v10  ;;  %v2078_v8 = vor.u32 %v2077_v55, %v2074_v18  ;;  %18912 = vst [vmem:[#allocation200_spill] sm:$0xff] %v12770_v40  ;;  %v12776_v39 = vld [vmem:[#allocation2 + $0x14c] sm:$0x7] }
 0x267   : > { %v5122_v28 = vmax.bf16 %v5074_v2, %v12719_v57  ;;  %v5123_v60 = vmax.bf16 %v5075_v4, %v12740_v43  ;;  %v12768_v26 = vmul.f32 %v9863_v36, %v12554_v53  ;;  %v8940_v34 = vrot.slane %v5121_v13, 11  ;;  %18913 = vst [vmem:[#allocation201_spill] sm:$0xff] %v12776_v39  ;;  %v18914_v18 = vld [vmem:[#allocation50_spill] sm:$0xff]  ;;  %v18915_v55 = vld [vmem:[#allocation195_spill] sm:$0xff]  ;;  %v18917_v53 = vld [vmem:[#allocation121_spill] sm:$0xff] }
 0x268   : > { %18910 = vst [vmem:[#allocation164_spill] sm:$0xff] %v12761_v61  ;;  %9864 = vpow2.f32 %v8845_v58  ;;  %v3899_v44 = vrot.slane %v3897_v63, 6  ;;  %v9253_v25 = vpack.c.bf16 %v12761_v61, %v12761_v61  ;;  %v12774_v11 = vrot.slane %v2078_v8, 4  ;;  %v12783_v13 = vld [vmem:[#allocation2 + $0xc0] sm:$0xf] }
 0x269   : > { %18911 = vst [vmem:[#allocation199_spill] sm:$0xff] %v12768_v26  ;;  %v5234_v10 = vrot.slane %v5122_v28, 7  ;;  %v5237_v23 = vrot.slane %v5123_v60, 7  ;;  %v9254_v2 = vpack.c.bf16 %v12768_v26, %v12768_v26  ;;  %v9397_v22 = vadd.f32 %v18915_v55, %v18914_v18 }
 0x26a   : > { %v3900_v4 = vor.u32 %v3899_v44, %v3896_v46  ;;  %1142 = vst [vmem:[#allocation2 + $0x134] sm:$0xf] %v9253_v25  ;;  %v2101_v36 = vshll.u32 %v12770_v40, 16  ;;  %v3913_v8 = vshrl.u32 %v12776_v39, 16  ;;  %v3916_v44 = vshll.u32 %v12776_v39, 16 }
 0x26b   : > { %v5235_v58 = vsel %vm12245_vm14, %v8940_v34, %v5234_v10  ;;  %v5236_v63 = vrot.slane %v5234_v10, 4  ;;  %1143 = vst [vmem:[#allocation2 + $0x138] sm:$0xf] %v9254_v2  ;;  %v12792_v46 = vadd.f32 %v12252_v37, %v9397_v22  ;;  %v1760_v10 = vshrl.u32 %v12783_v13, 16  ;;  %v2619_v37 = vld [vmem:[#allocation2 + $0xc0] sm:$0xe] }
 0x26c   : > { %v12789_v60 = vrot.slane %v3900_v4, 4  ;;  %v12798_v18 = vrot.slane %v2101_v36, 5  ;;  %v3915_v4 = vrot.slane %v3913_v8, 5  ;;  %v3918_v5 = vrot.slane %v3916_v44, 6  ;;  %v10163_v34 = vld [vmem:[#allocation2 + $0xc4] sm:$0xf] }
 0x26d   : > { %v5238_v25 = vsel %vm12245_vm14, %v5236_v63, %v5237_v23  ;;  %v8846_v2 = vmul.f32 -1.442695, %v12792_v46  ;;  %v1762_v22 = vrot.slane %v1760_v10, 4  ;;  %v1763_v28 = vshll.u32 %v12783_v13, 16  ;;  %v18922_v44 = vld [vmem:[#allocation117_spill] sm:$0xff] }
 0x26e   : > { %18916 = vst [vmem:[#allocation50_spill] sm:$0xff] %v12798_v18  ;;  %v8956_v55 = vcombine.low %v5235_v58, %v5238_v25  ;;  %v1782_v23 = vsel %vm10803_vm2, %v18918_v3, %v18917_v53  ;;  %v8893_v63 = vrot.slane %v2619_v37, 9  ;;  %v12808_v36 = vor.u32 %v3918_v5, %v3915_v4  ;;  %v18920_v25 = vld [vmem:[#allocation114_spill] sm:$0xff]  ;;  %v18925_v53 = vld [vmem:[#allocation113_spill] sm:$0xff] }
 0x26f   : > { %9866 = vpow2.f32 %v8846_v2  ;;  %v12810_v58 = vmax.bf16 %v10163_v34, %v1782_v23  ;;  %v18921_v8 = vrot.slane %v18920_v25, 5  ;;  %v18924_v26 = vpack.c.bf16 %v18906_v15, %v18905_v14  ;;  %v12828_v34 = vld [vmem:[#allocation2 + $0xcc] sm:$0x3]  ;;  %v18929_v15 = vld [vmem:[#allocation118_spill] sm:$0xff] }
 0x270   : > { %7685 = vmatprep.mubr.bf16.mxu1 %v8956_v55  ;;  %18919 = vst [vmem:[#allocation195_spill] sm:$0xff] %v12808_v36  ;;  %v1765_v3 = vrot.slane %v1763_v28, 5  ;;  %v18926_v55 = vrot.slane %v18925_v53, 5  ;;  %18927 = vst [vmem:[#allocation121_spill] sm:$0xff] %v12828_v34  ;;  %v3662_v4 = vshrl.u32 %v2619_v37, 16  ;;  %v3665_v14 = vshll.u32 %v2619_v37, 16 }
 0x271   : > { %v12817_v10 = vsel %vm10899_vm5, %v18922_v44, %v18921_v8  ;;  %7686 = vmatmul.mubr.bf16.gmra.mrb[12].mxu1 %v18924_v26  ;;  %v12831_v61 = vld [vmem:[#allocation2 + $0x134] sm:$0xf]  ;;  %v18931_v44 = vld [vmem:[#allocation122_spill] sm:$0xff] }
 0x272   : > { %v12826_v5 = vsel %vm10899_vm5, %v8893_v63, %v18926_v55  ;;  %v9865_v23 = vpop.eup %9864  ;;  %18928 = vst [vmem:[#allocation126_spill] sm:$0xff] %v12831_v61  ;;  %v3219_v8 = vmax.bf16 %v12817_v10, %v12810_v58  ;;  %v18930_v26 = vld [vmem:[#allocation120_spill] sm:$0xff]  ;;  %v12841_v63 = vor.u32 %v18932_v51, %v18931_v44  ;;  %v2042_v55 = vshll.u32 %v12831_v61, 16  ;;  %v12847_v0 = vld [vmem:[#allocation2 + $0x138] sm:$0xf] }
 0x273   : > { %v12837_v28 = vor.u32 %v18930_v26, %v18929_v15  ;;  %v2046_v2 = vshrl.u32 %v12831_v61, 16  ;;  %v17913_v20 = vrot.slane %v12831_v61, 5  ;;  %18933 = vst [vmem:[#allocation114_spill] sm:$0xff] %v12847_v0  ;;  %v2052_v37 = vshll.u32 %v12847_v0, 16 }
 0x274   : > { %v2056_v58 = vshrl.u32 %v12847_v0, 16  ;;  %v17914_v10 = vrot.slane %v12847_v0, 5  ;;  %v12853_v51 = vrot.slane %v2042_v55, 5  ;;  %v12861_v17 = vrot.slane %v2042_v55, 6 }
 0x275   : > { %v2048_v26 = vrot.slane %v2046_v2, 4  ;;  %v12857_v44 = vrot.slane %v17913_v20, 4  ;;  %v12859_v31 = vrot.slane %v2046_v2, 5  ;;  %v12863_v12 = vrot.slane %v2052_v37, 5 }
 0x276   : > { %18934 = vst [vmem:[#allocation117_spill] sm:$0xff] %v12853_v51  ;;  %18937 = vst [vmem:[#allocation120_spill] sm:$0xff] %v12861_v17  ;;  %v2058_v16 = vrot.slane %v2056_v58, 4  ;;  %v12867_v35 = vrot.slane %v17914_v10, 4  ;;  %v12870_v27 = vrot.slane %v2056_v58, 5  ;;  %v12872_v1 = vrot.slane %v2052_v37, 6 }
 0x277   : > { %18935 = vst [vmem:[#allocation113_spill] sm:$0xff] %v12857_v44  ;;  %18936 = vst [vmem:[#allocation118_spill] sm:$0xff] %v12859_v31  ;;  %v2049_v15 = vor.u32 %v2048_v26, %v12853_v51  ;;  %v790_v61 = vadd.f32 1.0, %v9865_v23  ;;  %v1766_v2 = vor.u32 %v1765_v3, %v1762_v22  ;;  %v18942_v55 = vrot.slane %v12828_v34, 5  ;;  %v18943_v17 = vld [vmem:[#allocation124_spill] sm:$0xff]  ;;  %v18946_v58 = vld [vmem:[#allocation130_spill] sm:$0xff] }
 0x278   : > { %18938 = vst [vmem:[#allocation122_spill] sm:$0xff] %v12863_v12  ;;  %18939 = vst [vmem:[#allocation123_spill] sm:$0xff] %v12867_v35  ;;  %v2059_v20 = vor.u32 %v2058_v16, %v12863_v12  ;;  %v12880_v44 = vld [vmem:[#allocation2 + $0xcc] sm:$0x7]  ;;  %v3664_v10 = vrot.slane %v3662_v4, 5  ;;  %v3667_v37 = vrot.slane %v3665_v14, 6 }
 0x279   : > { %18940 = vst [vmem:[#allocation202_spill] sm:$0xff] %v12870_v27  ;;  %18941 = vst [vmem:[#allocation203_spill] sm:$0xff] %v12872_v1  ;;  %v2891_v31 = vsel %vm10899_vm5, %v18943_v17, %v18942_v55  ;;  %v12882_v35 = vrot.slane %v2049_v15, 4  ;;  %9868 = vrcp.f32 %v790_v61  ;;  %v4361_v1 = vld [vmem:[#allocation2 + $0xc0] sm:$0xc]  ;;  %v9867_v23 = vpop.eup %9866  ;;  %v1767_v16 = vrot.slane %v1766_v2, 4 }
 0x27a   : > { %18944 = vst [vmem:[#allocation124_spill] sm:$0xff] %v12880_v44  ;;  %v3220_v26 = vmax.bf16 %v2891_v31, %v18946_v58  ;;  %v2060_v27 = vrot.slane %v2059_v20, 4  ;;  %v3674_v22 = vrot.slane %v12837_v28, 4  ;;  %v3679_v3 = vrot.slane %v12841_v63, 4  ;;  %v18947_v15 = vld [vmem:[#allocation68_spill] sm:$0xff] }
 0x27b   : > { %18945 = vst [vmem:[#allocation204_spill] sm:$0xff] %v12882_v35  ;;  %v791_v51 = vadd.f32 1.0, %v9867_v23  ;;  %v3668_v12 = vor.u32 %v3667_v37, %v3664_v10  ;;  %v3681_v17 = vshrl.u32 %v12880_v44, 16  ;;  %v3684_v4 = vshll.u32 %v12880_v44, 16  ;;  %v18948_v31 = vld [vmem:[#allocation116_spill] sm:$0xff] }
 0x27c   : > { %v2065_v61 = vsel %vm10803_vm2, %v2060_v27, %v18947_v15  ;;  %v1772_v14 = vsel %vm10803_vm2, %v1767_v16, %v18948_v31  ;;  %v3678_v20 = vsel %vm10967_vm8, %v3674_v22, %v12841_v63  ;;  %v8921_v2 = vrot.slane %v4361_v1, 10 }
 0x27d   : > { %v12899_v55 = vmax.bf16 %v2065_v61, %v12847_v0  ;;  %9870 = vrcp.f32 %v791_v51  ;;  %v2543_v10 = vmax.bf16 %v1772_v14, %v12783_v13  ;;  %v3669_v58 = vrot.slane %v3668_v12, 4  ;;  %v18955_v14 = vld [vmem:[#allocation71_spill] sm:$0xff] }
 0x27e   : > { %v3683_v37 = vrot.slane %v3681_v17, 5  ;;  %v3686_v23 = vrot.slane %v3684_v4, 6  ;;  %v4286_v35 = vmax.bf16 %v3678_v20, %v3219_v8  ;;  %v18950_v27 = vrot.slane %v18925_v53, 6  ;;  %v18956_v20 = vld [vmem:[#allocation72_spill] sm:$0xff]  ;;  %v18976_v0 = vld [vmem:[#allocation139_spill] sm:$0xff] }
 0x27f   : > { %18949 = vst [vmem:[#allocation130_spill] sm:$0xff] %v12899_v55  ;;  %v3218_v31 = vmax.bf16 %v12826_v5, %v2543_v10  ;;  %v3673_v1 = vsel %vm10967_vm8, %v3669_v58, %v12837_v28  ;;  %v18952_v13 = vrot.slane %v18920_v25, 6  ;;  %v17917_v8 = vrot.slane %v12880_v44, 6  ;;  %v18975_v55 = vld [vmem:[#allocation138_spill] sm:$0xff] }
 0x280   : > { %v4571_v16 = vsel %vm11111_vm11, %v8921_v2, %v18950_v27  ;;  %v18951_v63 = vmov %v18950_v27  ;;  %v12914_v22 = vor.u32 %v3686_v23, %v3683_v37  ;;  %v4980_v17 = vmax.bf16 %v12355_v30, %v12175_v32  ;;  %v12939_v23 = vld [vmem:[#allocation2 + $0xd0] sm:$0xf] }
 0x281   : > { %v4572_v51 = vrot.slane %v18951_v63, 4  ;;  %v4575_v12 = vrot.slane %v18952_v13, 4  ;;  %v4981_v5 = vmax.bf16 %v12330_v54, %v12178_v42  ;;  %v4285_v4 = vmax.bf16 %v3673_v1, %v3218_v31 }
 0x282   : > { %18953 = vst [vmem:[#allocation116_spill] sm:$0xff] %v12914_v22  ;;  %v18954_v61 = vmov %v18952_v13  ;;  %v4982_v28 = vmax.bf16 %v12357_v29, %v12181_v62  ;;  %v3688_v10 = vsel %vm10967_vm8, %v3679_v3, %v12914_v22  ;;  %v5028_v25 = vmax.bf16 %v4980_v17, %v12494_v21  ;;  %v18963_v17 = vld [vmem:[#allocation82_spill] sm:$0xff] }
 0x283   : > { %v4574_v53 = vsel %vm11111_vm11, %v4572_v51, %v18954_v61  ;;  %v4577_v58 = vsel %vm11111_vm11, %v4575_v12, %v17917_v8  ;;  %v9869_v27 = vpop.eup %9868  ;;  %v4287_v31 = vmax.bf16 %v3688_v10, %v3220_v26  ;;  %v12941_v1 = vmax.bf16 %v4571_v16, %v4285_v4  ;;  %v18960_v12 = vld [vmem:[#allocation74_spill] sm:$0xff] }
 0x284   : > { %v12936_v37 = vmax.bf16 %v4574_v53, %v4286_v35  ;;  %v5029_v63 = vmax.bf16 %v4981_v5, %v12487_v41  ;;  %v5030_v51 = vmax.bf16 %v4982_v28, %v12532_v24  ;;  %v12946_v3 = vmul.f32 %v9869_v27, %v12751_v56  ;;  %v18961_v35 = vld [vmem:[#allocation76_spill] sm:$0xff]  ;;  %v10165_v28 = vld [vmem:[%s17682_s2] ss:$0 sm:$0xff] }
 0x285   : > { %18958 = vst [vmem:[#allocation72_spill] sm:$0xff] %v12941_v1  ;;  %v5076_v13 = vmax.bf16 %v5028_v25, %v12738_v38  ;;  %v9400_v61 = vadd.f32 %v18961_v35, %v18960_v12  ;;  %v18962_v53 = vld [vmem:[#allocation92_spill] sm:$0xff]  ;;  %v12953_v2 = vmax.bf16 %v4577_v58, %v4287_v31  ;;  %v1799_v5 = vshrl.u32 %v12939_v23, 16 }
 0x286   : > { %18957 = vst [vmem:[#allocation71_spill] sm:$0xff] %v12936_v37  ;;  %18959 = vst [vmem:[#allocation205_spill] sm:$0xff] %v12946_v3  ;;  %v9403_v8 = vadd.f32 %v18963_v17, %v18962_v53  ;;  %v5077_v26 = vmax.bf16 %v5029_v63, %v12719_v57  ;;  %v5078_v16 = vmax.bf16 %v5030_v51, %v12740_v43  ;;  %v1802_v51 = vshll.u32 %v12939_v23, 16 }
 0x287   : > { %18964 = vst [vmem:[#allocation74_spill] sm:$0xff] %v12953_v2  ;;  %v9255_v56 = vpack.c.bf16 %v12946_v3, %v12946_v3  ;;  %v5124_v4 = vmax.bf16 %v5076_v13, %v12941_v1  ;;  %v12964_v10 = vadd.f32 %v10165_v28, %v9400_v61  ;;  %v9871_v58 = vpop.eup %9870  ;;  %v1801_v63 = vrot.slane %v1799_v5, 4  ;;  %v18967_v3 = vld [vmem:[#allocation144_spill] sm:$0xff] }
 0x288   : > { %v12966_v25 = vadd.f32 %v10165_v28, %v9403_v8  ;;  %v5125_v27 = vmax.bf16 %v5077_v26, %v12936_v37  ;;  %v5126_v31 = vmax.bf16 %v5078_v16, %v12953_v2  ;;  %v12972_v12 = vmul.f32 %v9871_v58, %v12792_v46  ;;  %v18966_v28 = vld [vmem:[#allocation141_spill] sm:$0xff]  ;;  %v2620_v16 = vld [vmem:[#allocation2 + $0xd0] sm:$0xe]  ;;  %v10166_v46 = vld [vmem:[#allocation2 + $0xd4] sm:$0xf] }
 0x289   : > { %1144 = vst [vmem:[#allocation2 + $0x144] sm:$0xf] %v9255_v56  ;;  %v8941_v13 = vrot.slane %v5124_v4, 11  ;;  %v8847_v35 = vmul.f32 -1.442695, %v12964_v10  ;;  %v1804_v17 = vrot.slane %v1802_v51, 5  ;;  %v1821_v26 = vsel %vm10803_vm2, %v18967_v3, %v18966_v28 }
 0x28a   : > { %18965 = vst [vmem:[#allocation76_spill] sm:$0xff] %v12972_v12  ;;  %v8848_v61 = vmul.f32 -1.442695, %v12966_v25  ;;  %v5241_v53 = vrot.slane %v5125_v27, 7  ;;  %v5244_v8 = vrot.slane %v5126_v31, 7  ;;  %v9256_v5 = vpack.c.bf16 %v12972_v12, %v12972_v12  ;;  %v18968_v51 = vld [vmem:[#allocation133_spill] sm:$0xff] }
 0x28b   : > { %9872 = vpow2.f32 %v8847_v35  ;;  %v12982_v56 = vmax.bf16 %v10166_v46, %v1821_v26  ;;  %v8894_v4 = vrot.slane %v2620_v16, 9  ;;  %v1805_v31 = vor.u32 %v1804_v17, %v1801_v63  ;;  %v18970_v28 = vld [vmem:[#allocation135_spill] sm:$0xff]  ;;  %v18972_v35 = vld [vmem:[#allocation137_spill] sm:$0xff] }
 0x28c   : > { %v5242_v58 = vsel %vm12245_vm14, %v8941_v13, %v5241_v53  ;;  %v5243_v27 = vrot.slane %v5241_v53, 4  ;;  %9874 = vpow2.f32 %v8848_v61  ;;  %1145 = vst [vmem:[#allocation2 + $0x148] sm:$0xf] %v9256_v5  ;;  %v18969_v15 = vrot.slane %v18968_v51, 5  ;;  %v12999_v46 = vld [vmem:[#allocation2 + $0xdc] sm:$0x3] }
 0x28d   : > { %v18971_v12 = vrot.slane %v18970_v28, 5  ;;  %18973 = vst [vmem:[#allocation92_spill] sm:$0xff] %v12999_v46  ;;  %v17925_v13 = vrot.slane %v12999_v46, 5  ;;  %v3691_v61 = vshrl.u32 %v2620_v16, 16  ;;  %v1806_v53 = vrot.slane %v1805_v31, 4  ;;  %v18980_v46 = vld [vmem:[#allocation145_spill] sm:$0xff] }
 0x28e   : > { %v12990_v3 = vsel %vm10899_vm5, %v8894_v4, %v18969_v15  ;;  %v5245_v63 = vsel %vm12245_vm14, %v5243_v27, %v5244_v8  ;;  %v3694_v17 = vshll.u32 %v2620_v16, 16  ;;  %v18974_v4 = vld [vmem:[#allocation142_spill] sm:$0xff]  ;;  %v13017_v32 = vor.u32 %v18976_v0, %v18975_v55  ;;  %v18977_v27 = vld [vmem:[#allocation136_spill] sm:$0xff]  ;;  %v18978_v16 = vld [vmem:[#allocation151_spill] sm:$0xff] }
 0x28f   : > { %v12997_v26 = vsel %vm10899_vm5, %v18972_v35, %v18971_v12  ;;  %v8957_v5 = vcombine.low %v5242_v58, %v5245_v63  ;;  %v13011_v12 = vsel %vm10899_vm5, %v18974_v4, %v17925_v13  ;;  %v13013_v35 = vrot.slane %v3691_v61, 5  ;;  %v18979_v15 = vld [vmem:[#allocation143_spill] sm:$0xff] }
 0x290   : > { %v1229_v8 = vld [vmem:[#allocation2 + $0x144] sm:$0xf]  ;;  %v1811_v31 = vsel %vm10803_vm2, %v1806_v53, %v18977_v27  ;;  %v13024_v63 = vrot.slane %v3694_v17, 6  ;;  %v13028_v4 = vor.u32 %v18980_v46, %v18979_v15  ;;  %v18981_v0 = vpack.c.bf16 %v18956_v20, %v18955_v14 }
 0x291   : > { %v2081_v61 = vshll.u32 %v1229_v8, 16  ;;  %v2085_v13 = vshrl.u32 %v1229_v8, 16  ;;  %v2972_v62 = vrot.slane %v1229_v8, 5  ;;  %v4658_v42 = vrot.slane %v1229_v8, 6  ;;  %7695 = vmatprep.mubr.bf16.mxu1 %v8957_v5 }
 0x292   : > { %7696 = vmatmul.mubr.bf16.gmra.mrb[16].mxu1 %v18981_v0  ;;  %v13034_v55 = vmax.bf16 %v1811_v31, %v12939_v23  ;;  %v3697_v53 = vor.u32 %v13024_v63, %v13013_v35  ;;  %v3703_v17 = vrot.slane %v13017_v32, 4  ;;  %v18982_v58 = vrot.slane %v12736_v19, 9 }
 0x293   : > { %v2083_v15 = vrot.slane %v2081_v61, 5  ;;  %v2087_v27 = vrot.slane %v2085_v13, 4  ;;  %v2974_v59 = vrot.slane %v2972_v62, 4  ;;  %v3902_v14 = vrot.slane %v2085_v13, 5  ;;  %v1230_v63 = vld [vmem:[#allocation2 + $0x148] sm:$0xf] }
 0x294   : > { %v2973_v5 = vsel %vm10899_vm5, %v18982_v58, %v2972_v62  ;;  %v3903_v20 = vrot.slane %v2081_v61, 6  ;;  %v18983_v23 = vrot.slane %v12765_v45, 10  ;;  %v4660_v35 = vrot.slane %v4658_v42, 4 }
 0x295   : > { %v9873_v0 = vpop.eup %9872  ;;  %v2084_v46 = vsel %vm10803_vm2, %v12774_v11, %v2083_v15  ;;  %v2088_v33 = vor.u32 %v2087_v27, %v2083_v15  ;;  %v2091_v19 = vshll.u32 %v1230_v63, 16  ;;  %v2095_v44 = vshrl.u32 %v1230_v63, 16 }
 0x296   : > { %v4659_v31 = vsel %vm11111_vm11, %v18983_v23, %v4658_v42  ;;  %v9875_v7 = vpop.eup %9874  ;;  %v2575_v62 = vmax.bf16 %v2084_v46, %v12723_v9  ;;  %v3904_v13 = vor.u32 %v3903_v20, %v3902_v14  ;;  %v2975_v58 = vrot.slane %v1230_v63, 5 }
 0x297   : > { %v4661_v61 = vrot.slane %v1230_v63, 6  ;;  %v2089_v45 = vrot.slane %v2088_v33, 4  ;;  %v2093_v22 = vrot.slane %v2091_v19, 5  ;;  %v2097_v49 = vrot.slane %v2095_v44, 4 }
 0x298   : > { %v3907_v23 = vrot.slane %v2095_v44, 5  ;;  %v3250_v42 = vmax.bf16 %v2973_v5, %v2575_v62  ;;  %v3905_v34 = vsel %vm10967_vm8, %v12789_v60, %v3904_v13  ;;  %v3906_v52 = vrot.slane %v3904_v13, 4 }
 0x299   : > { %v2976_v11 = vsel %vm10899_vm5, %v2974_v59, %v2975_v58  ;;  %v2094_v15 = vsel %vm10803_vm2, %v2089_v45, %v2093_v22  ;;  %v2098_v9 = vor.u32 %v2097_v49, %v2093_v22  ;;  %v2977_v46 = vrot.slane %v2975_v58, 4 }
 0x29a   : > { %v3908_v27 = vrot.slane %v2091_v19, 6  ;;  %v4317_v14 = vmax.bf16 %v3905_v34, %v3250_v42  ;;  %v2576_v33 = vmax.bf16 %v2094_v15, %v1229_v8  ;;  %v4662_v44 = vsel %vm11111_vm11, %v4660_v35, %v4661_v61  ;;  %v13071_v8 = vld [vmem:[#allocation2 + $0xdc] sm:$0x7] }
 0x29b   : > { %v4663_v5 = vrot.slane %v4661_v61, 4  ;;  %v2099_v20 = vrot.slane %v2098_v9, 4  ;;  %v18984_v62 = vrot.slane %v12770_v40, 5  ;;  %v792_v59 = vadd.f32 1.0, %v9873_v0  ;;  %18987 = vst [vmem:[#allocation141_spill] sm:$0xff] %v13071_v8 }
 0x29c   : > { %v3909_v13 = vor.u32 %v3908_v27, %v3907_v23  ;;  %v13065_v2 = vmax.bf16 %v4659_v31, %v4317_v14  ;;  %v3251_v45 = vmax.bf16 %v2976_v11, %v2576_v33  ;;  %v18986_v49 = vrot.slane %v12776_v39, 6  ;;  %v4362_v23 = vld [vmem:[#allocation2 + $0xd0] sm:$0xc] }
 0x29d   : > { %v2979_v60 = vsel %vm10899_vm5, %v2977_v46, %v18984_v62  ;;  %v793_v22 = vadd.f32 1.0, %v9875_v7  ;;  %v2104_v35 = vsel %vm10803_vm2, %v2099_v20, %v12798_v18  ;;  %9876 = vrcp.f32 %v792_v59 }
 0x29e   : > { %18985 = vst [vmem:[#allocation82_spill] sm:$0xff] %v13065_v2  ;;  %v4665_v34 = vsel %vm11111_vm11, %v4663_v5, %v18986_v49  ;;  %v3910_v19 = vsel %vm10967_vm8, %v3906_v52, %v3909_v13  ;;  %v3911_v58 = vrot.slane %v3909_v13, 4  ;;  %v2577_v31 = vmax.bf16 %v2104_v35, %v1230_v63 }
 0x29f   : > { %v4318_v0 = vmax.bf16 %v3910_v19, %v3251_v45  ;;  %9878 = vrcp.f32 %v793_v22  ;;  %v3222_v61 = vmax.bf16 %v12990_v3, %v13034_v55  ;;  %v3698_v42 = vrot.slane %v3697_v53, 4  ;;  %v13111_v45 = vld [vmem:[#allocation2] sm:$0xf] }
 0x2a0   : > { %v3920_v7 = vsel %vm10967_vm8, %v3911_v58, %v12808_v36  ;;  %v3707_v11 = vsel %vm10967_vm8, %v3703_v17, %v13028_v4  ;;  %v3710_v52 = vshrl.u32 %v13071_v8, 16  ;;  %v3252_v15 = vmax.bf16 %v2979_v60, %v2577_v31  ;;  %v13130_v31 = vld [vmem:[#allocation2 + $0x4] sm:$0xf]  ;;  %v13284_v36 = vld [vmem:[#allocation2 + $0x34] sm:$0xf] }
 0x2a1   : > { %v13087_v9 = vmax.bf16 %v4662_v44, %v4318_v0  ;;  %v3713_v63 = vshll.u32 %v13071_v8, 16  ;;  %v18989_v3 = vmax.bf16 %v12997_v26, %v12982_v56  ;;  %v3702_v46 = vsel %vm10967_vm8, %v3698_v42, %v13017_v32  ;;  %18998 = vst [vmem:[#allocation138_spill] sm:$0xff] %v13130_v31  ;;  %19013 = vst [vmem:[#allocation207_spill] sm:$0xff] %v13284_v36 }
 0x2a2   : > { %v3712_v53 = vrot.slane %v3710_v52, 5  ;;  %v8922_v27 = vrot.slane %v4362_v23, 10  ;;  %v18990_v14 = vrot.slane %v18968_v51, 6  ;;  %v4319_v33 = vmax.bf16 %v3920_v7, %v3252_v15  ;;  %v19000_v23 = vld [vmem:[#allocation79_spill] sm:$0xff]  ;;  %v19001_v7 = vld [vmem:[#allocation85_spill] sm:$0xff] }
 0x2a3   : > { %18988 = vst [vmem:[#allocation144_spill] sm:$0xff] %v13087_v9  ;;  %v4290_v55 = vmax.bf16 %v3707_v11, %v18989_v3  ;;  %v3715_v5 = vrot.slane %v3713_v63, 6  ;;  %v4289_v20 = vmax.bf16 %v3702_v46, %v3222_v61  ;;  %v18991_v44 = vrot.slane %v18970_v28, 6 }
 0x2a4   : > { %v4583_v17 = vrot.slane %v18990_v14, 4  ;;  %v18992_v60 = vmov %v18990_v14  ;;  %v17944_v13 = vrot.slane %v13071_v8, 6  ;;  %v4983_v59 = vmax.bf16 %v12494_v21, %v12355_v30  ;;  %v13317_v8 = vld [vmem:[#allocation2 + $0x3c] sm:$0x3] }
 0x2a5   : > { %v4586_v62 = vrot.slane %v18991_v44, 4  ;;  %v4582_v56 = vsel %vm11111_vm11, %v8922_v27, %v18992_v60  ;;  %v18993_v26 = vmov %v18991_v44  ;;  %v13113_v49 = vmax.bf16 %v4665_v34, %v4319_v33  ;;  %19015 = vst [vmem:[#allocation209_spill] sm:$0xff] %v13317_v8 }
 0x2a6   : > { %v4585_v32 = vsel %vm11111_vm11, %v4583_v17, %v18993_v26  ;;  %v13115_v22 = vor.u32 %v3715_v5, %v3712_v53  ;;  %v13117_v51 = vmax.bf16 %v4582_v56, %v4289_v20  ;;  %v4984_v19 = vmax.bf16 %v12487_v41, %v12330_v54  ;;  %v13163_v56 = vld [vmem:[#allocation2 + $0xc] sm:$0x3]  ;;  %v10170_v41 = vld [vmem:[#allocation2 + $0x9c] sm:$0x3] }
 0x2a7   : > { %18994 = vst [vmem:[#allocation133_spill] sm:$0xff] %v13113_v49  ;;  %v13119_v35 = vmax.bf16 %v4585_v32, %v4290_v55  ;;  %v4588_v28 = vsel %vm11111_vm11, %v4586_v62, %v17944_v13  ;;  %v4985_v58 = vmax.bf16 %v12532_v24, %v12357_v29  ;;  %v5031_v34 = vmax.bf16 %v4983_v59, %v12738_v38  ;;  %v9877_v15 = vpop.eup %9876  ;;  %v13158_v62 = vld [vmem:[#allocation2 + $0x8] sm:$0xf]  ;;  %v10171_v54 = vld [vmem:[#allocation2 + $0xac] sm:$0x3] }
 0x2a8   : > { %18995 = vst [vmem:[#allocation135_spill] sm:$0xff] %v13115_v22  ;;  %18996 = vst [vmem:[#allocation137_spill] sm:$0xff] %v13117_v51  ;;  %v18999_v0 = vrot.slane %v13028_v4, 4  ;;  %v895_v42 = vpack.c.bf16 %v19001_v7, %v19000_v23  ;;  %v1292_v11 = vshrl.u32 %v13111_v45, 16  ;;  %v1295_v52 = vshll.u32 %v13111_v45, 16 }
 0x2a9   : > { %18997 = vst [vmem:[#allocation142_spill] sm:$0xff] %v13119_v35  ;;  %v19002_v63 = vmax.bf16 %v13011_v12, %v18978_v16  ;;  %v5032_v55 = vmax.bf16 %v4984_v19, %v12719_v57  ;;  %v5033_v46 = vmax.bf16 %v4985_v58, %v12740_v43  ;;  %v5079_v4 = vmax.bf16 %v5031_v34, %v12941_v1  ;;  %v9879_v53 = vpop.eup %9878  ;;  %v19006_v16 = vld [vmem:[#allocation74_spill] sm:$0xff]  ;;  %v13253_v7 = vld [vmem:[#allocation2 + $0x28] sm:$0xf] }
 0x2aa   : > { %v3717_v61 = vsel %vm10967_vm8, %v18999_v0, %v13115_v22  ;;  %v13148_v27 = vmul.f32 %v9877_v15, %v12964_v10  ;;  %v1294_v14 = vrot.slane %v1292_v11, 4  ;;  %v1297_v17 = vrot.slane %v1295_v52, 5  ;;  %19007 = vst [vmem:[#allocation143_spill] sm:$0xff] %v13158_v62  ;;  %v13178_v15 = vld [vmem:[#allocation2 + $0x10] sm:$0xf]  ;;  %19012 = vst [vmem:[#allocation206_spill] sm:$0xff] %v13253_v7 }
 0x2ab   : > { %v4291_v3 = vmax.bf16 %v3717_v61, %v19002_v63  ;;  %v17947_v33 = vshll.u32 %v13130_v31, 16  ;;  %v13152_v5 = vmul.f32 %v9879_v53, %v12966_v25  ;;  %v5080_v12 = vmax.bf16 %v5032_v55, %v12936_v37  ;;  %v13183_v55 = vld [vmem:[#allocation2 + $0x14] sm:$0xf] }
 0x2ac   : > { %19003 = vst [vmem:[#allocation139_spill] sm:$0xff] %v13148_v27  ;;  %v5081_v44 = vmax.bf16 %v5033_v46, %v19006_v16  ;;  %v9257_v60 = vpack.c.bf16 %v13148_v27, %v13148_v27  ;;  %v5127_v10 = vmax.bf16 %v5079_v4, %v13117_v51  ;;  %v1298_v26 = vor.u32 %v1297_v17, %v1294_v14  ;;  %v10168_v16 = vld [vmem:[#allocation2 + $0x7c] sm:$0x3] }
 0x2ad   : > { %19004 = vst [vmem:[#allocation136_spill] sm:$0xff] %v13152_v5  ;;  %v13154_v20 = vmax.bf16 %v4588_v28, %v4291_v3  ;;  %v13167_v25 = vrot.slane %v17947_v33, 5  ;;  %v9258_v32 = vpack.c.bf16 %v13152_v5, %v13152_v5  ;;  %v5128_v59 = vmax.bf16 %v5080_v12, %v13119_v35  ;;  %19008 = vst [vmem:[#allocation145_spill] sm:$0xff] %v13183_v55  ;;  %v13261_v5 = vld [vmem:[#allocation2 + $0x2c] sm:$0x3] }
 0x2ae   : > { %v17948_v19 = vshrl.u32 %v13130_v31, 16  ;;  %1146 = vst [vmem:[#allocation2 + $0x154] sm:$0xf] %v9257_v60  ;;  %v8942_v58 = vrot.slane %v5127_v10, 11  ;;  %v13174_v34 = vrot.slane %v1298_v26, 4  ;;  %v17945_v0 = vshll.u32 %v13158_v62, 16 }
 0x2af   : > { %19005 = vst [vmem:[#allocation151_spill] sm:$0xff] %v13154_v20  ;;  %v5129_v28 = vmax.bf16 %v5081_v44, %v13154_v20  ;;  %v17946_v61 = vshrl.u32 %v13158_v62, 16  ;;  %1147 = vst [vmem:[#allocation2 + $0x158] sm:$0xf] %v9258_v32  ;;  %v5248_v11 = vrot.slane %v5128_v59, 7  ;;  %v1321_v3 = vshll.u32 %v13163_v56, 16 }
 0x2b0   : > { %v1307_v63 = vrot.slane %v17948_v19, 4  ;;  %v13191_v4 = vrot.slane %v17945_v0, 5  ;;  %v1325_v14 = vshrl.u32 %v13163_v56, 16  ;;  %v1331_v59 = vshrl.u32 %v13178_v15, 16  ;;  %v13206_v0 = vld [vmem:[#allocation2 + $0x18] sm:$0xf] }
 0x2b1   : > { %v5251_v52 = vrot.slane %v5129_v28, 7  ;;  %v1317_v53 = vrot.slane %v17946_v61, 4  ;;  %v5249_v12 = vsel %vm12245_vm14, %v8942_v58, %v5248_v11  ;;  %v5250_v44 = vrot.slane %v5248_v11, 4  ;;  %19010 = vst [vmem:[#allocation79_spill] sm:$0xff] %v13206_v0  ;;  %v13217_v19 = vld [vmem:[#allocation2 + $0x20] sm:$0xf] }
 0x2b2   : > { %v1308_v60 = vor.u32 %v1307_v63, %v13167_v25  ;;  %v13199_v10 = vrot.slane %v1321_v3, 5  ;;  %v1327_v32 = vrot.slane %v1325_v14, 4  ;;  %v1334_v28 = vshll.u32 %v13178_v15, 16  ;;  %v13212_v3 = vld [vmem:[#allocation2 + $0x1c] sm:$0x3] }
 0x2b3   : > { %v1318_v26 = vor.u32 %v1317_v53, %v13191_v4  ;;  %v5252_v13 = vsel %vm12245_vm14, %v5250_v44, %v5251_v52  ;;  %v17949_v58 = vshll.u32 %v13183_v55, 16  ;;  %v17950_v11 = vshrl.u32 %v13183_v55, 16 }
 0x2b4   : > { %v13208_v61 = vrot.slane %v1308_v60, 4  ;;  %v8958_v63 = vcombine.low %v5249_v12, %v5252_v13  ;;  %v1328_v14 = vor.u32 %v1327_v32, %v13199_v10  ;;  %v1333_v33 = vrot.slane %v1331_v59, 4 }
 0x2b5   : > { %v13214_v53 = vrot.slane %v1318_v26, 4  ;;  %v1336_v44 = vrot.slane %v1334_v28, 5  ;;  %v13225_v60 = vrot.slane %v17949_v58, 5  ;;  %v1346_v13 = vrot.slane %v17950_v11, 4  ;;  %v13240_v28 = vld [vmem:[#allocation2 + $0x24] sm:$0xf] }
 0x2b6   : > { %7705 = vmatprep.mubr.bf16.mxu1 %v8958_v63  ;;  %v13233_v26 = vrot.slane %v1328_v14, 4  ;;  %v17952_v32 = vshll.u32 %v13206_v0, 16  ;;  %v17955_v59 = vshrl.u32 %v13206_v0, 16  ;;  %19011 = vst [vmem:[#allocation85_spill] sm:$0xff] %v13240_v28  ;;  %v1360_v11 = vshll.u32 %v13212_v3, 16 }
 0x2b7   : > { %7706 = vmatmul.mubr.bf16.gmra.mrb[20].mxu1 %v895_v42  ;;  %v1337_v58 = vor.u32 %v1336_v44, %v1333_v33  ;;  %v1347_v63 = vor.u32 %v1346_v13, %v13225_v60  ;;  %v1364_v52 = vshrl.u32 %v13212_v3, 16  ;;  %v1370_v46 = vshrl.u32 %v13217_v19, 16 }
 0x2b8   : > { %v13247_v14 = vrot.slane %v17952_v32, 5  ;;  %v1356_v12 = vrot.slane %v17955_v59, 4  ;;  %v1373_v23 = vshll.u32 %v13217_v19, 16  ;;  %v13259_v44 = vrot.slane %v1360_v11, 5 }
 0x2b9   : > { %v13255_v42 = vrot.slane %v1337_v58, 4  ;;  %v13257_v33 = vrot.slane %v1347_v63, 4  ;;  %v1366_v13 = vrot.slane %v1364_v52, 4  ;;  %v1372_v27 = vrot.slane %v1370_v46, 4  ;;  %v13275_v63 = vld [vmem:[#allocation2 + $0x30] sm:$0xf] }
 0x2ba   : > { %v1357_v32 = vor.u32 %v1356_v12, %v13247_v14  ;;  %v1375_v18 = vrot.slane %v1373_v23, 5  ;;  %v17960_v59 = vshll.u32 %v13240_v28, 16  ;;  %v17961_v52 = vshrl.u32 %v13240_v28, 16 }
 0x2bb   : > { %v1367_v11 = vor.u32 %v1366_v13, %v13259_v44  ;;  %v17965_v39 = vshll.u32 %v13253_v7, 16  ;;  %v17969_v58 = vshrl.u32 %v13253_v7, 16  ;;  %v1399_v2 = vshll.u32 %v13261_v5, 16 }
 0x2bc   : > { %v13277_v46 = vrot.slane %v1357_v32, 4  ;;  %v1376_v12 = vor.u32 %v1375_v18, %v1372_v27  ;;  %v13281_v23 = vrot.slane %v17960_v59, 5  ;;  %v1385_v13 = vrot.slane %v17961_v52, 4  ;;  %v13303_v59 = vld [vmem:[#allocation2 + $0x38] sm:$0xf] }
 0x2bd   : > { %v13286_v40 = vrot.slane %v1367_v11, 4  ;;  %v13300_v32 = vrot.slane %v17965_v39, 5  ;;  %v1403_v11 = vshrl.u32 %v13261_v5, 16  ;;  %19014 = vst [vmem:[#allocation208_spill] sm:$0xff] %v13303_v59  ;;  %v1395_v49 = vrot.slane %v17969_v58, 4 }
 0x2be   : > { %v13296_v27 = vrot.slane %v1376_v12, 4  ;;  %v1386_v52 = vor.u32 %v1385_v13, %v13281_v23  ;;  %v13308_v9 = vrot.slane %v1399_v2, 5  ;;  %v1409_v17 = vshrl.u32 %v13275_v63, 16 }
 0x2bf   : > { %v1405_v39 = vrot.slane %v1403_v11, 4  ;;  %v1412_v18 = vshll.u32 %v13275_v63, 16  ;;  %v17977_v20 = vshll.u32 %v13284_v36, 16  ;;  %v1396_v58 = vor.u32 %v1395_v49, %v13300_v32 }
 0x2c0   : > { %v13319_v13 = vrot.slane %v1386_v52, 4  ;;  %v1411_v2 = vrot.slane %v1409_v17, 4  ;;  %v17980_v22 = vshrl.u32 %v13284_v36, 16  ;;  %v17983_v11 = vshll.u32 %v13303_v59, 16 }
 0x2c1   : > { %v1406_v35 = vor.u32 %v1405_v39, %v13308_v9  ;;  %v1414_v51 = vrot.slane %v1412_v18, 5  ;;  %v13326_v12 = vrot.slane %v17977_v20, 5  ;;  %v13333_v1 = vrot.slane %v1396_v58, 4 }
 0x2c2   : > { %v1424_v49 = vrot.slane %v17980_v22, 4  ;;  %v17994_v17 = vshrl.u32 %v13303_v59, 16  ;;  %v13342_v20 = vrot.slane %v17983_v11, 5  ;;  %v1438_v38 = vshll.u32 %v13317_v8, 16  ;;  %v19017_v11 = vld [vmem:[#allocation21_spill] sm:$0xff] }
 0x2c3   : > { %v13338_v39 = vrot.slane %v1406_v35, 4  ;;  %v1415_v18 = vor.u32 %v1414_v51, %v1411_v2  ;;  %v1442_v35 = vshrl.u32 %v13317_v8, 16  ;;  %v19016_v2 = vld [vmem:[#allocation19_spill] sm:$0xff]  ;;  %v1598_v37 = vshrl.u32 %v10168_v16, 16 }
 0x2c4   : > { %v1425_v52 = vor.u32 %v1424_v49, %v13326_v12  ;;  %v1434_v22 = vrot.slane %v17994_v17, 4  ;;  %v13355_v51 = vrot.slane %v1438_v38, 5  ;;  %v1562_v30 = vor.u32 %v19017_v11, %v19016_v2  ;;  %v10169_v49 = vld [vmem:[#allocation2 + $0x8c] sm:$0x3] }
 0x2c5   : > { %v13353_v21 = vrot.slane %v1415_v18, 4  ;;  %v1444_v57 = vrot.slane %v1442_v35, 4  ;;  %v1637_v24 = vshrl.u32 %v10169_v49, 16  ;;  %v1600_v38 = vrot.slane %v1598_v37, 4  ;;  %v19018_v35 = vld [vmem:[#allocation22_spill] sm:$0xff] }
 0x2c6   : > { %v13359_v43 = vrot.slane %v1425_v52, 4  ;;  %v1435_v58 = vor.u32 %v1434_v22, %v13342_v20  ;;  %v13366_v17 = vrot.slane %v1562_v30, 4  ;;  %v1676_v29 = vshrl.u32 %v10170_v41, 16 }
 0x2c7   : > { %v1421_v18 = vsel %vm10803_vm2, %v13353_v21, %v13326_v12  ;;  %v1445_v22 = vor.u32 %v1444_v57, %v13355_v51  ;;  %v1639_v52 = vrot.slane %v1637_v24, 4  ;;  %v1601_v2 = vor.u32 %v1600_v38, %v19018_v35  ;;  %v10172_v21 = vld [vmem:[#allocation2 + $0xbc] sm:$0x3]  ;;  %v19019_v12 = vld [vmem:[#allocation26_spill] sm:$0xff]  ;;  %v19021_v57 = vld [vmem:[#allocation16_spill] sm:$0xff] }
 0x2c8   : > { %v1431_v16 = vsel %vm10803_vm2, %v13359_v43, %v13342_v20  ;;  %v1436_v11 = vrot.slane %v1435_v58, 4  ;;  %v1678_v49 = vrot.slane %v1676_v29, 4  ;;  %v1715_v48 = vshrl.u32 %v10171_v54, 16  ;;  %v19020_v43 = vld [vmem:[#allocation121_spill] sm:$0xff]  ;;  %v13381_v58 = vld [vmem:[#allocation2 + $0xc] sm:$0x1] }
 0x2c9   : > { %v1754_v30 = vshrl.u32 %v10172_v21, 16  ;;  %v13377_v37 = vrot.slane %v1445_v22, 4  ;;  %v1640_v47 = vor.u32 %v1639_v52, %v19019_v12  ;;  %v1793_v20 = vshrl.u32 %v19020_v43, 16  ;;  %v13386_v35 = vld [vmem:[#allocation2 + $0x1c] sm:$0x1]  ;;  %v19026_v12 = vld [vmem:[#allocation23_spill] sm:$0xff] }
 0x2ca   : > { %v1441_v41 = vsel %vm10803_vm2, %v1436_v11, %v13355_v51  ;;  %v13383_v24 = vrot.slane %v1601_v2, 4  ;;  %v1679_v29 = vor.u32 %v1678_v49, %v19021_v57  ;;  %v1717_v38 = vrot.slane %v1715_v48, 4  ;;  %v13406_v52 = vld [vmem:[#allocation2 + $0x2c] sm:$0x1]  ;;  %v19025_v49 = vld [vmem:[#allocation20_spill] sm:$0xff] }
 0x2cb   : > { %v1756_v54 = vrot.slane %v1754_v30, 4  ;;  %v13388_v21 = vrot.slane %v1640_v47, 4  ;;  %v1795_v8 = vrot.slane %v1793_v20, 4  ;;  %v19022_v51 = vsel %vm10803_vm2, %v13174_v34, %v13167_v25  ;;  %v13408_v47 = vld [vmem:[#allocation2 + $0x3c] sm:$0x1]  ;;  %v19028_v57 = vld [vmem:[#allocation27_spill] sm:$0xff] }
 0x2cc   : > { %v13396_v11 = vmax.bf16 %v19022_v51, %v13111_v45  ;;  %v19023_v48 = vsel %vm10803_vm2, %v13208_v61, %v13191_v4  ;;  %v13410_v2 = vrot.slane %v1679_v29, 4  ;;  %v1718_v30 = vor.u32 %v1717_v38, %v19025_v49  ;;  %v13422_v61 = vld [vmem:[#allocation2 + $0x4c] sm:$0x1]  ;;  %v13426_v20 = vld [vmem:[#allocation2 + $0x7c] sm:$0x1] }
 0x2cd   : > { %v13404_v22 = vmax.bf16 %v19023_v48, %v13130_v31  ;;  %v1757_v25 = vor.u32 %v1756_v54, %v19026_v12  ;;  %v19027_v45 = vsel %vm10803_vm2, %v13214_v53, %v13199_v10  ;;  %v13424_v4 = vld [vmem:[#allocation2 + $0x6c] sm:$0x1]  ;;  %v1796_v29 = vor.u32 %v1795_v8, %v19028_v57  ;;  %v13449_v48 = vld [vmem:[#allocation2 + $0x9c] sm:$0x1]  ;;  %v13542_v38 = vld [vmem:[#allocation2 + $0x20] sm:$0xe] }
 0x2ce   : > { %19024 = vst [vmem:[#allocation19_spill] sm:$0xff] %v13410_v2  ;;  %v13420_v34 = vmax.bf16 %v19027_v45, %v13158_v62  ;;  %v19029_v54 = vsel %vm10803_vm2, %v13255_v42, %v13225_v60  ;;  %v19030_v53 = vsel %vm10803_vm2, %v13257_v33, %v13247_v14  ;;  %v13447_v8 = vld [vmem:[#allocation2 + $0x8c] sm:$0x1]  ;;  %19032 = vst [vmem:[#allocation22_spill] sm:$0xff] %v13449_v48  ;;  %v13451_v49 = vrot.slane %v1718_v30, 4  ;;  %v19063_v2 = vld [vmem:[#allocation134_spill] sm:$0xff] }
 0x2cf   : > { %v13437_v10 = vmax.bf16 %v19029_v54, %v13178_v15  ;;  %v13445_v51 = vmax.bf16 %v19030_v53, %v13183_v55  ;;  %19031 = vst [vmem:[#allocation21_spill] sm:$0xff] %v13447_v8  ;;  %v13453_v12 = vrot.slane %v1757_v25, 4  ;;  %v19035_v15 = vsel %vm10803_vm2, %v13277_v46, %v13259_v44  ;;  %v13465_v42 = vld [vmem:[#allocation2 + $0xac] sm:$0x1]  ;;  %v13467_v33 = vld [vmem:[#allocation2 + $0xbc] sm:$0x1] }
 0x2d0   : > { %19033 = vst [vmem:[#allocation26_spill] sm:$0xff] %v13451_v49  ;;  %v13461_v60 = vmax.bf16 %v19035_v15, %v13206_v0  ;;  %19036 = vst [vmem:[#allocation16_spill] sm:$0xff] %v13465_v42  ;;  %v13469_v45 = vrot.slane %v1796_v29, 4  ;;  %v19039_v30 = vsel %vm10803_vm2, %v13296_v27, %v13281_v23  ;;  %v19040_v44 = vsel %vm10803_vm2, %v13319_v13, %v13300_v32  ;;  %v13495_v54 = vld [vmem:[#allocation2 + $0xcc] sm:$0x1] }
 0x2d1   : > { %19034 = vst [vmem:[#allocation121_spill] sm:$0xff] %v13453_v12  ;;  %19037 = vst [vmem:[#allocation20_spill] sm:$0xff] %v13467_v33  ;;  %v13477_v25 = vmax.bf16 %v19039_v30, %v13217_v19  ;;  %v13485_v46 = vmax.bf16 %v19040_v44, %v13240_v28  ;;  %v19041_v57 = vsel %vm10803_vm2, %v13333_v1, %v13308_v9  ;;  %v19045_v1 = vld [vmem:[#allocation18_spill] sm:$0xff]  ;;  %v2755_v53 = vrot.slane %v13158_v62, 5  ;;  %v19061_v48 = vld [vmem:[#allocation75_spill] sm:$0xff] }
 0x2d2   : > { %19038 = vst [vmem:[#allocation23_spill] sm:$0xff] %v13469_v45  ;;  %v13493_v29 = vmax.bf16 %v19041_v57, %v13253_v7  ;;  %19042 = vst [vmem:[#allocation27_spill] sm:$0xff] %v13495_v54  ;;  %v13500_v23 = vmax.bf16 %v1421_v18, %v13275_v63  ;;  %v13503_v27 = vmax.bf16 %v1431_v16, %v13284_v36  ;;  %v13524_v30 = vld [vmem:[#allocation2] sm:$0xe]  ;;  %v13528_v57 = vld [vmem:[#allocation2 + $0x10] sm:$0xe] }
 0x2d3   : > { %v13506_v32 = vmax.bf16 %v1441_v41, %v13303_v59  ;;  %19046 = vst [vmem:[#allocation18_spill] sm:$0xff] %v13524_v30  ;;  %19047 = vst [vmem:[#allocation212_spill] sm:$0xff] %v13528_v57  ;;  %v8881_v15 = vrot.slane %v13524_v30, 9  ;;  %v2752_v63 = vrot.slane %v13130_v31, 5  ;;  %v2758_v18 = vrot.slane %v13163_v56, 5 }
 0x2d4   : > { %19043 = vst [vmem:[#allocation210_spill] sm:$0xff] %v13503_v27  ;;  %v8882_v16 = vrot.slane %v13528_v57, 9  ;;  %v2763_v9 = vrot.slane %v13183_v55, 5  ;;  %v2766_v41 = vrot.slane %v13206_v0, 5  ;;  %v2757_v19 = vrot.slane %v2755_v53, 4  ;;  %19048 = vst [vmem:[#allocation213_spill] sm:$0xff] %v13542_v38 }
 0x2d5   : > { %19044 = vst [vmem:[#allocation211_spill] sm:$0xff] %v13506_v32  ;;  %v13539_v13 = vsel %vm10899_vm5, %v8881_v15, %v2752_v63  ;;  %v2754_v44 = vrot.slane %v2752_v63, 4  ;;  %v2769_v14 = vrot.slane %v13212_v3, 5  ;;  %v2760_v6 = vrot.slane %v2758_v18, 4  ;;  %v13557_v55 = vld [vmem:[#allocation2 + $0x30] sm:$0xe] }
 0x2d6   : > { %v13546_v56 = vsel %vm10899_vm5, %v8882_v16, %v2763_v9  ;;  %v2765_v57 = vrot.slane %v2763_v9, 4  ;;  %v2768_v62 = vrot.slane %v2766_v41, 4  ;;  %v13554_v15 = vsel %vm10899_vm5, %v2757_v19, %v2758_v18  ;;  %19049 = vst [vmem:[#allocation214_spill] sm:$0xff] %v13557_v55  ;;  %v19132_v27 = vld [vmem:[#allocation73_spill] sm:$0xff] }
 0x2d7   : > { %v13550_v0 = vsel %vm10899_vm5, %v2754_v44, %v2755_v53  ;;  %v2771_v63 = vrot.slane %v2769_v14, 4  ;;  %v8883_v3 = vrot.slane %v13542_v38, 9  ;;  %v2774_v53 = vrot.slane %v13240_v28, 5 }
 0x2d8   : > { %v13561_v31 = vsel %vm10899_vm5, %v2765_v57, %v2766_v41  ;;  %v13565_v9 = vsel %vm10899_vm5, %v2768_v62, %v2769_v14  ;;  %v2777_v16 = vrot.slane %v13253_v7, 5  ;;  %v2780_v19 = vrot.slane %v13261_v5, 5  ;;  %v19050_v62 = vld [vmem:[#allocation209_spill] sm:$0xff] }
 0x2d9   : > { %v8884_v18 = vrot.slane %v13557_v55, 9  ;;  %v2785_v44 = vrot.slane %v13284_v36, 5  ;;  %v2788_v38 = vrot.slane %v13303_v59, 5  ;;  %v13575_v41 = vsel %vm10899_vm5, %v8883_v3, %v2774_v53 }
 0x2da   : > { %v2776_v57 = vrot.slane %v2774_v53, 4  ;;  %v2779_v30 = vrot.slane %v2777_v16, 4  ;;  %v2791_v14 = vrot.slane %v19050_v62, 5  ;;  %v2782_v54 = vrot.slane %v2780_v19, 4  ;;  %v19051_v53 = vld [vmem:[#allocation15_spill] sm:$0xff] }
 0x2db   : > { %v13580_v7 = vsel %vm10899_vm5, %v8884_v18, %v2785_v44  ;;  %v2787_v5 = vrot.slane %v2785_v44, 4  ;;  %v2790_v28 = vrot.slane %v2788_v38, 4  ;;  %v19052_v55 = vrot.slane %v19051_v53, 5  ;;  %v19055_v44 = vld [vmem:[#allocation17_spill] sm:$0xff] }
 0x2dc   : > { %v13584_v36 = vsel %vm10899_vm5, %v2776_v57, %v2777_v16  ;;  %v13588_v59 = vsel %vm10899_vm5, %v2779_v30, %v2780_v19  ;;  %v2793_v3 = vrot.slane %v2791_v14, 4  ;;  %v19056_v33 = vrot.slane %v19055_v44, 5  ;;  %v19057_v57 = vld [vmem:[#allocation24_spill] sm:$0xff] }
 0x2dd   : > { %v2826_v45 = vrot.slane %v19052_v55, 4  ;;  %v13594_v62 = vsel %vm10899_vm5, %v2787_v5, %v2788_v38  ;;  %v13598_v18 = vsel %vm10899_vm5, %v2790_v28, %v2791_v14  ;;  %v19058_v12 = vrot.slane %v19057_v57, 5  ;;  %v19059_v30 = vld [vmem:[#allocation80_spill] sm:$0xff]  ;;  %v19114_v28 = vld [vmem:[#allocation213_spill] sm:$0xff] }
 0x2de   : > { %19053 = vst [vmem:[#allocation209_spill] sm:$0xff] %v13594_v62  ;;  %19054 = vst [vmem:[#allocation15_spill] sm:$0xff] %v13598_v18  ;;  %v2837_v16 = vrot.slane %v19056_v33, 4  ;;  %v19060_v19 = vrot.slane %v19059_v30, 5  ;;  %v19062_v53 = vrot.slane %v19061_v48, 5  ;;  %v19064_v8 = vrot.slane %v19063_v2, 5 }
 0x2df   : > { %v2848_v42 = vrot.slane %v19058_v12, 4  ;;  %v19065_v5 = vrot.slane %v19020_v43, 5  ;;  %v19066_v14 = vmax.bf16 %v13233_v26, %v13381_v58  ;;  %v19067_v44 = vmax.bf16 %v13286_v40, %v13386_v35  ;;  %v19098_v40 = vld [vmem:[#allocation18_spill] sm:$0xff]  ;;  %v13718_v33 = vld [vmem:[#allocation2 + $0x1c] sm:$0x7] }
 0x2e0   : > { %v2859_v49 = vrot.slane %v19060_v19, 4  ;;  %v2870_v55 = vrot.slane %v19062_v53, 4  ;;  %v2881_v38 = vrot.slane %v19064_v8, 4  ;;  %v19068_v58 = vmax.bf16 %v13338_v39, %v13406_v52  ;;  %v19072_v39 = vld [vmem:[#allocation28_spill] sm:$0xff] }
 0x2e1   : > { %v2892_v50 = vrot.slane %v19065_v5, 4  ;;  %v13621_v48 = vmax.bf16 %v2760_v6, %v19066_v14  ;;  %v13632_v57 = vmax.bf16 %v2771_v63, %v19067_v44  ;;  %v19069_v63 = vmax.bf16 %v13377_v37, %v13408_v47  ;;  %v19078_v37 = vld [vmem:[#allocation21_spill] sm:$0xff] }
 0x2e2   : > { %v13643_v19 = vmax.bf16 %v2782_v54, %v19068_v58  ;;  %v19071_v14 = vmax.bf16 %v19045_v1, %v13422_v61  ;;  %v19074_v54 = vmax.bf16 %v13366_v17, %v13424_v4  ;;  %v19076_v58 = vmax.bf16 %v13383_v24, %v13426_v20  ;;  %v19082_v61 = vld [vmem:[#allocation19_spill] sm:$0xff]  ;;  %v19083_v1 = vld [vmem:[#allocation22_spill] sm:$0xff]  ;;  %v19087_v4 = vld [vmem:[#allocation16_spill] sm:$0xff] }
 0x2e3   : > { %v13654_v5 = vmax.bf16 %v2793_v3, %v19069_v63  ;;  %v19079_v47 = vmax.bf16 %v13388_v21, %v19078_v37  ;;  %v13677_v63 = vld [vmem:[#allocation2 + $0xc] sm:$0x7]  ;;  %v19086_v17 = vld [vmem:[#allocation26_spill] sm:$0xff]  ;;  %v19090_v24 = vld [vmem:[#allocation121_spill] sm:$0xff]  ;;  %v3314_v53 = vshrl.u32 %v19098_v40, 16  ;;  %19108 = vst [vmem:[#allocation16_spill] sm:$0xff] %v13718_v33 }
 0x2e4   : > { %v13660_v52 = vmax.bf16 %v19072_v39, %v19071_v14  ;;  %v13665_v44 = vmax.bf16 %v2826_v45, %v19074_v54  ;;  %v13670_v35 = vmax.bf16 %v2837_v16, %v19076_v58  ;;  %19081 = vst [vmem:[#allocation28_spill] sm:$0xff] %v13677_v63  ;;  %v19084_v14 = vmax.bf16 %v19082_v61, %v19083_v1  ;;  %v19091_v20 = vld [vmem:[#allocation20_spill] sm:$0xff]  ;;  %v19094_v21 = vld [vmem:[#allocation23_spill] sm:$0xff]  ;;  %v19099_v61 = vld [vmem:[#allocation138_spill] sm:$0xff] }
 0x2e5   : > { %19070 = vst [vmem:[#allocation17_spill] sm:$0xff] %v13654_v5  ;;  %v13675_v3 = vmax.bf16 %v2848_v42, %v19079_v47  ;;  %v19088_v45 = vmax.bf16 %v19086_v17, %v19087_v4  ;;  %v19092_v16 = vmax.bf16 %v19090_v24, %v19091_v20  ;;  %v19095_v42 = vld [vmem:[#allocation27_spill] sm:$0xff]  ;;  %v19100_v1 = vshrl.u32 %v19099_v61, 16 }
 0x2e6   : > { %19073 = vst [vmem:[#allocation24_spill] sm:$0xff] %v13660_v52  ;;  %19075 = vst [vmem:[#allocation80_spill] sm:$0xff] %v13665_v44  ;;  %v13682_v39 = vmax.bf16 %v2859_v49, %v19084_v14  ;;  %v19096_v37 = vmax.bf16 %v19094_v21, %v19095_v42  ;;  %v3317_v49 = vshll.u32 %v19098_v40, 16  ;;  %v19102_v4 = vld [vmem:[#allocation143_spill] sm:$0xff]  ;;  %v3316_v21 = vrot.slane %v3314_v53, 5  ;;  %v19105_v40 = vld [vmem:[#allocation212_spill] sm:$0xff] }
 0x2e7   : > { %19077 = vst [vmem:[#allocation75_spill] sm:$0xff] %v13670_v35  ;;  %19080 = vst [vmem:[#allocation134_spill] sm:$0xff] %v13675_v3  ;;  %v13687_v54 = vmax.bf16 %v2870_v55, %v19088_v45  ;;  %v13692_v58 = vmax.bf16 %v2881_v38, %v19092_v16  ;;  %v3322_v14 = vrot.slane %v19100_v1, 5  ;;  %v19101_v55 = vshll.u32 %v19099_v61, 16 }
 0x2e8   : > { %19085 = vst [vmem:[#allocation21_spill] sm:$0xff] %v13682_v39  ;;  %v13697_v47 = vmax.bf16 %v2892_v50, %v19096_v37  ;;  %v19103_v45 = vshrl.u32 %v19102_v4, 16  ;;  %v19104_v38 = vshll.u32 %v19102_v4, 16  ;;  %v3333_v16 = vshrl.u32 %v13677_v63, 16 }
 0x2e9   : > { %19089 = vst [vmem:[#allocation19_spill] sm:$0xff] %v13687_v54  ;;  %19093 = vst [vmem:[#allocation22_spill] sm:$0xff] %v13692_v58  ;;  %v3323_v17 = vrot.slane %v19101_v55, 6  ;;  %v3336_v50 = vshll.u32 %v13677_v63, 16  ;;  %v3319_v42 = vrot.slane %v3317_v49, 6  ;;  %v3343_v26 = vshrl.u32 %v19105_v40, 16 }
 0x2ea   : > { %19097 = vst [vmem:[#allocation26_spill] sm:$0xff] %v13697_v47  ;;  %v3327_v24 = vrot.slane %v19103_v45, 5  ;;  %v3328_v20 = vrot.slane %v19104_v38, 6  ;;  %v3335_v6 = vrot.slane %v3333_v16, 5  ;;  %v3346_v55 = vshll.u32 %v19105_v40, 16  ;;  %v19106_v38 = vld [vmem:[#allocation145_spill] sm:$0xff] }
 0x2eb   : > { %v13711_v37 = vor.u32 %v3323_v17, %v3322_v14  ;;  %v3338_v30 = vrot.slane %v3336_v50, 6  ;;  %v3320_v8 = vor.u32 %v3319_v42, %v3316_v21  ;;  %v3345_v43 = vrot.slane %v3343_v26, 5  ;;  %v19111_v21 = vld [vmem:[#allocation79_spill] sm:$0xff]  ;;  %v19119_v47 = vld [vmem:[#allocation206_spill] sm:$0xff] }
 0x2ec   : > { %v3329_v1 = vor.u32 %v3328_v20, %v3327_v24  ;;  %v19107_v2 = vshrl.u32 %v19106_v38, 16  ;;  %v3348_v14 = vrot.slane %v3346_v55, 6  ;;  %v19109_v17 = vshll.u32 %v19106_v38, 16  ;;  %v19116_v38 = vld [vmem:[#allocation85_spill] sm:$0xff] }
 0x2ed   : > { %v3326_v45 = vrot.slane %v13711_v37, 4  ;;  %v13720_v49 = vor.u32 %v3338_v30, %v3335_v6  ;;  %v13724_v20 = vrot.slane %v3320_v8, 4  ;;  %v19112_v26 = vshrl.u32 %v19111_v21, 16 }
 0x2ee   : > { %v3351_v12 = vrot.slane %v19107_v2, 5  ;;  %v3331_v53 = vrot.slane %v3329_v1, 4  ;;  %v3352_v24 = vrot.slane %v19109_v17, 6  ;;  %v19113_v2 = vshll.u32 %v19111_v21, 16 }
 0x2ef   : > { %v13728_v50 = vsel %vm10967_vm8, %v3326_v45, %v3329_v1  ;;  %v3356_v42 = vrot.slane %v19112_v26, 5  ;;  %v3349_v55 = vor.u32 %v3348_v14, %v3345_v43  ;;  %v3362_v17 = vshrl.u32 %v13718_v33, 16 }
 0x2f0   : > { %v3357_v40 = vrot.slane %v19113_v2, 6  ;;  %v13737_v30 = vsel %vm10967_vm8, %v3331_v53, %v13720_v49  ;;  %v13740_v8 = vor.u32 %v3352_v24, %v3351_v12  ;;  %v3365_v26 = vshll.u32 %v13718_v33, 16  ;;  %v13753_v12 = vld [vmem:[#allocation2 + $0x2c] sm:$0x7] }
 0x2f1   : > { %v13748_v2 = vrot.slane %v3349_v55, 4  ;;  %v3372_v21 = vshrl.u32 %v19114_v28, 16  ;;  %v3375_v43 = vshll.u32 %v19114_v28, 16  ;;  %19115 = vst [vmem:[#allocation121_spill] sm:$0xff] %v13753_v12  ;;  %v3364_v24 = vrot.slane %v3362_v17, 5 }
 0x2f2   : > { %v3358_v45 = vor.u32 %v3357_v40, %v3356_v42  ;;  %v3355_v53 = vrot.slane %v13740_v8, 4  ;;  %v3367_v6 = vrot.slane %v3365_v26, 6  ;;  %v19117_v1 = vshrl.u32 %v19116_v38, 16 }
 0x2f3   : > { %v3354_v40 = vsel %vm10967_vm8, %v13748_v2, %v13740_v8  ;;  %v3374_v33 = vrot.slane %v3372_v21, 5  ;;  %v3377_v63 = vrot.slane %v3375_v43, 6  ;;  %v19118_v28 = vshll.u32 %v19116_v38, 16  ;;  %v19122_v2 = vld [vmem:[#allocation214_spill] sm:$0xff]  ;;  %v13774_v43 = vld [vmem:[#allocation2 + $0x3c] sm:$0x7] }
 0x2f4   : > { %v3360_v14 = vrot.slane %v3358_v45, 4  ;;  %v3380_v42 = vrot.slane %v19117_v1, 5  ;;  %v3359_v55 = vsel %vm10967_vm8, %v3355_v53, %v3358_v45  ;;  %v3368_v4 = vor.u32 %v3367_v6, %v3364_v24  ;;  %v19123_v38 = vld [vmem:[#allocation207_spill] sm:$0xff] }
 0x2f5   : > { %v3381_v61 = vrot.slane %v19118_v28, 6  ;;  %v19120_v17 = vshrl.u32 %v19119_v47, 16  ;;  %v19121_v58 = vshll.u32 %v19119_v47, 16  ;;  %v3378_v54 = vor.u32 %v3377_v63, %v3374_v33 }
 0x2f6   : > { %v3391_v39 = vshrl.u32 %v13753_v12, 16  ;;  %v3394_v8 = vshll.u32 %v13753_v12, 16  ;;  %v3401_v3 = vshrl.u32 %v19122_v2, 16  ;;  %v3369_v21 = vsel %vm10967_vm8, %v3360_v14, %v3368_v4 }
 0x2f7   : > { %v3385_v26 = vrot.slane %v19120_v17, 5  ;;  %v3386_v1 = vrot.slane %v19121_v58, 6  ;;  %v3370_v6 = vrot.slane %v3368_v4, 4  ;;  %v3382_v45 = vor.u32 %v3381_v61, %v3380_v42  ;;  %v19126_v42 = vld [vmem:[#allocation208_spill] sm:$0xff] }
 0x2f8   : > { %v3379_v24 = vrot.slane %v3378_v54, 4  ;;  %v3393_v28 = vrot.slane %v3391_v39, 5  ;;  %v3396_v17 = vrot.slane %v3394_v8, 6  ;;  %v3403_v47 = vrot.slane %v3401_v3, 5 }
 0x2f9   : > { %v3387_v53 = vor.u32 %v3386_v1, %v3385_v26  ;;  %v3384_v58 = vrot.slane %v3382_v45, 4  ;;  %v3404_v63 = vshll.u32 %v19122_v2, 16  ;;  %v19124_v12 = vshrl.u32 %v19123_v38, 16 }
 0x2fa   : > { %v3383_v44 = vsel %vm10967_vm8, %v3379_v24, %v3382_v45  ;;  %v3397_v14 = vor.u32 %v3396_v17, %v3393_v28  ;;  %v19125_v61 = vshll.u32 %v19123_v38, 16  ;;  %v19127_v26 = vshrl.u32 %v19126_v42, 16 }
 0x2fb   : > { %v3389_v33 = vrot.slane %v3387_v53, 4  ;;  %v3409_v35 = vrot.slane %v19124_v12, 5  ;;  %v3388_v3 = vsel %vm10967_vm8, %v3384_v58, %v3387_v53  ;;  %v3406_v39 = vrot.slane %v3404_v63, 6  ;;  %v19130_v58 = vld [vmem:[#allocation40_spill] sm:$0xff] }
 0x2fc   : > { %v3410_v4 = vrot.slane %v19125_v61, 6  ;;  %v3414_v54 = vrot.slane %v19127_v26, 5  ;;  %v19128_v1 = vshll.u32 %v19126_v42, 16  ;;  %v3420_v2 = vshrl.u32 %v13774_v43, 16  ;;  %v19129_v26 = vld [vmem:[#allocation35_spill] sm:$0xff]  ;;  %v19131_v42 = vld [vmem:[#allocation44_spill] sm:$0xff] }
 0x2fd   : > { %v3398_v12 = vsel %vm10967_vm8, %v3389_v33, %v3397_v14  ;;  %v3399_v45 = vrot.slane %v3397_v14, 4  ;;  %v3423_v28 = vshll.u32 %v13774_v43, 16  ;;  %v3407_v17 = vor.u32 %v3406_v39, %v3403_v47  ;;  %v19133_v33 = vld [vmem:[#allocation128_spill] sm:$0xff] }
 0x2fe   : > { %v3415_v8 = vrot.slane %v19128_v1, 6  ;;  %v3411_v24 = vor.u32 %v3410_v4, %v3409_v35  ;;  %v3422_v38 = vrot.slane %v3420_v2, 5  ;;  %v3515_v52 = vrot.slane %v19129_v26, 4  ;;  %v19134_v4 = vld [vmem:[#allocation109_spill] sm:$0xff]  ;;  %v19135_v39 = vld [vmem:[#allocation116_spill] sm:$0xff] }
 0x2ff   : > { %v3425_v53 = vrot.slane %v3423_v28, 6  ;;  %v3544_v63 = vrot.slane %v19130_v58, 4  ;;  %v3573_v1 = vrot.slane %v19131_v42, 4  ;;  %v3408_v32 = vrot.slane %v3407_v17, 4 }
 0x300   : > { %v3416_v61 = vor.u32 %v3415_v8, %v3414_v54  ;;  %v3413_v5 = vrot.slane %v3411_v24, 4  ;;  %v3602_v62 = vrot.slane %v19132_v27, 4  ;;  %v3631_v14 = vrot.slane %v19133_v33, 4  ;;  %v19168_v33 = vld [vmem:[#allocation21_spill] sm:$0xff] }
 0x301   : > { %v3426_v47 = vor.u32 %v3425_v53, %v3422_v38  ;;  %v3660_v54 = vrot.slane %v19134_v4, 4  ;;  %v3689_v8 = vrot.slane %v19135_v39, 4  ;;  %v3412_v2 = vsel %vm10967_vm8, %v3408_v32, %v3411_v24  ;;  %v19166_v53 = vld [vmem:[#allocation134_spill] sm:$0xff]  ;;  %v19170_v4 = vld [vmem:[#allocation19_spill] sm:$0xff] }
 0x302   : > { %v3418_v18 = vrot.slane %v3416_v61, 4  ;;  %v3417_v35 = vsel %vm10967_vm8, %v3413_v5, %v3416_v61  ;;  %v19136_v42 = vmax.bf16 %v13539_v13, %v13396_v11  ;;  %v19137_v27 = vsel %vm10967_vm8, %v13724_v20, %v13711_v37  ;;  %v19164_v61 = vld [vmem:[#allocation75_spill] sm:$0xff] }
 0x303   : > { %v19138_v5 = vmax.bf16 %v13550_v0, %v13404_v22  ;;  %v19139_v17 = vmax.bf16 %v13554_v15, %v13420_v34  ;;  %v3428_v13 = vrot.slane %v3426_v47, 4  ;;  %v19140_v37 = vrot.slane %v13720_v49, 4 }
 0x304   : > { %v13812_v28 = vmax.bf16 %v19137_v27, %v19136_v42  ;;  %v3427_v11 = vsel %vm10967_vm8, %v3418_v18, %v3426_v47  ;;  %v19141_v0 = vmax.bf16 %v13546_v56, %v13437_v10  ;;  %v19142_v34 = vmax.bf16 %v13561_v31, %v13445_v51  ;;  %v4351_v47 = vld [vmem:[#allocation2 + $0x20] sm:$0xc] }
 0x305   : > { %v13818_v38 = vmax.bf16 %v13728_v50, %v19138_v5  ;;  %v13824_v32 = vmax.bf16 %v13737_v30, %v19139_v17  ;;  %v13831_v20 = vmax.bf16 %v19140_v37, %v13621_v48  ;;  %v19143_v50 = vmax.bf16 %v13565_v9, %v13461_v60  ;;  %v19174_v27 = vld [vmem:[#allocation26_spill] sm:$0xff] }
 0x306   : > { %v13836_v22 = vmax.bf16 %v3354_v40, %v19141_v0  ;;  %v13841_v15 = vmax.bf16 %v3359_v55, %v19142_v34  ;;  %v13849_v30 = vmax.bf16 %v3370_v6, %v13632_v57  ;;  %v19145_v48 = vmax.bf16 %v13575_v41, %v13477_v25  ;;  %v4349_v25 = vld [vmem:[#allocation2] sm:$0xc]  ;;  %v19150_v41 = vld [vmem:[#allocation209_spill] sm:$0xff]  ;;  %v19154_v55 = vld [vmem:[#allocation211_spill] sm:$0xff] }
 0x307   : > { %v13846_v18 = vmax.bf16 %v3369_v21, %v19143_v50  ;;  %v19146_v10 = vmax.bf16 %v13584_v36, %v13485_v46  ;;  %v19147_v31 = vmax.bf16 %v13588_v59, %v13493_v29  ;;  %v13867_v60 = vmax.bf16 %v3399_v45, %v13643_v19  ;;  %v19153_v46 = vld [vmem:[#allocation15_spill] sm:$0xff]  ;;  %v19156_v29 = vld [vmem:[#allocation17_spill] sm:$0xff]  ;;  %v19158_v19 = vld [vmem:[#allocation24_spill] sm:$0xff] }
 0x308   : > { %19144 = vst [vmem:[#allocation20_spill] sm:$0xff] %v13849_v30  ;;  %v13854_v49 = vmax.bf16 %v3383_v44, %v19145_v48  ;;  %v19149_v9 = vmax.bf16 %v13580_v7, %v13500_v23  ;;  %v19151_v44 = vld [vmem:[#allocation210_spill] sm:$0xff]  ;;  %v19155_v21 = vmax.bf16 %v19153_v46, %v19154_v55  ;;  %v13885_v6 = vmax.bf16 %v3428_v13, %v19156_v29  ;;  %v4350_v23 = vld [vmem:[#allocation2 + $0x10] sm:$0xc]  ;;  %v19180_v50 = vld [vmem:[#allocation79_spill] sm:$0xff] }
 0x309   : > { %v13859_v56 = vmax.bf16 %v3388_v3, %v19146_v10  ;;  %v13864_v51 = vmax.bf16 %v3398_v12, %v19147_v31  ;;  %19148 = vst [vmem:[#allocation23_spill] sm:$0xff] %v13867_v60  ;;  %v19152_v40 = vmax.bf16 %v19150_v41, %v19151_v44  ;;  %v19159_v3 = vld [vmem:[#allocation33_spill] sm:$0xff]  ;;  %v19162_v45 = vld [vmem:[#allocation80_spill] sm:$0xff]  ;;  %v13896_v26 = vmax.bf16 %v3544_v63, %v19164_v61  ;;  %v19176_v17 = vld [vmem:[#allocation138_spill] sm:$0xff] }
 0x30a   : > { %v13872_v57 = vmax.bf16 %v3412_v2, %v19149_v9  ;;  %v13882_v59 = vmax.bf16 %v3427_v11, %v19155_v21  ;;  %19157 = vst [vmem:[#allocation27_spill] sm:$0xff] %v13885_v6  ;;  %v19160_v12 = vrot.slane %v19159_v3, 4  ;;  %v13893_v24 = vmax.bf16 %v3515_v52, %v19162_v45  ;;  %v19172_v2 = vld [vmem:[#allocation22_spill] sm:$0xff]  ;;  %v19177_v11 = vld [vmem:[#allocation143_spill] sm:$0xff]  ;;  %v19183_v3 = vld [vmem:[#allocation85_spill] sm:$0xff] }
 0x30b   : > { %v13877_v36 = vmax.bf16 %v3417_v35, %v19152_v40  ;;  %19165 = vst [vmem:[#allocation213_spill] sm:$0xff] %v13896_v26  ;;  %v13899_v58 = vmax.bf16 %v3573_v1, %v19166_v53  ;;  %v13902_v35 = vmax.bf16 %v3602_v62, %v19168_v33  ;;  %v13905_v39 = vmax.bf16 %v3631_v14, %v19170_v4  ;;  %v19178_v1 = vld [vmem:[#allocation28_spill] sm:$0xff]  ;;  %v19179_v62 = vld [vmem:[#allocation145_spill] sm:$0xff]  ;;  %v19230_v26 = vld [vmem:[#allocation71_spill] sm:$0xff] }
 0x30c   : > { %v13890_v7 = vmax.bf16 %v19160_v12, %v19158_v19  ;;  %19163 = vst [vmem:[#allocation212_spill] sm:$0xff] %v13893_v24  ;;  %v13908_v42 = vmax.bf16 %v3660_v54, %v19172_v2  ;;  %v13911_v5 = vmax.bf16 %v3689_v8, %v19174_v27  ;;  %v8909_v52 = vrot.slane %v4349_v25, 10  ;;  %v19181_v14 = vld [vmem:[#allocation16_spill] sm:$0xff]  ;;  %v19185_v33 = vld [vmem:[#allocation121_spill] sm:$0xff] }
 0x30d   : > { %19167 = vst [vmem:[#allocation214_spill] sm:$0xff] %v13899_v58  ;;  %19169 = vst [vmem:[#allocation35_spill] sm:$0xff] %v13902_v35  ;;  %v4438_v63 = vrot.slane %v19176_v17, 6  ;;  %v4441_v13 = vrot.slane %v19177_v11, 6  ;;  %v4444_v37 = vrot.slane %v19178_v1, 6  ;;  %v8910_v0 = vrot.slane %v4350_v23, 10 }
 0x30e   : > { %19161 = vst [vmem:[#allocation18_spill] sm:$0xff] %v13890_v7  ;;  %19171 = vst [vmem:[#allocation40_spill] sm:$0xff] %v13905_v39  ;;  %v4449_v34 = vrot.slane %v19179_v62, 6  ;;  %v4452_v48 = vrot.slane %v19180_v50, 6  ;;  %v4455_v10 = vrot.slane %v19181_v14, 6  ;;  %v8911_v31 = vrot.slane %v4351_v47, 10 }
 0x30f   : > { %19173 = vst [vmem:[#allocation44_spill] sm:$0xff] %v13908_v42  ;;  %19175 = vst [vmem:[#allocation73_spill] sm:$0xff] %v13911_v5  ;;  %v4352_v54 = vld [vmem:[#allocation2 + $0x30] sm:$0xc]  ;;  %v4439_v8 = vsel %vm11111_vm11, %v8909_v52, %v4438_v63  ;;  %v4440_v41 = vrot.slane %v4438_v63, 4  ;;  %v4443_v25 = vrot.slane %v4441_v13, 4 }
 0x310   : > { %v13921_v44 = vrot.slane %v4444_v37, 4  ;;  %v4450_v40 = vsel %vm11111_vm11, %v8910_v0, %v4449_v34  ;;  %v4451_v46 = vrot.slane %v4449_v34, 4  ;;  %v4454_v55 = vrot.slane %v4452_v48, 4  ;;  %v19184_v23 = vld [vmem:[#allocation206_spill] sm:$0xff]  ;;  %v19186_v17 = vld [vmem:[#allocation207_spill] sm:$0xff] }
 0x311   : > { %v13925_v21 = vrot.slane %v4455_v10, 4  ;;  %v4442_v29 = vsel %vm11111_vm11, %v4440_v41, %v4441_v13  ;;  %v4445_v19 = vsel %vm11111_vm11, %v4443_v25, %v4444_v37  ;;  %v4460_v12 = vrot.slane %v19183_v3, 6  ;;  %v19188_v13 = vld [vmem:[#allocation208_spill] sm:$0xff]  ;;  %v19189_v0 = vld [vmem:[#allocation31_spill] sm:$0xff]  ;;  %v19193_v41 = vld [vmem:[#allocation34_spill] sm:$0xff] }
 0x312   : > { %v4463_v45 = vrot.slane %v19184_v23, 6  ;;  %v4453_v61 = vsel %vm11111_vm11, %v4451_v46, %v4452_v48  ;;  %v4456_v53 = vsel %vm11111_vm11, %v4454_v55, %v4455_v10  ;;  %v4466_v47 = vrot.slane %v19185_v33, 6  ;;  %v19196_v46 = vld [vmem:[#allocation38_spill] sm:$0xff]  ;;  %v19199_v23 = vld [vmem:[#allocation83_spill] sm:$0xff] }
 0x313   : > { %v8912_v4 = vrot.slane %v4352_v54, 10  ;;  %v4461_v2 = vsel %vm11111_vm11, %v8911_v31, %v4460_v12  ;;  %v4462_v27 = vrot.slane %v4460_v12, 4  ;;  %v4471_v63 = vrot.slane %v19186_v17, 6 }
 0x314   : > { %v4465_v52 = vrot.slane %v4463_v45, 4  ;;  %v13941_v11 = vrot.slane %v4466_v47, 4  ;;  %v4474_v1 = vrot.slane %v19188_v13, 6  ;;  %v4477_v37 = vrot.slane %v13774_v43, 6 }
 0x315   : > { %v19190_v62 = vrot.slane %v19189_v0, 6  ;;  %v4464_v50 = vsel %vm11111_vm11, %v4462_v27, %v4463_v45  ;;  %v4472_v14 = vsel %vm11111_vm11, %v8912_v4, %v4471_v63  ;;  %v4473_v10 = vrot.slane %v4471_v63, 4  ;;  %v19208_v0 = vld [vmem:[#allocation124_spill] sm:$0xff] }
 0x316   : > { %19187 = vst [vmem:[#allocation128_spill] sm:$0xff] %v13941_v11  ;;  %v4467_v48 = vsel %vm11111_vm11, %v4465_v52, %v4466_v47  ;;  %v4476_v31 = vrot.slane %v4474_v1, 4  ;;  %v13955_v54 = vrot.slane %v4477_v37, 4  ;;  %v19194_v25 = vrot.slane %v19193_v41, 6  ;;  %v19202_v47 = vld [vmem:[#allocation63_spill] sm:$0xff]  ;;  %v19205_v52 = vld [vmem:[#allocation154_spill] sm:$0xff] }
 0x317   : > { %v13947_v34 = vrot.slane %v19190_v62, 4  ;;  %v19197_v55 = vrot.slane %v19196_v46, 6  ;;  %v4475_v12 = vsel %vm11111_vm11, %v4473_v10, %v4474_v1  ;;  %v19200_v45 = vrot.slane %v19199_v23, 6 }
 0x318   : > { %19192 = vst [vmem:[#allocation116_spill] sm:$0xff] %v13955_v54  ;;  %v13959_v43 = vrot.slane %v19194_v25, 4  ;;  %v19203_v4 = vrot.slane %v19202_v47, 6  ;;  %v19206_v17 = vrot.slane %v19205_v52, 6  ;;  %v4478_v13 = vsel %vm11111_vm11, %v4476_v31, %v4477_v37 }
 0x319   : > { %19191 = vst [vmem:[#allocation109_spill] sm:$0xff] %v13947_v34  ;;  %v13963_v3 = vrot.slane %v19197_v55, 4  ;;  %v13969_v33 = vrot.slane %v19200_v45, 4  ;;  %v19209_v62 = vrot.slane %v19208_v0, 6  ;;  %v13986_v1 = vmax.bf16 %v4439_v8, %v13812_v28  ;;  %v19215_v45 = vld [vmem:[#allocation189_spill] sm:$0xff]  ;;  %v19219_v28 = vld [vmem:[#allocation187_spill] sm:$0xff] }
 0x31a   : > { %19195 = vst [vmem:[#allocation209_spill] sm:$0xff] %v13959_v43  ;;  %v13973_v27 = vrot.slane %v19203_v4, 4  ;;  %v13977_v63 = vrot.slane %v19206_v17, 4  ;;  %v13989_v10 = vmax.bf16 %v4442_v29, %v13818_v38  ;;  %v13992_v25 = vmax.bf16 %v4445_v19, %v13824_v32  ;;  %v19216_v17 = vld [vmem:[#allocation190_spill] sm:$0xff]  ;;  %v19217_v0 = vld [vmem:[#allocation193_spill] sm:$0xff] }
 0x31b   : > { %19198 = vst [vmem:[#allocation210_spill] sm:$0xff] %v13963_v3  ;;  %19201 = vst [vmem:[#allocation15_spill] sm:$0xff] %v13969_v33  ;;  %v13983_v41 = vrot.slane %v19209_v62, 4  ;;  %v13997_v55 = vmax.bf16 %v4450_v40, %v13836_v22  ;;  %v14000_v37 = vmax.bf16 %v4453_v61, %v13841_v15  ;;  %v14003_v31 = vmax.bf16 %v4456_v53, %v13846_v18  ;;  %v19218_v29 = vld [vmem:[#allocation194_spill] sm:$0xff] }
 0x31c   : > { %19204 = vst [vmem:[#allocation211_spill] sm:$0xff] %v13973_v27  ;;  %19207 = vst [vmem:[#allocation17_spill] sm:$0xff] %v13977_v63  ;;  %v14008_v38 = vmax.bf16 %v4461_v2, %v13854_v49  ;;  %v14011_v32 = vmax.bf16 %v4464_v50, %v13859_v56  ;;  %v14014_v8 = vmax.bf16 %v4467_v48, %v13864_v51  ;;  %v14057_v47 = vrot.slane %v19215_v45, 6  ;;  %v19223_v63 = vld [vmem:[#allocation78_spill] sm:$0xff]  ;;  %v19224_v27 = vld [vmem:[#allocation131_spill] sm:$0xff] }
 0x31d   : > { %19210 = vst [vmem:[#allocation24_spill] sm:$0xff] %v13983_v41  ;;  %v14019_v15 = vmax.bf16 %v4472_v14, %v13872_v57  ;;  %v14022_v18 = vmax.bf16 %v4475_v12, %v13877_v36  ;;  %v14025_v40 = vmax.bf16 %v4478_v13, %v13882_v59  ;;  %v19214_v12 = vld [vmem:[#allocation186_spill] sm:$0xff]  ;;  %v5478_v13 = vrot.slane %v19216_v17, 6  ;;  %v19221_v41 = vld [vmem:[#allocation81_spill] sm:$0xff] }
 0x31e   : > { %v14046_v2 = vrot.slane %v14011_v32, 6  ;;  %v5453_v50 = vrot.slane %v14014_v8, 6  ;;  %v14054_v23 = vrot.slane %v19214_v12, 6  ;;  %v14062_v62 = vrot.slane %v19217_v0, 6 }
 0x31f   : > { %v14050_v48 = vrot.slane %v14022_v18, 6  ;;  %v5458_v14 = vrot.slane %v14025_v40, 6  ;;  %v5477_v36 = vrot.slane %v14057_v47, 4  ;;  %v5480_v19 = vrot.slane %v5478_v13, 4 }
 0x320   : > { %19212 = vst [vmem:[#allocation33_spill] sm:$0xff] %v14046_v2  ;;  %v5452_v4 = vrot.slane %v14046_v2, 4  ;;  %v5455_v52 = vrot.slane %v5453_v50, 4  ;;  %v5472_v59 = vrot.slane %v14054_v23, 4  ;;  %v5482_v51 = vrot.slane %v14062_v62, 4 }
 0x321   : > { %19213 = vst [vmem:[#allocation80_spill] sm:$0xff] %v14050_v48  ;;  %v5457_v53 = vrot.slane %v14050_v48, 4  ;;  %v5460_v61 = vrot.slane %v5458_v14, 4  ;;  %v5483_v49 = vrot.slane %v19218_v29, 6  ;;  %v19220_v46 = vrot.slane %v19219_v28, 6 }
 0x322   : > { %v5454_v57 = vsel %vm11111_vm11, %v5452_v4, %v5453_v50  ;;  %v5479_v5 = vsel %vm11111_vm11, %v5477_v36, %v5478_v13  ;;  %v14080_v42 = vrot.slane %v19221_v41, 6  ;;  %v5488_v39 = vrot.slane %v19223_v63, 6  ;;  %v19229_v36 = vld [vmem:[#allocation70_spill] sm:$0xff] }
 0x323   : > { %v5459_v22 = vsel %vm11111_vm11, %v5457_v53, %v5458_v14  ;;  %v5474_v16 = vsel %vm11111_vm11, %v5472_v59, %v19220_v46  ;;  %v5484_v50 = vsel %vm11111_vm11, %v5482_v51, %v5483_v49  ;;  %v5485_v4 = vrot.slane %v5483_v49, 4  ;;  %v19226_v14 = vld [vmem:[#allocation95_spill] sm:$0xff]  ;;  %v19227_v46 = vld [vmem:[#allocation198_spill] sm:$0xff] }
 0x324   : > { %19222 = vst [vmem:[#allocation75_spill] sm:$0xff] %v14080_v42  ;;  %v14086_v35 = vrot.slane %v19224_v27, 6  ;;  %v5487_v53 = vrot.slane %v14080_v42, 4  ;;  %v5493_v33 = vrot.slane %v19226_v14, 6  ;;  %v14091_v59 = vrot.slane %v19227_v46, 6  ;;  %v19232_v49 = vld [vmem:[#allocation74_spill] sm:$0xff] }
 0x325   : > { %v5498_v13 = vrot.slane %v19229_v36, 6  ;;  %v5490_v58 = vrot.slane %v5488_v39, 4  ;;  %v14096_v51 = vrot.slane %v19230_v26, 6  ;;  %v5503_v43 = vrot.slane %v19232_v49, 6  ;;  %v19312_v9 = vld [vmem:[#allocation210_spill] sm:$0xff] }
 0x326   : > { %19225 = vst [vmem:[#allocation134_spill] sm:$0xff] %v14086_v35  ;;  %19228 = vst [vmem:[#allocation21_spill] sm:$0xff] %v14091_v59  ;;  %v5492_v3 = vrot.slane %v14086_v35, 4  ;;  %v5489_v24 = vsel %vm11111_vm11, %v5487_v53, %v5488_v39  ;;  %v5495_v34 = vrot.slane %v5493_v33, 4  ;;  %v5497_v28 = vrot.slane %v14091_v59, 4 }
 0x327   : > { %19231 = vst [vmem:[#allocation19_spill] sm:$0xff] %v14096_v51  ;;  %v5500_v7 = vrot.slane %v5498_v13, 4  ;;  %v5502_v6 = vrot.slane %v14096_v51, 4  ;;  %v5505_v54 = vrot.slane %v5503_v43, 4  ;;  %v14106_v60 = vmax.bf16 %v5454_v57, %v14011_v32 }
 0x328   : > { %v5494_v56 = vsel %vm11111_vm11, %v5492_v3, %v5493_v33  ;;  %v5499_v11 = vsel %vm11111_vm11, %v5497_v28, %v5498_v13  ;;  %v14111_v30 = vmax.bf16 %v5455_v52, %v14014_v8  ;;  %v14114_v39 = vmax.bf16 %v5459_v22, %v14022_v18 }
 0x329   : > { %19233 = vst [vmem:[#allocation22_spill] sm:$0xff] %v14106_v60  ;;  %v14117_v53 = vmax.bf16 %v5460_v61, %v14025_v40  ;;  %v5504_v3 = vsel %vm11111_vm11, %v5502_v6, %v5503_v43  ;;  %v14122_v33 = vmax.bf16 %v5474_v16, %v19214_v12  ;;  %v14125_v57 = vmax.bf16 %v5479_v5, %v19215_v45 }
 0x32a   : > { %19234 = vst [vmem:[#allocation26_spill] sm:$0xff] %v14111_v30  ;;  %19235 = vst [vmem:[#allocation138_spill] sm:$0xff] %v14114_v39  ;;  %v14128_v28 = vmax.bf16 %v5480_v19, %v19216_v17  ;;  %v14131_v52 = vmax.bf16 %v5484_v50, %v19217_v0  ;;  %v14134_v22 = vmax.bf16 %v5485_v4, %v19218_v29  ;;  %v6284_v4 = vrot.slane %v13992_v25, 6 }
 0x32b   : > { %19236 = vst [vmem:[#allocation143_spill] sm:$0xff] %v14117_v53  ;;  %19237 = vst [vmem:[#allocation28_spill] sm:$0xff] %v14122_v33  ;;  %v14137_v61 = vmax.bf16 %v5489_v24, %v19221_v41  ;;  %v14140_v6 = vmax.bf16 %v5490_v58, %v19223_v63  ;;  %v14143_v16 = vmax.bf16 %v5494_v56, %v19224_v27  ;;  %v9001_v58 = vrot.slane %v13986_v1, 10  ;;  %v19255_v27 = vld [vmem:[#allocation192_spill] sm:$0xff] }
 0x32c   : > { %19238 = vst [vmem:[#allocation145_spill] sm:$0xff] %v14125_v57  ;;  %19239 = vst [vmem:[#allocation79_spill] sm:$0xff] %v14128_v28  ;;  %v14146_v5 = vmax.bf16 %v5495_v34, %v19226_v14  ;;  %v14149_v43 = vmax.bf16 %v5499_v11, %v19227_v46  ;;  %v14152_v19 = vmax.bf16 %v5500_v7, %v19229_v36  ;;  %v6281_v56 = vrot.slane %v13989_v10, 6  ;;  %v19251_v46 = vld [vmem:[#allocation54_spill] sm:$0xff]  ;;  %v19259_v41 = vld [vmem:[#allocation72_spill] sm:$0xff] }
 0x32d   : > { %19240 = vst [vmem:[#allocation16_spill] sm:$0xff] %v14131_v52  ;;  %19241 = vst [vmem:[#allocation85_spill] sm:$0xff] %v14134_v22  ;;  %v14155_v50 = vmax.bf16 %v5504_v3, %v19230_v26  ;;  %v14158_v24 = vmax.bf16 %v5505_v54, %v19232_v49  ;;  %v9002_v34 = vrot.slane %v13997_v55, 10  ;;  %v6289_v11 = vrot.slane %v14000_v37, 6 }
 0x32e   : > { %19242 = vst [vmem:[#allocation206_spill] sm:$0xff] %v14137_v61  ;;  %19243 = vst [vmem:[#allocation121_spill] sm:$0xff] %v14140_v6  ;;  %v6292_v13 = vrot.slane %v14003_v31, 6  ;;  %v6282_v7 = vsel %vm11111_vm11, %v9001_v58, %v6281_v56  ;;  %v6283_v3 = vrot.slane %v6281_v56, 4  ;;  %v9004_v54 = vrot.slane %v14019_v15, 10  ;;  %v19250_v56 = vld [vmem:[#allocation59_spill] sm:$0xff] }
 0x32f   : > { %19244 = vst [vmem:[#allocation207_spill] sm:$0xff] %v14143_v16  ;;  %19245 = vst [vmem:[#allocation208_spill] sm:$0xff] %v14146_v5  ;;  %v6290_v49 = vsel %vm11111_vm11, %v9002_v34, %v6289_v11  ;;  %v6291_v26 = vrot.slane %v6289_v11, 4  ;;  %v19252_v5 = vrot.slane %v19251_v46, 10  ;;  %v19253_v11 = vld [vmem:[#allocation51_spill] sm:$0xff]  ;;  %v9009_v6 = vrot.slane %v19255_v27, 10 }
 0x330   : > { %19246 = vst [vmem:[#allocation31_spill] sm:$0xff] %v14149_v43  ;;  %19247 = vst [vmem:[#allocation34_spill] sm:$0xff] %v14152_v19  ;;  %v6294_v19 = vrot.slane %v6292_v13, 4  ;;  %v6285_v43 = vsel %vm11111_vm11, %v6283_v3, %v6284_v4  ;;  %v6300_v58 = vsel %vm11111_vm11, %v9004_v54, %v14050_v48  ;;  %v9007_v14 = vrot.slane %v19253_v11, 10  ;;  %v19257_v61 = vld [vmem:[#allocation96_spill] sm:$0xff]  ;;  %v19258_v54 = vld [vmem:[#allocation69_spill] sm:$0xff] }
 0x331   : > { %19248 = vst [vmem:[#allocation38_spill] sm:$0xff] %v14155_v50  ;;  %19249 = vst [vmem:[#allocation83_spill] sm:$0xff] %v14158_v24  ;;  %v9003_v50 = vrot.slane %v14008_v38, 10  ;;  %v6286_v24 = vrot.slane %v6284_v4, 4  ;;  %v6306_v16 = vsel %vm11111_vm11, %v19252_v5, %v19250_v56  ;;  %v6293_v34 = vsel %vm11111_vm11, %v6291_v26, %v6292_v13  ;;  %v19254_v4 = vld [vmem:[#allocation188_spill] sm:$0xff] }
 0x332   : > { %v9008_v3 = vrot.slane %v19254_v4, 10  ;;  %v9011_v63 = vrot.slane %v19257_v61, 10  ;;  %v9012_v48 = vrot.slane %v19258_v54, 10  ;;  %v9013_v22 = vrot.slane %v19259_v41, 10 }
 0x333   : > { %v6297_v36 = vsel %vm11111_vm11, %v9003_v50, %v14046_v2  ;;  %v19256_v50 = vld [vmem:[#allocation77_spill] sm:$0xff]  ;;  %v6309_v5 = vsel %vm11111_vm11, %v9007_v14, %v14054_v23  ;;  %v6315_v13 = vsel %vm11111_vm11, %v9009_v6, %v14062_v62  ;;  %v6419_v56 = vmax.bf16 %v6282_v7, %v13986_v1 }
 0x334   : > { %v9010_v2 = vrot.slane %v19256_v50, 10  ;;  %v6312_v26 = vsel %vm11111_vm11, %v9008_v3, %v14057_v47  ;;  %v6321_v29 = vsel %vm11111_vm11, %v9011_v63, %v14086_v35  ;;  %v6324_v14 = vsel %vm11111_vm11, %v9012_v48, %v14091_v59 }
 0x335   : > { %v6327_v3 = vsel %vm11111_vm11, %v9013_v22, %v14096_v51  ;;  %v6420_v6 = vmax.bf16 %v6285_v43, %v13989_v10  ;;  %v6421_v1 = vmax.bf16 %v6286_v24, %v13992_v25  ;;  %v6422_v7 = vmax.bf16 %v6290_v49, %v13997_v55 }
 0x336   : > { %v6318_v52 = vsel %vm11111_vm11, %v9010_v2, %v14080_v42  ;;  %v6423_v2 = vmax.bf16 %v6293_v34, %v14000_v37  ;;  %v6424_v42 = vmax.bf16 %v6294_v19, %v14003_v31  ;;  %v6425_v63 = vmax.bf16 %v6297_v36, %v14008_v38 }
 0x337   : > { %v6426_v35 = vmax.bf16 %v6300_v58, %v14019_v15  ;;  %v6428_v48 = vmax.bf16 %v6306_v16, %v19251_v46  ;;  %v6429_v59 = vmax.bf16 %v6309_v5, %v19253_v11  ;;  %v6430_v22 = vmax.bf16 %v6312_v26, %v19254_v4 }
 0x338   : > { %v6431_v43 = vmax.bf16 %v6315_v13, %v19255_v27  ;;  %v6432_v24 = vmax.bf16 %v6318_v52, %v19256_v50  ;;  %v6433_v55 = vmax.bf16 %v6321_v29, %v19257_v61  ;;  %v6434_v49 = vmax.bf16 %v6324_v14, %v19258_v54  ;;  %v19261_v29 = vld [vmem:[#allocation20_spill] sm:$0xff] }
 0x339   : > { %v6435_v19 = vmax.bf16 %v6327_v3, %v19259_v41  ;;  %v6455_v36 = vmax.bf16 %v6419_v56, %v13989_v10  ;;  %v6456_v58 = vmax.bf16 %v6420_v6, %v13992_v25  ;;  %v19260_v16 = vmax.bf16 %v13921_v44, %v13831_v20  ;;  %v19264_v20 = vld [vmem:[#allocation128_spill] sm:$0xff]  ;;  %v19265_v44 = vld [vmem:[#allocation23_spill] sm:$0xff]  ;;  %v19274_v6 = vld [vmem:[#allocation58_spill] sm:$0xff] }
 0x33a   : > { %v14237_v5 = vmax.bf16 %v6422_v7, %v14000_v37  ;;  %v14240_v26 = vmax.bf16 %v6423_v2, %v14003_v31  ;;  %v19262_v52 = vmax.bf16 %v13925_v21, %v19261_v29  ;;  %v14248_v14 = vmax.bf16 %v6425_v63, %v14011_v32  ;;  %v19269_v21 = vld [vmem:[#allocation116_spill] sm:$0xff]  ;;  %v19270_v32 = vld [vmem:[#allocation27_spill] sm:$0xff]  ;;  %v19277_v63 = vld [vmem:[#allocation53_spill] sm:$0xff] }
 0x33b   : > { %v6457_v34 = vmax.bf16 %v6421_v1, %v19260_v16  ;;  %v14252_v10 = vmax.bf16 %v14106_v60, %v14014_v8  ;;  %v19266_v25 = vmax.bf16 %v19264_v20, %v19265_v44  ;;  %v14261_v31 = vmax.bf16 %v6426_v35, %v14022_v18  ;;  %v19273_v8 = vld [vmem:[#allocation52_spill] sm:$0xff]  ;;  %v19275_v1 = vld [vmem:[#allocation49_spill] sm:$0xff]  ;;  %v19281_v29 = vld [vmem:[#allocation18_spill] sm:$0xff] }
 0x33c   : > { %v14245_v13 = vmax.bf16 %v6424_v42, %v19262_v52  ;;  %19263 = vst [vmem:[#allocation63_spill] sm:$0xff] %v14248_v14  ;;  %v14265_v42 = vmax.bf16 %v14114_v39, %v14025_v40  ;;  %v19271_v56 = vmax.bf16 %v19269_v21, %v19270_v32  ;;  %v19276_v7 = vmax.bf16 %v19274_v6, %v19275_v1  ;;  %v19278_v16 = vld [vmem:[#allocation64_spill] sm:$0xff]  ;;  %v19280_v18 = vld [vmem:[#allocation45_spill] sm:$0xff]  ;;  %v19283_v52 = vld [vmem:[#allocation66_spill] sm:$0xff] }
 0x33d   : > { %v14258_v37 = vmax.bf16 %v14111_v30, %v19266_v25  ;;  %v14281_v35 = vmax.bf16 %v19278_v16, %v19277_v63  ;;  %v19282_v40 = vmax.bf16 %v19280_v18, %v19281_v29  ;;  %v19284_v44 = vld [vmem:[#allocation55_spill] sm:$0xff]  ;;  %v19286_v21 = vld [vmem:[#allocation56_spill] sm:$0xff]  ;;  %v19287_v32 = vld [vmem:[#allocation65_spill] sm:$0xff]  ;;  %v14303_v63 = vmax.bf16 %v6429_v59, %v19214_v12 }
 0x33e   : > { %19268 = vst [vmem:[#allocation124_spill] sm:$0xff] %v14265_v42  ;;  %v14271_v3 = vmax.bf16 %v14117_v53, %v19271_v56  ;;  %v14277_v2 = vmax.bf16 %v19276_v7, %v19273_v8  ;;  %v14290_v25 = vmax.bf16 %v6428_v48, %v19284_v44  ;;  %v14294_v56 = vmax.bf16 %v19287_v32, %v19286_v21  ;;  %v19289_v6 = vld [vmem:[#allocation46_spill] sm:$0xff]  ;;  %v19290_v8 = vld [vmem:[#allocation37_spill] sm:$0xff]  ;;  %v19295_v18 = vld [vmem:[#allocation187_spill] sm:$0xff] }
 0x33f   : > { %19267 = vst [vmem:[#allocation154_spill] sm:$0xff] %v14258_v37  ;;  %19279 = vst [vmem:[#allocation189_spill] sm:$0xff] %v14281_v35  ;;  %v14287_v20 = vmax.bf16 %v19283_v52, %v19282_v40  ;;  %v19291_v1 = vmax.bf16 %v19289_v6, %v19290_v8  ;;  %v19292_v7 = vld [vmem:[#allocation61_spill] sm:$0xff]  ;;  %v14307_v29 = vmax.bf16 %v14122_v33, %v19295_v18  ;;  %v19298_v48 = vld [vmem:[#allocation212_spill] sm:$0xff] }
 0x340   : > { %19272 = vst [vmem:[#allocation186_spill] sm:$0xff] %v14271_v3  ;;  %19285 = vst [vmem:[#allocation190_spill] sm:$0xff] %v14290_v25  ;;  %v19297_v40 = vld [vmem:[#allocation109_spill] sm:$0xff]  ;;  %v14316_v21 = vmax.bf16 %v6430_v22, %v19215_v45  ;;  %v14320_v6 = vmax.bf16 %v14125_v57, %v19216_v17  ;;  %v14329_v18 = vmax.bf16 %v6431_v43, %v19217_v0  ;;  %v19313_v45 = vld [vmem:[#allocation214_spill] sm:$0xff] }
 0x341   : > { %19288 = vst [vmem:[#allocation193_spill] sm:$0xff] %v14294_v56  ;;  %v14300_v51 = vmax.bf16 %v19292_v7, %v19291_v1  ;;  %19294 = vst [vmem:[#allocation51_spill] sm:$0xff] %v14303_v63  ;;  %v19299_v44 = vmax.bf16 %v19297_v40, %v19298_v48  ;;  %v19300_v41 = vld [vmem:[#allocation57_spill] sm:$0xff]  ;;  %v19309_v40 = vld [vmem:[#allocation194_spill] sm:$0xff]  ;;  %v19314_v22 = vmax.bf16 %v19312_v9, %v19313_v45 }
 0x342   : > { %19296 = vst [vmem:[#allocation188_spill] sm:$0xff] %v14307_v29  ;;  %19302 = vst [vmem:[#allocation77_spill] sm:$0xff] %v14316_v21  ;;  %v19304_v8 = vld [vmem:[#allocation209_spill] sm:$0xff]  ;;  %v19310_v48 = vld [vmem:[#allocation16_spill] sm:$0xff] }
 0x343   : > { %19293 = vst [vmem:[#allocation54_spill] sm:$0xff] %v14300_v51  ;;  %v14313_v54 = vmax.bf16 %v19300_v41, %v19299_v44  ;;  %19303 = vst [vmem:[#allocation96_spill] sm:$0xff] %v14320_v6  ;;  %v19305_v12 = vld [vmem:[#allocation213_spill] sm:$0xff]  ;;  %v14333_v44 = vmax.bf16 %v19310_v48, %v19309_v40  ;;  %v19322_v16 = vld [vmem:[#allocation15_spill] sm:$0xff] }
 0x344   : > { %v19306_v59 = vmax.bf16 %v19304_v8, %v19305_v12  ;;  %19308 = vst [vmem:[#allocation128_spill] sm:$0xff] %v14329_v18  ;;  %v19315_v7 = vld [vmem:[#allocation85_spill] sm:$0xff]  ;;  %v19319_v8 = vld [vmem:[#allocation78_spill] sm:$0xff]  ;;  %v19323_v0 = vld [vmem:[#allocation35_spill] sm:$0xff] }
 0x345   : > { %19301 = vst [vmem:[#allocation192_spill] sm:$0xff] %v14313_v54  ;;  %19311 = vst [vmem:[#allocation23_spill] sm:$0xff] %v14333_v44  ;;  %v14339_v32 = vmax.bf16 %v19315_v7, %v19314_v22  ;;  %v19317_v17 = vld [vmem:[#allocation81_spill] sm:$0xff]  ;;  %v19320_v12 = vld [vmem:[#allocation206_spill] sm:$0xff]  ;;  %v19324_v43 = vmax.bf16 %v19322_v16, %v19323_v0 }
 0x346   : > { %v14326_v1 = vmax.bf16 %v14128_v28, %v19306_v59  ;;  %v14342_v52 = vmax.bf16 %v6432_v24, %v19317_v17  ;;  %v14346_v59 = vmax.bf16 %v19320_v12, %v19319_v8  ;;  %v19325_v28 = vld [vmem:[#allocation121_spill] sm:$0xff]  ;;  %v19327_v40 = vld [vmem:[#allocation131_spill] sm:$0xff]  ;;  %v19333_v24 = vld [vmem:[#allocation40_spill] sm:$0xff] }
 0x347   : > { %19316 = vst [vmem:[#allocation116_spill] sm:$0xff] %v14339_v32  ;;  %v14352_v41 = vmax.bf16 %v19325_v28, %v19324_v43  ;;  %v14355_v48 = vmax.bf16 %v6433_v55, %v19327_v40  ;;  %v19329_v9 = vld [vmem:[#allocation95_spill] sm:$0xff]  ;;  %v19335_v57 = vld [vmem:[#allocation208_spill] sm:$0xff]  ;;  %v19337_v8 = vld [vmem:[#allocation198_spill] sm:$0xff] }
 0x348   : > { %19307 = vst [vmem:[#allocation20_spill] sm:$0xff] %v14326_v1  ;;  %19318 = vst [vmem:[#allocation27_spill] sm:$0xff] %v14342_v52  ;;  %v19330_v45 = vld [vmem:[#allocation207_spill] sm:$0xff]  ;;  %v14368_v12 = vmax.bf16 %v6434_v49, %v19337_v8  ;;  %v19339_v16 = vld [vmem:[#allocation70_spill] sm:$0xff] }
 0x349   : > { %19321 = vst [vmem:[#allocation52_spill] sm:$0xff] %v14346_v59  ;;  %19326 = vst [vmem:[#allocation58_spill] sm:$0xff] %v14352_v41  ;;  %v14359_v22 = vmax.bf16 %v19330_v45, %v19329_v9  ;;  %v19332_v7 = vld [vmem:[#allocation211_spill] sm:$0xff]  ;;  %v19342_v28 = vld [vmem:[#allocation17_spill] sm:$0xff] }
 0x34a   : > { %19328 = vst [vmem:[#allocation49_spill] sm:$0xff] %v14355_v48  ;;  %v19334_v17 = vmax.bf16 %v19332_v7, %v19333_v24  ;;  %19338 = vst [vmem:[#allocation18_spill] sm:$0xff] %v14368_v12  ;;  %v19340_v0 = vld [vmem:[#allocation31_spill] sm:$0xff]  ;;  %v19343_v55 = vld [vmem:[#allocation44_spill] sm:$0xff] }
 0x34b   : > { %19331 = vst [vmem:[#allocation53_spill] sm:$0xff] %v14359_v22  ;;  %v14372_v43 = vmax.bf16 %v19340_v0, %v19339_v16  ;;  %v19344_v40 = vmax.bf16 %v19342_v28, %v19343_v55  ;;  %v19345_v53 = vld [vmem:[#allocation34_spill] sm:$0xff]  ;;  %v19347_v9 = vld [vmem:[#allocation71_spill] sm:$0xff]  ;;  %v19353_v49 = vld [vmem:[#allocation73_spill] sm:$0xff]  ;;  %v6539_v0 = vmax.bf16 %v14237_v5, %v6455_v36  ;;  %v6540_v28 = vmax.bf16 %v14240_v26, %v6456_v58 }
 0x34c   : > { %v14365_v33 = vmax.bf16 %v19335_v57, %v19334_v17  ;;  %v14381_v45 = vmax.bf16 %v6435_v19, %v19347_v9  ;;  %v19349_v7 = vld [vmem:[#allocation74_spill] sm:$0xff]  ;;  %v19352_v57 = vld [vmem:[#allocation24_spill] sm:$0xff]  ;;  %v19355_v39 = vld [vmem:[#allocation83_spill] sm:$0xff]  ;;  %v6551_v19 = vmax.bf16 %v14290_v25, %v14277_v2  ;;  %v6552_v55 = vmax.bf16 %v14294_v56, %v14281_v35 }
 0x34d   : > { %19341 = vst [vmem:[#allocation55_spill] sm:$0xff] %v14372_v43  ;;  %v14378_v30 = vmax.bf16 %v19345_v53, %v19344_v40  ;;  %v19350_v24 = vld [vmem:[#allocation38_spill] sm:$0xff]  ;;  %v19354_v8 = vmax.bf16 %v19352_v57, %v19353_v49  ;;  %v6541_v40 = vmax.bf16 %v14245_v13, %v6457_v34  ;;  %v6563_v57 = vmax.bf16 %v14342_v52, %v14329_v18 }
 0x34e   : > { %19336 = vst [vmem:[#allocation45_spill] sm:$0xff] %v14365_v33  ;;  %19348 = vst [vmem:[#allocation46_spill] sm:$0xff] %v14381_v45  ;;  %v14385_v17 = vmax.bf16 %v19350_v24, %v19349_v7  ;;  %v6553_v24 = vmax.bf16 %v14300_v51, %v14287_v20  ;;  %v6565_v36 = vmax.bf16 %v14352_v41, %v14339_v32 }
 0x34f   : > { %19346 = vst [vmem:[#allocation56_spill] sm:$0xff] %v14378_v30  ;;  %v14391_v60 = vmax.bf16 %v19355_v39, %v19354_v8  ;;  %v6564_v8 = vmax.bf16 %v14346_v59, %v14333_v44  ;;  %v6611_v58 = vmax.bf16 %v6539_v0, %v14248_v14  ;;  %v6612_v34 = vmax.bf16 %v6540_v28, %v14252_v10 }
 0x350   : > { %19351 = vst [vmem:[#allocation37_spill] sm:$0xff] %v14385_v17  ;;  %v6613_v49 = vmax.bf16 %v6541_v40, %v14258_v37  ;;  %v6623_v39 = vmax.bf16 %v6551_v19, %v14303_v63  ;;  %v6624_v53 = vmax.bf16 %v6552_v55, %v14307_v29  ;;  %v6625_v51 = vmax.bf16 %v6553_v24, %v14313_v54 }
 0x351   : > { %19356 = vst [vmem:[#allocation187_spill] sm:$0xff] %v14391_v60  ;;  %v6635_v52 = vmax.bf16 %v6563_v57, %v14355_v48  ;;  %v6636_v56 = vmax.bf16 %v6564_v8, %v14359_v22  ;;  %v6637_v59 = vmax.bf16 %v6565_v36, %v14365_v33  ;;  %v6683_v41 = vmax.bf16 %v6611_v58, %v14261_v31 }
 0x352   : > { %v6684_v0 = vmax.bf16 %v6612_v34, %v14265_v42  ;;  %v6685_v28 = vmax.bf16 %v6613_v49, %v14271_v3  ;;  %v6695_v40 = vmax.bf16 %v6623_v39, %v14316_v21  ;;  %v6696_v19 = vmax.bf16 %v6624_v53, %v14320_v6 }
 0x353   : > { %v6697_v55 = vmax.bf16 %v6625_v51, %v14326_v1  ;;  %v6707_v24 = vmax.bf16 %v6635_v52, %v14368_v12  ;;  %v6708_v57 = vmax.bf16 %v6636_v56, %v14372_v43  ;;  %v6709_v8 = vmax.bf16 %v6637_v59, %v14378_v30  ;;  %v19363_v56 = vld [vmem:[#allocation33_spill] sm:$0xff] }
 0x354   : > { %v6755_v36 = vmax.bf16 %v6683_v41, %v14277_v2  ;;  %v6756_v58 = vmax.bf16 %v6684_v0, %v14281_v35  ;;  %v6757_v34 = vmax.bf16 %v6685_v28, %v14287_v20  ;;  %v14430_v49 = vmax.bf16 %v6695_v40, %v14329_v18  ;;  %v19364_v0 = vld [vmem:[#allocation80_spill] sm:$0xff] }
 0x355   : > { %v14433_v39 = vmax.bf16 %v6696_v19, %v14333_v44  ;;  %v14436_v51 = vmax.bf16 %v6697_v55, %v14339_v32  ;;  %v14439_v53 = vmax.bf16 %v6707_v24, %v14381_v45  ;;  %v14442_v52 = vmax.bf16 %v6708_v57, %v14385_v17  ;;  %v19366_v24 = vld [vmem:[#allocation59_spill] sm:$0xff]  ;;  %v14497_v17 = vld [vmem:[#allocation2 + $0xe0] sm:$0xf]  ;;  %v19389_v32 = vld [vmem:[#allocation65_spill] sm:$0xff] }
 0x356   : > { %19357 = vst [vmem:[#allocation109_spill] sm:$0xff] %v14430_v49  ;;  %v14445_v41 = vmax.bf16 %v6709_v8, %v14391_v60  ;;  %v5643_v59 = vmax.bf16 %v19363_v56, %v14008_v38  ;;  %v14451_v28 = vmax.bf16 %v19364_v0, %v14019_v15  ;;  %v6827_v40 = vmax.bf16 %v14430_v49, %v6755_v36  ;;  %v19371_v36 = vld [vmem:[#allocation75_spill] sm:$0xff]  ;;  %v19376_v0 = vld [vmem:[#allocation138_spill] sm:$0xff] }
 0x357   : > { %19358 = vst [vmem:[#allocation212_spill] sm:$0xff] %v14433_v39  ;;  %19359 = vst [vmem:[#allocation209_spill] sm:$0xff] %v14436_v51  ;;  %v6828_v19 = vmax.bf16 %v14433_v39, %v6756_v58  ;;  %v6829_v55 = vmax.bf16 %v14436_v51, %v6757_v34  ;;  %v14458_v57 = vmax.bf16 %v19366_v24, %v19251_v46  ;;  %v19378_v24 = vld [vmem:[#allocation143_spill] sm:$0xff]  ;;  %v19381_v39 = vld [vmem:[#allocation57_spill] sm:$0xff] }
 0x358   : > { %19360 = vst [vmem:[#allocation213_spill] sm:$0xff] %v14439_v53  ;;  %19361 = vst [vmem:[#allocation194_spill] sm:$0xff] %v14442_v52  ;;  %v14462_v8 = vmax.bf16 %v14054_v23, %v19253_v11  ;;  %v14466_v38 = vmax.bf16 %v14057_v47, %v19254_v4  ;;  %v14470_v15 = vmax.bf16 %v14062_v62, %v19255_v27  ;;  %v19373_v23 = vld [vmem:[#allocation134_spill] sm:$0xff] }
 0x359   : > { %19362 = vst [vmem:[#allocation210_spill] sm:$0xff] %v14445_v41  ;;  %19365 = vst [vmem:[#allocation214_spill] sm:$0xff] %v14451_v28  ;;  %v14474_v58 = vmax.bf16 %v19371_v36, %v19256_v50  ;;  %v6875_v34 = vmax.bf16 %v6827_v40, %v14439_v53  ;;  %v6876_v46 = vmax.bf16 %v6828_v19, %v14442_v52  ;;  %v19375_v4 = vld [vmem:[#allocation22_spill] sm:$0xff]  ;;  %v19379_v52 = vld [vmem:[#allocation28_spill] sm:$0xff] }
 0x35a   : > { %19367 = vst [vmem:[#allocation81_spill] sm:$0xff] %v14458_v57  ;;  %19368 = vst [vmem:[#allocation78_spill] sm:$0xff] %v14462_v8  ;;  %v6877_v56 = vmax.bf16 %v6829_v55, %v14445_v41  ;;  %v14481_v11 = vmax.bf16 %v19373_v23, %v19257_v61  ;;  %v5715_v47 = vmax.bf16 %v14451_v28, %v5643_v59  ;;  %v19377_v62 = vld [vmem:[#allocation26_spill] sm:$0xff]  ;;  %v19380_v55 = vld [vmem:[#allocation145_spill] sm:$0xff] }
 0x35b   : > { %19369 = vst [vmem:[#allocation15_spill] sm:$0xff] %v14466_v38  ;;  %19370 = vst [vmem:[#allocation35_spill] sm:$0xff] %v14470_v15  ;;  %v5716_v27 = vmax.bf16 %v19376_v0, %v19375_v4  ;;  %v5717_v51 = vmax.bf16 %v19378_v24, %v19377_v62  ;;  %v5727_v50 = vmax.bf16 %v14466_v38, %v14462_v8  ;;  %v9029_v40 = vrot.slane %v6875_v34, 9  ;;  %v19382_v23 = vld [vmem:[#allocation79_spill] sm:$0xff]  ;;  %v19383_v49 = vld [vmem:[#allocation62_spill] sm:$0xff] }
 0x35c   : > { %19372 = vst [vmem:[#allocation211_spill] sm:$0xff] %v14474_v58  ;;  %19374 = vst [vmem:[#allocation40_spill] sm:$0xff] %v14481_v11  ;;  %v6973_v36 = vrot.slane %v6876_v46, 5  ;;  %v6976_v19 = vrot.slane %v6877_v56, 5  ;;  %v5728_v41 = vmax.bf16 %v19380_v55, %v19379_v52  ;;  %v5729_v53 = vmax.bf16 %v19382_v23, %v19381_v39  ;;  %v19384_v28 = vld [vmem:[#allocation64_spill] sm:$0xff]  ;;  %v19385_v4 = vld [vmem:[#allocation66_spill] sm:$0xff] }
 0x35d   : > { %v5775_v59 = vmax.bf16 %v5715_v47, %v19383_v49  ;;  %v5776_v60 = vmax.bf16 %v5716_v27, %v19384_v28  ;;  %v5777_v0 = vmax.bf16 %v5717_v51, %v19385_v4  ;;  %v5787_v46 = vmax.bf16 %v5727_v50, %v14470_v15  ;;  %v19387_v56 = vld [vmem:[#allocation16_spill] sm:$0xff]  ;;  %v19388_v55 = vld [vmem:[#allocation85_spill] sm:$0xff]  ;;  %v19391_v28 = vld [vmem:[#allocation206_spill] sm:$0xff] }
 0x35e   : > { %v6974_v38 = vsel %vm10899_vm5, %v9029_v40, %v6973_v36  ;;  %v6975_v34 = vrot.slane %v6973_v36, 4  ;;  %v5788_v24 = vmax.bf16 %v5728_v41, %v19387_v56  ;;  %v5789_v45 = vmax.bf16 %v5729_v53, %v19388_v55  ;;  %v19390_v49 = vld [vmem:[#allocation61_spill] sm:$0xff]  ;;  %v19414_v55 = vld [vmem:[#allocation160_spill] sm:$0xff]  ;;  %v19415_v56 = vld [vmem:[#allocation147_spill] sm:$0xff] }
 0x35f   : > { %v5835_v23 = vmax.bf16 %v5775_v59, %v14458_v57  ;;  %v5836_v47 = vmax.bf16 %v5776_v60, %v19389_v32  ;;  %v5837_v27 = vmax.bf16 %v5777_v0, %v19390_v49  ;;  %v5847_v4 = vmax.bf16 %v5787_v46, %v14474_v58  ;;  %v19392_v15 = vld [vmem:[#allocation121_spill] sm:$0xff]  ;;  %v19394_v49 = vld [vmem:[#allocation207_spill] sm:$0xff]  ;;  %v2621_v46 = vld [vmem:[#allocation2 + $0xe0] sm:$0xe] }
 0x360   : > { %v6977_v51 = vsel %vm10899_vm5, %v6975_v34, %v6976_v19  ;;  %v5848_v40 = vmax.bf16 %v5788_v24, %v19391_v28  ;;  %v1838_v36 = vshrl.u32 %v14497_v17, 16  ;;  %v5849_v41 = vmax.bf16 %v5789_v45, %v19392_v15  ;;  %v19396_v24 = vld [vmem:[#allocation208_spill] sm:$0xff]  ;;  %v19413_v57 = vld [vmem:[#allocation159_spill] sm:$0xff] }
 0x361   : > { %v9045_v50 = vcombine.low %v6974_v38, %v6977_v51  ;;  %v5895_v53 = vmax.bf16 %v5835_v23, %v14462_v8  ;;  %v5896_v59 = vmax.bf16 %v5836_v47, %v19379_v52  ;;  %v5897_v60 = vmax.bf16 %v5837_v27, %v19381_v39  ;;  %v19398_v38 = vld [vmem:[#allocation157_spill] sm:$0xff]  ;;  %v19399_v23 = vld [vmem:[#allocation152_spill] sm:$0xff] }
 0x362   : > { %v14517_v0 = vmax.bf16 %v5847_v4, %v14481_v11  ;;  %v14520_v19 = vmax.bf16 %v5848_v40, %v19394_v49  ;;  %v1840_v34 = vrot.slane %v1838_v36, 4  ;;  %v14523_v28 = vmax.bf16 %v5849_v41, %v19396_v24  ;;  %v10173_v40 = vld [vmem:[#allocation2 + $0xe4] sm:$0xf]  ;;  %v19401_v36 = vld [vmem:[#allocation153_spill] sm:$0xff]  ;;  %v19404_v8 = vld [vmem:[#allocation140_spill] sm:$0xff] }
 0x363   : > { %7848 = vmatprep.mubr.bf16.mxu0 %v9045_v50  ;;  %v1841_v45 = vshll.u32 %v14497_v17, 16  ;;  %v1860_v47 = vsel %vm10803_vm2, %v19399_v23, %v19398_v38  ;;  %v8895_v27 = vrot.slane %v2621_v46, 9  ;;  %v19402_v39 = vrot.slane %v19401_v36, 5  ;;  %v19403_v50 = vld [vmem:[#allocation150_spill] sm:$0xff]  ;;  %v14542_v23 = vld [vmem:[#allocation2 + $0xec] sm:$0x3] }
 0x364   : > { %19393 = vst [vmem:[#allocation70_spill] sm:$0xff] %v14517_v0  ;;  %19395 = vst [vmem:[#allocation17_spill] sm:$0xff] %v14520_v19  ;;  %v5955_v4 = vmax.bf16 %v14517_v0, %v5895_v53  ;;  %v5956_v11 = vmax.bf16 %v14520_v19, %v5896_v59  ;;  %v2552_v49 = vmax.bf16 %v10173_v40, %v1860_v47  ;;  %v19405_v15 = vrot.slane %v19404_v8, 5 }
 0x365   : > { %19397 = vst [vmem:[#allocation44_spill] sm:$0xff] %v14523_v28  ;;  %v2910_v41 = vsel %vm10899_vm5, %v19403_v50, %v19402_v39  ;;  %v5957_v24 = vmax.bf16 %v14523_v28, %v5897_v60  ;;  %v1843_v52 = vrot.slane %v1841_v45, 5  ;;  %19406 = vst [vmem:[#allocation71_spill] sm:$0xff] %v14542_v23  ;;  %v18165_v53 = vrot.slane %v14542_v23, 5  ;;  %v19407_v39 = vld [vmem:[#allocation158_spill] sm:$0xff] }
 0x366   : > { %v2907_v38 = vsel %vm10899_vm5, %v8895_v27, %v19405_v15  ;;  %v8969_v59 = vrot.slane %v5955_v4, 10  ;;  %v6053_v47 = vrot.slane %v5956_v11, 6  ;;  %v3227_v40 = vmax.bf16 %v2910_v41, %v2552_v49  ;;  %v14550_v45 = vld [vmem:[#allocation2 + $0xec] sm:$0x7]  ;;  %v4363_v15 = vld [vmem:[#allocation2 + $0xe0] sm:$0xc] }
 0x367   : > { %v3720_v19 = vshrl.u32 %v2621_v46, 16  ;;  %v6056_v0 = vrot.slane %v5957_v24, 6  ;;  %v1844_v58 = vor.u32 %v1843_v52, %v1840_v34  ;;  %v2913_v60 = vsel %vm10899_vm5, %v19407_v39, %v18165_v53  ;;  %19408 = vst [vmem:[#allocation74_spill] sm:$0xff] %v14550_v45  ;;  %v19410_v4 = vld [vmem:[#allocation42_spill] sm:$0xff]  ;;  %v19411_v52 = vld [vmem:[#allocation148_spill] sm:$0xff]  ;;  %v19412_v34 = vld [vmem:[#allocation149_spill] sm:$0xff] }
 0x368   : > { %v3723_v50 = vshll.u32 %v2621_v46, 16  ;;  %v6054_v28 = vsel %vm11111_vm11, %v8969_v59, %v6053_v47  ;;  %v6055_v32 = vrot.slane %v6053_v47, 4  ;;  %v3228_v11 = vmax.bf16 %v2913_v60, %v19410_v4 }
 0x369   : > { %v3722_v49 = vrot.slane %v3720_v19, 5  ;;  %v1845_v41 = vrot.slane %v1844_v58, 4  ;;  %v3730_v23 = vor.u32 %v19412_v34, %v19411_v52  ;;  %v3735_v62 = vor.u32 %v19414_v55, %v19413_v57 }
 0x36a   : > { %v3725_v24 = vrot.slane %v3723_v50, 6  ;;  %v6057_v39 = vsel %vm11111_vm11, %v6055_v32, %v6056_v0  ;;  %v3739_v46 = vshrl.u32 %v14550_v45, 16  ;;  %v3742_v53 = vshll.u32 %v14550_v45, 16 }
 0x36b   : > { %v8923_v59 = vrot.slane %v4363_v15, 10  ;;  %v8985_v47 = vcombine.low %v6054_v28, %v6057_v39  ;;  %v1850_v58 = vsel %vm10803_vm2, %v1845_v41, %v19415_v56  ;;  %v3732_v60 = vrot.slane %v3730_v23, 4 }
 0x36c   : > { %v3726_v19 = vor.u32 %v3725_v24, %v3722_v49  ;;  %v2551_v50 = vmax.bf16 %v1850_v58, %v14497_v17  ;;  %v3737_v4 = vrot.slane %v3735_v62, 4  ;;  %v3741_v52 = vrot.slane %v3739_v46, 5 }
 0x36d   : > { %v3744_v57 = vrot.slane %v3742_v53, 6  ;;  %7849 = vmatmul.mubr.bf16.vlgmr.msra.gmra.mrb[64].mxu0 %v8985_v47  ;;  %v3736_v0 = vsel %vm10967_vm8, %v3732_v60, %v3735_v62  ;;  %v19417_v34 = vrot.slane %v19404_v8, 6  ;;  %v19420_v24 = vrot.slane %v19401_v36, 6  ;;  %v19422_v8 = vld [vmem:[#allocation69_spill] sm:$0xff]  ;;  %v19425_v60 = vld [vmem:[#allocation198_spill] sm:$0xff] }
 0x36e   : > { %v3727_v55 = vrot.slane %v3726_v19, 4  ;;  %v3226_v49 = vmax.bf16 %v2907_v38, %v2551_v50  ;;  %v4294_v17 = vmax.bf16 %v3736_v0, %v3227_v40  ;;  %v4986_v47 = vmax.bf16 %v19422_v8, %v19257_v61  ;;  %v19424_v19 = vld [vmem:[#allocation131_spill] sm:$0xff]  ;;  %v19427_v61 = vld [vmem:[#allocation72_spill] sm:$0xff] }
 0x36f   : > { %v4593_v28 = vsel %vm11111_vm11, %v8923_v59, %v19417_v34  ;;  %v19418_v15 = vmov %v19417_v34  ;;  %v14575_v41 = vor.u32 %v3744_v57, %v3741_v52  ;;  %v4597_v53 = vrot.slane %v19420_v24, 4  ;;  %v19426_v52 = vld [vmem:[#allocation95_spill] sm:$0xff]  ;;  %v19428_v34 = vld [vmem:[#allocation98_spill] sm:$0xff] }
 0x370   : > { %v4594_v56 = vrot.slane %v19418_v15, 4  ;;  %v3731_v39 = vsel %vm10967_vm8, %v3727_v55, %v3730_v23  ;;  %v19421_v62 = vmov %v19420_v24  ;;  %v18166_v59 = vrot.slane %v14550_v45, 6  ;;  %v19429_v15 = vld [vmem:[#allocation100_spill] sm:$0xff] }
 0x371   : > { %19419 = vst [vmem:[#allocation24_spill] sm:$0xff] %v14575_v41  ;;  %v3746_v38 = vsel %vm10967_vm8, %v3737_v4, %v14575_v41  ;;  %v4293_v40 = vmax.bf16 %v3731_v39, %v3226_v49  ;;  %v4987_v23 = vmax.bf16 %v19425_v60, %v19424_v19  ;;  %v4988_v57 = vmax.bf16 %v19339_v16, %v19426_v52  ;;  %v10175_v49 = vld [vmem:[#allocation2 + $0xdc] sm:$0x3]  ;;  %v19434_v19 = vld [vmem:[#allocation142_spill] sm:$0xff] }
 0x372   : > { %v4596_v46 = vsel %vm11111_vm11, %v4594_v56, %v19421_v62  ;;  %v4295_v50 = vmax.bf16 %v3746_v38, %v3228_v11  ;;  %v4599_v36 = vsel %vm11111_vm11, %v4597_v53, %v18166_v59  ;;  %v5034_v55 = vmax.bf16 %v4986_v47, %v19427_v61  ;;  %v19431_v39 = vld [vmem:[#allocation137_spill] sm:$0xff]  ;;  %v19432_v62 = vld [vmem:[#allocation92_spill] sm:$0xff] }
 0x373   : > { %v14591_v58 = vmax.bf16 %v4596_v46, %v4294_v17  ;;  %v14602_v0 = vmax.bf16 %v4593_v28, %v4293_v40  ;;  %v5035_v4 = vmax.bf16 %v4987_v23, %v19347_v9  ;;  %v896_v56 = vpack.c.bf16 %v19429_v15, %v19428_v34  ;;  %v19435_v40 = vld [vmem:[#allocation135_spill] sm:$0xff]  ;;  %v19436_v23 = vld [vmem:[#allocation141_spill] sm:$0xff] }
 0x374   : > { %v1832_v17 = vshrl.u32 %v10175_v49, 16  ;;  %v14607_v11 = vmax.bf16 %v4599_v36, %v4295_v50  ;;  %v5036_v24 = vmax.bf16 %v4988_v57, %v19349_v7  ;;  %v5082_v53 = vmax.bf16 %v5034_v55, %v19431_v39  ;;  %v19438_v34 = vld [vmem:[#allocation151_spill] sm:$0xff]  ;;  %v19440_v49 = vld [vmem:[#allocation32_spill] sm:$0xff] }
 0x375   : > { %19423 = vst [vmem:[#allocation73_spill] sm:$0xff] %v14591_v58  ;;  %v19433_v46 = vrot.slane %v19432_v62, 5  ;;  %v5083_v47 = vmax.bf16 %v5035_v4, %v19434_v19  ;;  %v3718_v52 = vrot.slane %v19435_v40, 4  ;;  %v19437_v59 = vrot.slane %v19436_v23, 6 }
 0x376   : > { %19430 = vst [vmem:[#allocation33_spill] sm:$0xff] %v14607_v11  ;;  %v1834_v28 = vrot.slane %v1832_v17, 4  ;;  %v5084_v15 = vmax.bf16 %v5036_v24, %v19438_v34  ;;  %v5130_v50 = vmax.bf16 %v5082_v53, %v14602_v0  ;;  %v14620_v36 = vrot.slane %v19434_v19, 6  ;;  %v1203_v24 = vld [vmem:[#allocation2 + $0xdc] sm:$0x1] }
 0x377   : > { %v2903_v38 = vrot.slane %v19433_v46, 4  ;;  %v4589_v45 = vrot.slane %v19437_v59, 4  ;;  %v5508_v57 = vrot.slane %v19438_v34, 6  ;;  %v5131_v55 = vmax.bf16 %v5083_v47, %v14591_v58 }
 0x378   : > { %19439 = vst [vmem:[#allocation80_spill] sm:$0xff] %v14620_v36  ;;  %v1835_v62 = vor.u32 %v1834_v28, %v19440_v49  ;;  %v9014_v4 = vrot.slane %v19431_v39, 10  ;;  %v6542_v17 = vmax.bf16 %v14248_v14, %v14237_v5  ;;  %v5132_v59 = vmax.bf16 %v5084_v15, %v14607_v11 }
 0x379   : > { %v8943_v46 = vrot.slane %v5130_v50, 11  ;;  %v5507_v53 = vrot.slane %v14620_v36, 4  ;;  %v5510_v40 = vrot.slane %v5508_v57, 4  ;;  %v5255_v23 = vrot.slane %v5131_v55, 7 }
 0x37a   : > { %v1836_v41 = vrot.slane %v1835_v62, 4  ;;  %v6330_v47 = vsel %vm11111_vm11, %v9014_v4, %v14620_v36  ;;  %v6543_v28 = vmax.bf16 %v14252_v10, %v14240_v26  ;;  %v5258_v49 = vrot.slane %v5132_v59, 7  ;;  %v19445_v59 = vld [vmem:[#allocation193_spill] sm:$0xff] }
 0x37b   : > { %v5509_v5 = vsel %vm11111_vm11, %v5507_v53, %v5508_v57  ;;  %v14638_v15 = vmax.bf16 %v5510_v40, %v19438_v34  ;;  %v6436_v50 = vmax.bf16 %v6330_v47, %v19431_v39  ;;  %v5256_v55 = vsel %vm12245_vm14, %v8943_v46, %v5255_v23 }
 0x37c   : > { %v5257_v62 = vrot.slane %v5255_v23, 4  ;;  %v2550_v11 = vmax.bf16 %v1836_v41, %v1203_v24  ;;  %v14644_v58 = vmax.bf16 %v5509_v5, %v19434_v19  ;;  %v6544_v26 = vmax.bf16 %v14258_v37, %v14245_v13  ;;  %v19447_v24 = vld [vmem:[#allocation54_spill] sm:$0xff]  ;;  %v19448_v5 = vld [vmem:[#allocation27_spill] sm:$0xff] }
 0x37d   : > { %19441 = vst [vmem:[#allocation59_spill] sm:$0xff] %v14638_v15  ;;  %v14647_v4 = vmax.bf16 %v6436_v50, %v19434_v19  ;;  %v6554_v57 = vmax.bf16 %v14303_v63, %v14290_v25  ;;  %v6555_v53 = vmax.bf16 %v14307_v29, %v19445_v59  ;;  %v6556_v23 = vmax.bf16 %v14313_v54, %v19447_v24  ;;  %v19449_v50 = vld [vmem:[#allocation52_spill] sm:$0xff]  ;;  %v19450_v63 = vld [vmem:[#allocation58_spill] sm:$0xff] }
 0x37e   : > { %19443 = vst [vmem:[#allocation75_spill] sm:$0xff] %v14644_v58  ;;  %v5259_v46 = vsel %vm12245_vm14, %v5257_v62, %v5258_v49  ;;  %v3225_v40 = vmax.bf16 %v2903_v38, %v2550_v11  ;;  %v14659_v41 = vmax.bf16 %v14644_v58, %v19438_v34  ;;  %v6566_v13 = vmax.bf16 %v14355_v48, %v19448_v5 }
 0x37f   : > { %19444 = vst [vmem:[#allocation134_spill] sm:$0xff] %v14647_v4  ;;  %v8959_v47 = vcombine.low %v5256_v55, %v5259_v46  ;;  %v6567_v36 = vmax.bf16 %v14359_v22, %v19449_v50  ;;  %v6568_v29 = vmax.bf16 %v14365_v33, %v19450_v63  ;;  %v6614_v11 = vmax.bf16 %v6542_v17, %v14261_v31 }
 0x380   : > { %19446 = vst [vmem:[#allocation22_spill] sm:$0xff] %v14659_v41  ;;  %v4292_v37 = vmax.bf16 %v3718_v52, %v3225_v40  ;;  %v6615_v38 = vmax.bf16 %v6543_v28, %v14265_v42  ;;  %v6616_v49 = vmax.bf16 %v6544_v26, %v14271_v3  ;;  %v6626_v62 = vmax.bf16 %v6554_v57, %v14316_v21 }
 0x381   : > { %7715 = vmatprep.mubr.bf16.mxu1 %v8959_v47  ;;  %v6627_v55 = vmax.bf16 %v6555_v53, %v14320_v6  ;;  %v6628_v46 = vmax.bf16 %v6556_v23, %v14326_v1  ;;  %v6638_v58 = vmax.bf16 %v6566_v13, %v14368_v12  ;;  %v6639_v33 = vmax.bf16 %v6567_v36, %v14372_v43  ;;  %v19452_v23 = vld [vmem:[#allocation116_spill] sm:$0xff]  ;;  %v19454_v36 = vld [vmem:[#allocation37_spill] sm:$0xff] }
 0x382   : > { %7716 = vmatmul.mubr.bf16.gmra.mrb[24].mxu1 %v896_v56  ;;  %v4911_v22 = vmax.bf16 %v4589_v45, %v4292_v37  ;;  %v6640_v52 = vmax.bf16 %v6568_v29, %v14378_v30  ;;  %v6686_v17 = vmax.bf16 %v6614_v11, %v14277_v2  ;;  %v6687_v28 = vmax.bf16 %v6615_v38, %v14281_v35  ;;  %v19453_v37 = vld [vmem:[#allocation46_spill] sm:$0xff]  ;;  %v19455_v29 = vld [vmem:[#allocation187_spill] sm:$0xff] }
 0x383   : > { %v6688_v26 = vmax.bf16 %v6616_v49, %v14287_v20  ;;  %v6698_v57 = vmax.bf16 %v6626_v62, %v14329_v18  ;;  %v6699_v53 = vmax.bf16 %v6627_v55, %v14333_v44  ;;  %v6700_v56 = vmax.bf16 %v6628_v46, %v19452_v23 }
 0x384   : > { %v14684_v40 = vmax.bf16 %v14638_v15, %v4911_v22  ;;  %v6710_v45 = vmax.bf16 %v6638_v58, %v19453_v37  ;;  %v6711_v47 = vmax.bf16 %v6639_v33, %v19454_v36  ;;  %v6712_v13 = vmax.bf16 %v6640_v52, %v19455_v29  ;;  %v19462_v52 = vld [vmem:[#allocation21_spill] sm:$0xff]  ;;  %v19466_v15 = vld [vmem:[#allocation138_spill] sm:$0xff] }
 0x385   : > { %v6758_v11 = vmax.bf16 %v6686_v17, %v14290_v25  ;;  %v6759_v38 = vmax.bf16 %v6687_v28, %v19445_v59  ;;  %v6760_v49 = vmax.bf16 %v6688_v26, %v19447_v24  ;;  %v14694_v62 = vmax.bf16 %v6698_v57, %v19448_v5  ;;  %v19464_v28 = vld [vmem:[#allocation214_spill] sm:$0xff]  ;;  %v19473_v24 = vld [vmem:[#allocation16_spill] sm:$0xff]  ;;  %v19474_v25 = vld [vmem:[#allocation79_spill] sm:$0xff] }
 0x386   : > { %19451 = vst [vmem:[#allocation26_spill] sm:$0xff] %v14684_v40  ;;  %v14697_v22 = vmax.bf16 %v6699_v53, %v19449_v50  ;;  %v14700_v55 = vmax.bf16 %v6700_v56, %v19450_v63  ;;  %v14703_v58 = vmax.bf16 %v6710_v45, %v14647_v4  ;;  %v14706_v33 = vmax.bf16 %v6711_v47, %v14659_v41  ;;  %v19465_v26 = vld [vmem:[#allocation62_spill] sm:$0xff]  ;;  %v19467_v4 = vld [vmem:[#allocation64_spill] sm:$0xff]  ;;  %v19468_v41 = vld [vmem:[#allocation143_spill] sm:$0xff] }
 0x387   : > { %19456 = vst [vmem:[#allocation157_spill] sm:$0xff] %v14694_v62  ;;  %v14709_v46 = vmax.bf16 %v6712_v13, %v14684_v40  ;;  %v14713_v17 = vmax.bf16 %v19462_v52, %v19422_v8  ;;  %v5718_v57 = vmax.bf16 %v19465_v26, %v19464_v28  ;;  %v6830_v53 = vmax.bf16 %v14694_v62, %v6758_v11  ;;  %v19469_v63 = vld [vmem:[#allocation66_spill] sm:$0xff]  ;;  %v19470_v40 = vld [vmem:[#allocation15_spill] sm:$0xff]  ;;  %v19472_v52 = vld [vmem:[#allocation145_spill] sm:$0xff] }
 0x388   : > { %19457 = vst [vmem:[#allocation152_spill] sm:$0xff] %v14697_v22  ;;  %19458 = vst [vmem:[#allocation153_spill] sm:$0xff] %v14700_v55  ;;  %v6831_v56 = vmax.bf16 %v14697_v22, %v6759_v38  ;;  %v6832_v45 = vmax.bf16 %v14700_v55, %v6760_v49  ;;  %v5719_v47 = vmax.bf16 %v19467_v4, %v19466_v15  ;;  %v19471_v50 = vld [vmem:[#allocation35_spill] sm:$0xff]  ;;  %v19475_v28 = vld [vmem:[#allocation85_spill] sm:$0xff] }
 0x389   : > { %19459 = vst [vmem:[#allocation150_spill] sm:$0xff] %v14703_v58  ;;  %19460 = vst [vmem:[#allocation140_spill] sm:$0xff] %v14706_v33  ;;  %v5720_v13 = vmax.bf16 %v19469_v63, %v19468_v41  ;;  %v5730_v5 = vmax.bf16 %v19471_v50, %v19470_v40  ;;  %v5731_v59 = vmax.bf16 %v19473_v24, %v19472_v52  ;;  %v19476_v55 = vld [vmem:[#allocation81_spill] sm:$0xff]  ;;  %v19479_v4 = vld [vmem:[#allocation211_spill] sm:$0xff] }
 0x38a   : > { %19461 = vst [vmem:[#allocation158_spill] sm:$0xff] %v14709_v46  ;;  %19463 = vst [vmem:[#allocation41_spill] sm:$0xff] %v14713_v17  ;;  %v5732_v26 = vmax.bf16 %v19475_v28, %v19474_v25  ;;  %v6878_v11 = vmax.bf16 %v6830_v53, %v14703_v58  ;;  %v6879_v38 = vmax.bf16 %v6831_v56, %v14706_v33  ;;  %v19477_v22 = vld [vmem:[#allocation65_spill] sm:$0xff]  ;;  %v19480_v29 = vld [vmem:[#allocation206_spill] sm:$0xff] }
 0x38b   : > { %v6880_v49 = vmax.bf16 %v6832_v45, %v14709_v46  ;;  %v5778_v15 = vmax.bf16 %v5718_v57, %v19476_v55  ;;  %v5779_v62 = vmax.bf16 %v5719_v47, %v19477_v22  ;;  %v19478_v41 = vld [vmem:[#allocation61_spill] sm:$0xff]  ;;  %v5790_v50 = vmax.bf16 %v5730_v5, %v19479_v4  ;;  %v19482_v53 = vld [vmem:[#allocation78_spill] sm:$0xff]  ;;  %v19483_v56 = vld [vmem:[#allocation28_spill] sm:$0xff] }
 0x38c   : > { %v5780_v63 = vmax.bf16 %v5720_v13, %v19478_v41  ;;  %v5791_v36 = vmax.bf16 %v5731_v59, %v19480_v29  ;;  %v9030_v24 = vrot.slane %v6878_v11, 9  ;;  %v6980_v37 = vrot.slane %v6879_v38, 5  ;;  %v19481_v28 = vld [vmem:[#allocation121_spill] sm:$0xff]  ;;  %v19485_v57 = vld [vmem:[#allocation40_spill] sm:$0xff]  ;;  %v19487_v4 = vld [vmem:[#allocation207_spill] sm:$0xff] }
 0x38d   : > { %v6983_v23 = vrot.slane %v6880_v49, 5  ;;  %v5792_v44 = vmax.bf16 %v5732_v26, %v19481_v28  ;;  %v5838_v58 = vmax.bf16 %v5778_v15, %v19482_v53  ;;  %v5839_v33 = vmax.bf16 %v5779_v62, %v19483_v56  ;;  %v19484_v45 = vld [vmem:[#allocation57_spill] sm:$0xff]  ;;  %v1208_v47 = vld [vmem:[#allocation2 + $0xf0] sm:$0xf] }
 0x38e   : > { %v5840_v46 = vmax.bf16 %v5780_v63, %v19484_v45  ;;  %v5850_v55 = vmax.bf16 %v5790_v50, %v19485_v57  ;;  %v6981_v13 = vsel %vm10899_vm5, %v9030_v24, %v6980_v37  ;;  %v6982_v5 = vrot.slane %v6980_v37, 4  ;;  %v19488_v11 = vld [vmem:[#allocation208_spill] sm:$0xff]  ;;  %v19490_v50 = vld [vmem:[#allocation31_spill] sm:$0xff]  ;;  %v19492_v24 = vld [vmem:[#allocation34_spill] sm:$0xff] }
 0x38f   : > { %v5851_v59 = vmax.bf16 %v5791_v36, %v19487_v4  ;;  %v5852_v38 = vmax.bf16 %v5792_v44, %v19488_v11  ;;  %v5898_v49 = vmax.bf16 %v5838_v58, %v19470_v40  ;;  %v5899_v26 = vmax.bf16 %v5839_v33, %v19472_v52  ;;  %v19494_v33 = vld [vmem:[#allocation170_spill] sm:$0xff]  ;;  %v4364_v53 = vld [vmem:[#allocation2 + $0xf0] sm:$0xc] }
 0x390   : > { %v5900_v15 = vmax.bf16 %v5840_v46, %v19474_v25  ;;  %v14751_v62 = vmax.bf16 %v5850_v55, %v14713_v17  ;;  %v6984_v63 = vsel %vm10899_vm5, %v6982_v5, %v6983_v23  ;;  %v1877_v36 = vshrl.u32 %v1208_v47, 16  ;;  %v19495_v52 = vld [vmem:[#allocation174_spill] sm:$0xff]  ;;  %v2622_v17 = vld [vmem:[#allocation2 + $0xf0] sm:$0xe] }
 0x391   : > { %v14756_v57 = vmax.bf16 %v5851_v59, %v19490_v50  ;;  %v14759_v37 = vmax.bf16 %v5852_v38, %v19492_v24  ;;  %v9046_v44 = vcombine.low %v6981_v13, %v6984_v63  ;;  %v1880_v40 = vshll.u32 %v1208_v47, 16  ;;  %v10176_v59 = vld [vmem:[#allocation2 + $0xf4] sm:$0xf]  ;;  %v19496_v63 = vld [vmem:[#allocation166_spill] sm:$0xff] }
 0x392   : > { %19489 = vst [vmem:[#allocation42_spill] sm:$0xff] %v14751_v62  ;;  %v5958_v58 = vmax.bf16 %v14751_v62, %v5898_v49  ;;  %v1899_v55 = vsel %vm10803_vm2, %v19495_v52, %v19494_v33  ;;  %v1879_v5 = vrot.slane %v1877_v36, 4  ;;  %v8896_v13 = vrot.slane %v2622_v17, 9  ;;  %v19498_v62 = vld [vmem:[#allocation43_spill] sm:$0xff]  ;;  %v14773_v33 = vld [vmem:[#allocation2 + $0xfc] sm:$0x3] }
 0x393   : > { %19491 = vst [vmem:[#allocation148_spill] sm:$0xff] %v14756_v57  ;;  %19493 = vst [vmem:[#allocation149_spill] sm:$0xff] %v14759_v37  ;;  %v5959_v46 = vmax.bf16 %v14756_v57, %v5899_v26  ;;  %v5960_v23 = vmax.bf16 %v14759_v37, %v5900_v15  ;;  %v2556_v50 = vmax.bf16 %v10176_v59, %v1899_v55  ;;  %7858 = vmatprep.mubr.bf16.mxu0 %v9046_v44  ;;  %v19500_v55 = vld [vmem:[#allocation165_spill] sm:$0xff] }
 0x394   : > { %v8970_v38 = vrot.slane %v5958_v58, 10  ;;  %v1882_v24 = vrot.slane %v1880_v40, 5  ;;  %v19497_v49 = vrot.slane %v19496_v63, 5  ;;  %19499 = vst [vmem:[#allocation159_spill] sm:$0xff] %v14773_v33  ;;  %v18223_v26 = vrot.slane %v14773_v33, 5  ;;  %v19505_v57 = vld [vmem:[#allocation185_spill] sm:$0xff] }
 0x395   : > { %v6060_v11 = vrot.slane %v5959_v46, 6  ;;  %v6063_v52 = vrot.slane %v5960_v23, 6  ;;  %v19501_v59 = vrot.slane %v19500_v55, 5  ;;  %v14780_v44 = vld [vmem:[#allocation2 + $0xfc] sm:$0x7]  ;;  %v3749_v58 = vshrl.u32 %v2622_v17, 16 }
 0x396   : > { %v2921_v25 = vsel %vm10899_vm5, %v19498_v62, %v19497_v49  ;;  %v1883_v36 = vor.u32 %v1882_v24, %v1879_v5  ;;  %v3752_v37 = vshll.u32 %v2622_v17, 16  ;;  %v19502_v23 = vld [vmem:[#allocation171_spill] sm:$0xff]  ;;  %v19504_v24 = vld [vmem:[#allocation169_spill] sm:$0xff]  ;;  %v3768_v33 = vshrl.u32 %v14780_v44, 16 }
 0x397   : > { %v3231_v15 = vmax.bf16 %v2921_v25, %v2556_v50  ;;  %v2918_v40 = vsel %vm10899_vm5, %v8896_v13, %v19501_v59  ;;  %v6061_v62 = vsel %vm11111_vm11, %v8970_v38, %v6060_v11  ;;  %v6062_v46 = vrot.slane %v6060_v11, 4  ;;  %v19503_v50 = vld [vmem:[#allocation167_spill] sm:$0xff]  ;;  %v19506_v38 = vld [vmem:[#allocation172_spill] sm:$0xff] }
 0x398   : > { %v2924_v25 = vsel %vm10899_vm5, %v19502_v23, %v18223_v26  ;;  %v3759_v5 = vor.u32 %v19504_v24, %v19503_v50  ;;  %v1884_v49 = vrot.slane %v1883_v36, 4  ;;  %v3751_v59 = vrot.slane %v3749_v58, 5  ;;  %v19507_v11 = vld [vmem:[#allocation175_spill] sm:$0xff]  ;;  %v19508_v23 = vld [vmem:[#allocation36_spill] sm:$0xff] }
 0x399   : > { %v3232_v13 = vmax.bf16 %v2924_v25, %v19505_v57  ;;  %v3754_v4 = vrot.slane %v3752_v37, 6  ;;  %v6064_v17 = vsel %vm11111_vm11, %v6062_v46, %v6063_v52  ;;  %v3764_v56 = vor.u32 %v19507_v11, %v19506_v38 }
 0x39a   : > { %v3761_v45 = vrot.slane %v3759_v5, 4  ;;  %v8986_v22 = vcombine.low %v6061_v62, %v6064_v17  ;;  %v1889_v50 = vsel %vm10803_vm2, %v1884_v49, %v19508_v23  ;;  %v3771_v57 = vshll.u32 %v14780_v44, 16 }
 0x39b   : > { %v3755_v36 = vor.u32 %v3754_v4, %v3751_v59  ;;  %v2555_v58 = vmax.bf16 %v1889_v50, %v1208_v47  ;;  %v3766_v52 = vrot.slane %v3764_v56, 4  ;;  %v3770_v46 = vrot.slane %v3768_v33, 5 }
 0x39c   : > { %v3765_v37 = vsel %vm10967_vm8, %v3761_v45, %v3764_v56  ;;  %7859 = vmatmul.mubr.bf16.gmra.mrb[68].mxu0 %v8986_v22  ;;  %v3773_v24 = vrot.slane %v3771_v57, 6  ;;  %v8924_v11 = vrot.slane %v4364_v53, 10  ;;  %v19509_v62 = vrot.slane %v19500_v55, 6 }
 0x39d   : > { %v3756_v25 = vrot.slane %v3755_v36, 4  ;;  %v4298_v38 = vmax.bf16 %v3765_v37, %v3231_v15  ;;  %v3230_v26 = vmax.bf16 %v2918_v40, %v2555_v58  ;;  %v19510_v49 = vrot.slane %v19496_v63, 6  ;;  %v19513_v58 = vld [vmem:[#allocation112_spill] sm:$0xff]  ;;  %v19514_v37 = vld [vmem:[#allocation125_spill] sm:$0xff] }
 0x39e   : > { %v4605_v17 = vrot.slane %v19509_v62, 4  ;;  %v18224_v59 = vrot.slane %v14780_v44, 6  ;;  %v14810_v45 = vor.u32 %v3773_v24, %v3770_v46  ;;  %v19511_v22 = vmov %v19509_v62  ;;  %v19517_v62 = vld [vmem:[#allocation73_spill] sm:$0xff] }
 0x39f   : > { %v4608_v4 = vrot.slane %v19510_v49, 4  ;;  %v3760_v47 = vsel %vm10967_vm8, %v3756_v25, %v3759_v5  ;;  %v4604_v56 = vsel %vm11111_vm11, %v8924_v11, %v19511_v22  ;;  %v4989_v53 = vmax.bf16 %v19427_v61, %v19422_v8 }
 0x3a0   : > { %v4297_v33 = vmax.bf16 %v3760_v47, %v3230_v26  ;;  %v19512_v15 = vmov %v19510_v49  ;;  %v4990_v55 = vmax.bf16 %v19347_v9, %v19425_v60  ;;  %v3775_v23 = vsel %vm10967_vm8, %v3766_v52, %v14810_v45  ;;  %v19515_v52 = vld [vmem:[#allocation71_spill] sm:$0xff] }
 0x3a1   : > { %v4607_v40 = vsel %vm11111_vm11, %v4605_v17, %v19512_v15  ;;  %v4610_v5 = vsel %vm11111_vm11, %v4608_v4, %v18224_v59  ;;  %v4991_v8 = vmax.bf16 %v19349_v7, %v19339_v16  ;;  %v5037_v63 = vmax.bf16 %v4989_v53, %v19431_v39  ;;  %v19518_v17 = vld [vmem:[#allocation24_spill] sm:$0xff]  ;;  %v19519_v4 = vld [vmem:[#allocation74_spill] sm:$0xff]  ;;  %v19533_v59 = vld [vmem:[#allocation45_spill] sm:$0xff] }
 0x3a2   : > { %v14831_v50 = vmax.bf16 %v4607_v40, %v4298_v38  ;;  %v4299_v26 = vmax.bf16 %v3775_v23, %v3232_v13  ;;  %v14836_v36 = vmax.bf16 %v4604_v56, %v4297_v33  ;;  %v5038_v57 = vmax.bf16 %v4990_v55, %v19434_v19  ;;  %v19521_v56 = vld [vmem:[#allocation33_spill] sm:$0xff] }
 0x3a3   : > { %v897_v46 = vpack.c.bf16 %v19514_v37, %v19513_v58  ;;  %v5039_v60 = vmax.bf16 %v4991_v8, %v19438_v34  ;;  %v5085_v25 = vmax.bf16 %v5037_v63, %v14602_v0  ;;  %v1871_v24 = vshrl.u32 %v19515_v52, 16  ;;  %v19523_v8 = vld [vmem:[#allocation63_spill] sm:$0xff] }
 0x3a4   : > { %v19516_v38 = vrot.slane %v19515_v52, 5  ;;  %v14846_v16 = vmax.bf16 %v4610_v5, %v4299_v26  ;;  %v5086_v13 = vmax.bf16 %v5038_v57, %v19517_v62  ;;  %v3747_v49 = vrot.slane %v19518_v17, 4  ;;  %v19524_v58 = vld [vmem:[#allocation39_spill] sm:$0xff] }
 0x3a5   : > { %v19520_v47 = vrot.slane %v19519_v4, 6  ;;  %v5087_v53 = vmax.bf16 %v5039_v60, %v19521_v56  ;;  %v5133_v33 = vmax.bf16 %v5085_v25, %v14836_v36  ;;  %v1873_v15 = vrot.slane %v1871_v24, 4  ;;  %v1207_v52 = vld [vmem:[#allocation2 + $0xec] sm:$0x1] }
 0x3a6   : > { %v2914_v11 = vrot.slane %v19516_v38, 4  ;;  %v14855_v40 = vrot.slane %v19517_v62, 6  ;;  %v5134_v55 = vmax.bf16 %v5086_v13, %v14831_v50  ;;  %v5513_v5 = vrot.slane %v19521_v56, 6 }
 0x3a7   : > { %v4600_v22 = vrot.slane %v19520_v47, 4  ;;  %v9015_v23 = vrot.slane %v14602_v0, 10  ;;  %v6545_v63 = vmax.bf16 %v14261_v31, %v19523_v8  ;;  %v5135_v26 = vmax.bf16 %v5087_v53, %v14846_v16 }
 0x3a8   : > { %19522 = vst [vmem:[#allocation160_spill] sm:$0xff] %v14855_v40  ;;  %v8944_v57 = vrot.slane %v5133_v33, 11  ;;  %v1874_v37 = vor.u32 %v1873_v15, %v19524_v58  ;;  %v5512_v60 = vrot.slane %v14855_v40, 4  ;;  %v5262_v25 = vrot.slane %v5134_v55, 7 }
 0x3a9   : > { %v5515_v24 = vrot.slane %v5513_v5, 4  ;;  %v6333_v38 = vsel %vm11111_vm11, %v9015_v23, %v14855_v40  ;;  %v6546_v13 = vmax.bf16 %v14265_v42, %v14252_v10  ;;  %v5265_v17 = vrot.slane %v5135_v26, 7  ;;  %v19528_v26 = vld [vmem:[#allocation154_spill] sm:$0xff] }
 0x3aa   : > { %v1875_v4 = vrot.slane %v1874_v37, 4  ;;  %v5514_v47 = vsel %vm11111_vm11, %v5512_v60, %v5513_v5  ;;  %v6437_v53 = vmax.bf16 %v6333_v38, %v14602_v0  ;;  %v5263_v33 = vsel %vm12245_vm14, %v8944_v57, %v5262_v25  ;;  %v19529_v5 = vld [vmem:[#allocation51_spill] sm:$0xff] }
 0x3ab   : > { %v5264_v15 = vrot.slane %v5262_v25, 4  ;;  %v14876_v55 = vmax.bf16 %v5514_v47, %v19517_v62  ;;  %v14879_v8 = vmax.bf16 %v5515_v24, %v19521_v56  ;;  %v6547_v58 = vmax.bf16 %v14271_v3, %v19528_v26  ;;  %v19531_v25 = vld [vmem:[#allocation188_spill] sm:$0xff] }
 0x3ac   : > { %v2554_v23 = vmax.bf16 %v1875_v4, %v1207_v52  ;;  %v14882_v10 = vmax.bf16 %v6437_v53, %v19517_v62  ;;  %v6557_v37 = vmax.bf16 %v14316_v21, %v19529_v5  ;;  %v6558_v24 = vmax.bf16 %v14320_v6, %v19531_v25  ;;  %v19532_v53 = vld [vmem:[#allocation53_spill] sm:$0xff] }
 0x3ad   : > { %19525 = vst [vmem:[#allocation147_spill] sm:$0xff] %v14876_v55  ;;  %19526 = vst [vmem:[#allocation69_spill] sm:$0xff] %v14879_v8  ;;  %v5266_v57 = vsel %vm12245_vm14, %v5264_v15, %v5265_v17  ;;  %v14892_v60 = vmax.bf16 %v14876_v55, %v19521_v56  ;;  %v6559_v52 = vmax.bf16 %v14326_v1, %v14313_v54  ;;  %v19536_v1 = vld [vmem:[#allocation46_spill] sm:$0xff]  ;;  %v19537_v21 = vld [vmem:[#allocation37_spill] sm:$0xff] }
 0x3ae   : > { %19527 = vst [vmem:[#allocation131_spill] sm:$0xff] %v14882_v10  ;;  %v8960_v38 = vcombine.low %v5263_v33, %v5266_v57  ;;  %v3229_v4 = vmax.bf16 %v2914_v11, %v2554_v23  ;;  %v6569_v47 = vmax.bf16 %v14368_v12, %v14355_v48  ;;  %v6570_v26 = vmax.bf16 %v14372_v43, %v19532_v53  ;;  %v19534_v11 = vld [vmem:[#allocation23_spill] sm:$0xff]  ;;  %v19535_v57 = vld [vmem:[#allocation116_spill] sm:$0xff] }
 0x3af   : > { %19530 = vst [vmem:[#allocation198_spill] sm:$0xff] %v14892_v60  ;;  %v6571_v17 = vmax.bf16 %v14378_v30, %v19533_v59  ;;  %v6617_v15 = vmax.bf16 %v6545_v63, %v14277_v2  ;;  %v6618_v55 = vmax.bf16 %v6546_v13, %v14281_v35  ;;  %v6619_v40 = vmax.bf16 %v6547_v58, %v14287_v20  ;;  %v19538_v30 = vld [vmem:[#allocation187_spill] sm:$0xff]  ;;  %v19539_v63 = vld [vmem:[#allocation190_spill] sm:$0xff]  ;;  %v19540_v35 = vld [vmem:[#allocation193_spill] sm:$0xff] }
 0x3b0   : > { %7725 = vmatprep.mubr.bf16.mxu1 %v8960_v38  ;;  %v4296_v6 = vmax.bf16 %v3747_v49, %v3229_v4  ;;  %v6629_v33 = vmax.bf16 %v6557_v37, %v14329_v18  ;;  %v6630_v23 = vmax.bf16 %v6558_v24, %v19534_v11  ;;  %v6631_v12 = vmax.bf16 %v6559_v52, %v19535_v57  ;;  %v19541_v38 = vld [vmem:[#allocation54_spill] sm:$0xff]  ;;  %v19542_v4 = vld [vmem:[#allocation27_spill] sm:$0xff]  ;;  %v19543_v18 = vld [vmem:[#allocation52_spill] sm:$0xff] }
 0x3b1   : > { %7726 = vmatmul.mubr.bf16.gmra.mrb[28].mxu1 %v897_v46  ;;  %v6641_v43 = vmax.bf16 %v6569_v47, %v19536_v1  ;;  %v6642_v3 = vmax.bf16 %v6570_v26, %v19537_v21  ;;  %v6643_v42 = vmax.bf16 %v6571_v17, %v19538_v30  ;;  %v6689_v14 = vmax.bf16 %v6617_v15, %v19539_v63  ;;  %v19544_v11 = vld [vmem:[#allocation58_spill] sm:$0xff] }
 0x3b2   : > { %v4915_v13 = vmax.bf16 %v4600_v22, %v4296_v6  ;;  %v6690_v58 = vmax.bf16 %v6618_v55, %v19540_v35  ;;  %v6691_v49 = vmax.bf16 %v6619_v40, %v19541_v38  ;;  %v6701_v37 = vmax.bf16 %v6629_v33, %v19542_v4  ;;  %v19545_v46 = vld [vmem:[#allocation134_spill] sm:$0xff]  ;;  %v19555_v33 = vld [vmem:[#allocation19_spill] sm:$0xff] }
 0x3b3   : > { %v6702_v24 = vmax.bf16 %v6630_v23, %v19543_v18  ;;  %v6703_v52 = vmax.bf16 %v6631_v12, %v19544_v11  ;;  %v6713_v57 = vmax.bf16 %v6641_v43, %v19545_v46  ;;  %v19546_v47 = vld [vmem:[#allocation22_spill] sm:$0xff]  ;;  %v6761_v6 = vmax.bf16 %v6689_v14, %v19529_v5 }
 0x3b4   : > { %v6714_v1 = vmax.bf16 %v6642_v3, %v19546_v47  ;;  %v14922_v26 = vmax.bf16 %v14879_v8, %v4915_v13  ;;  %v19548_v17 = vld [vmem:[#allocation26_spill] sm:$0xff]  ;;  %v6762_v22 = vmax.bf16 %v6690_v58, %v19531_v25  ;;  %v6763_v40 = vmax.bf16 %v6691_v49, %v14313_v54  ;;  %v19560_v8 = vld [vmem:[#allocation65_spill] sm:$0xff]  ;;  %v19570_v25 = vld [vmem:[#allocation207_spill] sm:$0xff] }
 0x3b5   : > { %v6715_v15 = vmax.bf16 %v6643_v42, %v19548_v17  ;;  %v14929_v55 = vmax.bf16 %v6701_v37, %v14355_v48  ;;  %v14932_v12 = vmax.bf16 %v6702_v24, %v19532_v53  ;;  %v14935_v43 = vmax.bf16 %v6703_v52, %v19533_v59  ;;  %v19557_v37 = vld [vmem:[#allocation62_spill] sm:$0xff]  ;;  %v19558_v24 = vld [vmem:[#allocation81_spill] sm:$0xff]  ;;  %v19559_v52 = vld [vmem:[#allocation64_spill] sm:$0xff] }
 0x3b6   : > { %19547 = vst [vmem:[#allocation95_spill] sm:$0xff] %v14922_v26  ;;  %v14938_v3 = vmax.bf16 %v6713_v57, %v14882_v10  ;;  %v14941_v42 = vmax.bf16 %v6714_v1, %v14892_v60  ;;  %v14948_v23 = vmax.bf16 %v19555_v33, %v19427_v61  ;;  %v5721_v57 = vmax.bf16 %v19558_v24, %v19557_v37  ;;  %v19561_v60 = vld [vmem:[#allocation66_spill] sm:$0xff]  ;;  %v19563_v10 = vld [vmem:[#allocation211_spill] sm:$0xff]  ;;  %v19564_v33 = vld [vmem:[#allocation16_spill] sm:$0xff] }
 0x3b7   : > { %19549 = vst [vmem:[#allocation72_spill] sm:$0xff] %v14929_v55  ;;  %19550 = vst [vmem:[#allocation98_spill] sm:$0xff] %v14932_v12  ;;  %v14944_v14 = vmax.bf16 %v6715_v15, %v14922_v26  ;;  %v6833_v13 = vmax.bf16 %v14929_v55, %v6761_v6  ;;  %v6834_v58 = vmax.bf16 %v14932_v12, %v6762_v22  ;;  %v19562_v26 = vld [vmem:[#allocation35_spill] sm:$0xff]  ;;  %v19566_v12 = vld [vmem:[#allocation78_spill] sm:$0xff] }
 0x3b8   : > { %19551 = vst [vmem:[#allocation100_spill] sm:$0xff] %v14935_v43  ;;  %19552 = vst [vmem:[#allocation137_spill] sm:$0xff] %v14938_v3  ;;  %v6835_v49 = vmax.bf16 %v14935_v43, %v6763_v40  ;;  %v5722_v1 = vmax.bf16 %v19560_v8, %v19559_v52  ;;  %v5723_v15 = vmax.bf16 %v19478_v41, %v19561_v60  ;;  %v19565_v43 = vld [vmem:[#allocation85_spill] sm:$0xff]  ;;  %v19567_v55 = vld [vmem:[#allocation28_spill] sm:$0xff] }
 0x3b9   : > { %19553 = vst [vmem:[#allocation92_spill] sm:$0xff] %v14941_v42  ;;  %19554 = vst [vmem:[#allocation142_spill] sm:$0xff] %v14944_v14  ;;  %v5733_v59 = vmax.bf16 %v19563_v10, %v19562_v26  ;;  %v5734_v53 = vmax.bf16 %v19480_v29, %v19564_v33  ;;  %v6881_v6 = vmax.bf16 %v6833_v13, %v14938_v3  ;;  %v19568_v60 = vld [vmem:[#allocation57_spill] sm:$0xff]  ;;  %v19569_v24 = vld [vmem:[#allocation40_spill] sm:$0xff] }
 0x3ba   : > { %19556 = vst [vmem:[#allocation135_spill] sm:$0xff] %v14948_v23  ;;  %v6882_v22 = vmax.bf16 %v6834_v58, %v14941_v42  ;;  %v6883_v40 = vmax.bf16 %v6835_v49, %v14944_v14  ;;  %v5735_v37 = vmax.bf16 %v19481_v28, %v19565_v43  ;;  %v5781_v52 = vmax.bf16 %v5721_v57, %v19566_v12  ;;  %v19571_v3 = vld [vmem:[#allocation208_spill] sm:$0xff]  ;;  %v19572_v42 = vld [vmem:[#allocation15_spill] sm:$0xff]  ;;  %v19573_v14 = vld [vmem:[#allocation145_spill] sm:$0xff] }
 0x3bb   : > { %v5782_v8 = vmax.bf16 %v5722_v1, %v19567_v55  ;;  %v5783_v41 = vmax.bf16 %v5723_v15, %v19568_v60  ;;  %v5793_v10 = vmax.bf16 %v5733_v59, %v19569_v24  ;;  %v9031_v48 = vrot.slane %v6881_v6, 9  ;;  %v19574_v28 = vld [vmem:[#allocation79_spill] sm:$0xff]  ;;  %v1212_v57 = vld [vmem:[#allocation2 + $0x100] sm:$0xf]  ;;  %v19576_v60 = vld [vmem:[#allocation41_spill] sm:$0xff] }
 0x3bc   : > { %v6987_v54 = vrot.slane %v6882_v22, 5  ;;  %v6990_v29 = vrot.slane %v6883_v40, 5  ;;  %v5794_v13 = vmax.bf16 %v5734_v53, %v19570_v25  ;;  %v5795_v58 = vmax.bf16 %v5735_v37, %v19571_v3  ;;  %v19577_v6 = vld [vmem:[#allocation31_spill] sm:$0xff]  ;;  %v19578_v40 = vld [vmem:[#allocation34_spill] sm:$0xff] }
 0x3bd   : > { %v5841_v49 = vmax.bf16 %v5781_v52, %v19572_v42  ;;  %v5842_v5 = vmax.bf16 %v5782_v8, %v19573_v14  ;;  %v5843_v17 = vmax.bf16 %v5783_v41, %v19574_v28  ;;  %v5853_v59 = vmax.bf16 %v5793_v10, %v19576_v60  ;;  %v4365_v42 = vld [vmem:[#allocation2 + $0x100] sm:$0xc] }
 0x3be   : > { %v6988_v1 = vsel %vm10899_vm5, %v9031_v48, %v6987_v54  ;;  %v6989_v15 = vrot.slane %v6987_v54, 4  ;;  %v5854_v22 = vmax.bf16 %v5794_v13, %v19577_v6  ;;  %v5855_v24 = vmax.bf16 %v5795_v58, %v19578_v40  ;;  %v19580_v48 = vld [vmem:[#allocation38_spill] sm:$0xff]  ;;  %v19582_v13 = vld [vmem:[#allocation83_spill] sm:$0xff] }
 0x3bf   : > { %v5901_v53 = vmax.bf16 %v5841_v49, %v19562_v26  ;;  %v5902_v37 = vmax.bf16 %v5842_v5, %v19564_v33  ;;  %v5903_v52 = vmax.bf16 %v5843_v17, %v19565_v43  ;;  %v14988_v8 = vmax.bf16 %v5853_v59, %v14948_v23  ;;  %v19584_v49 = vld [vmem:[#allocation181_spill] sm:$0xff]  ;;  %v19585_v26 = vld [vmem:[#allocation180_spill] sm:$0xff]  ;;  %v10178_v59 = vld [vmem:[#allocation2 + $0x104] sm:$0xf] }
 0x3c0   : > { %v6991_v41 = vsel %vm10899_vm5, %v6989_v15, %v6990_v29  ;;  %v14991_v54 = vmax.bf16 %v5854_v22, %v19580_v48  ;;  %v1916_v10 = vshrl.u32 %v1212_v57, 16  ;;  %v14994_v6 = vmax.bf16 %v5855_v24, %v19582_v13  ;;  %v2623_v22 = vld [vmem:[#allocation2 + $0x100] sm:$0xe]  ;;  %v19586_v13 = vld [vmem:[#allocation173_spill] sm:$0xff]  ;;  %v19588_v43 = vld [vmem:[#allocation179_spill] sm:$0xff] }
 0x3c1   : > { %19579 = vst [vmem:[#allocation141_spill] sm:$0xff] %v14988_v8  ;;  %v9047_v60 = vcombine.low %v6988_v1, %v6991_v41  ;;  %v1919_v58 = vshll.u32 %v1212_v57, 16  ;;  %v1938_v5 = vsel %vm10803_vm2, %v19585_v26, %v19584_v49  ;;  %v5961_v17 = vmax.bf16 %v14988_v8, %v5901_v53  ;;  %v15008_v53 = vld [vmem:[#allocation2 + $0x10c] sm:$0x3]  ;;  %v19594_v8 = vld [vmem:[#allocation177_spill] sm:$0xff] }
 0x3c2   : > { %19581 = vst [vmem:[#allocation151_spill] sm:$0xff] %v14991_v54  ;;  %19583 = vst [vmem:[#allocation32_spill] sm:$0xff] %v14994_v6  ;;  %v5962_v29 = vmax.bf16 %v14991_v54, %v5902_v37  ;;  %v1918_v15 = vrot.slane %v1916_v10, 4  ;;  %v2560_v23 = vmax.bf16 %v10178_v59, %v1938_v5  ;;  %v5963_v1 = vmax.bf16 %v14994_v6, %v5903_v52 }
 0x3c3   : > { %7868 = vmatprep.mubr.bf16.mxu0 %v9047_v60  ;;  %v1921_v41 = vrot.slane %v1919_v58, 5  ;;  %v8897_v24 = vrot.slane %v2623_v22, 9  ;;  %v19587_v48 = vrot.slane %v19586_v13, 5  ;;  %v8971_v26 = vrot.slane %v5961_v17, 10  ;;  %19589 = vst [vmem:[#allocation21_spill] sm:$0xff] %v15008_v53  ;;  %v19590_v60 = vld [vmem:[#allocation168_spill] sm:$0xff] }
 0x3c4   : > { %v6067_v49 = vrot.slane %v5962_v29, 6  ;;  %v18282_v37 = vrot.slane %v15008_v53, 5  ;;  %v6070_v5 = vrot.slane %v5963_v1, 6  ;;  %v19591_v54 = vrot.slane %v19590_v60, 5  ;;  %v15015_v58 = vld [vmem:[#allocation2 + $0x10c] sm:$0x7] }
 0x3c5   : > { %v2932_v33 = vsel %vm10899_vm5, %v19588_v43, %v19587_v48  ;;  %v1922_v59 = vor.u32 %v1921_v41, %v1918_v15  ;;  %v3778_v6 = vshrl.u32 %v2623_v22, 16  ;;  %v19592_v17 = vld [vmem:[#allocation183_spill] sm:$0xff]  ;;  %v3797_v53 = vshrl.u32 %v15015_v58, 16 }
 0x3c6   : > { %v3235_v10 = vmax.bf16 %v2932_v33, %v2560_v23  ;;  %v2929_v52 = vsel %vm10899_vm5, %v8897_v24, %v19591_v54  ;;  %v6068_v43 = vsel %vm11111_vm11, %v8971_v26, %v6067_v49  ;;  %v6069_v48 = vrot.slane %v6067_v49, 4  ;;  %v19593_v15 = vld [vmem:[#allocation191_spill] sm:$0xff]  ;;  %v19595_v54 = vld [vmem:[#allocation178_spill] sm:$0xff]  ;;  %v19597_v49 = vld [vmem:[#allocation184_spill] sm:$0xff] }
 0x3c7   : > { %v2935_v23 = vsel %vm10899_vm5, %v19592_v17, %v18282_v37  ;;  %v3781_v33 = vshll.u32 %v2623_v22, 16  ;;  %v1923_v29 = vrot.slane %v1922_v59, 4  ;;  %v3780_v41 = vrot.slane %v3778_v6, 5  ;;  %v19596_v26 = vld [vmem:[#allocation182_spill] sm:$0xff]  ;;  %v19598_v17 = vld [vmem:[#allocation176_spill] sm:$0xff] }
 0x3c8   : > { %v3236_v1 = vmax.bf16 %v2935_v23, %v19593_v15  ;;  %v3788_v24 = vor.u32 %v19595_v54, %v19594_v8  ;;  %v6071_v40 = vsel %vm11111_vm11, %v6069_v48, %v6070_v5  ;;  %v3793_v14 = vor.u32 %v19597_v49, %v19596_v26 }
 0x3c9   : > { %v3783_v28 = vrot.slane %v3781_v33, 6  ;;  %v8987_v12 = vcombine.low %v6068_v43, %v6071_v40  ;;  %v1928_v22 = vsel %vm10803_vm2, %v1923_v29, %v19598_v17  ;;  %v3800_v6 = vshll.u32 %v15015_v58, 16 }
 0x3ca   : > { %v3790_v59 = vrot.slane %v3788_v24, 4  ;;  %v2559_v23 = vmax.bf16 %v1928_v22, %v1212_v57  ;;  %v3795_v15 = vrot.slane %v3793_v14, 4  ;;  %v3799_v54 = vrot.slane %v3797_v53, 5 }
 0x3cb   : > { %v3784_v8 = vor.u32 %v3783_v28, %v3780_v41  ;;  %7869 = vmatmul.mubr.bf16.gmra.mrb[72].mxu0 %v8987_v12  ;;  %v3802_v48 = vrot.slane %v3800_v6, 6  ;;  %v8925_v33 = vrot.slane %v4365_v42, 10  ;;  %v19599_v26 = vrot.slane %v19590_v60, 6  ;;  %v19603_v6 = vld [vmem:[#allocation127_spill] sm:$0xff] }
 0x3cc   : > { %v3794_v5 = vsel %vm10967_vm8, %v3790_v59, %v3793_v14  ;;  %v3234_v43 = vmax.bf16 %v2929_v52, %v2559_v23  ;;  %v19600_v29 = vrot.slane %v19586_v13, 6  ;;  %v18284_v57 = vrot.slane %v15015_v58, 6 }
 0x3cd   : > { %v4616_v40 = vrot.slane %v19599_v26, 4  ;;  %v3785_v49 = vrot.slane %v3784_v8, 4  ;;  %v4302_v37 = vmax.bf16 %v3794_v5, %v3235_v10  ;;  %v15042_v51 = vor.u32 %v3802_v48, %v3799_v54  ;;  %v19605_v54 = vld [vmem:[#allocation159_spill] sm:$0xff] }
 0x3ce   : > { %v4619_v17 = vrot.slane %v19600_v29, 4  ;;  %v19601_v28 = vmov %v19599_v26  ;;  %v19602_v14 = vmov %v19600_v29  ;;  %v4992_v52 = vmax.bf16 %v19431_v39, %v19427_v61 }
 0x3cf   : > { %v4615_v12 = vsel %vm11111_vm11, %v8925_v33, %v19601_v28  ;;  %v4618_v42 = vsel %vm11111_vm11, %v4616_v40, %v19602_v14  ;;  %v3789_v53 = vsel %vm10967_vm8, %v3785_v49, %v3788_v24  ;;  %v4993_v60 = vmax.bf16 %v19434_v19, %v19347_v9  ;;  %v19604_v9 = vld [vmem:[#allocation146_spill] sm:$0xff] }
 0x3d0   : > { %v15055_v10 = vmax.bf16 %v4618_v42, %v4302_v37  ;;  %v3804_v13 = vsel %vm10967_vm8, %v3795_v15, %v15042_v51  ;;  %v4301_v41 = vmax.bf16 %v3789_v53, %v3234_v43  ;;  %v4621_v22 = vsel %vm11111_vm11, %v4619_v17, %v18284_v57 }
 0x3d1   : > { %v4994_v37 = vmax.bf16 %v19438_v34, %v19349_v7  ;;  %v4303_v24 = vmax.bf16 %v3804_v13, %v3236_v1  ;;  %v5040_v59 = vmax.bf16 %v4992_v52, %v14602_v0  ;;  %v5041_v61 = vmax.bf16 %v4993_v60, %v19517_v62 }
 0x3d2   : > { %v898_v23 = vpack.c.bf16 %v19604_v9, %v19603_v6  ;;  %v15074_v8 = vmax.bf16 %v4615_v12, %v4301_v41  ;;  %v1910_v5 = vshrl.u32 %v19605_v54, 16  ;;  %v19606_v48 = vrot.slane %v19605_v54, 5 }
 0x3d3   : > { %v5042_v15 = vmax.bf16 %v4994_v37, %v19521_v56  ;;  %v15080_v26 = vmax.bf16 %v4621_v22, %v4303_v24  ;;  %v5088_v7 = vmax.bf16 %v5040_v59, %v14836_v36  ;;  %v5089_v1 = vmax.bf16 %v5041_v61, %v14831_v50  ;;  %v1211_v37 = vld [vmem:[#allocation2 + $0xfc] sm:$0x1] }
 0x3d4   : > { %v2925_v33 = vrot.slane %v19606_v48, 4  ;;  %v3776_v40 = vrot.slane %v14810_v45, 4  ;;  %v1912_v49 = vrot.slane %v1910_v5, 4  ;;  %v19607_v29 = vrot.slane %v14780_v44, 6  ;;  %v19609_v45 = vld [vmem:[#allocation47_spill] sm:$0xff] }
 0x3d5   : > { %v5090_v43 = vmax.bf16 %v5042_v15, %v14846_v16  ;;  %v15089_v28 = vrot.slane %v14831_v50, 6  ;;  %v5136_v12 = vmax.bf16 %v5088_v7, %v15074_v8  ;;  %v5137_v14 = vmax.bf16 %v5089_v1, %v15055_v10 }
 0x3d6   : > { %v4611_v17 = vrot.slane %v19607_v29, 4  ;;  %v5518_v42 = vrot.slane %v14846_v16, 6  ;;  %v9016_v53 = vrot.slane %v14836_v36, 10  ;;  %v1913_v60 = vor.u32 %v1912_v49, %v19609_v45  ;;  %v19614_v49 = vld [vmem:[#allocation189_spill] sm:$0xff]  ;;  %v19617_v45 = vld [vmem:[#allocation128_spill] sm:$0xff] }
 0x3d7   : > { %19608 = vst [vmem:[#allocation214_spill] sm:$0xff] %v15089_v28  ;;  %v5138_v52 = vmax.bf16 %v5090_v43, %v15080_v26  ;;  %v5517_v13 = vrot.slane %v15089_v28, 4  ;;  %v6548_v44 = vmax.bf16 %v14277_v2, %v14261_v31  ;;  %v8945_v41 = vrot.slane %v5136_v12, 11  ;;  %v19613_v43 = vld [vmem:[#allocation124_spill] sm:$0xff]  ;;  %v19615_v12 = vld [vmem:[#allocation186_spill] sm:$0xff] }
 0x3d8   : > { %v5269_v22 = vrot.slane %v5137_v14, 7  ;;  %v5520_v24 = vrot.slane %v5518_v42, 4  ;;  %v6336_v59 = vsel %vm11111_vm11, %v9016_v53, %v15089_v28  ;;  %v1914_v6 = vrot.slane %v1913_v60, 4  ;;  %v19626_v28 = vld [vmem:[#allocation26_spill] sm:$0xff] }
 0x3d9   : > { %v5272_v61 = vrot.slane %v5138_v52, 7  ;;  %v5519_v9 = vsel %vm11111_vm11, %v5517_v13, %v5518_v42  ;;  %v6438_v15 = vmax.bf16 %v6336_v59, %v14836_v36  ;;  %v6549_v29 = vmax.bf16 %v19614_v49, %v19613_v43  ;;  %v19616_v52 = vld [vmem:[#allocation77_spill] sm:$0xff]  ;;  %v19618_v13 = vld [vmem:[#allocation96_spill] sm:$0xff]  ;;  %v19624_v49 = vld [vmem:[#allocation55_spill] sm:$0xff] }
 0x3da   : > { %v5270_v5 = vsel %vm12245_vm14, %v8945_v41, %v5269_v22  ;;  %v5271_v48 = vrot.slane %v5269_v22, 4  ;;  %v15109_v31 = vmax.bf16 %v5519_v9, %v14831_v50  ;;  %v15112_v2 = vmax.bf16 %v5520_v24, %v14846_v16  ;;  %v19619_v41 = vld [vmem:[#allocation23_spill] sm:$0xff]  ;;  %v19620_v59 = vld [vmem:[#allocation20_spill] sm:$0xff] }
 0x3db   : > { %v2558_v7 = vmax.bf16 %v1914_v6, %v1211_v37  ;;  %v15115_v1 = vmax.bf16 %v6438_v15, %v14831_v50  ;;  %v6550_v14 = vmax.bf16 %v14287_v20, %v19615_v12  ;;  %v6560_v60 = vmax.bf16 %v19617_v45, %v19616_v52  ;;  %v19621_v6 = vld [vmem:[#allocation116_spill] sm:$0xff]  ;;  %v19622_v15 = vld [vmem:[#allocation18_spill] sm:$0xff] }
 0x3dc   : > { %19611 = vst [vmem:[#allocation138_spill] sm:$0xff] %v15109_v31  ;;  %19612 = vst [vmem:[#allocation143_spill] sm:$0xff] %v15112_v2  ;;  %v5273_v42 = vsel %vm12245_vm14, %v5271_v48, %v5272_v61  ;;  %v15125_v53 = vmax.bf16 %v15109_v31, %v14846_v16  ;;  %v6561_v22 = vmax.bf16 %v19619_v41, %v19618_v13  ;;  %v19623_v20 = vld [vmem:[#allocation46_spill] sm:$0xff]  ;;  %v19625_v48 = vld [vmem:[#allocation56_spill] sm:$0xff] }
 0x3dd   : > { %v8961_v37 = vcombine.low %v5270_v5, %v5273_v42  ;;  %v3233_v24 = vmax.bf16 %v2925_v33, %v2558_v7  ;;  %v6562_v9 = vmax.bf16 %v19621_v6, %v19620_v59  ;;  %v6572_v43 = vmax.bf16 %v19623_v20, %v19622_v15 }
 0x3de   : > { %v6573_v61 = vmax.bf16 %v19537_v21, %v19624_v49  ;;  %v6574_v12 = vmax.bf16 %v19538_v30, %v19625_v48  ;;  %v6620_v57 = vmax.bf16 %v6548_v44, %v19539_v63  ;;  %v6621_v45 = vmax.bf16 %v6549_v29, %v19540_v35  ;;  %v19627_v44 = vld [vmem:[#allocation51_spill] sm:$0xff]  ;;  %v19628_v29 = vld [vmem:[#allocation188_spill] sm:$0xff] }
 0x3df   : > { %7735 = vmatprep.mubr.bf16.mxu1 %v8961_v37  ;;  %v4300_v41 = vmax.bf16 %v3776_v40, %v3233_v24  ;;  %v6622_v33 = vmax.bf16 %v6550_v14, %v19541_v38  ;;  %v6632_v5 = vmax.bf16 %v6560_v60, %v19542_v4  ;;  %v6633_v7 = vmax.bf16 %v6561_v22, %v19543_v18  ;;  %v19629_v37 = vld [vmem:[#allocation192_spill] sm:$0xff]  ;;  %v19630_v14 = vld [vmem:[#allocation49_spill] sm:$0xff] }
 0x3e0   : > { %7736 = vmatmul.mubr.bf16.gmra.mrb[32].mxu1 %v898_v23  ;;  %v6634_v42 = vmax.bf16 %v6562_v9, %v19544_v11  ;;  %v6644_v6 = vmax.bf16 %v6572_v43, %v19545_v46  ;;  %v6645_v31 = vmax.bf16 %v6573_v61, %v19546_v47  ;;  %v6646_v30 = vmax.bf16 %v6574_v12, %v19626_v28  ;;  %v19631_v60 = vld [vmem:[#allocation53_spill] sm:$0xff]  ;;  %v19633_v11 = vld [vmem:[#allocation131_spill] sm:$0xff]  ;;  %v19634_v43 = vld [vmem:[#allocation198_spill] sm:$0xff] }
 0x3e1   : > { %v4919_v63 = vmax.bf16 %v4611_v17, %v4300_v41  ;;  %v6692_v35 = vmax.bf16 %v6620_v57, %v19627_v44  ;;  %v6693_v40 = vmax.bf16 %v6621_v45, %v19628_v29  ;;  %v6694_v38 = vmax.bf16 %v6622_v33, %v19629_v37  ;;  %v19632_v23 = vld [vmem:[#allocation45_spill] sm:$0xff]  ;;  %v19635_v17 = vld [vmem:[#allocation95_spill] sm:$0xff] }
 0x3e2   : > { %v6704_v4 = vmax.bf16 %v6632_v5, %v19630_v14  ;;  %v6705_v18 = vmax.bf16 %v6633_v7, %v19631_v60  ;;  %v6706_v22 = vmax.bf16 %v6634_v42, %v19632_v23  ;;  %v6716_v24 = vmax.bf16 %v6644_v6, %v19633_v11  ;;  %v19646_v44 = vld [vmem:[#allocation65_spill] sm:$0xff]  ;;  %v19650_v14 = vld [vmem:[#allocation40_spill] sm:$0xff]  ;;  %v19651_v23 = vld [vmem:[#allocation206_spill] sm:$0xff] }
 0x3e3   : > { %v15156_v9 = vmax.bf16 %v15112_v2, %v4919_v63  ;;  %v6717_v61 = vmax.bf16 %v6645_v31, %v19634_v43  ;;  %v6718_v12 = vmax.bf16 %v6646_v30, %v19635_v17  ;;  %v6764_v57 = vmax.bf16 %v6692_v35, %v19616_v52  ;;  %v19647_v29 = vld [vmem:[#allocation61_spill] sm:$0xff]  ;;  %v19660_v2 = vld [vmem:[#allocation16_spill] sm:$0xff] }
 0x3e4   : > { %v6765_v45 = vmax.bf16 %v6693_v40, %v19618_v13  ;;  %v6766_v41 = vmax.bf16 %v6694_v38, %v19620_v59  ;;  %v15164_v33 = vmax.bf16 %v6704_v4, %v19622_v15  ;;  %v15167_v5 = vmax.bf16 %v6705_v18, %v19624_v49  ;;  %v19642_v59 = vld [vmem:[#allocation80_spill] sm:$0xff]  ;;  %v19644_v49 = vld [vmem:[#allocation81_spill] sm:$0xff]  ;;  %v19649_v38 = vld [vmem:[#allocation211_spill] sm:$0xff] }
 0x3e5   : > { %v15170_v7 = vmax.bf16 %v6706_v22, %v19625_v48  ;;  %v15173_v42 = vmax.bf16 %v6716_v24, %v15115_v1  ;;  %v15176_v30 = vmax.bf16 %v6717_v61, %v15125_v53  ;;  %v15179_v31 = vmax.bf16 %v6718_v12, %v15156_v9  ;;  %v19645_v48 = vld [vmem:[#allocation78_spill] sm:$0xff]  ;;  %v19648_v40 = vld [vmem:[#allocation57_spill] sm:$0xff] }
 0x3e6   : > { %19636 = vst [vmem:[#allocation170_spill] sm:$0xff] %v15164_v33  ;;  %19637 = vst [vmem:[#allocation174_spill] sm:$0xff] %v15167_v5  ;;  %v6836_v52 = vmax.bf16 %v15164_v33, %v6764_v57  ;;  %v6837_v13 = vmax.bf16 %v15167_v5, %v6765_v45  ;;  %v15185_v15 = vmax.bf16 %v19642_v59, %v19431_v39  ;;  %v19652_v24 = vld [vmem:[#allocation121_spill] sm:$0xff]  ;;  %v19653_v57 = vld [vmem:[#allocation15_spill] sm:$0xff] }
 0x3e7   : > { %19638 = vst [vmem:[#allocation166_spill] sm:$0xff] %v15170_v7  ;;  %19639 = vst [vmem:[#allocation43_spill] sm:$0xff] %v15173_v42  ;;  %v5724_v6 = vmax.bf16 %v19645_v48, %v19644_v49  ;;  %v6838_v63 = vmax.bf16 %v15170_v7, %v6766_v41  ;;  %v5725_v35 = vmax.bf16 %v19567_v55, %v19646_v44  ;;  %v19654_v45 = vld [vmem:[#allocation145_spill] sm:$0xff]  ;;  %v19655_v59 = vld [vmem:[#allocation79_spill] sm:$0xff] }
 0x3e8   : > { %19640 = vst [vmem:[#allocation165_spill] sm:$0xff] %v15176_v30  ;;  %19641 = vst [vmem:[#allocation171_spill] sm:$0xff] %v15179_v31  ;;  %v5726_v37 = vmax.bf16 %v19648_v40, %v19647_v29  ;;  %v5736_v4 = vmax.bf16 %v19650_v14, %v19649_v38  ;;  %v6884_v60 = vmax.bf16 %v6836_v52, %v15173_v42  ;;  %v19656_v29 = vld [vmem:[#allocation41_spill] sm:$0xff]  ;;  %v19657_v40 = vld [vmem:[#allocation31_spill] sm:$0xff] }
 0x3e9   : > { %19643 = vst [vmem:[#allocation167_spill] sm:$0xff] %v15185_v15  ;;  %v6885_v18 = vmax.bf16 %v6837_v13, %v15176_v30  ;;  %v5737_v22 = vmax.bf16 %v19570_v25, %v19651_v23  ;;  %v5738_v61 = vmax.bf16 %v19571_v3, %v19652_v24  ;;  %v6886_v12 = vmax.bf16 %v6838_v63, %v15179_v31  ;;  %v19658_v30 = vld [vmem:[#allocation34_spill] sm:$0xff]  ;;  %v19659_v42 = vld [vmem:[#allocation35_spill] sm:$0xff]  ;;  %v1216_v63 = vld [vmem:[#allocation2 + $0x110] sm:$0xf] }
 0x3ea   : > { %v5784_v55 = vmax.bf16 %v5724_v6, %v19653_v57  ;;  %v5785_v41 = vmax.bf16 %v5725_v35, %v19654_v45  ;;  %v5786_v49 = vmax.bf16 %v5726_v37, %v19655_v59  ;;  %v9032_v48 = vrot.slane %v6884_v60, 9  ;;  %v19662_v57 = vld [vmem:[#allocation85_spill] sm:$0xff]  ;;  %v19663_v60 = vld [vmem:[#allocation135_spill] sm:$0xff]  ;;  %v19664_v45 = vld [vmem:[#allocation38_spill] sm:$0xff] }
 0x3eb   : > { %v6994_v44 = vrot.slane %v6885_v18, 5  ;;  %v5796_v52 = vmax.bf16 %v5736_v4, %v19656_v29  ;;  %v5797_v13 = vmax.bf16 %v5737_v22, %v19657_v40  ;;  %v6997_v7 = vrot.slane %v6886_v12, 5  ;;  %v19665_v59 = vld [vmem:[#allocation83_spill] sm:$0xff]  ;;  %v19685_v31 = vld [vmem:[#allocation94_spill] sm:$0xff] }
 0x3ec   : > { %v5798_v5 = vmax.bf16 %v5738_v61, %v19658_v30  ;;  %v5844_v33 = vmax.bf16 %v5784_v55, %v19659_v42  ;;  %v5845_v3 = vmax.bf16 %v5785_v41, %v19660_v2  ;;  %v5846_v37 = vmax.bf16 %v5786_v49, %v19662_v57 }
 0x3ed   : > { %v6995_v6 = vsel %vm10899_vm5, %v9032_v48, %v6994_v44  ;;  %v6996_v35 = vrot.slane %v6994_v44, 4  ;;  %v5856_v18 = vmax.bf16 %v5796_v52, %v19663_v60  ;;  %v5857_v4 = vmax.bf16 %v5797_v13, %v19664_v45  ;;  %v19667_v48 = vld [vmem:[#allocation75_spill] sm:$0xff] }
 0x3ee   : > { %v5858_v22 = vmax.bf16 %v5798_v5, %v19665_v59  ;;  %v5904_v12 = vmax.bf16 %v5844_v33, %v19649_v38  ;;  %v5905_v61 = vmax.bf16 %v5845_v3, %v19651_v23  ;;  %v5906_v42 = vmax.bf16 %v5846_v37, %v19652_v24  ;;  %v19669_v52 = vld [vmem:[#allocation59_spill] sm:$0xff]  ;;  %v2624_v33 = vld [vmem:[#allocation2 + $0x110] sm:$0xe]  ;;  %v19671_v23 = vld [vmem:[#allocation106_spill] sm:$0xff] }
 0x3ef   : > { %v6998_v2 = vsel %vm10899_vm5, %v6996_v35, %v6997_v7  ;;  %v15223_v55 = vmax.bf16 %v5856_v18, %v15185_v15  ;;  %v1955_v41 = vshrl.u32 %v1216_v63, 16  ;;  %v15226_v44 = vmax.bf16 %v5857_v4, %v19667_v48  ;;  %v19672_v7 = vld [vmem:[#allocation67_spill] sm:$0xff]  ;;  %v10180_v4 = vld [vmem:[#allocation2 + $0x114] sm:$0xf]  ;;  %v19678_v15 = vld [vmem:[#allocation86_spill] sm:$0xff] }
 0x3f0   : > { %v9048_v49 = vcombine.low %v6995_v6, %v6998_v2  ;;  %v15229_v13 = vmax.bf16 %v5858_v22, %v19669_v52  ;;  %v1958_v5 = vshll.u32 %v1216_v63, 16  ;;  %v1977_v24 = vsel %vm10803_vm2, %v19672_v7, %v19671_v23  ;;  %v19674_v52 = vld [vmem:[#allocation93_spill] sm:$0xff]  ;;  %v19684_v45 = vld [vmem:[#allocation91_spill] sm:$0xff] }
 0x3f1   : > { %19666 = vst [vmem:[#allocation169_spill] sm:$0xff] %v15223_v55  ;;  %19668 = vst [vmem:[#allocation185_spill] sm:$0xff] %v15226_v44  ;;  %v5964_v3 = vmax.bf16 %v15223_v55, %v5904_v12  ;;  %v1957_v38 = vrot.slane %v1955_v41, 4  ;;  %v8898_v57 = vrot.slane %v2624_v33, 9  ;;  %v5965_v6 = vmax.bf16 %v15226_v44, %v5905_v61  ;;  %v19676_v41 = vld [vmem:[#allocation90_spill] sm:$0xff]  ;;  %v19681_v44 = vld [vmem:[#allocation87_spill] sm:$0xff] }
 0x3f2   : > { %19670 = vst [vmem:[#allocation172_spill] sm:$0xff] %v15229_v13  ;;  %7878 = vmatprep.mubr.bf16.mxu0 %v9048_v49  ;;  %v5966_v37 = vmax.bf16 %v15229_v13, %v5906_v42  ;;  %v1960_v18 = vrot.slane %v1958_v5, 5  ;;  %v2564_v22 = vmax.bf16 %v10180_v4, %v1977_v24  ;;  %v19675_v48 = vrot.slane %v19674_v52, 5  ;;  %v15247_v49 = vld [vmem:[#allocation2 + $0x11c] sm:$0x3] }
 0x3f3   : > { %v8972_v2 = vrot.slane %v5964_v3, 10  ;;  %v19677_v55 = vrot.slane %v19676_v41, 5  ;;  %19679 = vst [vmem:[#allocation175_spill] sm:$0xff] %v15247_v49  ;;  %v18309_v61 = vrot.slane %v15247_v49, 5  ;;  %v6074_v42 = vrot.slane %v5965_v6, 6  ;;  %v19680_v3 = vld [vmem:[#allocation89_spill] sm:$0xff] }
 0x3f4   : > { %v2940_v12 = vsel %vm10899_vm5, %v8898_v57, %v19675_v48  ;;  %v6077_v5 = vrot.slane %v5966_v37, 6  ;;  %v1961_v7 = vor.u32 %v1960_v18, %v1957_v38  ;;  %v15255_v57 = vld [vmem:[#allocation2 + $0x11c] sm:$0x7]  ;;  %v3807_v4 = vshrl.u32 %v2624_v33, 16  ;;  %v19683_v38 = vld [vmem:[#allocation132_spill] sm:$0xff] }
 0x3f5   : > { %v2943_v23 = vsel %vm10899_vm5, %v19678_v15, %v19677_v55  ;;  %v2946_v48 = vsel %vm10899_vm5, %v19680_v3, %v18309_v61  ;;  %v3810_v13 = vshll.u32 %v2624_v33, 16  ;;  %v19682_v15 = vld [vmem:[#allocation97_spill] sm:$0xff]  ;;  %v6075_v59 = vsel %vm11111_vm11, %v8972_v2, %v6074_v42  ;;  %v19686_v33 = vld [vmem:[#allocation88_spill] sm:$0xff] }
 0x3f6   : > { %v3239_v24 = vmax.bf16 %v2943_v23, %v2564_v22  ;;  %v3817_v55 = vor.u32 %v19682_v15, %v19681_v44  ;;  %v6076_v6 = vrot.slane %v6074_v42, 4  ;;  %v1962_v37 = vrot.slane %v1961_v7, 4  ;;  %v4366_v42 = vld [vmem:[#allocation2 + $0x110] sm:$0xc] }
 0x3f7   : > { %v3240_v18 = vmax.bf16 %v2946_v48, %v19683_v38  ;;  %v3809_v22 = vrot.slane %v3807_v4, 5  ;;  %v3812_v23 = vrot.slane %v3810_v13, 6  ;;  %v3822_v3 = vor.u32 %v19685_v31, %v19684_v45 }
 0x3f8   : > { %v3819_v49 = vrot.slane %v3817_v55, 4  ;;  %v6078_v61 = vsel %vm11111_vm11, %v6076_v6, %v6077_v5  ;;  %v1967_v44 = vsel %vm10803_vm2, %v1962_v37, %v19686_v33  ;;  %v3826_v15 = vshrl.u32 %v15255_v57, 16 }
 0x3f9   : > { %v3829_v2 = vshll.u32 %v15255_v57, 16  ;;  %v8988_v7 = vcombine.low %v6075_v59, %v6078_v61  ;;  %v2563_v48 = vmax.bf16 %v1967_v44, %v1216_v63  ;;  %v3813_v4 = vor.u32 %v3812_v23, %v3809_v22 }
 0x3fa   : > { %v3823_v13 = vsel %vm10967_vm8, %v3819_v49, %v3822_v3  ;;  %v3824_v38 = vrot.slane %v3822_v3, 4  ;;  %v3828_v31 = vrot.slane %v3826_v15, 5  ;;  %v8926_v35 = vrot.slane %v4366_v42, 10 }
 0x3fb   : > { %v3831_v45 = vrot.slane %v3829_v2, 6  ;;  %v4306_v60 = vmax.bf16 %v3823_v13, %v3239_v24  ;;  %7879 = vmatmul.mubr.bf16.gmra.mrb[76].mxu0 %v8988_v7  ;;  %v3238_v5 = vmax.bf16 %v2940_v12, %v2563_v48  ;;  %v3814_v6 = vrot.slane %v3813_v4, 4  ;;  %v19692_v7 = vld [vmem:[#allocation156_spill] sm:$0xff]  ;;  %v19693_v48 = vld [vmem:[#allocation161_spill] sm:$0xff] }
 0x3fc   : > { %v19687_v37 = vrot.slane %v19674_v52, 6  ;;  %v19688_v59 = vrot.slane %v19676_v41, 6  ;;  %v18311_v61 = vrot.slane %v15255_v57, 6  ;;  %v4995_v49 = vmax.bf16 %v14602_v0, %v19431_v39  ;;  %v19694_v13 = vld [vmem:[#allocation21_spill] sm:$0xff] }
 0x3fd   : > { %v15275_v30 = vor.u32 %v3831_v45, %v3828_v31  ;;  %v3818_v24 = vsel %vm10967_vm8, %v3814_v6, %v3817_v55  ;;  %v4996_v44 = vmax.bf16 %v19517_v62, %v19434_v19  ;;  %v4997_v41 = vmax.bf16 %v19521_v56, %v19438_v34 }
 0x3fe   : > { %v4627_v33 = vrot.slane %v19687_v37, 4  ;;  %v4630_v63 = vrot.slane %v19688_v59, 4  ;;  %v19689_v12 = vmov %v19687_v37  ;;  %v19690_v23 = vmov %v19688_v59 }
 0x3ff   : > { %v4626_v22 = vsel %vm11111_vm11, %v8926_v35, %v19689_v12  ;;  %v3833_v39 = vsel %vm10967_vm8, %v3824_v38, %v15275_v30  ;;  %v4305_v15 = vmax.bf16 %v3818_v24, %v3238_v5  ;;  %v5043_v2 = vmax.bf16 %v4995_v49, %v14836_v36 }
 0x400   : > { %v4629_v3 = vsel %vm11111_vm11, %v4627_v33, %v19690_v23  ;;  %v4632_v52 = vsel %vm11111_vm11, %v4630_v63, %v18311_v61  ;;  %v4307_v35 = vmax.bf16 %v3833_v39, %v3240_v18  ;;  %v5044_v19 = vmax.bf16 %v4996_v44, %v14831_v50  ;;  %v19698_v23 = vld [vmem:[#allocation48_spill] sm:$0xff] }
 0x401   : > { %v15301_v55 = vmax.bf16 %v4629_v3, %v4306_v60  ;;  %v15307_v42 = vmax.bf16 %v4626_v22, %v4305_v15  ;;  %v899_v4 = vpack.c.bf16 %v19693_v48, %v19692_v7  ;;  %v1949_v38 = vshrl.u32 %v19694_v13, 16 }
 0x402   : > { %v19695_v31 = vrot.slane %v19694_v13, 5  ;;  %v15314_v60 = vmax.bf16 %v4632_v52, %v4307_v35  ;;  %v5045_v18 = vmax.bf16 %v4997_v41, %v14846_v16  ;;  %v5091_v34 = vmax.bf16 %v5043_v2, %v15074_v8  ;;  %v1215_v35 = vld [vmem:[#allocation2 + $0x10c] sm:$0x1] }
 0x403   : > { %19691 = vst [vmem:[#allocation36_spill] sm:$0xff] %v15307_v42  ;;  %v5092_v5 = vmax.bf16 %v5044_v19, %v15055_v10  ;;  %v1951_v6 = vrot.slane %v1949_v38, 4  ;;  %v3805_v37 = vrot.slane %v15042_v51, 4  ;;  %v19696_v33 = vrot.slane %v15015_v58, 6 }
 0x404   : > { %v2936_v45 = vrot.slane %v19695_v31, 4  ;;  %v15323_v63 = vrot.slane %v15055_v10, 6  ;;  %v5093_v49 = vmax.bf16 %v5045_v18, %v15080_v26  ;;  %v5139_v24 = vmax.bf16 %v5091_v34, %v15307_v42 }
 0x405   : > { %v4622_v59 = vrot.slane %v19696_v33, 4  ;;  %v5140_v12 = vmax.bf16 %v5092_v5, %v15301_v55  ;;  %v5523_v22 = vrot.slane %v15080_v26, 6  ;;  %v1952_v3 = vor.u32 %v1951_v6, %v19698_v23  ;;  %v19701_v6 = vld [vmem:[#allocation187_spill] sm:$0xff] }
 0x406   : > { %19697 = vst [vmem:[#allocation112_spill] sm:$0xff] %v15323_v63  ;;  %v5522_v44 = vrot.slane %v15323_v63, 4  ;;  %v9017_v51 = vrot.slane %v15074_v8, 10  ;;  %v6575_v58 = vmax.bf16 %v19545_v46, %v19623_v20  ;;  %v5141_v39 = vmax.bf16 %v5093_v49, %v15314_v60 }
 0x407   : > { %v8946_v15 = vrot.slane %v5139_v24, 11  ;;  %v5276_v52 = vrot.slane %v5140_v12, 7  ;;  %v5525_v41 = vrot.slane %v5523_v22, 4  ;;  %v1953_v2 = vrot.slane %v1952_v3, 4 }
 0x408   : > { %v5524_v19 = vsel %vm11111_vm11, %v5522_v44, %v5523_v22  ;;  %v6339_v7 = vsel %vm11111_vm11, %v9017_v51, %v15323_v63  ;;  %v6576_v48 = vmax.bf16 %v19546_v47, %v19537_v21  ;;  %v5279_v38 = vrot.slane %v5141_v39, 7 }
 0x409   : > { %v5277_v20 = vsel %vm12245_vm14, %v8946_v15, %v5276_v52  ;;  %v5278_v13 = vrot.slane %v5276_v52, 4  ;;  %v15345_v31 = vmax.bf16 %v5524_v19, %v15055_v10  ;;  %v2562_v18 = vmax.bf16 %v1953_v2, %v1215_v35  ;;  %v19702_v15 = vld [vmem:[#allocation109_spill] sm:$0xff]  ;;  %v19705_v2 = vld [vmem:[#allocation194_spill] sm:$0xff] }
 0x40a   : > { %v15348_v34 = vmax.bf16 %v5525_v41, %v15080_v26  ;;  %v6439_v5 = vmax.bf16 %v6339_v7, %v15074_v8  ;;  %v6577_v33 = vmax.bf16 %v19626_v28, %v19701_v6  ;;  %v6647_v24 = vmax.bf16 %v6575_v58, %v19633_v11  ;;  %v19703_v52 = vld [vmem:[#allocation213_spill] sm:$0xff]  ;;  %v19704_v41 = vld [vmem:[#allocation212_spill] sm:$0xff]  ;;  %v1220_v58 = vld [vmem:[#allocation2 + $0x120] sm:$0xf] }
 0x40b   : > { %19699 = vst [vmem:[#allocation125_spill] sm:$0xff] %v15345_v31  ;;  %v5280_v21 = vsel %vm12245_vm14, %v5278_v13, %v5279_v38  ;;  %v15357_v49 = vmax.bf16 %v15345_v31, %v15080_v26  ;;  %v6648_v12 = vmax.bf16 %v6576_v48, %v19634_v43  ;;  %v3237_v23 = vmax.bf16 %v2936_v45, %v2562_v18  ;;  %v19706_v48 = vld [vmem:[#allocation209_spill] sm:$0xff]  ;;  %v19708_v38 = vld [vmem:[#allocation160_spill] sm:$0xff] }
 0x40c   : > { %19700 = vst [vmem:[#allocation71_spill] sm:$0xff] %v15348_v34  ;;  %v8962_v22 = vcombine.low %v5277_v20, %v5280_v21  ;;  %v15362_v3 = vmax.bf16 %v6439_v5, %v15055_v10  ;;  %v6649_v44 = vmax.bf16 %v6577_v33, %v19635_v17  ;;  %v6719_v51 = vmax.bf16 %v6647_v24, %v15115_v1  ;;  %v19707_v20 = vld [vmem:[#allocation210_spill] sm:$0xff]  ;;  %v19712_v24 = vld [vmem:[#allocation208_spill] sm:$0xff] }
 0x40d   : > { %v6720_v39 = vmax.bf16 %v6648_v12, %v15125_v53  ;;  %v6839_v35 = vmax.bf16 %v19703_v52, %v19702_v15  ;;  %v6840_v19 = vmax.bf16 %v19705_v2, %v19704_v41  ;;  %v4304_v7 = vmax.bf16 %v3805_v37, %v3237_v23  ;;  %v19713_v12 = vld [vmem:[#allocation34_spill] sm:$0xff]  ;;  %v19714_v15 = vld [vmem:[#allocation135_spill] sm:$0xff] }
 0x40e   : > { %7745 = vmatprep.mubr.bf16.mxu1 %v8962_v22  ;;  %v6721_v45 = vmax.bf16 %v6649_v44, %v15156_v9  ;;  %v6841_v13 = vmax.bf16 %v19707_v20, %v19706_v48  ;;  %v15376_v18 = vmax.bf16 %v19708_v38, %v14602_v0  ;;  %v15379_v5 = vmax.bf16 %v6719_v51, %v15362_v3  ;;  %v19718_v52 = vld [vmem:[#allocation75_spill] sm:$0xff] }
 0x40f   : > { %7746 = vmatmul.mubr.bf16.gmra.mrb[36].mxu1 %v899_v4  ;;  %v15382_v6 = vmax.bf16 %v6720_v39, %v15357_v49  ;;  %v5739_v33 = vmax.bf16 %v19656_v29, %v19650_v14  ;;  %v5740_v37 = vmax.bf16 %v19657_v40, %v19570_v25  ;;  %v4923_v21 = vmax.bf16 %v4622_v59, %v4304_v7  ;;  %v19715_v39 = vld [vmem:[#allocation38_spill] sm:$0xff]  ;;  %v19716_v14 = vld [vmem:[#allocation83_spill] sm:$0xff] }
 0x410   : > { %19709 = vst [vmem:[#allocation73_spill] sm:$0xff] %v15376_v18  ;;  %19710 = vst [vmem:[#allocation24_spill] sm:$0xff] %v15379_v5  ;;  %v5741_v22 = vmax.bf16 %v19713_v12, %v19712_v24  ;;  %v1994_v23 = vshrl.u32 %v1220_v58, 16  ;;  %v1997_v44 = vshll.u32 %v1220_v58, 16  ;;  %v6887_v4 = vmax.bf16 %v6839_v35, %v15379_v5  ;;  %v19717_v24 = vld [vmem:[#allocation167_spill] sm:$0xff]  ;;  %v19722_v5 = vld [vmem:[#allocation108_spill] sm:$0xff] }
 0x411   : > { %19711 = vst [vmem:[#allocation74_spill] sm:$0xff] %v15382_v6  ;;  %v6888_v51 = vmax.bf16 %v6840_v19, %v15382_v6  ;;  %v5799_v41 = vmax.bf16 %v5739_v33, %v19714_v15  ;;  %v5800_v48 = vmax.bf16 %v5740_v37, %v19715_v39  ;;  %v15395_v38 = vmax.bf16 %v15348_v34, %v4923_v21  ;;  %v19720_v19 = vld [vmem:[#allocation59_spill] sm:$0xff] }
 0x412   : > { %v5801_v61 = vmax.bf16 %v5741_v22, %v19716_v14  ;;  %v1996_v25 = vrot.slane %v1994_v23, 4  ;;  %v1999_v59 = vrot.slane %v1997_v44, 5  ;;  %v9033_v7 = vrot.slane %v6887_v4, 9  ;;  %v19721_v37 = vld [vmem:[#allocation111_spill] sm:$0xff]  ;;  %v4367_v14 = vld [vmem:[#allocation2 + $0x120] sm:$0xc] }
 0x413   : > { %v7001_v20 = vrot.slane %v6888_v51, 5  ;;  %v5859_v2 = vmax.bf16 %v5799_v41, %v19717_v24  ;;  %v5860_v31 = vmax.bf16 %v5800_v48, %v19718_v52  ;;  %v15401_v35 = vmax.bf16 %v6721_v45, %v15395_v38  ;;  %v19726_v51 = vld [vmem:[#allocation147_spill] sm:$0xff]  ;;  %v19728_v48 = vld [vmem:[#allocation69_spill] sm:$0xff] }
 0x414   : > { %v5861_v33 = vmax.bf16 %v5801_v61, %v19720_v19  ;;  %v2000_v6 = vor.u32 %v1999_v59, %v1996_v25  ;;  %v2016_v34 = vsel %vm10803_vm2, %v19722_v5, %v19721_v37  ;;  %v10182_v59 = vld [vmem:[#allocation2 + $0x124] sm:$0xf]  ;;  %v2625_v19 = vld [vmem:[#allocation2 + $0x120] sm:$0xe]  ;;  %v19844_v32 = vld [vmem:[#allocation71_spill] sm:$0xff] }
 0x415   : > { %19719 = vst [vmem:[#allocation33_spill] sm:$0xff] %v15401_v35  ;;  %v7002_v23 = vsel %vm10899_vm5, %v9033_v7, %v7001_v20  ;;  %v7003_v44 = vrot.slane %v7001_v20, 4  ;;  %v15411_v4 = vmax.bf16 %v5859_v2, %v15376_v18  ;;  %v15414_v41 = vmax.bf16 %v5860_v31, %v19726_v51  ;;  %v19730_v5 = vld [vmem:[#allocation70_spill] sm:$0xff]  ;;  %v19731_v7 = vld [vmem:[#allocation17_spill] sm:$0xff]  ;;  %v19732_v18 = vld [vmem:[#allocation107_spill] sm:$0xff] }
 0x416   : > { %v6889_v45 = vmax.bf16 %v6841_v13, %v15401_v35  ;;  %v15418_v61 = vmax.bf16 %v5861_v33, %v19728_v48  ;;  %v2001_v25 = vrot.slane %v2000_v6, 4  ;;  %v2568_v63 = vmax.bf16 %v10182_v59, %v2016_v34  ;;  %v19734_v31 = vld [vmem:[#allocation104_spill] sm:$0xff]  ;;  %v19736_v48 = vld [vmem:[#allocation110_spill] sm:$0xff]  ;;  %v15434_v59 = vld [vmem:[#allocation2 + $0x12c] sm:$0x3] }
 0x417   : > { %19725 = vst [vmem:[#allocation63_spill] sm:$0xff] %v15411_v4  ;;  %19727 = vst [vmem:[#allocation39_spill] sm:$0xff] %v15414_v41  ;;  %v5967_v37 = vmax.bf16 %v15411_v4, %v19730_v5  ;;  %v5968_v20 = vmax.bf16 %v15414_v41, %v19731_v7  ;;  %v8899_v2 = vrot.slane %v2625_v19, 9  ;;  %v19733_v52 = vrot.slane %v19732_v18, 5  ;;  %v19735_v33 = vld [vmem:[#allocation44_spill] sm:$0xff]  ;;  %v19738_v51 = vld [vmem:[#allocation155_spill] sm:$0xff] }
 0x418   : > { %19729 = vst [vmem:[#allocation154_spill] sm:$0xff] %v15418_v61  ;;  %v7004_v35 = vrot.slane %v6889_v45, 5  ;;  %v5969_v6 = vmax.bf16 %v15418_v61, %v19735_v33  ;;  %v2006_v34 = vsel %vm10803_vm2, %v2001_v25, %v19736_v48  ;;  %19737 = vst [vmem:[#allocation37_spill] sm:$0xff] %v15434_v59  ;;  %v18331_v5 = vrot.slane %v15434_v59, 5  ;;  %v19740_v33 = vld [vmem:[#allocation103_spill] sm:$0xff] }
 0x419   : > { %v2954_v13 = vsel %vm10899_vm5, %v19734_v31, %v19733_v52  ;;  %v8973_v7 = vrot.slane %v5967_v37, 10  ;;  %v6081_v41 = vrot.slane %v5968_v20, 6  ;;  %v2567_v4 = vmax.bf16 %v2006_v34, %v1220_v58  ;;  %v15448_v61 = vld [vmem:[#allocation2 + $0x12c] sm:$0x7] }
 0x41a   : > { %v19739_v24 = vrot.slane %v19738_v51, 5  ;;  %v7005_v45 = vsel %vm10899_vm5, %v7003_v44, %v7004_v35  ;;  %v6084_v31 = vrot.slane %v5969_v6, 6  ;;  %v2957_v48 = vsel %vm10899_vm5, %v19740_v33, %v18331_v5  ;;  %v19742_v44 = vld [vmem:[#allocation102_spill] sm:$0xff]  ;;  %v19743_v6 = vld [vmem:[#allocation99_spill] sm:$0xff] }
 0x41b   : > { %v3243_v25 = vmax.bf16 %v2954_v13, %v2568_v63  ;;  %v9049_v37 = vcombine.low %v7002_v23, %v7005_v45  ;;  %v6082_v58 = vsel %vm11111_vm11, %v8973_v7, %v6081_v41  ;;  %v6083_v20 = vrot.slane %v6081_v41, 4  ;;  %v19744_v13 = vld [vmem:[#allocation105_spill] sm:$0xff]  ;;  %v19745_v33 = vld [vmem:[#allocation115_spill] sm:$0xff] }
 0x41c   : > { %v2951_v52 = vsel %vm10899_vm5, %v8899_v2, %v19739_v24  ;;  %v19741_v24 = vld [vmem:[#allocation101_spill] sm:$0xff]  ;;  %v3836_v21 = vshrl.u32 %v2625_v19, 16  ;;  %v3839_v35 = vshll.u32 %v2625_v19, 16  ;;  %v3846_v59 = vor.u32 %v19743_v6, %v19742_v44 }
 0x41d   : > { %v3242_v34 = vmax.bf16 %v2951_v52, %v2567_v4  ;;  %v3244_v2 = vmax.bf16 %v2957_v48, %v19741_v24  ;;  %7888 = vmatprep.mubr.bf16.mxu0 %v9049_v37  ;;  %v6085_v63 = vsel %vm11111_vm11, %v6083_v20, %v6084_v31  ;;  %v3851_v23 = vor.u32 %v19745_v33, %v19744_v13 }
 0x41e   : > { %v3855_v45 = vshrl.u32 %v15448_v61, 16  ;;  %v3858_v41 = vshll.u32 %v15448_v61, 16  ;;  %v8989_v4 = vcombine.low %v6082_v58, %v6085_v63  ;;  %v3838_v7 = vrot.slane %v3836_v21, 5 }
 0x41f   : > { %v3841_v52 = vrot.slane %v3839_v35, 6  ;;  %v3848_v48 = vrot.slane %v3846_v59, 4  ;;  %v3853_v19 = vrot.slane %v3851_v23, 4  ;;  %v8927_v44 = vrot.slane %v4367_v14, 10 }
 0x420   : > { %v3857_v24 = vrot.slane %v3855_v45, 5  ;;  %v3860_v5 = vrot.slane %v3858_v41, 6  ;;  %7889 = vmatmul.mubr.bf16.gmra.mrb[80].mxu0 %v8989_v4  ;;  %v19746_v20 = vrot.slane %v19738_v51, 6  ;;  %v19747_v13 = vrot.slane %v19732_v18, 6 }
 0x421   : > { %v3842_v37 = vor.u32 %v3841_v52, %v3838_v7  ;;  %v3852_v31 = vsel %vm10967_vm8, %v3848_v48, %v3851_v23  ;;  %v18333_v14 = vrot.slane %v15448_v61, 6  ;;  %v4998_v41 = vmax.bf16 %v14836_v36, %v14602_v0 }
 0x422   : > { %v4638_v6 = vrot.slane %v19746_v20, 4  ;;  %v4641_v33 = vrot.slane %v19747_v13, 4  ;;  %v15467_v22 = vor.u32 %v3860_v5, %v3857_v24  ;;  %v4310_v21 = vmax.bf16 %v3852_v31, %v3243_v25  ;;  %v19750_v24 = vld [vmem:[#allocation162_spill] sm:$0xff]  ;;  %v19752_v31 = vld [vmem:[#allocation175_spill] sm:$0xff] }
 0x423   : > { %v19748_v58 = vmov %v19746_v20  ;;  %v3843_v63 = vrot.slane %v3842_v37, 4  ;;  %v19749_v45 = vmov %v19747_v13  ;;  %v4999_v5 = vmax.bf16 %v14831_v50, %v19517_v62 }
 0x424   : > { %v4637_v35 = vsel %vm11111_vm11, %v8927_v44, %v19748_v58  ;;  %v4640_v23 = vsel %vm11111_vm11, %v4638_v6, %v19749_v45  ;;  %v3862_v51 = vsel %vm10967_vm8, %v3853_v19, %v15467_v22  ;;  %v4643_v25 = vsel %vm11111_vm11, %v4641_v33, %v18333_v14  ;;  %v19751_v44 = vld [vmem:[#allocation163_spill] sm:$0xff]  ;;  %v19773_v14 = vld [vmem:[#allocation73_spill] sm:$0xff] }
 0x425   : > { %v15489_v4 = vmax.bf16 %v4640_v23, %v4310_v21  ;;  %v5000_v18 = vmax.bf16 %v14846_v16, %v19521_v56  ;;  %v3847_v0 = vsel %vm10967_vm8, %v3843_v63, %v3846_v59  ;;  %v4311_v7 = vmax.bf16 %v3862_v51, %v3244_v2 }
 0x426   : > { %v5046_v62 = vmax.bf16 %v4998_v41, %v15074_v8  ;;  %v5047_v52 = vmax.bf16 %v4999_v5, %v15055_v10  ;;  %v4309_v48 = vmax.bf16 %v3847_v0, %v3242_v34  ;;  %v900_v37 = vpack.c.bf16 %v19751_v44, %v19750_v24 }
 0x427   : > { %v5048_v19 = vmax.bf16 %v5000_v18, %v15080_v26  ;;  %v1988_v20 = vshrl.u32 %v19752_v31, 16  ;;  %v15501_v6 = vmax.bf16 %v4643_v25, %v4311_v7  ;;  %v19753_v59 = vrot.slane %v19752_v31, 5  ;;  %v19755_v25 = vld [vmem:[#allocation197_spill] sm:$0xff] }
 0x428   : > { %v5094_v56 = vmax.bf16 %v5046_v62, %v15307_v42  ;;  %v5095_v13 = vmax.bf16 %v5047_v52, %v15301_v55  ;;  %v15507_v33 = vmax.bf16 %v4637_v35, %v4309_v48  ;;  %v3834_v58 = vrot.slane %v15275_v30, 4  ;;  %v1219_v30 = vld [vmem:[#allocation2 + $0x11c] sm:$0x1] }
 0x429   : > { %v2947_v2 = vrot.slane %v19753_v59, 4  ;;  %v5096_v34 = vmax.bf16 %v5048_v19, %v15314_v60  ;;  %v1990_v21 = vrot.slane %v1988_v20, 4  ;;  %v19754_v45 = vrot.slane %v15255_v57, 6 }
 0x42a   : > { %v5143_v63 = vmax.bf16 %v5095_v13, %v15489_v4  ;;  %v15515_v41 = vrot.slane %v15301_v55, 6  ;;  %v5528_v5 = vrot.slane %v15314_v60, 6  ;;  %v5142_v51 = vmax.bf16 %v5094_v56, %v15507_v33 }
 0x42b   : > { %v4633_v23 = vrot.slane %v19754_v45, 4  ;;  %v5144_v35 = vmax.bf16 %v5096_v34, %v15501_v6  ;;  %v1991_v18 = vor.u32 %v1990_v21, %v19755_v25  ;;  %v9018_v0 = vrot.slane %v15307_v42, 10 }
 0x42c   : > { %v5283_v7 = vrot.slane %v5143_v63, 7  ;;  %v5527_v62 = vrot.slane %v15515_v41, 4  ;;  %v5530_v52 = vrot.slane %v5528_v5, 4  ;;  %v6578_v57 = vmax.bf16 %v19633_v11, %v19545_v46 }
 0x42d   : > { %v8947_v48 = vrot.slane %v5142_v51, 11  ;;  %v5286_v19 = vrot.slane %v5144_v35, 7  ;;  %v1992_v24 = vrot.slane %v1991_v18, 4  ;;  %v6342_v44 = vsel %vm11111_vm11, %v9018_v0, %v15515_v41 }
 0x42e   : > { %v5285_v31 = vrot.slane %v5283_v7, 4  ;;  %v5529_v20 = vsel %vm11111_vm11, %v5527_v62, %v5528_v5  ;;  %v15531_v56 = vmax.bf16 %v5530_v52, %v15314_v60  ;;  %v6440_v13 = vmax.bf16 %v6342_v44, %v15307_v42  ;;  %v19759_v62 = vld [vmem:[#allocation150_spill] sm:$0xff]  ;;  %v19762_v44 = vld [vmem:[#allocation153_spill] sm:$0xff] }
 0x42f   : > { %v5284_v59 = vsel %vm12245_vm14, %v8947_v48, %v5283_v7  ;;  %v2566_v46 = vmax.bf16 %v1992_v24, %v1219_v30  ;;  %v15537_v34 = vmax.bf16 %v5529_v20, %v15301_v55  ;;  %v6579_v21 = vmax.bf16 %v19634_v43, %v19546_v47  ;;  %v19758_v30 = vld [vmem:[#allocation157_spill] sm:$0xff]  ;;  %v19760_v48 = vld [vmem:[#allocation152_spill] sm:$0xff] }
 0x430   : > { %19756 = vst [vmem:[#allocation190_spill] sm:$0xff] %v15531_v56  ;;  %v5287_v63 = vsel %vm12245_vm14, %v5285_v31, %v5286_v19  ;;  %v15544_v45 = vmax.bf16 %v6440_v13, %v15301_v55  ;;  %v6580_v5 = vmax.bf16 %v19635_v17, %v19626_v28  ;;  %v6650_v51 = vmax.bf16 %v6578_v57, %v15115_v1  ;;  %v19761_v19 = vld [vmem:[#allocation140_spill] sm:$0xff]  ;;  %v19763_v31 = vld [vmem:[#allocation158_spill] sm:$0xff] }
 0x431   : > { %19757 = vst [vmem:[#allocation193_spill] sm:$0xff] %v15537_v34  ;;  %v8963_v35 = vcombine.low %v5284_v59, %v5287_v63  ;;  %v3241_v25 = vmax.bf16 %v2947_v2, %v2566_v46  ;;  %v15551_v18 = vmax.bf16 %v15537_v34, %v15314_v60  ;;  %v6651_v0 = vmax.bf16 %v6579_v21, %v15125_v53  ;;  %v1224_v24 = vld [vmem:[#allocation2 + $0x130] sm:$0xf]  ;;  %v19764_v13 = vld [vmem:[#allocation214_spill] sm:$0xff] }
 0x432   : > { %v6652_v47 = vmax.bf16 %v6580_v5, %v15156_v9  ;;  %v6722_v7 = vmax.bf16 %v6650_v51, %v15362_v3  ;;  %v6842_v52 = vmax.bf16 %v19759_v62, %v19758_v30  ;;  %v6843_v28 = vmax.bf16 %v19761_v19, %v19760_v48  ;;  %v19777_v34 = vld [vmem:[#allocation122_spill] sm:$0xff] }
 0x433   : > { %7755 = vmatprep.mubr.bf16.mxu1 %v8963_v35  ;;  %v4308_v57 = vmax.bf16 %v3834_v58, %v3241_v25  ;;  %v6723_v2 = vmax.bf16 %v6651_v0, %v15357_v49  ;;  %v6844_v20 = vmax.bf16 %v19763_v31, %v19762_v44  ;;  %v15565_v59 = vmax.bf16 %v19764_v13, %v14836_v36  ;;  %v19768_v35 = vld [vmem:[#allocation83_spill] sm:$0xff] }
 0x434   : > { %7756 = vmatmul.mubr.bf16.gmra.mrb[40].mxu1 %v900_v37  ;;  %v6724_v46 = vmax.bf16 %v6652_v47, %v15395_v38  ;;  %v15569_v21 = vmax.bf16 %v6722_v7, %v15544_v45  ;;  %v5742_v63 = vmax.bf16 %v19714_v15, %v19656_v29  ;;  %v5743_v58 = vmax.bf16 %v19715_v39, %v19657_v40  ;;  %v19769_v47 = vld [vmem:[#allocation167_spill] sm:$0xff] }
 0x435   : > { %19765 = vst [vmem:[#allocation54_spill] sm:$0xff] %v15565_v59  ;;  %v4927_v5 = vmax.bf16 %v4633_v23, %v4308_v57  ;;  %v15576_v51 = vmax.bf16 %v6723_v2, %v15551_v18  ;;  %v5744_v25 = vmax.bf16 %v19768_v35, %v19713_v12  ;;  %v2033_v0 = vshrl.u32 %v1224_v24, 16  ;;  %v19770_v7 = vld [vmem:[#allocation75_spill] sm:$0xff] }
 0x436   : > { %19766 = vst [vmem:[#allocation27_spill] sm:$0xff] %v15569_v21  ;;  %v6890_v37 = vmax.bf16 %v6842_v52, %v15569_v21  ;;  %v5802_v30 = vmax.bf16 %v5742_v63, %v19769_v47  ;;  %v5803_v48 = vmax.bf16 %v5743_v58, %v19770_v7  ;;  %v2036_v44 = vshll.u32 %v1224_v24, 16  ;;  %v19772_v23 = vld [vmem:[#allocation59_spill] sm:$0xff]  ;;  %v19776_v58 = vld [vmem:[#allocation69_spill] sm:$0xff] }
 0x437   : > { %19767 = vst [vmem:[#allocation52_spill] sm:$0xff] %v15576_v51  ;;  %v15584_v29 = vmax.bf16 %v15531_v56, %v4927_v5  ;;  %v6891_v40 = vmax.bf16 %v6843_v28, %v15576_v51  ;;  %v5804_v57 = vmax.bf16 %v5744_v25, %v19772_v23  ;;  %v2035_v2 = vrot.slane %v2033_v0, 4  ;;  %v19774_v12 = vld [vmem:[#allocation147_spill] sm:$0xff]  ;;  %v19778_v5 = vld [vmem:[#allocation204_spill] sm:$0xff]  ;;  %v19781_v0 = vld [vmem:[#allocation138_spill] sm:$0xff] }
 0x438   : > { %v9034_v13 = vrot.slane %v6890_v37, 9  ;;  %v5862_v31 = vmax.bf16 %v5802_v30, %v19773_v14  ;;  %v5863_v19 = vmax.bf16 %v5803_v48, %v19774_v12  ;;  %v2038_v62 = vrot.slane %v2036_v44, 5  ;;  %v10184_v48 = vld [vmem:[#allocation2 + $0x134] sm:$0xf]  ;;  %v2626_v14 = vld [vmem:[#allocation2 + $0x130] sm:$0xe] }
 0x439   : > { %19771 = vst [vmem:[#allocation58_spill] sm:$0xff] %v15584_v29  ;;  %v15591_v52 = vmax.bf16 %v6724_v46, %v15584_v29  ;;  %v7008_v63 = vrot.slane %v6891_v40, 5  ;;  %v5864_v21 = vmax.bf16 %v5804_v57, %v19776_v58  ;;  %v2055_v28 = vsel %vm10803_vm2, %v19778_v5, %v19777_v34  ;;  %v19784_v58 = vld [vmem:[#allocation143_spill] sm:$0xff]  ;;  %v19786_v34 = vld [vmem:[#allocation42_spill] sm:$0xff]  ;;  %v19787_v5 = vld [vmem:[#allocation148_spill] sm:$0xff] }
 0x43a   : > { %v15599_v25 = vmax.bf16 %v5862_v31, %v15565_v59  ;;  %v15602_v37 = vmax.bf16 %v5863_v19, %v19781_v0  ;;  %v2039_v30 = vor.u32 %v2038_v62, %v2035_v2  ;;  %v2572_v44 = vmax.bf16 %v10184_v48, %v2055_v28  ;;  %v19788_v28 = vld [vmem:[#allocation149_spill] sm:$0xff]  ;;  %v19789_v48 = vld [vmem:[#allocation114_spill] sm:$0xff] }
 0x43b   : > { %19775 = vst [vmem:[#allocation134_spill] sm:$0xff] %v15591_v52  ;;  %v6892_v46 = vmax.bf16 %v6844_v20, %v15591_v52  ;;  %v7009_v40 = vsel %vm10899_vm5, %v9034_v13, %v7008_v63  ;;  %v7010_v57 = vrot.slane %v7008_v63, 4  ;;  %v15608_v12 = vmax.bf16 %v5864_v21, %v19784_v58  ;;  %v19791_v13 = vld [vmem:[#allocation113_spill] sm:$0xff] }
 0x43c   : > { %19780 = vst [vmem:[#allocation22_spill] sm:$0xff] %v15599_v25  ;;  %19782 = vst [vmem:[#allocation19_spill] sm:$0xff] %v15602_v37  ;;  %v5970_v31 = vmax.bf16 %v15599_v25, %v19786_v34  ;;  %v5971_v19 = vmax.bf16 %v15602_v37, %v19787_v5  ;;  %v2040_v0 = vrot.slane %v2039_v30, 4  ;;  %v8900_v62 = vrot.slane %v2626_v14, 9  ;;  %v15621_v63 = vld [vmem:[#allocation2 + $0x13c] sm:$0x3] }
 0x43d   : > { %19785 = vst [vmem:[#allocation62_spill] sm:$0xff] %v15608_v12  ;;  %v7011_v2 = vrot.slane %v6892_v46, 5  ;;  %v5972_v20 = vmax.bf16 %v15608_v12, %v19788_v28  ;;  %v19790_v52 = vrot.slane %v19789_v48, 5  ;;  %19792 = vst [vmem:[#allocation64_spill] sm:$0xff] %v15621_v63  ;;  %v18350_v58 = vrot.slane %v15621_v63, 5  ;;  %v19793_v59 = vld [vmem:[#allocation117_spill] sm:$0xff] }
 0x43e   : > { %v8974_v34 = vrot.slane %v5970_v31, 10  ;;  %v6088_v25 = vrot.slane %v5971_v19, 6  ;;  %v2045_v30 = vsel %vm10803_vm2, %v2040_v0, %v19793_v59  ;;  %v19794_v46 = vld [vmem:[#allocation126_spill] sm:$0xff]  ;;  %v15638_v19 = vld [vmem:[#allocation2 + $0x13c] sm:$0x7] }
 0x43f   : > { %v2965_v21 = vsel %vm10899_vm5, %v19791_v13, %v19790_v52  ;;  %v19795_v5 = vrot.slane %v19794_v46, 5  ;;  %v7012_v12 = vsel %vm10899_vm5, %v7010_v57, %v7011_v2  ;;  %v6091_v37 = vrot.slane %v5972_v20, 6  ;;  %v19796_v13 = vld [vmem:[#allocation123_spill] sm:$0xff]  ;;  %v19800_v63 = vld [vmem:[#allocation202_spill] sm:$0xff] }
 0x440   : > { %v2571_v52 = vmax.bf16 %v2045_v30, %v1224_v24  ;;  %v2968_v31 = vsel %vm10899_vm5, %v19796_v13, %v18350_v58  ;;  %v9050_v56 = vcombine.low %v7009_v40, %v7012_v12  ;;  %v6089_v59 = vsel %vm11111_vm11, %v8974_v34, %v6088_v25  ;;  %v4368_v24 = vld [vmem:[#allocation2 + $0x130] sm:$0xc]  ;;  %v19798_v30 = vld [vmem:[#allocation118_spill] sm:$0xff]  ;;  %v19801_v12 = vld [vmem:[#allocation203_spill] sm:$0xff] }
 0x441   : > { %v2962_v28 = vsel %vm10899_vm5, %v8900_v62, %v19795_v5  ;;  %v6090_v0 = vrot.slane %v6088_v25, 4  ;;  %v3247_v23 = vmax.bf16 %v2965_v21, %v2572_v44  ;;  %v19797_v5 = vld [vmem:[#allocation130_spill] sm:$0xff]  ;;  %v3865_v57 = vshrl.u32 %v2626_v14, 16  ;;  %v19799_v13 = vld [vmem:[#allocation120_spill] sm:$0xff] }
 0x442   : > { %v3246_v62 = vmax.bf16 %v2962_v28, %v2571_v52  ;;  %v3248_v35 = vmax.bf16 %v2968_v31, %v19797_v5  ;;  %v3868_v2 = vshll.u32 %v2626_v14, 16  ;;  %7898 = vmatprep.mubr.bf16.mxu0 %v9050_v56  ;;  %v3875_v58 = vor.u32 %v19799_v13, %v19798_v30 }
 0x443   : > { %v6092_v20 = vsel %vm11111_vm11, %v6090_v0, %v6091_v37  ;;  %v3880_v40 = vor.u32 %v19801_v12, %v19800_v63  ;;  %v3884_v34 = vshrl.u32 %v15638_v19, 16  ;;  %v3867_v44 = vrot.slane %v3865_v57, 5 }
 0x444   : > { %v8990_v25 = vcombine.low %v6089_v59, %v6092_v20  ;;  %v3870_v21 = vrot.slane %v3868_v2, 6  ;;  %v3887_v28 = vshll.u32 %v15638_v19, 16  ;;  %v3877_v52 = vrot.slane %v3875_v58, 4 }
 0x445   : > { %v3882_v14 = vrot.slane %v3880_v40, 4  ;;  %v3886_v31 = vrot.slane %v3884_v34, 5  ;;  %v8928_v56 = vrot.slane %v4368_v24, 10  ;;  %v19802_v0 = vrot.slane %v19794_v46, 6 }
 0x446   : > { %7899 = vmatmul.mubr.bf16.gmra.mrb[84].mxu0 %v8990_v25  ;;  %v3871_v5 = vor.u32 %v3870_v21, %v3867_v44  ;;  %v3889_v37 = vrot.slane %v3887_v28, 6  ;;  %v19803_v13 = vrot.slane %v19789_v48, 6  ;;  %v3881_v59 = vsel %vm10967_vm8, %v3877_v52, %v3880_v40 }
 0x447   : > { %v4649_v30 = vrot.slane %v19802_v0, 4  ;;  %v19804_v57 = vmov %v19802_v0  ;;  %v18353_v20 = vrot.slane %v15638_v19, 6  ;;  %v5001_v24 = vmax.bf16 %v15074_v8, %v14836_v36 }
 0x448   : > { %v4652_v63 = vrot.slane %v19803_v13, 4  ;;  %v4648_v2 = vsel %vm11111_vm11, %v8928_v56, %v19804_v57  ;;  %v3872_v12 = vrot.slane %v3871_v5, 4  ;;  %v15664_v34 = vor.u32 %v3889_v37, %v3886_v31  ;;  %v19806_v31 = vld [vmem:[#allocation60_spill] sm:$0xff]  ;;  %v19807_v56 = vld [vmem:[#allocation119_spill] sm:$0xff] }
 0x449   : > { %v4314_v25 = vmax.bf16 %v3881_v59, %v3247_v23  ;;  %v19805_v44 = vmov %v19803_v13  ;;  %v5002_v40 = vmax.bf16 %v15055_v10, %v14831_v50  ;;  %v5003_v36 = vmax.bf16 %v15080_v26, %v14846_v16  ;;  %v19808_v13 = vld [vmem:[#allocation37_spill] sm:$0xff] }
 0x44a   : > { %v4651_v21 = vsel %vm11111_vm11, %v4649_v30, %v19805_v44  ;;  %v4654_v46 = vsel %vm11111_vm11, %v4652_v63, %v18353_v20  ;;  %v5049_v28 = vmax.bf16 %v5001_v24, %v15307_v42  ;;  %v3876_v23 = vsel %vm10967_vm8, %v3872_v12, %v3875_v58 }
 0x44b   : > { %v3891_v48 = vsel %vm10967_vm8, %v3882_v14, %v15664_v34  ;;  %v15684_v52 = vmax.bf16 %v4651_v21, %v4314_v25  ;;  %v901_v5 = vpack.c.bf16 %v19807_v56, %v19806_v31  ;;  %v4313_v37 = vmax.bf16 %v3876_v23, %v3246_v62 }
 0x44c   : > { %v4315_v0 = vmax.bf16 %v3891_v48, %v3248_v35  ;;  %v5050_v50 = vmax.bf16 %v5002_v40, %v15301_v55  ;;  %v5051_v16 = vmax.bf16 %v5003_v36, %v15314_v60  ;;  %v5097_v30 = vmax.bf16 %v5049_v28, %v15507_v33  ;;  %v19811_v28 = vld [vmem:[#allocation84_spill] sm:$0xff] }
 0x44d   : > { %v2027_v63 = vshrl.u32 %v19808_v13, 16  ;;  %v19809_v58 = vrot.slane %v19808_v13, 5  ;;  %v3863_v14 = vrot.slane %v15467_v22, 4  ;;  %v15695_v57 = vmax.bf16 %v4648_v2, %v4313_v37 }
 0x44e   : > { %v15697_v24 = vmax.bf16 %v4654_v46, %v4315_v0  ;;  %v5098_v62 = vmax.bf16 %v5050_v50, %v15489_v4  ;;  %v5099_v35 = vmax.bf16 %v5051_v16, %v15501_v6  ;;  %v19810_v25 = vrot.slane %v15448_v61, 6  ;;  %v1223_v50 = vld [vmem:[#allocation2 + $0x12c] sm:$0x1] }
 0x44f   : > { %v2958_v59 = vrot.slane %v19809_v58, 4  ;;  %v2029_v12 = vrot.slane %v2027_v63, 4  ;;  %v5531_v21 = vrot.slane %v15489_v4, 6  ;;  %v5533_v40 = vrot.slane %v15501_v6, 6 }
 0x450   : > { %v4644_v44 = vrot.slane %v19810_v25, 4  ;;  %v5145_v36 = vmax.bf16 %v5097_v30, %v15695_v57  ;;  %v5146_v22 = vmax.bf16 %v5098_v62, %v15684_v52  ;;  %v5147_v2 = vmax.bf16 %v5099_v35, %v15697_v24 }
 0x451   : > { %v9019_v46 = vrot.slane %v15507_v33, 10  ;;  %v2030_v23 = vor.u32 %v2029_v12, %v19811_v28  ;;  %v5532_v48 = vrot.slane %v5531_v21, 4  ;;  %v5535_v31 = vrot.slane %v5533_v40, 4 }
 0x452   : > { %v6581_v61 = vmax.bf16 %v15115_v1, %v19633_v11  ;;  %v8948_v56 = vrot.slane %v5145_v36, 11  ;;  %v5290_v37 = vrot.slane %v5146_v22, 7  ;;  %v5293_v0 = vrot.slane %v5147_v2, 7 }
 0x453   : > { %v6345_v16 = vsel %vm11111_vm11, %v9019_v46, %v5531_v21  ;;  %v2031_v30 = vrot.slane %v2030_v23, 4  ;;  %v5534_v13 = vsel %vm11111_vm11, %v5532_v48, %v5533_v40  ;;  %v15717_v63 = vmax.bf16 %v5535_v31, %v15501_v6  ;;  %v19816_v23 = vld [vmem:[#allocation72_spill] sm:$0xff] }
 0x454   : > { %v6441_v58 = vmax.bf16 %v6345_v16, %v15507_v33  ;;  %v5291_v62 = vsel %vm12245_vm14, %v8948_v56, %v5290_v37  ;;  %v5292_v11 = vrot.slane %v5290_v37, 4  ;;  %v15723_v35 = vmax.bf16 %v5534_v13, %v15489_v4  ;;  %v19819_v16 = vld [vmem:[#allocation92_spill] sm:$0xff]  ;;  %v19821_v13 = vld [vmem:[#allocation142_spill] sm:$0xff] }
 0x455   : > { %19812 = vst [vmem:[#allocation66_spill] sm:$0xff] %v15717_v63  ;;  %v6582_v12 = vmax.bf16 %v15125_v53, %v19634_v43  ;;  %v2570_v25 = vmax.bf16 %v2031_v30, %v1223_v50  ;;  %v6583_v40 = vmax.bf16 %v15156_v9, %v19635_v17  ;;  %v6653_v22 = vmax.bf16 %v6581_v61, %v15362_v3  ;;  %v19817_v43 = vld [vmem:[#allocation137_spill] sm:$0xff]  ;;  %v19818_v50 = vld [vmem:[#allocation98_spill] sm:$0xff]  ;;  %v19820_v30 = vld [vmem:[#allocation100_spill] sm:$0xff] }
 0x456   : > { %19813 = vst [vmem:[#allocation28_spill] sm:$0xff] %v15723_v35  ;;  %v15728_v36 = vmax.bf16 %v6441_v58, %v15489_v4  ;;  %v5294_v2 = vsel %vm12245_vm14, %v5292_v11, %v5293_v0  ;;  %v15737_v46 = vmax.bf16 %v15723_v35, %v15501_v6  ;;  %v6845_v48 = vmax.bf16 %v19817_v43, %v19816_v23  ;;  %v19826_v23 = vld [vmem:[#allocation133_spill] sm:$0xff] }
 0x457   : > { %v6654_v28 = vmax.bf16 %v6582_v12, %v15357_v49  ;;  %v8964_v31 = vcombine.low %v5291_v62, %v5294_v2  ;;  %v3245_v56 = vmax.bf16 %v2958_v59, %v2570_v25  ;;  %v6655_v37 = vmax.bf16 %v6583_v40, %v15395_v38  ;;  %v19824_v2 = vld [vmem:[#allocation144_spill] sm:$0xff] }
 0x458   : > { %19814 = vst [vmem:[#allocation207_spill] sm:$0xff] %v15728_v36  ;;  %19815 = vst [vmem:[#allocation181_spill] sm:$0xff] %v15737_v46  ;;  %v6725_v17 = vmax.bf16 %v6653_v22, %v15544_v45  ;;  %v6846_v0 = vmax.bf16 %v19819_v16, %v19818_v50  ;;  %v6847_v58 = vmax.bf16 %v19821_v13, %v19820_v30  ;;  %v15750_v11 = vrot.slane %v15684_v52, 6 }
 0x459   : > { %v6726_v61 = vmax.bf16 %v6654_v28, %v15551_v18  ;;  %7765 = vmatprep.mubr.bf16.mxu1 %v8964_v31  ;;  %v4312_v12 = vmax.bf16 %v3863_v14, %v3245_v56  ;;  %v6727_v62 = vmax.bf16 %v6655_v37, %v15584_v29  ;;  %v5538_v25 = vrot.slane %v15697_v24, 6  ;;  %v19827_v37 = vld [vmem:[#allocation112_spill] sm:$0xff] }
 0x45a   : > { %v15754_v59 = vmax.bf16 %v6725_v17, %v15728_v36  ;;  %7766 = vmatmul.mubr.bf16.gmra.mrb[44].mxu1 %v901_v5  ;;  %v5537_v22 = vrot.slane %v15750_v11, 4  ;;  %v15762_v28 = vrot.slane %v19824_v2, 6  ;;  %v5543_v50 = vrot.slane %v19826_v23, 6 }
 0x45b   : > { %v15758_v40 = vmax.bf16 %v6726_v61, %v15737_v46  ;;  %v4931_v31 = vmax.bf16 %v4644_v44, %v4312_v12  ;;  %v5540_v56 = vrot.slane %v5538_v25, 4  ;;  %v15768_v17 = vmax.bf16 %v19827_v37, %v15074_v8  ;;  %v19846_v46 = vld [vmem:[#allocation73_spill] sm:$0xff] }
 0x45c   : > { %19822 = vst [vmem:[#allocation180_spill] sm:$0xff] %v15754_v59  ;;  %19825 = vst [vmem:[#allocation179_spill] sm:$0xff] %v15762_v28  ;;  %v6893_v14 = vmax.bf16 %v6845_v48, %v15754_v59  ;;  %v5539_v61 = vsel %vm11111_vm11, %v5537_v22, %v5538_v25  ;;  %v5542_v30 = vrot.slane %v15762_v28, 4  ;;  %v5545_v20 = vrot.slane %v5543_v50, 4  ;;  %v19841_v59 = vld [vmem:[#allocation59_spill] sm:$0xff] }
 0x45d   : > { %19823 = vst [vmem:[#allocation173_spill] sm:$0xff] %v15758_v40  ;;  %19828 = vst [vmem:[#allocation168_spill] sm:$0xff] %v15768_v17  ;;  %v6894_v5 = vmax.bf16 %v6846_v0, %v15758_v40  ;;  %v15775_v13 = vmax.bf16 %v15717_v63, %v4931_v31  ;;  %v15779_v44 = vmax.bf16 %v15515_v41, %v15307_v42  ;;  %v19840_v40 = vld [vmem:[#allocation83_spill] sm:$0xff] }
 0x45e   : > { %v9035_v16 = vrot.slane %v6893_v14, 9  ;;  %v15782_v48 = vmax.bf16 %v5531_v21, %v15507_v33  ;;  %v5544_v0 = vsel %vm11111_vm11, %v5542_v30, %v5543_v50  ;;  %v15788_v25 = vmax.bf16 %v15750_v11, %v15695_v57  ;;  %v19836_v14 = vld [vmem:[#allocation82_spill] sm:$0xff] }
 0x45f   : > { %19829 = vst [vmem:[#allocation183_spill] sm:$0xff] %v15775_v13  ;;  %19830 = vst [vmem:[#allocation191_spill] sm:$0xff] %v15779_v44  ;;  %v7015_v12 = vrot.slane %v6894_v5, 5  ;;  %v15791_v22 = vmax.bf16 %v5539_v61, %v15684_v52  ;;  %v15794_v31 = vmax.bf16 %v6727_v62, %v15775_v13  ;;  %v15797_v41 = vmax.bf16 %v5540_v56, %v15697_v24 }
 0x460   : > { %19831 = vst [vmem:[#allocation177_spill] sm:$0xff] %v15782_v48  ;;  %19832 = vst [vmem:[#allocation178_spill] sm:$0xff] %v15788_v25  ;;  %v15801_v21 = vmax.bf16 %v15762_v28, %v19836_v14  ;;  %v15804_v37 = vmax.bf16 %v5544_v0, %v19824_v2  ;;  %v15809_v61 = vmax.bf16 %v5545_v20, %v19826_v23  ;;  %v19842_v28 = vld [vmem:[#allocation125_spill] sm:$0xff]  ;;  %v19845_v20 = vld [vmem:[#allocation190_spill] sm:$0xff] }
 0x461   : > { %19833 = vst [vmem:[#allocation182_spill] sm:$0xff] %v15791_v22  ;;  %19834 = vst [vmem:[#allocation184_spill] sm:$0xff] %v15794_v31  ;;  %v7016_v50 = vsel %vm10899_vm5, %v9035_v16, %v7015_v12  ;;  %v7017_v5 = vrot.slane %v7015_v12, 4  ;;  %v5745_v62 = vmax.bf16 %v19769_v47, %v19714_v15  ;;  %v6895_v56 = vmax.bf16 %v6847_v58, %v15794_v31  ;;  %v19843_v16 = vld [vmem:[#allocation193_spill] sm:$0xff]  ;;  %v19847_v31 = vld [vmem:[#allocation147_spill] sm:$0xff] }
 0x462   : > { %19835 = vst [vmem:[#allocation176_spill] sm:$0xff] %v15797_v41  ;;  %19837 = vst [vmem:[#allocation127_spill] sm:$0xff] %v15801_v21  ;;  %v5746_v30 = vmax.bf16 %v19770_v7, %v19715_v39  ;;  %v5747_v43 = vmax.bf16 %v19841_v59, %v19840_v40  ;;  %v5757_v0 = vmax.bf16 %v15779_v44, %v15768_v17  ;;  %v19848_v7 = vld [vmem:[#allocation69_spill] sm:$0xff] }
 0x463   : > { %19838 = vst [vmem:[#allocation146_spill] sm:$0xff] %v15804_v37  ;;  %19839 = vst [vmem:[#allocation159_spill] sm:$0xff] %v15809_v61  ;;  %v5758_v12 = vmax.bf16 %v19843_v16, %v19842_v28  ;;  %v5759_v13 = vmax.bf16 %v19845_v20, %v19844_v32  ;;  %v5805_v36 = vmax.bf16 %v5745_v62, %v19846_v46  ;;  %v7018_v58 = vrot.slane %v6895_v56, 5  ;;  %v19849_v16 = vld [vmem:[#allocation54_spill] sm:$0xff] }
 0x464   : > { %v5004_v15 = vmax.bf16 %v15307_v42, %v15074_v8  ;;  %v5806_v39 = vmax.bf16 %v5746_v30, %v19847_v31  ;;  %v5807_v47 = vmax.bf16 %v5747_v43, %v19848_v7  ;;  %v5817_v40 = vmax.bf16 %v5757_v0, %v15782_v48  ;;  %v19850_v8 = vld [vmem:[#allocation138_spill] sm:$0xff]  ;;  %v19851_v42 = vld [vmem:[#allocation143_spill] sm:$0xff] }
 0x465   : > { %v5818_v44 = vmax.bf16 %v5758_v12, %v15723_v35  ;;  %v5819_v59 = vmax.bf16 %v5759_v13, %v15717_v63  ;;  %v5865_v29 = vmax.bf16 %v5805_v36, %v19849_v16  ;;  %v5005_v20 = vmax.bf16 %v15301_v55, %v15055_v10 }
 0x466   : > { %v7019_v62 = vsel %vm10899_vm5, %v7017_v5, %v7018_v58  ;;  %v5866_v56 = vmax.bf16 %v5806_v39, %v19850_v8  ;;  %v5867_v30 = vmax.bf16 %v5807_v47, %v19851_v42  ;;  %v5877_v43 = vmax.bf16 %v5817_v40, %v15788_v25  ;;  %v19856_v58 = vld [vmem:[#allocation151_spill] sm:$0xff]  ;;  %v19857_v40 = vld [vmem:[#allocation32_spill] sm:$0xff] }
 0x467   : > { %v9051_v7 = vcombine.low %v7016_v50, %v7019_v62  ;;  %v5878_v0 = vmax.bf16 %v5818_v44, %v15791_v22  ;;  %v5879_v12 = vmax.bf16 %v5819_v59, %v15797_v41  ;;  %v5925_v13 = vmax.bf16 %v5865_v29, %v15768_v17  ;;  %v19855_v59 = vld [vmem:[#allocation141_spill] sm:$0xff] }
 0x468   : > { %v5926_v36 = vmax.bf16 %v5866_v56, %v19842_v28  ;;  %v5927_v10 = vmax.bf16 %v5867_v30, %v19844_v32  ;;  %v15846_v63 = vmax.bf16 %v5877_v43, %v15801_v21  ;;  %v5006_v5 = vmax.bf16 %v15314_v60, %v15080_v26 }
 0x469   : > { %7908 = vmatprep.mubr.bf16.mxu0 %v9051_v7  ;;  %v15851_v47 = vmax.bf16 %v5878_v0, %v15804_v37  ;;  %v15854_v44 = vmax.bf16 %v5879_v12, %v15809_v61  ;;  %v5973_v50 = vmax.bf16 %v5925_v13, %v19855_v59  ;;  %v5052_v29 = vmax.bf16 %v5004_v15, %v15507_v33 }
 0x46a   : > { %19852 = vst [vmem:[#allocation47_spill] sm:$0xff] %v15846_v63  ;;  %v5974_v39 = vmax.bf16 %v5926_v36, %v19856_v58  ;;  %v5975_v62 = vmax.bf16 %v5927_v10, %v19857_v40  ;;  %v5985_v56 = vmax.bf16 %v15846_v63, %v5925_v13  ;;  %v5053_v30 = vmax.bf16 %v5005_v20, %v15489_v4 }
 0x46b   : > { %19853 = vst [vmem:[#allocation196_spill] sm:$0xff] %v15851_v47  ;;  %19854 = vst [vmem:[#allocation124_spill] sm:$0xff] %v15854_v44  ;;  %v5986_v26 = vmax.bf16 %v15851_v47, %v5926_v36  ;;  %v5987_v7 = vmax.bf16 %v15854_v44, %v5927_v10  ;;  %v8975_v43 = vrot.slane %v5973_v50, 10  ;;  %v5054_v0 = vmax.bf16 %v5006_v5, %v15501_v6  ;;  %v19861_v50 = vld [vmem:[#allocation129_spill] sm:$0xff] }
 0x46c   : > { %v6095_v12 = vrot.slane %v5974_v39, 6  ;;  %v6098_v21 = vrot.slane %v5975_v62, 6  ;;  %v15865_v59 = vrot.slane %v5985_v56, 10  ;;  %v5100_v15 = vmax.bf16 %v5052_v29, %v15695_v57  ;;  %v19862_v39 = vld [vmem:[#allocation29_spill] sm:$0xff] }
 0x46d   : > { %v15868_v58 = vrot.slane %v5986_v26, 6  ;;  %v15870_v40 = vrot.slane %v5987_v7, 6  ;;  %v5101_v13 = vmax.bf16 %v5053_v30, %v15684_v52  ;;  %v5102_v20 = vmax.bf16 %v5054_v0, %v15697_v24  ;;  %v19863_v7 = vld [vmem:[#allocation64_spill] sm:$0xff] }
 0x46e   : > { %19858 = vst [vmem:[#allocation189_spill] sm:$0xff] %v15865_v59  ;;  %v6096_v36 = vsel %vm11111_vm11, %v8975_v43, %v6095_v12  ;;  %v6097_v10 = vrot.slane %v6095_v12, 4  ;;  %v5148_v5 = vmax.bf16 %v5100_v15, %v19836_v14  ;;  %v902_v62 = vpack.c.bf16 %v19862_v39, %v19861_v50  ;;  %v19871_v59 = vld [vmem:[#allocation174_spill] sm:$0xff] }
 0x46f   : > { %19859 = vst [vmem:[#allocation186_spill] sm:$0xff] %v15868_v58  ;;  %19860 = vst [vmem:[#allocation77_spill] sm:$0xff] %v15870_v40  ;;  %v5149_v29 = vmax.bf16 %v5101_v13, %v19824_v2  ;;  %v5150_v26 = vmax.bf16 %v5102_v20, %v19826_v23  ;;  %v2066_v44 = vshrl.u32 %v19863_v7, 16  ;;  %v19864_v43 = vrot.slane %v19863_v7, 5 }
 0x470   : > { %v6099_v30 = vsel %vm11111_vm11, %v6097_v10, %v6098_v21  ;;  %v8949_v0 = vrot.slane %v5148_v5, 11  ;;  %v3892_v15 = vrot.slane %v15664_v34, 4  ;;  %v19865_v56 = vrot.slane %v15638_v19, 6  ;;  %v19866_v10 = vld [vmem:[#allocation68_spill] sm:$0xff] }
 0x471   : > { %v2969_v12 = vrot.slane %v19864_v43, 4  ;;  %v8991_v47 = vcombine.low %v6096_v36, %v6099_v30  ;;  %v5297_v63 = vrot.slane %v5149_v29, 7  ;;  %v5300_v50 = vrot.slane %v5150_v26, 7  ;;  %v19868_v26 = vld [vmem:[#allocation43_spill] sm:$0xff] }
 0x472   : > { %v2068_v39 = vrot.slane %v2066_v44, 4  ;;  %v4655_v13 = vrot.slane %v19865_v56, 4  ;;  %v9020_v20 = vrot.slane %v15695_v57, 10  ;;  %v15893_v40 = vmax.bf16 %v15791_v22, %v15697_v24  ;;  %v1227_v44 = vld [vmem:[#allocation2 + $0x13c] sm:$0x1] }
 0x473   : > { %v6584_v21 = vmax.bf16 %v15362_v3, %v15115_v1  ;;  %7909 = vmatmul.mubr.bf16.gmra.mrb[88].mxu0 %v8991_v47  ;;  %v5298_v34 = vsel %vm12245_vm14, %v8949_v0, %v5297_v63  ;;  %v5299_v36 = vrot.slane %v5297_v63, 4  ;;  %v6585_v19 = vmax.bf16 %v15357_v49, %v15125_v53  ;;  %v19867_v47 = vld [vmem:[#allocation170_spill] sm:$0xff] }
 0x474   : > { %v2069_v5 = vor.u32 %v2068_v39, %v19866_v10  ;;  %v6348_v56 = vsel %vm11111_vm11, %v9020_v20, %v15750_v11  ;;  %v6586_v29 = vmax.bf16 %v15395_v38, %v15156_v9  ;;  %v6848_v7 = vmax.bf16 %v19868_v26, %v19867_v47  ;;  %v19869_v39 = vld [vmem:[#allocation58_spill] sm:$0xff]  ;;  %v19870_v11 = vld [vmem:[#allocation207_spill] sm:$0xff]  ;;  %v19872_v9 = vld [vmem:[#allocation165_spill] sm:$0xff] }
 0x475   : > { %v6656_v1 = vmax.bf16 %v6584_v21, %v15544_v45  ;;  %v5301_v63 = vsel %vm12245_vm14, %v5299_v36, %v5300_v50  ;;  %v6442_v0 = vmax.bf16 %v6348_v56, %v15695_v57  ;;  %v6657_v53 = vmax.bf16 %v6585_v19, %v15551_v18  ;;  %v1232_v21 = vld [vmem:[#allocation2 + $0x150] sm:$0xf]  ;;  %v19873_v26 = vld [vmem:[#allocation181_spill] sm:$0xff]  ;;  %v19874_v36 = vld [vmem:[#allocation166_spill] sm:$0xff] }
 0x476   : > { %v2070_v30 = vrot.slane %v2069_v5, 4  ;;  %v8965_v43 = vcombine.low %v5298_v34, %v5301_v63  ;;  %v6658_v10 = vmax.bf16 %v6586_v29, %v19869_v39  ;;  %v6849_v58 = vmax.bf16 %v19872_v9, %v19871_v59  ;;  %v19875_v5 = vld [vmem:[#allocation171_spill] sm:$0xff]  ;;  %v19880_v9 = vld [vmem:[#allocation69_spill] sm:$0xff] }
 0x477   : > { %v6728_v20 = vmax.bf16 %v6656_v1, %v19870_v11  ;;  %v15919_v47 = vmax.bf16 %v6442_v0, %v15684_v52  ;;  %v6729_v50 = vmax.bf16 %v6657_v53, %v19873_v26  ;;  %v6850_v56 = vmax.bf16 %v19875_v5, %v19874_v36  ;;  %v19876_v19 = vld [vmem:[#allocation183_spill] sm:$0xff]  ;;  %v15940_v5 = vld [vmem:[#allocation2 + $0x154] sm:$0xf] }
 0x478   : > { %v2574_v22 = vmax.bf16 %v2070_v30, %v1227_v44  ;;  %7775 = vmatprep.mubr.bf16.mxu1 %v8965_v43  ;;  %v6730_v34 = vmax.bf16 %v6658_v10, %v19876_v19  ;;  %v19877_v63 = vld [vmem:[#allocation167_spill] sm:$0xff]  ;;  %v2111_v43 = vshrl.u32 %v1232_v21, 16 }
 0x479   : > { %v5748_v29 = vmax.bf16 %v19846_v46, %v19877_v63  ;;  %v19878_v1 = vld [vmem:[#allocation75_spill] sm:$0xff]  ;;  %7776 = vmatmul.mubr.bf16.gmra.mrb[48].mxu1 %v902_v62  ;;  %v15932_v0 = vmax.bf16 %v6728_v20, %v15919_v47  ;;  %v15935_v53 = vmax.bf16 %v6729_v50, %v15893_v40 }
 0x47a   : > { %v5749_v25 = vmax.bf16 %v19847_v31, %v19878_v1  ;;  %v19879_v59 = vld [vmem:[#allocation59_spill] sm:$0xff]  ;;  %v3249_v30 = vmax.bf16 %v2969_v12, %v2574_v22  ;;  %v2114_v1 = vshll.u32 %v1232_v21, 16  ;;  %v2113_v12 = vrot.slane %v2111_v43, 4  ;;  %v15957_v43 = vld [vmem:[#allocation2 + $0x158] sm:$0xf] }
 0x47b   : > { %v5750_v44 = vmax.bf16 %v19880_v9, %v19879_v59  ;;  %19881 = vst [vmem:[#allocation128_spill] sm:$0xff] %v15932_v0  ;;  %19882 = vst [vmem:[#allocation96_spill] sm:$0xff] %v15935_v53  ;;  %v5808_v10 = vmax.bf16 %v5748_v29, %v19849_v16  ;;  %v6896_v62 = vmax.bf16 %v6848_v7, %v15932_v0 }
 0x47c   : > { %v5809_v36 = vmax.bf16 %v5749_v25, %v19850_v8  ;;  %v4316_v35 = vmax.bf16 %v3892_v15, %v3249_v30  ;;  %v6897_v22 = vmax.bf16 %v6849_v58, %v15935_v53  ;;  %v2116_v29 = vrot.slane %v2114_v1, 5  ;;  %v19885_v15 = vld [vmem:[#allocation193_spill] sm:$0xff]  ;;  %v19887_v58 = vld [vmem:[#allocation190_spill] sm:$0xff] }
 0x47d   : > { %v5810_v63 = vmax.bf16 %v5750_v44, %v19851_v42  ;;  %v5868_v20 = vmax.bf16 %v5808_v10, %v15768_v17  ;;  %v9036_v25 = vrot.slane %v6896_v62, 9  ;;  %v2120_v44 = vshll.u32 %v15940_v5, 16  ;;  %v19883_v42 = vld [vmem:[#allocation191_spill] sm:$0xff]  ;;  %v19889_v1 = vld [vmem:[#allocation169_spill] sm:$0xff] }
 0x47e   : > { %v5869_v50 = vmax.bf16 %v5809_v36, %v19842_v28  ;;  %v4935_v48 = vmax.bf16 %v4655_v13, %v4316_v35  ;;  %v7022_v61 = vrot.slane %v6897_v22, 5  ;;  %v2117_v10 = vor.u32 %v2116_v29, %v2113_v12  ;;  %v19890_v22 = vld [vmem:[#allocation185_spill] sm:$0xff] }
 0x47f   : > { %v5870_v59 = vmax.bf16 %v5810_v63, %v19844_v32  ;;  %v15949_v9 = vmax.bf16 %v5868_v20, %v19883_v42  ;;  %v2122_v63 = vrot.slane %v2120_v44, 5  ;;  %v2130_v29 = vshll.u32 %v15957_v43, 16 }
 0x480   : > { %v15952_v7 = vmax.bf16 %v5869_v50, %v19885_v15  ;;  %v15960_v36 = vmax.bf16 %v15797_v41, %v4935_v48  ;;  %v7023_v35 = vsel %vm10899_vm5, %v9036_v25, %v7022_v61  ;;  %v7024_v13 = vrot.slane %v7022_v61, 4  ;;  %v19891_v50 = vld [vmem:[#allocation172_spill] sm:$0xff] }
 0x481   : > { %19884 = vst [vmem:[#allocation23_spill] sm:$0xff] %v15949_v9  ;;  %v15955_v30 = vmax.bf16 %v5870_v59, %v19887_v58  ;;  %v5976_v62 = vmax.bf16 %v15949_v9, %v19889_v1  ;;  %v2118_v53 = vrot.slane %v2117_v10, 4  ;;  %v2124_v48 = vshrl.u32 %v15940_v5, 16 }
 0x482   : > { %19886 = vst [vmem:[#allocation20_spill] sm:$0xff] %v15952_v7  ;;  %v5977_v20 = vmax.bf16 %v15952_v7, %v19890_v22  ;;  %v15971_v12 = vmax.bf16 %v6730_v34, %v15960_v36  ;;  %v2134_v61 = vshrl.u32 %v15957_v43, 16  ;;  %v15979_v7 = vld [vmem:[#allocation2 + $0x15c] sm:$0x3]  ;;  %v2983_v28 = vrot.slane %v15940_v5, 5 }
 0x483   : > { %19888 = vst [vmem:[#allocation116_spill] sm:$0xff] %v15955_v30  ;;  %v5978_v59 = vmax.bf16 %v15955_v30, %v19891_v50  ;;  %v8976_v25 = vrot.slane %v5976_v62, 10  ;;  %v2123_v9 = vsel %vm10803_vm2, %v2118_v53, %v2122_v63  ;;  %19894 = vst [vmem:[#allocation46_spill] sm:$0xff] %v15979_v7  ;;  %v2126_v10 = vrot.slane %v2124_v48, 4  ;;  %v2628_v62 = vld [vmem:[#allocation2 + $0x150] sm:$0xe] }
 0x484   : > { %19892 = vst [vmem:[#allocation18_spill] sm:$0xff] %v15971_v12  ;;  %v6102_v0 = vrot.slane %v5977_v20, 6  ;;  %v6898_v22 = vmax.bf16 %v6850_v56, %v15971_v12  ;;  %v2132_v50 = vrot.slane %v2130_v29, 5  ;;  %v2136_v34 = vrot.slane %v2134_v61, 4 }
 0x485   : > { %v6105_v41 = vrot.slane %v5978_v59, 6  ;;  %v2140_v15 = vshll.u32 %v15979_v7, 16  ;;  %v15984_v42 = vmax.bf16 %v2123_v9, %v1232_v21  ;;  %v2127_v59 = vor.u32 %v2126_v10, %v2122_v63 }
 0x486   : > { %v6103_v30 = vsel %vm11111_vm11, %v8976_v25, %v6102_v0  ;;  %v6104_v58 = vrot.slane %v6102_v0, 4  ;;  %v7025_v20 = vrot.slane %v6898_v22, 5  ;;  %v2137_v32 = vor.u32 %v2136_v34, %v2132_v50 }
 0x487   : > { %v8902_v53 = vrot.slane %v2628_v62, 9  ;;  %v15988_v12 = vrot.slane %v2140_v15, 5  ;;  %v2986_v17 = vrot.slane %v15957_v43, 5  ;;  %v2128_v9 = vrot.slane %v2127_v59, 4 }
 0x488   : > { %v6106_v56 = vsel %vm11111_vm11, %v6104_v58, %v6105_v41  ;;  %v7026_v0 = vsel %vm10899_vm5, %v7024_v13, %v7025_v20  ;;  %v2138_v21 = vrot.slane %v2137_v32, 4  ;;  %v2985_v22 = vrot.slane %v2983_v28, 4 }
 0x489   : > { %19895 = vst [vmem:[#allocation55_spill] sm:$0xff] %v15988_v12  ;;  %v8992_v25 = vcombine.low %v6103_v30, %v6106_v56  ;;  %v9052_v8 = vcombine.low %v7023_v35, %v7026_v0  ;;  %v2984_v63 = vsel %vm10899_vm5, %v8902_v53, %v2983_v28  ;;  %v2988_v10 = vrot.slane %v2986_v17, 4  ;;  %v16007_v35 = vld [vmem:[#allocation2 + $0x15c] sm:$0x7] }
 0x48a   : > { %v2133_v41 = vsel %vm10803_vm2, %v2128_v9, %v2132_v50  ;;  %v2143_v15 = vsel %vm10803_vm2, %v2138_v21, %v15988_v12  ;;  %v18411_v58 = vrot.slane %v15979_v7, 5  ;;  %v3254_v13 = vmax.bf16 %v2984_v63, %v15984_v42  ;;  %19896 = vst [vmem:[#allocation56_spill] sm:$0xff] %v16007_v35  ;;  %v2629_v12 = vld [vmem:[#allocation2 + $0x160] sm:$0xe] }
 0x48b   : > { %7918 = vmatprep.mubr.bf16.mxu0 %v9052_v8  ;;  %v2580_v32 = vmax.bf16 %v2133_v41, %v15940_v5  ;;  %v2581_v30 = vmax.bf16 %v2143_v15, %v15957_v43  ;;  %v2987_v28 = vsel %vm10899_vm5, %v2985_v22, %v2986_v17  ;;  %v3923_v34 = vshrl.u32 %v2628_v62, 16  ;;  %v4370_v8 = vld [vmem:[#allocation2 + $0x150] sm:$0xc] }
 0x48c   : > { %7919 = vmatmul.mubr.bf16.gmra.mrb[92].mxu0 %v8992_v25  ;;  %v2990_v50 = vsel %vm10899_vm5, %v2988_v10, %v18411_v58  ;;  %v3926_v20 = vshll.u32 %v2628_v62, 16  ;;  %v3931_v59 = vrot.slane %v2124_v48, 5  ;;  %v3932_v42 = vrot.slane %v2120_v44, 6 }
 0x48d   : > { %v3255_v53 = vmax.bf16 %v2987_v28, %v2580_v32  ;;  %v3256_v56 = vmax.bf16 %v2990_v50, %v2581_v30  ;;  %v3925_v0 = vrot.slane %v3923_v34, 5  ;;  %v3936_v9 = vrot.slane %v2134_v61, 5 }
 0x48e   : > { %v3928_v21 = vrot.slane %v3926_v20, 6  ;;  %v3933_v63 = vor.u32 %v3932_v42, %v3931_v59  ;;  %v3937_v17 = vrot.slane %v2130_v29, 6  ;;  %v3942_v22 = vshrl.u32 %v16007_v35, 16 }
 0x48f   : > { %v3945_v25 = vshll.u32 %v16007_v35, 16  ;;  %v8930_v41 = vrot.slane %v4370_v8, 10  ;;  %v4669_v15 = vrot.slane %v15940_v5, 6  ;;  %v4672_v10 = vrot.slane %v15957_v43, 6  ;;  %v19899_v8 = vld [vmem:[#allocation36_spill] sm:$0xff] }
 0x490   : > { %v3929_v62 = vor.u32 %v3928_v21, %v3925_v0  ;;  %v3935_v48 = vrot.slane %v3933_v63, 4  ;;  %v3938_v44 = vor.u32 %v3937_v17, %v3936_v9  ;;  %v3944_v58 = vrot.slane %v3942_v22, 5 }
 0x491   : > { %v3947_v32 = vrot.slane %v3945_v25, 6  ;;  %v4670_v61 = vsel %vm11111_vm11, %v8930_v41, %v4669_v15  ;;  %v4671_v30 = vrot.slane %v4669_v15, 4  ;;  %v4674_v28 = vrot.slane %v4672_v10, 4  ;;  %v16044_v15 = vld [vmem:[#allocation2 + $0x164] sm:$0xf] }
 0x492   : > { %v3930_v29 = vrot.slane %v3929_v62, 4  ;;  %v3939_v50 = vsel %vm10967_vm8, %v3935_v48, %v3938_v44  ;;  %v3940_v20 = vrot.slane %v3938_v44, 4  ;;  %v18412_v59 = vrot.slane %v16007_v35, 6  ;;  %v19900_v48 = vld [vmem:[#allocation164_spill] sm:$0xff]  ;;  %v19901_v44 = vld [vmem:[#allocation199_spill] sm:$0xff] }
 0x493   : > { %v16022_v5 = vor.u32 %v3947_v32, %v3944_v58  ;;  %v4322_v43 = vmax.bf16 %v3939_v50, %v3255_v53  ;;  %v4673_v42 = vsel %vm11111_vm11, %v4671_v30, %v4672_v10  ;;  %v5007_v0 = vmax.bf16 %v15507_v33, %v19899_v8  ;;  %v1236_v53 = vld [vmem:[#allocation2 + $0x160] sm:$0xf]  ;;  %v16061_v8 = vld [vmem:[#allocation2 + $0x16c] sm:$0x3] }
 0x494   : > { %v3934_v9 = vsel %vm10967_vm8, %v3930_v29, %v3933_v63  ;;  %v4676_v21 = vsel %vm11111_vm11, %v4674_v28, %v18412_v59  ;;  %v5008_v17 = vmax.bf16 %v15489_v4, %v15301_v55  ;;  %v5009_v58 = vmax.bf16 %v15501_v6, %v15314_v60  ;;  %v16053_v28 = vld [vmem:[#allocation2 + $0x168] sm:$0xf]  ;;  %19902 = vst [vmem:[#allocation51_spill] sm:$0xff] %v16061_v8 }
 0x495   : > { %19898 = vst [vmem:[#allocation26_spill] sm:$0xff] %v16022_v5  ;;  %v3949_v22 = vsel %vm10967_vm8, %v3940_v20, %v16022_v5  ;;  %v4321_v25 = vmax.bf16 %v3934_v9, %v3254_v13  ;;  %v16041_v41 = vmax.bf16 %v4673_v42, %v4322_v43  ;;  %v5055_v63 = vmax.bf16 %v5007_v0, %v15695_v57 }
 0x496   : > { %v4323_v10 = vmax.bf16 %v3949_v22, %v3256_v56  ;;  %v5056_v62 = vmax.bf16 %v5008_v17, %v15684_v52  ;;  %v5057_v55 = vmax.bf16 %v5009_v58, %v15697_v24  ;;  %v903_v60 = vpack.c.bf16 %v19901_v44, %v19900_v48 }
 0x497   : > { %v16050_v32 = vmax.bf16 %v4670_v61, %v4321_v25  ;;  %v5103_v30 = vmax.bf16 %v5055_v63, %v19836_v14  ;;  %v2150_v13 = vshrl.u32 %v1236_v53, 16  ;;  %v2153_v29 = vshll.u32 %v1236_v53, 16 }
 0x498   : > { %v16055_v50 = vmax.bf16 %v4676_v21, %v4323_v10  ;;  %v5104_v20 = vmax.bf16 %v5056_v62, %v19824_v2  ;;  %v5105_v56 = vmax.bf16 %v5057_v55, %v19826_v23  ;;  %v2159_v43 = vshll.u32 %v16044_v15, 16 }
 0x499   : > { %v5151_v42 = vmax.bf16 %v5103_v30, %v16050_v32  ;;  %v2152_v61 = vrot.slane %v2150_v13, 4  ;;  %v2155_v0 = vrot.slane %v2153_v29, 5  ;;  %v2163_v9 = vshrl.u32 %v16044_v15, 16 }
 0x49a   : > { %v5152_v17 = vmax.bf16 %v5104_v20, %v16041_v41  ;;  %v5153_v58 = vmax.bf16 %v5105_v56, %v16055_v50  ;;  %v2161_v21 = vrot.slane %v2159_v43, 5  ;;  %v2169_v22 = vshll.u32 %v16053_v28, 16 }
 0x49b   : > { %v8950_v25 = vrot.slane %v5151_v42, 11  ;;  %v2156_v63 = vor.u32 %v2155_v0, %v2152_v61  ;;  %v2165_v10 = vrot.slane %v2163_v9, 4  ;;  %v2173_v62 = vshrl.u32 %v16053_v28, 16 }
 0x49c   : > { %v5304_v55 = vrot.slane %v5152_v17, 7  ;;  %v5307_v48 = vrot.slane %v5153_v58, 7  ;;  %v2171_v44 = vrot.slane %v2169_v22, 5  ;;  %v2179_v30 = vshll.u32 %v16061_v8, 16 }
 0x49d   : > { %v2157_v13 = vrot.slane %v2156_v63, 4  ;;  %v2166_v29 = vor.u32 %v2165_v10, %v2161_v21  ;;  %v2175_v59 = vrot.slane %v2173_v62, 4  ;;  %v8903_v61 = vrot.slane %v2629_v12, 9 }
 0x49e   : > { %v5305_v56 = vsel %vm12245_vm14, %v8950_v25, %v5304_v55  ;;  %v5306_v35 = vrot.slane %v5304_v55, 4  ;;  %v16072_v42 = vrot.slane %v2179_v30, 5  ;;  %v2994_v5 = vrot.slane %v16044_v15, 5 }
 0x49f   : > { %v2162_v0 = vsel %vm10803_vm2, %v2157_v13, %v2161_v21  ;;  %v2167_v17 = vrot.slane %v2166_v29, 4  ;;  %v2176_v58 = vor.u32 %v2175_v59, %v2171_v44  ;;  %v2997_v20 = vrot.slane %v16053_v28, 5 }
 0x4a0   : > { %19903 = vst [vmem:[#allocation188_spill] sm:$0xff] %v16072_v42  ;;  %v5308_v63 = vsel %vm12245_vm14, %v5306_v35, %v5307_v48  ;;  %v2583_v10 = vmax.bf16 %v2162_v0, %v1236_v53  ;;  %v18424_v7 = vrot.slane %v16061_v8, 5  ;;  %v2995_v21 = vsel %vm10899_vm5, %v8903_v61, %v2994_v5  ;;  %v16089_v53 = vld [vmem:[#allocation2 + $0x16c] sm:$0x7] }
 0x4a1   : > { %v8966_v25 = vcombine.low %v5305_v56, %v5308_v63  ;;  %v2172_v55 = vsel %vm10803_vm2, %v2167_v17, %v2171_v44  ;;  %v2177_v30 = vrot.slane %v2176_v58, 4  ;;  %v2996_v13 = vrot.slane %v2994_v5, 4  ;;  %19904 = vst [vmem:[#allocation192_spill] sm:$0xff] %v16089_v53  ;;  %v4371_v58 = vld [vmem:[#allocation2 + $0x160] sm:$0xc] }
 0x4a2   : > { %v2584_v59 = vmax.bf16 %v2172_v55, %v16044_v15  ;;  %v2999_v29 = vrot.slane %v2997_v20, 4  ;;  %v3258_v31 = vmax.bf16 %v2995_v21, %v2583_v10  ;;  %v3952_v48 = vshrl.u32 %v2629_v12, 16 }
 0x4a3   : > { %7785 = vmatprep.mubr.bf16.mxu1 %v8966_v25  ;;  %v2182_v35 = vsel %vm10803_vm2, %v2177_v30, %v16072_v42  ;;  %v3955_v56 = vshll.u32 %v2629_v12, 16  ;;  %v3960_v0 = vrot.slane %v2163_v9, 5  ;;  %v2998_v61 = vsel %vm10899_vm5, %v2996_v13, %v2997_v20 }
 0x4a4   : > { %7786 = vmatmul.mubr.bf16.gmra.mrb[52].mxu1 %v903_v60  ;;  %v2585_v44 = vmax.bf16 %v2182_v35, %v16053_v28  ;;  %v3001_v5 = vsel %vm10899_vm5, %v2999_v29, %v18424_v7  ;;  %v3961_v17 = vrot.slane %v2159_v43, 6  ;;  %v3259_v63 = vmax.bf16 %v2998_v61, %v2584_v59 }
 0x4a5   : > { %v3954_v10 = vrot.slane %v3952_v48, 5  ;;  %v3957_v25 = vrot.slane %v3955_v56, 6  ;;  %v3965_v55 = vrot.slane %v2173_v62, 5  ;;  %v3966_v9 = vrot.slane %v2169_v22, 6 }
 0x4a6   : > { %v3260_v30 = vmax.bf16 %v3001_v5, %v2585_v44  ;;  %v3962_v12 = vor.u32 %v3961_v17, %v3960_v0  ;;  %v3971_v60 = vshrl.u32 %v16089_v53, 16  ;;  %v3974_v35 = vshll.u32 %v16089_v53, 16 }
 0x4a7   : > { %v3958_v21 = vor.u32 %v3957_v25, %v3954_v10  ;;  %v8931_v20 = vrot.slane %v4371_v58, 10  ;;  %v4680_v13 = vrot.slane %v16044_v15, 6  ;;  %v3967_v8 = vor.u32 %v3966_v9, %v3965_v55  ;;  %v10186_v55 = vld [vmem:[#allocation2 + $0x14c] sm:$0x3] }
 0x4a8   : > { %v3964_v42 = vrot.slane %v3962_v12, 4  ;;  %v3973_v29 = vrot.slane %v3971_v60, 5  ;;  %v4683_v43 = vrot.slane %v16053_v28, 6  ;;  %v3976_v48 = vrot.slane %v3974_v35, 6 }
 0x4a9   : > { %v3959_v59 = vrot.slane %v3958_v21, 4  ;;  %v4681_v62 = vsel %vm11111_vm11, %v8931_v20, %v4680_v13  ;;  %v4682_v56 = vrot.slane %v4680_v13, 4  ;;  %v3969_v0 = vrot.slane %v3967_v8, 4  ;;  %v19906_v20 = vld [vmem:[#allocation200_spill] sm:$0xff] }
 0x4aa   : > { %v3968_v22 = vsel %vm10967_vm8, %v3964_v42, %v3967_v8  ;;  %v4685_v44 = vrot.slane %v4683_v43, 4  ;;  %v18423_v61 = vrot.slane %v16089_v53, 6  ;;  %v16109_v5 = vor.u32 %v3976_v48, %v3973_v29  ;;  %v19943_v53 = vld [vmem:[#allocation39_spill] sm:$0xff] }
 0x4ab   : > { %v3963_v15 = vsel %vm10967_vm8, %v3959_v59, %v3962_v12  ;;  %v4326_v17 = vmax.bf16 %v3968_v22, %v3259_v63  ;;  %v4684_v28 = vsel %vm11111_vm11, %v4682_v56, %v4683_v43  ;;  %v5010_v8 = vmax.bf16 %v15695_v57, %v15507_v33  ;;  %v19908_v43 = vld [vmem:[#allocation195_spill] sm:$0xff] }
 0x4ac   : > { %19905 = vst [vmem:[#allocation49_spill] sm:$0xff] %v16109_v5  ;;  %v4325_v58 = vmax.bf16 %v3963_v15, %v3258_v31  ;;  %v4687_v10 = vsel %vm11111_vm11, %v4685_v44, %v18423_v61  ;;  %v5011_v42 = vmax.bf16 %v15684_v52, %v15489_v4  ;;  %v3978_v25 = vsel %vm10967_vm8, %v3969_v0, %v16109_v5  ;;  %v19911_v44 = vld [vmem:[#allocation50_spill] sm:$0xff]  ;;  %v19929_v61 = vld [vmem:[#allocation125_spill] sm:$0xff] }
 0x4ad   : > { %v16124_v63 = vmax.bf16 %v4684_v28, %v4326_v17  ;;  %v5012_v31 = vmax.bf16 %v15697_v24, %v15501_v6  ;;  %v2105_v12 = vshrl.u32 %v10186_v55, 16  ;;  %v4327_v9 = vmax.bf16 %v3978_v25, %v3260_v30  ;;  %v19944_v5 = vld [vmem:[#allocation154_spill] sm:$0xff] }
 0x4ae   : > { %v16128_v60 = vmax.bf16 %v4681_v62, %v4325_v58  ;;  %v5058_v21 = vmax.bf16 %v5010_v8, %v19836_v14  ;;  %v5059_v33 = vmax.bf16 %v5011_v42, %v19824_v2  ;;  %v19907_v13 = vrot.slane %v19906_v20, 5  ;;  %v19909_v62 = vld [vmem:[#allocation201_spill] sm:$0xff]  ;;  %v1231_v42 = vld [vmem:[#allocation2 + $0x14c] sm:$0x1] }
 0x4af   : > { %v5060_v4 = vmax.bf16 %v5012_v31, %v19826_v23  ;;  %v2107_v35 = vrot.slane %v2105_v12, 4  ;;  %v3921_v59 = vrot.slane %v19908_v43, 4  ;;  %v16136_v48 = vmax.bf16 %v4687_v10, %v4327_v9  ;;  %v19912_v12 = vld [vmem:[#allocation179_spill] sm:$0xff] }
 0x4b0   : > { %v2980_v29 = vrot.slane %v19907_v13, 4  ;;  %v5106_v6 = vmax.bf16 %v5058_v21, %v16050_v32  ;;  %v5107_v30 = vmax.bf16 %v5059_v33, %v16041_v41  ;;  %v19910_v56 = vrot.slane %v19909_v62, 6 }
 0x4b1   : > { %v5108_v0 = vmax.bf16 %v5060_v4, %v16055_v50  ;;  %v2108_v15 = vor.u32 %v2107_v35, %v19911_v44  ;;  %v9021_v17 = vrot.slane %v19836_v14, 10  ;;  %v16147_v28 = vmax.bf16 %v15804_v37, %v19826_v23 }
 0x4b2   : > { %v4666_v22 = vrot.slane %v19910_v56, 4  ;;  %v5154_v58 = vmax.bf16 %v5106_v6, %v16128_v60  ;;  %v5155_v10 = vmax.bf16 %v5107_v30, %v16124_v63  ;;  %v18422_v8 = vrot.slane %v16136_v48, 6 }
 0x4b3   : > { %v6587_v25 = vmax.bf16 %v15544_v45, %v15362_v3  ;;  %v5156_v31 = vmax.bf16 %v5108_v0, %v16136_v48  ;;  %v2109_v55 = vrot.slane %v2108_v15, 4  ;;  %v6351_v9 = vsel %vm11111_vm11, %v9021_v17, %v19912_v12  ;;  %v19918_v12 = vld [vmem:[#allocation210_spill] sm:$0xff] }
 0x4b4   : > { %v6588_v21 = vmax.bf16 %v15551_v18, %v15357_v49  ;;  %v8951_v33 = vrot.slane %v5154_v58, 11  ;;  %v5311_v4 = vrot.slane %v5155_v10, 7  ;;  %v5555_v35 = vrot.slane %v18422_v8, 4  ;;  %v19914_v58 = vld [vmem:[#allocation213_spill] sm:$0xff]  ;;  %v19915_v10 = vld [vmem:[#allocation24_spill] sm:$0xff] }
 0x4b5   : > { %v6443_v20 = vmax.bf16 %v6351_v9, %v19836_v14  ;;  %v5314_v13 = vrot.slane %v5156_v31, 7  ;;  %v2578_v43 = vmax.bf16 %v2109_v55, %v1231_v42  ;;  %v6589_v3 = vmax.bf16 %v19869_v39, %v15395_v38  ;;  %v19917_v31 = vld [vmem:[#allocation74_spill] sm:$0xff]  ;;  %v19919_v9 = vld [vmem:[#allocation33_spill] sm:$0xff] }
 0x4b6   : > { %v6659_v6 = vmax.bf16 %v6587_v25, %v19870_v11  ;;  %v5312_v30 = vsel %vm12245_vm14, %v8951_v33, %v5311_v4  ;;  %v5313_v62 = vrot.slane %v5311_v4, 4  ;;  %v16169_v49 = vmax.bf16 %v5555_v35, %v16136_v48  ;;  %v19916_v25 = vld [vmem:[#allocation194_spill] sm:$0xff]  ;;  %v16185_v4 = vld [vmem:[#allocation2 + $0x170] sm:$0xf] }
 0x4b7   : > { %v16172_v56 = vmax.bf16 %v6443_v20, %v19824_v2  ;;  %v3253_v0 = vmax.bf16 %v2980_v29, %v2578_v43  ;;  %v6660_v44 = vmax.bf16 %v6588_v21, %v19873_v26  ;;  %v6661_v15 = vmax.bf16 %v6589_v3, %v19876_v19  ;;  %v19921_v3 = vld [vmem:[#allocation147_spill] sm:$0xff] }
 0x4b8   : > { %19913 = vst [vmem:[#allocation53_spill] sm:$0xff] %v16169_v49  ;;  %v6731_v17 = vmax.bf16 %v6659_v6, %v15919_v47  ;;  %v5315_v38 = vsel %vm12245_vm14, %v5313_v62, %v5314_v13  ;;  %v6851_v42 = vmax.bf16 %v19915_v10, %v19914_v58  ;;  %v6852_v55 = vmax.bf16 %v19917_v31, %v19916_v25  ;;  %v19922_v6 = vld [vmem:[#allocation138_spill] sm:$0xff]  ;;  %v19923_v58 = vld [vmem:[#allocation69_spill] sm:$0xff]  ;;  %v19924_v25 = vld [vmem:[#allocation143_spill] sm:$0xff] }
 0x4b9   : > { %v6853_v33 = vmax.bf16 %v19919_v9, %v19918_v12  ;;  %v8967_v29 = vcombine.low %v5312_v30, %v5315_v38  ;;  %v4320_v21 = vmax.bf16 %v3921_v59, %v3253_v0  ;;  %v6732_v35 = vmax.bf16 %v6660_v44, %v15893_v40  ;;  %v19926_v30 = vld [vmem:[#allocation205_spill] sm:$0xff]  ;;  %v19927_v0 = vld [vmem:[#allocation76_spill] sm:$0xff]  ;;  %v19934_v10 = vld [vmem:[#allocation190_spill] sm:$0xff] }
 0x4ba   : > { %v6733_v20 = vmax.bf16 %v6661_v15, %v15960_v36  ;;  %v16190_v43 = vmax.bf16 %v6731_v17, %v16172_v56  ;;  %v5751_v13 = vmax.bf16 %v19849_v16, %v19846_v46  ;;  %v5752_v62 = vmax.bf16 %v19922_v6, %v19921_v3  ;;  %v19928_v38 = vld [vmem:[#allocation168_spill] sm:$0xff]  ;;  %v19930_v3 = vld [vmem:[#allocation71_spill] sm:$0xff] }
 0x4bb   : > { %v5753_v12 = vmax.bf16 %v19924_v25, %v19923_v58  ;;  %7795 = vmatprep.mubr.bf16.mxu1 %v8967_v29  ;;  %v4939_v8 = vmax.bf16 %v4666_v22, %v4320_v21  ;;  %v16199_v59 = vmax.bf16 %v6732_v35, %v16147_v28  ;;  %v904_v44 = vpack.c.bf16 %v19927_v0, %v19926_v30  ;;  %v16208_v31 = vld [vmem:[#allocation2 + $0x174] sm:$0xf]  ;;  %v19931_v29 = vld [vmem:[#allocation159_spill] sm:$0xff] }
 0x4bc   : > { %19920 = vst [vmem:[#allocation45_spill] sm:$0xff] %v16190_v43  ;;  %v2189_v15 = vshrl.u32 %v16185_v4, 16  ;;  %v6899_v17 = vmax.bf16 %v6851_v42, %v16190_v43  ;;  %v5811_v46 = vmax.bf16 %v5751_v13, %v19928_v38  ;;  %v5812_v7 = vmax.bf16 %v5752_v62, %v19929_v61  ;;  %v19932_v0 = vld [vmem:[#allocation191_spill] sm:$0xff]  ;;  %v19933_v43 = vld [vmem:[#allocation193_spill] sm:$0xff] }
 0x4bd   : > { %19925 = vst [vmem:[#allocation131_spill] sm:$0xff] %v16199_v59  ;;  %v5813_v9 = vmax.bf16 %v5753_v12, %v19930_v3  ;;  %v16211_v22 = vmax.bf16 %v19931_v29, %v4939_v8  ;;  %v6900_v21 = vmax.bf16 %v6852_v55, %v16199_v59  ;;  %7796 = vmatmul.mubr.bf16.gmra.mrb[56].mxu1 %v904_v44  ;;  %v2192_v58 = vshll.u32 %v16185_v4, 16  ;;  %v19936_v29 = vld [vmem:[#allocation177_spill] sm:$0xff]  ;;  %v19938_v44 = vld [vmem:[#allocation28_spill] sm:$0xff]  ;;  %v19942_v8 = vld [vmem:[#allocation63_spill] sm:$0xff] }
 0x4be   : > { %v2191_v35 = vrot.slane %v2189_v15, 4  ;;  %v9037_v30 = vrot.slane %v6899_v17, 9  ;;  %v5871_v42 = vmax.bf16 %v5811_v46, %v19932_v0  ;;  %v5872_v13 = vmax.bf16 %v5812_v7, %v19933_v43  ;;  %v19940_v17 = vld [vmem:[#allocation66_spill] sm:$0xff]  ;;  %v16231_v46 = vld [vmem:[#allocation2 + $0x178] sm:$0xf] }
 0x4bf   : > { %v5873_v62 = vmax.bf16 %v5813_v9, %v19934_v10  ;;  %v16219_v12 = vmax.bf16 %v6733_v20, %v16211_v22  ;;  %v7029_v37 = vrot.slane %v6900_v21, 5  ;;  %v2194_v49 = vrot.slane %v2192_v58, 5  ;;  %v2630_v0 = vld [vmem:[#allocation2 + $0x170] sm:$0xe] }
 0x4c0   : > { %v16223_v55 = vmax.bf16 %v5871_v42, %v19936_v29  ;;  %v16226_v15 = vmax.bf16 %v5872_v13, %v19938_v44  ;;  %v2202_v7 = vshrl.u32 %v16208_v31, 16 }
 0x4c1   : > { %19935 = vst [vmem:[#allocation198_spill] sm:$0xff] %v16219_v12  ;;  %v16229_v59 = vmax.bf16 %v5873_v62, %v19940_v17  ;;  %v6901_v9 = vmax.bf16 %v6853_v33, %v16219_v12  ;;  %v7030_v20 = vsel %vm10899_vm5, %v9037_v30, %v7029_v37  ;;  %v7031_v21 = vrot.slane %v7029_v37, 4 }
 0x4c2   : > { %19937 = vst [vmem:[#allocation95_spill] sm:$0xff] %v16223_v55  ;;  %19939 = vst [vmem:[#allocation80_spill] sm:$0xff] %v16226_v15  ;;  %v2195_v58 = vor.u32 %v2194_v49, %v2191_v35  ;;  %v5979_v42 = vmax.bf16 %v16223_v55, %v19942_v8  ;;  %v5980_v13 = vmax.bf16 %v16226_v15, %v19943_v53  ;;  %v19945_v17 = vshll.u32 %v16208_v31, 16  ;;  %v1283_v35 = vld [vmem:[#allocation2 + $0x17c] sm:$0x3] }
 0x4c3   : > { %19941 = vst [vmem:[#allocation81_spill] sm:$0xff] %v16229_v59  ;;  %v5981_v62 = vmax.bf16 %v16229_v59, %v19944_v5  ;;  %v7032_v29 = vrot.slane %v6901_v9, 5  ;;  %v2204_v33 = vrot.slane %v2202_v7, 4  ;;  %v2208_v12 = vshll.u32 %v16231_v46, 16 }
 0x4c4   : > { %v2200_v44 = vrot.slane %v19945_v17, 5  ;;  %v2196_v10 = vrot.slane %v2195_v58, 4  ;;  %v8977_v30 = vrot.slane %v5979_v42, 10  ;;  %v6109_v37 = vrot.slane %v5980_v13, 6 }
 0x4c5   : > { %v6112_v49 = vrot.slane %v5981_v62, 6  ;;  %v2212_v8 = vshrl.u32 %v16231_v46, 16  ;;  %v7033_v53 = vsel %vm10899_vm5, %v7031_v21, %v7032_v29  ;;  %v2210_v15 = vrot.slane %v2208_v12, 5 }
 0x4c6   : > { %v2201_v5 = vsel %vm10803_vm2, %v2196_v10, %v2200_v44  ;;  %v2205_v59 = vor.u32 %v2204_v33, %v2200_v44  ;;  %v9053_v17 = vcombine.low %v7030_v20, %v7033_v53  ;;  %v6110_v9 = vsel %vm11111_vm11, %v8977_v30, %v6109_v37 }
 0x4c7   : > { %v6111_v58 = vrot.slane %v6109_v37, 4  ;;  %v2214_v55 = vrot.slane %v2212_v8, 4  ;;  %v2218_v13 = vshll.u32 %v1283_v35, 16  ;;  %v2222_v62 = vshrl.u32 %v1283_v35, 16 }
 0x4c8   : > { %v2206_v42 = vrot.slane %v2205_v59, 4  ;;  %v2587_v43 = vmax.bf16 %v2201_v5, %v16185_v4  ;;  %7928 = vmatprep.mubr.bf16.mxu0 %v9053_v17  ;;  %v8904_v10 = vrot.slane %v2630_v0, 9  ;;  %v3005_v44 = vrot.slane %v16208_v31, 5 }
 0x4c9   : > { %v6113_v29 = vsel %vm11111_vm11, %v6111_v58, %v6112_v49  ;;  %v2215_v21 = vor.u32 %v2214_v55, %v2210_v15  ;;  %v2220_v30 = vrot.slane %v2218_v13, 5  ;;  %v2224_v37 = vrot.slane %v2222_v62, 4 }
 0x4ca   : > { %v8993_v20 = vcombine.low %v6110_v9, %v6113_v29  ;;  %v2211_v33 = vsel %vm10803_vm2, %v2206_v42, %v2210_v15  ;;  %v3006_v4 = vsel %vm10899_vm5, %v8904_v10, %v3005_v44  ;;  %v3007_v5 = vrot.slane %v3005_v44, 4  ;;  %v3305_v44 = vld [vmem:[#allocation2 + $0x17c] sm:$0x7] }
 0x4cb   : > { %v2216_v59 = vrot.slane %v2215_v21, 4  ;;  %v2588_v53 = vmax.bf16 %v2211_v33, %v16208_v31  ;;  %v2225_v17 = vor.u32 %v2224_v37, %v2220_v30  ;;  %v3008_v55 = vrot.slane %v16231_v46, 5  ;;  %v4372_v37 = vld [vmem:[#allocation2 + $0x170] sm:$0xc] }
 0x4cc   : > { %7929 = vmatmul.mubr.bf16.gmra.mrb[96].mxu0 %v8993_v20  ;;  %v3011_v49 = vrot.slane %v1283_v35, 5  ;;  %v3262_v58 = vmax.bf16 %v3006_v4, %v2587_v43  ;;  %v3981_v29 = vshrl.u32 %v2630_v0, 16  ;;  %v3984_v15 = vshll.u32 %v2630_v0, 16 }
 0x4cd   : > { %v2221_v9 = vsel %vm10803_vm2, %v2216_v59, %v2220_v30  ;;  %v3989_v42 = vrot.slane %v2202_v7, 5  ;;  %v16265_v13 = vrot.slane %v2225_v17, 4  ;;  %v3009_v21 = vsel %vm10899_vm5, %v3007_v5, %v3008_v55 }
 0x4ce   : > { %v2589_v62 = vmax.bf16 %v2221_v9, %v16231_v46  ;;  %v3010_v10 = vrot.slane %v3008_v55, 4  ;;  %v16270_v20 = vrot.slane %v3011_v49, 4  ;;  %v3263_v33 = vmax.bf16 %v3009_v21, %v2588_v53 }
 0x4cf   : > { %19946 = vst [vmem:[#allocation78_spill] sm:$0xff] %v16265_v13  ;;  %v3983_v35 = vrot.slane %v3981_v29, 5  ;;  %v3986_v43 = vrot.slane %v3984_v15, 6  ;;  %v19948_v0 = vshll.u32 %v16208_v31, 16  ;;  %v3994_v59 = vrot.slane %v2212_v8, 5 }
 0x4d0   : > { %19947 = vst [vmem:[#allocation65_spill] sm:$0xff] %v16270_v20  ;;  %v3012_v30 = vsel %vm10899_vm5, %v3010_v10, %v3011_v49  ;;  %v3995_v4 = vrot.slane %v2208_v12, 6  ;;  %v4000_v1 = vshrl.u32 %v3305_v44, 16  ;;  %v4003_v5 = vshll.u32 %v3305_v44, 16 }
 0x4d1   : > { %v3990_v7 = vrot.slane %v19948_v0, 6  ;;  %v3264_v17 = vmax.bf16 %v3012_v30, %v2589_v62  ;;  %v3987_v9 = vor.u32 %v3986_v43, %v3983_v35  ;;  %v8932_v3 = vrot.slane %v4372_v37, 10 }
 0x4d2   : > { %v3996_v13 = vor.u32 %v3995_v4, %v3994_v59  ;;  %v4691_v53 = vrot.slane %v16208_v31, 6  ;;  %v4002_v15 = vrot.slane %v4000_v1, 5  ;;  %v4005_v21 = vrot.slane %v4003_v5, 6  ;;  %v19950_v4 = vld [vmem:[#allocation46_spill] sm:$0xff] }
 0x4d3   : > { %v3991_v55 = vor.u32 %v3990_v7, %v3989_v42  ;;  %v3988_v29 = vrot.slane %v3987_v9, 4  ;;  %v4694_v20 = vrot.slane %v16231_v46, 6  ;;  %v4697_v43 = vrot.slane %v3305_v44, 6 }
 0x4d4   : > { %v3998_v10 = vrot.slane %v3996_v13, 4  ;;  %v4692_v8 = vsel %vm11111_vm11, %v8932_v3, %v4691_v53  ;;  %v4693_v12 = vrot.slane %v4691_v53, 4  ;;  %v16282_v35 = vor.u32 %v4005_v21, %v4002_v15  ;;  %v19953_v21 = vld [vmem:[#allocation26_spill] sm:$0xff] }
 0x4d5   : > { %v3993_v49 = vrot.slane %v3991_v55, 4  ;;  %v3992_v62 = vsel %vm10967_vm8, %v3988_v29, %v3991_v55  ;;  %v4696_v42 = vrot.slane %v4694_v20, 4  ;;  %v5013_v37 = vmax.bf16 %v19836_v14, %v15695_v57 }
 0x4d6   : > { %v4329_v1 = vmax.bf16 %v3992_v62, %v3262_v58  ;;  %v4695_v46 = vsel %vm11111_vm11, %v4693_v12, %v4694_v20  ;;  %v4007_v3 = vsel %vm10967_vm8, %v3998_v10, %v16282_v35  ;;  %v16296_v59 = vrot.slane %v4697_v43, 4  ;;  %v19954_v10 = vld [vmem:[#allocation56_spill] sm:$0xff] }
 0x4d7   : > { %v3997_v31 = vsel %vm10967_vm8, %v3993_v49, %v3996_v13  ;;  %v4698_v44 = vsel %vm11111_vm11, %v4696_v42, %v4697_v43  ;;  %v4331_v7 = vmax.bf16 %v4007_v3, %v3264_v17  ;;  %v5014_v13 = vmax.bf16 %v19824_v2, %v15684_v52  ;;  %v19956_v3 = vld [vmem:[#allocation55_spill] sm:$0xff] }
 0x4d8   : > { %v4330_v0 = vmax.bf16 %v3997_v31, %v3263_v33  ;;  %v16298_v58 = vmax.bf16 %v4692_v8, %v4329_v1  ;;  %v5015_v57 = vmax.bf16 %v19826_v23, %v15697_v24  ;;  %v5061_v14 = vmax.bf16 %v5013_v37, %v16050_v32 }
 0x4d9   : > { %v2144_v33 = vshrl.u32 %v19950_v4, 16  ;;  %v16308_v9 = vmax.bf16 %v4698_v44, %v4331_v7  ;;  %v5062_v17 = vmax.bf16 %v5014_v13, %v16041_v41  ;;  %v19951_v55 = vrot.slane %v19950_v4, 5 }
 0x4da   : > { %19949 = vst [vmem:[#allocation61_spill] sm:$0xff] %v16298_v58  ;;  %v16302_v20 = vmax.bf16 %v4695_v46, %v4330_v0  ;;  %v9024_v5 = vrot.slane %v16298_v58, 10  ;;  %v5063_v52 = vmax.bf16 %v5015_v57, %v16055_v50  ;;  %v5109_v2 = vmax.bf16 %v5061_v14, %v16128_v60  ;;  %v1235_v57 = vld [vmem:[#allocation2 + $0x15c] sm:$0x1] }
 0x4db   : > { %v2991_v53 = vrot.slane %v19951_v55, 4  ;;  %v2146_v24 = vrot.slane %v2144_v33, 4  ;;  %v5110_v23 = vmax.bf16 %v5062_v17, %v16124_v63  ;;  %v5558_v15 = vrot.slane %v16308_v9, 6 }
 0x4dc   : > { %v16317_v29 = vrot.slane %v16302_v20, 6  ;;  %v3950_v49 = vrot.slane %v19953_v21, 4  ;;  %v19955_v8 = vrot.slane %v19954_v10, 6  ;;  %v5111_v62 = vmax.bf16 %v5063_v52, %v16136_v48 }
 0x4dd   : > { %v5157_v42 = vmax.bf16 %v5109_v2, %v16298_v58  ;;  %v5158_v1 = vmax.bf16 %v5110_v23, %v16302_v20  ;;  %v5560_v46 = vrot.slane %v5558_v15, 4  ;;  %v2147_v0 = vor.u32 %v2146_v24, %v19956_v3 }
 0x4de   : > { %19952 = vst [vmem:[#allocation57_spill] sm:$0xff] %v16317_v29  ;;  %v4677_v12 = vrot.slane %v19955_v8, 4  ;;  %v5557_v43 = vrot.slane %v16317_v29, 4  ;;  %v16330_v31 = vsel %vm11111_vm11, %v9024_v5, %v16317_v29  ;;  %v5159_v44 = vmax.bf16 %v5111_v62, %v16308_v9 }
 0x4df   : > { %v8952_v7 = vrot.slane %v5157_v42, 11  ;;  %v16340_v14 = vrot.slane %v16041_v41, 6  ;;  %v5318_v4 = vrot.slane %v5158_v1, 7  ;;  %v16346_v17 = vmax.bf16 %v5560_v46, %v16308_v9 }
 0x4e0   : > { %v5559_v13 = vsel %vm11111_vm11, %v5557_v43, %v5558_v15  ;;  %v2148_v5 = vrot.slane %v2147_v0, 4  ;;  %v5321_v55 = vrot.slane %v5159_v44, 7  ;;  %v5548_v2 = vrot.slane %v16055_v50, 6 }
 0x4e1   : > { %v16343_v33 = vmax.bf16 %v5559_v13, %v16302_v20  ;;  %19958 = vst [vmem:[#allocation40_spill] sm:$0xff] %v16346_v17  ;;  %v5547_v52 = vrot.slane %v16340_v14, 4  ;;  %v9022_v24 = vrot.slane %v16050_v32, 10  ;;  %v5319_v23 = vsel %vm12245_vm14, %v8952_v7, %v5318_v4 }
 0x4e2   : > { %v5320_v15 = vrot.slane %v5318_v4, 4  ;;  %v2582_v21 = vmax.bf16 %v2148_v5, %v1235_v57  ;;  %v6590_v10 = vmax.bf16 %v19870_v11, %v15544_v45  ;;  %v5550_v62 = vrot.slane %v5548_v2, 4 }
 0x4e3   : > { %19957 = vst [vmem:[#allocation211_spill] sm:$0xff] %v16343_v33  ;;  %v5549_v8 = vsel %vm11111_vm11, %v5547_v52, %v5548_v2  ;;  %v6354_v42 = vsel %vm11111_vm11, %v9022_v24, %v16340_v14  ;;  %v6591_v43 = vmax.bf16 %v19873_v26, %v15551_v18  ;;  %v6592_v7 = vmax.bf16 %v19876_v19, %v19869_v39  ;;  %v19960_v52 = vld [vmem:[#allocation27_spill] sm:$0xff]  ;;  %v19961_v2 = vld [vmem:[#allocation140_spill] sm:$0xff] }
 0x4e4   : > { %v5322_v1 = vsel %vm12245_vm14, %v5320_v15, %v5321_v55  ;;  %v3257_v46 = vmax.bf16 %v2991_v53, %v2582_v21  ;;  %v16365_v3 = vmax.bf16 %v5549_v8, %v16041_v41  ;;  %v6444_v45 = vmax.bf16 %v6354_v42, %v16050_v32  ;;  %v19959_v55 = vld [vmem:[#allocation150_spill] sm:$0xff]  ;;  %v19962_v24 = vld [vmem:[#allocation52_spill] sm:$0xff] }
 0x4e5   : > { %v8968_v0 = vcombine.low %v5319_v23, %v5322_v1  ;;  %v16369_v44 = vmax.bf16 %v5550_v62, %v16055_v50  ;;  %v6662_v13 = vmax.bf16 %v6590_v10, %v15919_v47  ;;  %v6663_v53 = vmax.bf16 %v6591_v43, %v15893_v40  ;;  %v19963_v15 = vld [vmem:[#allocation158_spill] sm:$0xff]  ;;  %v19966_v43 = vld [vmem:[#allocation71_spill] sm:$0xff] }
 0x4e6   : > { %v4324_v57 = vmax.bf16 %v3950_v49, %v3257_v46  ;;  %v16375_v18 = vmax.bf16 %v6444_v45, %v16041_v41  ;;  %v16379_v54 = vmax.bf16 %v16365_v3, %v16055_v50  ;;  %v6664_v4 = vmax.bf16 %v6592_v7, %v15960_v36  ;;  %v19964_v21 = vld [vmem:[#allocation134_spill] sm:$0xff]  ;;  %v19968_v45 = vld [vmem:[#allocation191_spill] sm:$0xff] }
 0x4e7   : > { %7805 = vmatprep.mubr.bf16.mxu1 %v8968_v0  ;;  %v6734_v5 = vmax.bf16 %v6662_v13, %v16172_v56  ;;  %v6854_v39 = vmax.bf16 %v19960_v52, %v19959_v55  ;;  %v6855_v49 = vmax.bf16 %v19962_v24, %v19961_v2  ;;  %v6735_v41 = vmax.bf16 %v6663_v53, %v16147_v28 }
 0x4e8   : > { %v4943_v23 = vmax.bf16 %v4677_v12, %v4324_v57  ;;  %v6856_v50 = vmax.bf16 %v19964_v21, %v19963_v15  ;;  %v5754_v10 = vmax.bf16 %v19928_v38, %v19849_v16  ;;  %v6736_v8 = vmax.bf16 %v6664_v4, %v16211_v22  ;;  %v19969_v16 = vld [vmem:[#allocation139_spill] sm:$0xff]  ;;  %v19970_v38 = vld [vmem:[#allocation136_spill] sm:$0xff]  ;;  %v19971_v57 = vld [vmem:[#allocation193_spill] sm:$0xff] }
 0x4e9   : > { %v16395_v62 = vmax.bf16 %v6734_v5, %v16375_v18  ;;  %v5755_v42 = vmax.bf16 %v19929_v61, %v19922_v6  ;;  %v5756_v1 = vmax.bf16 %v19966_v43, %v19924_v25  ;;  %v16405_v46 = vmax.bf16 %v6735_v41, %v16379_v54  ;;  %v19972_v4 = vld [vmem:[#allocation190_spill] sm:$0xff]  ;;  %v19973_v6 = vld [vmem:[#allocation51_spill] sm:$0xff]  ;;  %v19983_v21 = vld [vmem:[#allocation49_spill] sm:$0xff] }
 0x4ea   : > { %v16402_v12 = vmax.bf16 %v16369_v44, %v4943_v23  ;;  %v5814_v0 = vmax.bf16 %v5754_v10, %v19968_v45  ;;  %v905_v7 = vpack.c.bf16 %v19970_v38, %v19969_v16  ;;  %v19974_v5 = vshrl.u32 %v19973_v6, 16  ;;  %v19976_v23 = vld [vmem:[#allocation177_spill] sm:$0xff] }
 0x4eb   : > { %19965 = vst [vmem:[#allocation206_spill] sm:$0xff] %v16395_v62  ;;  %19967 = vst [vmem:[#allocation121_spill] sm:$0xff] %v16405_v46  ;;  %v6902_v13 = vmax.bf16 %v6854_v39, %v16395_v62  ;;  %v5815_v53 = vmax.bf16 %v5755_v42, %v19971_v57  ;;  %v5816_v61 = vmax.bf16 %v5756_v1, %v19972_v4  ;;  %v19977_v15 = vrot.slane %v19973_v6, 5  ;;  %v19978_v39 = vld [vmem:[#allocation28_spill] sm:$0xff]  ;;  %v19979_v42 = vld [vmem:[#allocation66_spill] sm:$0xff] }
 0x4ec   : > { %v2185_v25 = vrot.slane %v19974_v5, 4  ;;  %v16416_v55 = vmax.bf16 %v6736_v8, %v16402_v12  ;;  %v6903_v2 = vmax.bf16 %v6855_v49, %v16405_v46  ;;  %v5874_v41 = vmax.bf16 %v5814_v0, %v19976_v23  ;;  %7806 = vmatmul.mubr.bf16.gmra.mrb[60].mxu1 %v905_v7  ;;  %v19980_v1 = vld [vmem:[#allocation188_spill] sm:$0xff]  ;;  %v19981_v8 = vld [vmem:[#allocation178_spill] sm:$0xff]  ;;  %v1239_v49 = vld [vmem:[#allocation2 + $0x16c] sm:$0x1] }
 0x4ed   : > { %v3002_v10 = vrot.slane %v19977_v15, 4  ;;  %v9038_v43 = vrot.slane %v6902_v13, 9  ;;  %v5875_v16 = vmax.bf16 %v5815_v53, %v19978_v39  ;;  %v5876_v38 = vmax.bf16 %v5816_v61, %v19979_v42  ;;  %v19984_v7 = vld [vmem:[#allocation182_spill] sm:$0xff]  ;;  %v19986_v6 = vld [vmem:[#allocation176_spill] sm:$0xff] }
 0x4ee   : > { %19975 = vst [vmem:[#allocation15_spill] sm:$0xff] %v16416_v55  ;;  %v2186_v30 = vor.u32 %v2185_v25, %v19980_v1  ;;  %v6904_v5 = vmax.bf16 %v6856_v50, %v16416_v55  ;;  %v7036_v37 = vrot.slane %v6903_v2, 5  ;;  %v16427_v29 = vmax.bf16 %v5874_v41, %v19981_v8  ;;  %v19988_v15 = vld [vmem:[#allocation192_spill] sm:$0xff]  ;;  %v19990_v41 = vld [vmem:[#allocation22_spill] sm:$0xff]  ;;  %v19991_v55 = vld [vmem:[#allocation19_spill] sm:$0xff] }
 0x4ef   : > { %v3979_v0 = vrot.slane %v19983_v21, 4  ;;  %v16431_v46 = vmax.bf16 %v5875_v16, %v19984_v7  ;;  %v16434_v13 = vmax.bf16 %v5876_v38, %v19986_v6  ;;  %v19989_v61 = vrot.slane %v19988_v15, 6  ;;  %v19992_v16 = vld [vmem:[#allocation62_spill] sm:$0xff] }
 0x4f0   : > { %19982 = vst [vmem:[#allocation145_spill] sm:$0xff] %v16427_v29  ;;  %v2187_v53 = vrot.slane %v2186_v30, 4  ;;  %v7037_v50 = vsel %vm10899_vm5, %v9038_v43, %v7036_v37  ;;  %v7038_v25 = vrot.slane %v7036_v37, 4  ;;  %v7039_v2 = vrot.slane %v6904_v5, 5 }
 0x4f1   : > { %19985 = vst [vmem:[#allocation79_spill] sm:$0xff] %v16431_v46  ;;  %19987 = vst [vmem:[#allocation41_spill] sm:$0xff] %v16434_v13  ;;  %v4688_v24 = vrot.slane %v19989_v61, 4  ;;  %v5982_v1 = vmax.bf16 %v16427_v29, %v19990_v41  ;;  %v5983_v21 = vmax.bf16 %v16431_v46, %v19991_v55  ;;  %v5984_v62 = vmax.bf16 %v16434_v13, %v19992_v16 }
 0x4f2   : > { %v2586_v38 = vmax.bf16 %v2187_v53, %v1239_v49  ;;  %v16447_v30 = vrot.slane %v16124_v63, 6  ;;  %v7040_v15 = vsel %vm10899_vm5, %v7038_v25, %v7039_v2  ;;  %v9023_v37 = vrot.slane %v16128_v60, 10 }
 0x4f3   : > { %v8978_v61 = vrot.slane %v5982_v1, 10  ;;  %v6593_v43 = vmax.bf16 %v15919_v47, %v19870_v11  ;;  %v9054_v5 = vcombine.low %v7037_v50, %v7040_v15  ;;  %v6116_v41 = vrot.slane %v5983_v21, 6 }
 0x4f4   : > { %v6119_v29 = vrot.slane %v5984_v62, 6  ;;  %v3261_v55 = vmax.bf16 %v3002_v10, %v2586_v38  ;;  %v5552_v46 = vrot.slane %v16447_v30, 4  ;;  %v6357_v49 = vsel %vm11111_vm11, %v9023_v37, %v16447_v30 }
 0x4f5   : > { %v6594_v53 = vmax.bf16 %v15893_v40, %v19873_v26  ;;  %v6595_v25 = vmax.bf16 %v15960_v36, %v19876_v19  ;;  %7938 = vmatprep.mubr.bf16.mxu0 %v9054_v5  ;;  %v6117_v11 = vsel %vm11111_vm11, %v8978_v61, %v6116_v41  ;;  %v6118_v50 = vrot.slane %v6116_v41, 4  ;;  %v1243_v5 = vld [vmem:[#allocation2 + $0x17c] sm:$0x1] }
 0x4f6   : > { %v4328_v2 = vmax.bf16 %v3979_v0, %v3261_v55  ;;  %v6445_v62 = vmax.bf16 %v6357_v49, %v16128_v60  ;;  %v19993_v10 = vrot.slane %v16136_v48, 6  ;;  %v6665_v21 = vmax.bf16 %v6593_v43, %v16172_v56  ;;  %v19995_v55 = vld [vmem:[#allocation137_spill] sm:$0xff]  ;;  %v19996_v49 = vld [vmem:[#allocation180_spill] sm:$0xff] }
 0x4f7   : > { %v6666_v26 = vmax.bf16 %v6594_v53, %v16147_v28  ;;  %v6667_v16 = vmax.bf16 %v6595_v25, %v16211_v22  ;;  %v6120_v19 = vsel %vm11111_vm11, %v6118_v50, %v6119_v29  ;;  %v19994_v29 = vld [vmem:[#allocation53_spill] sm:$0xff]  ;;  %v6857_v53 = vmax.bf16 %v19996_v49, %v19995_v55  ;;  %v20008_v55 = vld [vmem:[#allocation78_spill] sm:$0xff] }
 0x4f8   : > { %v5554_v1 = vsel %vm11111_vm11, %v5552_v46, %v19993_v10  ;;  %v4947_v38 = vmax.bf16 %v4688_v24, %v4328_v2  ;;  %v16478_v0 = vmax.bf16 %v6445_v62, %v16124_v63  ;;  %v8994_v61 = vcombine.low %v6117_v11, %v6120_v19  ;;  %v19998_v25 = vld [vmem:[#allocation173_spill] sm:$0xff]  ;;  %v20000_v2 = vld [vmem:[#allocation142_spill] sm:$0xff]  ;;  %v20001_v62 = vld [vmem:[#allocation184_spill] sm:$0xff] }
 0x4f9   : > { %v16475_v15 = vmax.bf16 %v5554_v1, %v16124_v63  ;;  %v6737_v37 = vmax.bf16 %v6665_v21, %v16375_v18  ;;  %v6738_v46 = vmax.bf16 %v6666_v26, %v16379_v54  ;;  %v6739_v43 = vmax.bf16 %v6667_v16, %v16402_v12  ;;  %v19997_v63 = vld [vmem:[#allocation92_spill] sm:$0xff]  ;;  %v20002_v1 = vld [vmem:[#allocation186_spill] sm:$0xff]  ;;  %v20003_v21 = vld [vmem:[#allocation189_spill] sm:$0xff] }
 0x4fa   : > { %v16488_v24 = vmax.bf16 %v19994_v29, %v4947_v38  ;;  %v6858_v11 = vmax.bf16 %v19998_v25, %v19997_v63  ;;  %7939 = vmatmul.mubr.bf16.gmra.mrb[100].mxu0 %v8994_v61  ;;  %v6859_v10 = vmax.bf16 %v20001_v62, %v20000_v2  ;;  %v20004_v26 = vld [vmem:[#allocation77_spill] sm:$0xff]  ;;  %v20005_v16 = vrot.slane %v20002_v1, 4  ;;  %v20017_v25 = vld [vmem:[#allocation18_spill] sm:$0xff] }
 0x4fb   : > { %v16485_v41 = vmax.bf16 %v16475_v15, %v16136_v48  ;;  %v16495_v50 = vmax.bf16 %v6737_v37, %v16478_v0  ;;  %v6124_v48 = vsel %vm11111_vm11, %v20003_v21, %v20002_v1  ;;  %v2590_v63 = vmax.bf16 %v20008_v55, %v1243_v5  ;;  %v20010_v5 = vld [vmem:[#allocation65_spill] sm:$0xff] }
 0x4fc   : > { %v6127_v19 = vsel %vm11111_vm11, %v20005_v16, %v20004_v26  ;;  %v16512_v61 = vmax.bf16 %v6739_v43, %v16488_v24  ;;  %v20009_v21 = vmax.bf16 %v16330_v31, %v16298_v58  ;;  %v16524_v1 = vmax.bf16 %v16343_v33, %v16308_v9  ;;  %v20011_v9 = vld [vmem:[#allocation43_spill] sm:$0xff] }
 0x4fd   : > { %19999 = vst [vmem:[#allocation31_spill] sm:$0xff] %v16495_v50  ;;  %v16509_v38 = vmax.bf16 %v6738_v46, %v16485_v41  ;;  %v8995_v37 = vcombine.low %v6124_v48, %v6127_v19  ;;  %v6905_v2 = vmax.bf16 %v6857_v53, %v16495_v50  ;;  %v6596_v46 = vmax.bf16 %v16172_v56, %v15919_v47  ;;  %v20012_v19 = vld [vmem:[#allocation128_spill] sm:$0xff] }
 0x4fe   : > { %20007 = vst [vmem:[#allocation16_spill] sm:$0xff] %v16512_v61  ;;  %v16520_v62 = vmax.bf16 %v20009_v21, %v16302_v20  ;;  %v6907_v48 = vmax.bf16 %v6859_v10, %v16512_v61  ;;  %v3265_v26 = vmax.bf16 %v20010_v5, %v2590_v63  ;;  %v6597_v53 = vmax.bf16 %v16147_v28, %v15893_v40  ;;  %v20015_v5 = vld [vmem:[#allocation96_spill] sm:$0xff] }
 0x4ff   : > { %20006 = vst [vmem:[#allocation35_spill] sm:$0xff] %v16509_v38  ;;  %v6906_v43 = vmax.bf16 %v6858_v11, %v16509_v38  ;;  %v9039_v16 = vrot.slane %v6905_v2, 9  ;;  %v6598_v20 = vmax.bf16 %v16211_v22, %v15960_v36  ;;  %v6668_v31 = vmax.bf16 %v6596_v46, %v16375_v18  ;;  %v20014_v2 = vld [vmem:[#allocation165_spill] sm:$0xff]  ;;  %v20016_v36 = vld [vmem:[#allocation171_spill] sm:$0xff] }
 0x500   : > { %v6860_v55 = vmax.bf16 %v20012_v19, %v20011_v9  ;;  %v7046_v47 = vrot.slane %v6907_v48, 5  ;;  %v20013_v11 = vrot.slane %v16282_v35, 4  ;;  %v6669_v10 = vmax.bf16 %v6597_v53, %v16379_v54 }
 0x501   : > { %v7043_v21 = vrot.slane %v6906_v43, 5  ;;  %v6670_v63 = vmax.bf16 %v6598_v20, %v16402_v12  ;;  %v6740_v40 = vmax.bf16 %v6668_v31, %v16478_v0  ;;  %v6861_v61 = vmax.bf16 %v20015_v5, %v20014_v2  ;;  %v16580_v2 = vld [vmem:[#allocation2 + $0x184] sm:$0xf]  ;;  %v20029_v5 = vld [vmem:[#allocation116_spill] sm:$0xff] }
 0x502   : > { %v4332_v38 = vmax.bf16 %v20013_v11, %v3265_v26  ;;  %v6862_v46 = vmax.bf16 %v20017_v25, %v20016_v36  ;;  %v6741_v35 = vmax.bf16 %v6669_v10, %v16485_v41  ;;  %v16557_v20 = vmax.bf16 %v16340_v14, %v16050_v32  ;;  %v1244_v11 = vld [vmem:[#allocation2 + $0x180] sm:$0xf] }
 0x503   : > { %v7044_v9 = vsel %vm10899_vm5, %v9039_v16, %v7043_v21  ;;  %v7045_v43 = vrot.slane %v7043_v21, 4  ;;  %v6742_v26 = vmax.bf16 %v6670_v63, %v16488_v24  ;;  %v16553_v53 = vmax.bf16 %v6740_v40, %v16520_v62 }
 0x504   : > { %v4951_v48 = vmax.bf16 %v16296_v59, %v4332_v38  ;;  %v5760_v31 = vmax.bf16 %v19976_v23, %v19968_v45  ;;  %v16567_v38 = vmax.bf16 %v6741_v35, %v16524_v1  ;;  %v5761_v21 = vmax.bf16 %v19978_v39, %v19971_v57 }
 0x505   : > { %20018 = vst [vmem:[#allocation85_spill] sm:$0xff] %v16553_v53  ;;  %v7047_v16 = vsel %vm10899_vm5, %v7045_v43, %v7046_v47  ;;  %v6908_v32 = vmax.bf16 %v6860_v55, %v16553_v53  ;;  %v5762_v14 = vmax.bf16 %v19979_v42, %v19972_v4  ;;  %v2228_v36 = vshrl.u32 %v1244_v11, 16  ;;  %v20021_v55 = vld [vmem:[#allocation127_spill] sm:$0xff] }
 0x506   : > { %v16564_v59 = vmax.bf16 %v16346_v17, %v4951_v48  ;;  %20019 = vst [vmem:[#allocation106_spill] sm:$0xff] %v16567_v38  ;;  %v9055_v10 = vcombine.low %v7044_v9, %v7047_v16  ;;  %v5820_v45 = vmax.bf16 %v5760_v31, %v19981_v8  ;;  %v6909_v47 = vmax.bf16 %v6861_v61, %v16567_v38  ;;  %v20023_v61 = vld [vmem:[#allocation159_spill] sm:$0xff] }
 0x507   : > { %v5821_v40 = vmax.bf16 %v5761_v21, %v19984_v7  ;;  %v9040_v57 = vrot.slane %v6908_v32, 9  ;;  %v5822_v9 = vmax.bf16 %v5762_v14, %v19986_v6  ;;  %v2231_v48 = vshll.u32 %v1244_v11, 16  ;;  %v16590_v38 = vld [vmem:[#allocation2 + $0x188] sm:$0xf] }
 0x508   : > { %v16576_v63 = vmax.bf16 %v6742_v26, %v16564_v59  ;;  %7948 = vmatprep.mubr.bf16.mxu1 %v9055_v10  ;;  %v5880_v43 = vmax.bf16 %v5820_v45, %v20021_v55  ;;  %v7050_v35 = vrot.slane %v6909_v47, 5  ;;  %v20022_v26 = vld [vmem:[#allocation146_spill] sm:$0xff]  ;;  %v2230_v16 = vrot.slane %v2228_v36, 4 }
 0x509   : > { %7949 = vmatmul.mubr.bf16.vlgmr.msra.gmra.mrb[40].mxu1 %v8995_v37  ;;  %v5881_v31 = vmax.bf16 %v5821_v40, %v20022_v26  ;;  %v5882_v25 = vmax.bf16 %v5822_v9, %v20023_v61  ;;  %v2233_v10 = vrot.slane %v2231_v48, 5  ;;  %v18450_v32 = vshll.u32 %v16580_v2, 16  ;;  %v20027_v40 = vld [vmem:[#allocation23_spill] sm:$0xff] }
 0x50a   : > { %20020 = vst [vmem:[#allocation67_spill] sm:$0xff] %v16576_v63  ;;  %v6910_v4 = vmax.bf16 %v6862_v46, %v16576_v63  ;;  %v16588_v21 = vmax.bf16 %v5880_v43, %v16557_v20  ;;  %v7051_v14 = vsel %vm10899_vm5, %v9040_v57, %v7050_v35  ;;  %v7052_v37 = vrot.slane %v7050_v35, 4  ;;  %v20028_v63 = vld [vmem:[#allocation20_spill] sm:$0xff] }
 0x50b   : > { %v16596_v46 = vmax.bf16 %v5881_v31, %v16365_v3  ;;  %v16599_v47 = vmax.bf16 %v5882_v25, %v16369_v44  ;;  %v2234_v9 = vor.u32 %v2233_v10, %v2230_v16  ;;  %v2239_v43 = vrot.slane %v18450_v32, 5 }
 0x50c   : > { %20024 = vst [vmem:[#allocation93_spill] sm:$0xff] %v16588_v21  ;;  %v7053_v45 = vrot.slane %v6910_v4, 5  ;;  %v5988_v36 = vmax.bf16 %v16588_v21, %v20027_v40  ;;  %v1284_v4 = vld [vmem:[#allocation2 + $0x18c] sm:$0x3]  ;;  %v2241_v35 = vshrl.u32 %v16580_v2, 16  ;;  %v2247_v31 = vshll.u32 %v16590_v38, 16 }
 0x50d   : > { %20025 = vst [vmem:[#allocation90_spill] sm:$0xff] %v16596_v46  ;;  %20026 = vst [vmem:[#allocation86_spill] sm:$0xff] %v16599_v47  ;;  %v5989_v57 = vmax.bf16 %v16596_v46, %v20028_v63  ;;  %v5990_v53 = vmax.bf16 %v16599_v47, %v20029_v5  ;;  %v2235_v16 = vrot.slane %v2234_v9, 4  ;;  %v2251_v19 = vshrl.u32 %v16590_v38, 16 }
 0x50e   : > { %v7054_v48 = vsel %vm10899_vm5, %v7052_v37, %v7053_v45  ;;  %v8980_v40 = vrot.slane %v5988_v36, 10  ;;  %v2243_v21 = vrot.slane %v2241_v35, 4  ;;  %v2249_v32 = vrot.slane %v2247_v31, 5  ;;  %v2631_v36 = vld [vmem:[#allocation2 + $0x180] sm:$0xe] }
 0x50f   : > { %v9056_v25 = vcombine.low %v7051_v14, %v7054_v48  ;;  %v6130_v10 = vrot.slane %v5989_v57, 6  ;;  %v6133_v37 = vrot.slane %v5990_v53, 6  ;;  %v2240_v63 = vsel %vm10803_vm2, %v2235_v16, %v2239_v43 }
 0x510   : > { %v2257_v46 = vshll.u32 %v1284_v4, 16  ;;  %v2261_v50 = vshrl.u32 %v1284_v4, 16  ;;  %v2244_v49 = vor.u32 %v2243_v21, %v2239_v43  ;;  %v2253_v5 = vrot.slane %v2251_v19, 4  ;;  %v1247_v21 = vld [vmem:[#allocation2 + $0x18c] sm:$0x1] }
 0x511   : > { %7958 = vmatprep.mubr.bf16.mxu1 %v9056_v25  ;;  %v6131_v14 = vsel %vm11111_vm11, %v8980_v40, %v6130_v10  ;;  %v6132_v48 = vrot.slane %v6130_v10, 4  ;;  %v16618_v47 = vmax.bf16 %v2240_v63, %v1244_v11  ;;  %v8905_v13 = vrot.slane %v2631_v36, 9 }
 0x512   : > { %v2259_v9 = vrot.slane %v2257_v46, 5  ;;  %v2263_v57 = vrot.slane %v2261_v50, 4  ;;  %v2245_v25 = vrot.slane %v2244_v49, 4  ;;  %v2254_v17 = vor.u32 %v2253_v5, %v2249_v32 }
 0x513   : > { %v6134_v53 = vsel %vm11111_vm11, %v6132_v48, %v6133_v37  ;;  %v3016_v16 = vrot.slane %v16580_v2, 5  ;;  %v3019_v40 = vrot.slane %v16590_v38, 5  ;;  %v3022_v10 = vrot.slane %v1284_v4, 5 }
 0x514   : > { %v8996_v33 = vcombine.low %v6131_v14, %v6134_v53  ;;  %v2264_v58 = vor.u32 %v2263_v57, %v2259_v9  ;;  %v2250_v46 = vsel %vm10803_vm2, %v2245_v25, %v2249_v32  ;;  %v2255_v50 = vrot.slane %v2254_v17, 4 }
 0x515   : > { %v3017_v11 = vsel %vm10899_vm5, %v8905_v13, %v3016_v16  ;;  %v3018_v43 = vrot.slane %v3016_v16, 4  ;;  %v2592_v49 = vmax.bf16 %v2250_v46, %v16580_v2  ;;  %v3021_v63 = vrot.slane %v3019_v40, 4  ;;  %v3306_v13 = vld [vmem:[#allocation2 + $0x18c] sm:$0x7] }
 0x516   : > { %7959 = vmatmul.mubr.bf16.gmra.mrb[44].mxu1 %v8996_v33  ;;  %v2265_v37 = vrot.slane %v2264_v58, 4  ;;  %v3024_v48 = vrot.slane %v3022_v10, 4  ;;  %v2260_v14 = vsel %vm10803_vm2, %v2255_v50, %v2259_v9  ;;  %v3266_v5 = vmax.bf16 %v3017_v11, %v16618_v47  ;;  %v4373_v50 = vld [vmem:[#allocation2 + $0x180] sm:$0xc] }
 0x517   : > { %v3020_v4 = vsel %vm10899_vm5, %v3018_v43, %v3019_v40  ;;  %v4010_v32 = vshrl.u32 %v2631_v36, 16  ;;  %v2593_v17 = vmax.bf16 %v2260_v14, %v16590_v38  ;;  %v3023_v33 = vsel %vm10899_vm5, %v3021_v63, %v3022_v10 }
 0x518   : > { %v2594_v57 = vmax.bf16 %v2265_v37, %v1247_v21  ;;  %v3267_v58 = vmax.bf16 %v3020_v4, %v2592_v49  ;;  %v4013_v25 = vshll.u32 %v2631_v36, 16  ;;  %v4018_v16 = vrot.slane %v2241_v35, 5 }
 0x519   : > { %v4012_v53 = vrot.slane %v4010_v32, 5  ;;  %v20031_v46 = vshll.u32 %v16580_v2, 16  ;;  %v3268_v52 = vmax.bf16 %v3023_v33, %v2593_v17  ;;  %v4023_v43 = vrot.slane %v2251_v19, 5 }
 0x51a   : > { %v3269_v40 = vmax.bf16 %v3024_v48, %v2594_v57  ;;  %v4024_v47 = vrot.slane %v2247_v31, 6  ;;  %v4015_v11 = vrot.slane %v4013_v25, 6  ;;  %v4029_v14 = vshrl.u32 %v3306_v13, 16 }
 0x51b   : > { %v4019_v9 = vrot.slane %v20031_v46, 6  ;;  %v4032_v21 = vshll.u32 %v3306_v13, 16  ;;  %v8933_v51 = vrot.slane %v4373_v50, 10  ;;  %v4702_v10 = vrot.slane %v16580_v2, 6 }
 0x51c   : > { %v4025_v37 = vor.u32 %v4024_v47, %v4023_v43  ;;  %v4705_v49 = vrot.slane %v16590_v38, 6  ;;  %v4016_v36 = vor.u32 %v4015_v11, %v4012_v53  ;;  %v4031_v63 = vrot.slane %v4029_v14, 5 }
 0x51d   : > { %v4020_v45 = vor.u32 %v4019_v9, %v4018_v16  ;;  %v4034_v4 = vrot.slane %v4032_v21, 6  ;;  %v4703_v48 = vsel %vm11111_vm11, %v8933_v51, %v4702_v10  ;;  %v4704_v19 = vrot.slane %v4702_v10, 4  ;;  %v20032_v10 = vld [vmem:[#allocation24_spill] sm:$0xff] }
 0x51e   : > { %v4027_v32 = vrot.slane %v4025_v37, 4  ;;  %v4707_v31 = vrot.slane %v4705_v49, 4  ;;  %v4017_v17 = vrot.slane %v4016_v36, 4  ;;  %v4708_v25 = vrot.slane %v3306_v13, 6 }
 0x51f   : > { %v4022_v35 = vrot.slane %v4020_v45, 4  ;;  %v4035_v33 = vor.u32 %v4034_v4, %v4031_v63  ;;  %v4706_v38 = vsel %vm11111_vm11, %v4704_v19, %v4705_v49  ;;  %v6599_v2 = vmax.bf16 %v16375_v18, %v16172_v56  ;;  %v20033_v49 = vld [vmem:[#allocation45_spill] sm:$0xff] }
 0x520   : > { %v6600_v53 = vmax.bf16 %v16379_v54, %v16147_v28  ;;  %v4021_v51 = vsel %vm10967_vm8, %v4017_v17, %v4020_v45  ;;  %v4709_v13 = vsel %vm11111_vm11, %v4707_v31, %v4708_v25  ;;  %v4710_v43 = vrot.slane %v4708_v25, 4  ;;  %v20036_v17 = vld [vmem:[#allocation33_spill] sm:$0xff] }
 0x521   : > { %v4026_v57 = vsel %vm10967_vm8, %v4022_v35, %v4025_v37  ;;  %v4036_v46 = vsel %vm10967_vm8, %v4027_v32, %v4035_v33  ;;  %v4037_v9 = vrot.slane %v4035_v33, 4  ;;  %v6601_v56 = vmax.bf16 %v16402_v12, %v16211_v22  ;;  %v20034_v32 = vld [vmem:[#allocation74_spill] sm:$0xff] }
 0x522   : > { %v4334_v16 = vmax.bf16 %v4026_v57, %v3267_v58  ;;  %v4333_v58 = vmax.bf16 %v4021_v51, %v3266_v5  ;;  %v4335_v50 = vmax.bf16 %v4036_v46, %v3268_v52  ;;  %v6671_v28 = vmax.bf16 %v6599_v2, %v16478_v0  ;;  %v20037_v57 = vld [vmem:[#allocation198_spill] sm:$0xff] }
 0x523   : > { %v4336_v11 = vmax.bf16 %v4037_v9, %v3269_v40  ;;  %v6672_v14 = vmax.bf16 %v6600_v53, %v16485_v41  ;;  %v6863_v36 = vmax.bf16 %v20033_v49, %v20032_v10  ;;  %v6673_v52 = vmax.bf16 %v6601_v56, %v16488_v24  ;;  %v16692_v9 = vpop.f32.mrb[0].mxu1 }
 0x524   : > { %v4953_v47 = vmax.bf16 %v4706_v38, %v4334_v16  ;;  %v16661_v45 = vmax.bf16 %v4703_v48, %v4333_v58  ;;  %v4954_v21 = vmax.bf16 %v4709_v13, %v4335_v50  ;;  %v6743_v40 = vmax.bf16 %v6671_v28, %v16520_v62  ;;  %v20035_v48 = vld [vmem:[#allocation131_spill] sm:$0xff]  ;;  %v16683_v38 = vld [vmem:[#allocation2 + $0x190] sm:$0xf]  ;;  %20038 = vst [vmem:[#allocation89_spill] sm:$0xff] %v16692_v9  ;;  %v16702_v50 = vpop.f32.mrb[1].mxu1 }
 0x525   : > { %v4955_v5 = vmax.bf16 %v4710_v43, %v4336_v11  ;;  %v6744_v35 = vmax.bf16 %v6672_v14, %v16524_v1  ;;  %v6864_v19 = vmax.bf16 %v20035_v48, %v20034_v32  ;;  %v6745_v31 = vmax.bf16 %v6673_v52, %v16564_v59  ;;  %20040 = vst [vmem:[#allocation97_spill] sm:$0xff] %v16702_v50  ;;  %v16709_v28 = vpop.f32.mrb[2].mxu1  ;;  %v16718_v52 = vld [vmem:[#allocation2 + $0x194] sm:$0xf]  ;;  %v16962_v9 = vld [vmem:[#allocation2 + $0x1a8] sm:$0xf] }
 0x526   : > { %v16663_v37 = vrot.slane %v4953_v47, 6  ;;  %v5563_v63 = vrot.slane %v4954_v21, 6  ;;  %v9025_v4 = vrot.slane %v16661_v45, 10  ;;  %v6865_v33 = vmax.bf16 %v20037_v57, %v20036_v17  ;;  %20041 = vst [vmem:[#allocation132_spill] sm:$0xff] %v16709_v28 }
 0x527   : > { %v16679_v25 = vmax.bf16 %v16447_v30, %v16128_v60  ;;  %v5763_v16 = vmax.bf16 %v19981_v8, %v19976_v23  ;;  %v5764_v46 = vmax.bf16 %v19984_v7, %v19978_v39  ;;  %v16694_v60 = vpop.f32.mrb[64].mxu0  ;;  %v5765_v13 = vmax.bf16 %v19986_v6, %v19979_v42 }
 0x528   : > { %v5562_v22 = vrot.slane %v16663_v37, 4  ;;  %v5565_v53 = vrot.slane %v5563_v63, 4  ;;  %v6363_v51 = vsel %vm11111_vm11, %v9025_v4, %v16663_v37  ;;  %20039 = vst [vmem:[#allocation87_spill] sm:$0xff] %v16694_v60  ;;  %v2267_v39 = vshrl.u32 %v16683_v38, 16  ;;  %v16744_v60 = vld [vmem:[#allocation2 + $0x198] sm:$0xf] }
 0x529   : > { %v6447_v23 = vmax.bf16 %v6363_v51, %v16661_v45  ;;  %v5823_v58 = vmax.bf16 %v5763_v16, %v20021_v55  ;;  %v5824_v11 = vmax.bf16 %v5764_v46, %v20022_v26  ;;  %v2270_v56 = vshll.u32 %v16683_v38, 16 }
 0x52a   : > { %v5564_v2 = vsel %vm11111_vm11, %v5562_v22, %v5563_v63  ;;  %v16704_v43 = vmax.bf16 %v5565_v53, %v4954_v21  ;;  %v5825_v42 = vmax.bf16 %v5765_v13, %v20023_v61  ;;  %v16720_v22 = vpop.f32.mrb[3].mxu1  ;;  %v2269_v32 = vrot.slane %v2267_v39, 4 }
 0x52b   : > { %v16696_v30 = vmax.bf16 %v5564_v2, %v4953_v47  ;;  %v16711_v14 = vmax.bf16 %v6447_v23, %v4953_v47  ;;  %v5883_v49 = vmax.bf16 %v5823_v58, %v16557_v20  ;;  %20042 = vst [vmem:[#allocation91_spill] sm:$0xff] %v16720_v22  ;;  %v5884_v4 = vmax.bf16 %v5824_v11, %v16365_v3  ;;  %v16726_v47 = vpop.f32.mrb[4].mxu1 }
 0x52c   : > { %v16723_v63 = vmax.bf16 %v16704_v43, %v4955_v5  ;;  %v2272_v48 = vrot.slane %v2270_v56, 5  ;;  %20043 = vst [vmem:[#allocation94_spill] sm:$0xff] %v16726_v47  ;;  %v5885_v57 = vmax.bf16 %v5825_v42, %v16369_v44  ;;  %v16732_v2 = vpop.f32.mrb[5].mxu1  ;;  %v18462_v46 = vshll.u32 %v16718_v52, 16  ;;  %v20048_v42 = vld [vmem:[#allocation80_spill] sm:$0xff] }
 0x52d   : > { %v16714_v10 = vmax.bf16 %v16696_v30, %v4954_v21  ;;  %v6815_v21 = vmax.bf16 %v6743_v40, %v16711_v14  ;;  %v5943_v16 = vmax.bf16 %v5883_v49, %v16679_v25  ;;  %20044 = vst [vmem:[#allocation88_spill] sm:$0xff] %v16732_v2  ;;  %v5944_v5 = vmax.bf16 %v5884_v4, %v16475_v15  ;;  %v16737_v23 = vpop.f32.mrb[6].mxu1 }
 0x52e   : > { %v6817_v53 = vmax.bf16 %v6745_v31, %v16723_v63  ;;  %v2273_v51 = vor.u32 %v2272_v48, %v2269_v32  ;;  %20045 = vst [vmem:[#allocation156_spill] sm:$0xff] %v16737_v23  ;;  %v5945_v40 = vmax.bf16 %v5885_v57, %v19994_v29  ;;  %v16741_v39 = vpop.f32.mrb[7].mxu1  ;;  %v2278_v4 = vrot.slane %v18462_v46, 5  ;;  %v2632_v23 = vld [vmem:[#allocation2 + $0x190] sm:$0xe] }
 0x52f   : > { %v6816_v17 = vmax.bf16 %v6744_v35, %v16714_v10  ;;  %v6911_v13 = vmax.bf16 %v6863_v36, %v6815_v21  ;;  %v20046_v35 = vld [vmem:[#allocation95_spill] sm:$0xff]  ;;  %20047 = vst [vmem:[#allocation161_spill] sm:$0xff] %v16741_v39  ;;  %v5992_v49 = vmax.bf16 %v5944_v5, %v20048_v42  ;;  %v16748_v32 = vpop.f32.mrb[8].mxu1  ;;  %v4713_v50 = vrot.slane %v16718_v52, 6 }
 0x530   : > { %v5991_v11 = vmax.bf16 %v5943_v16, %v20046_v35  ;;  %v6913_v56 = vmax.bf16 %v6865_v33, %v6817_v53  ;;  %v2274_v31 = vrot.slane %v2273_v51, 4  ;;  %20049 = vst [vmem:[#allocation21_spill] sm:$0xff] %v16748_v32  ;;  %v16751_v57 = vpop.f32.mrb[9].mxu1  ;;  %v16753_v33 = vld [vmem:[#allocation2 + $0x19c] sm:$0x3]  ;;  %v18463_v51 = vshrl.u32 %v16718_v52, 16 }
 0x531   : > { %v6912_v58 = vmax.bf16 %v6864_v19, %v6816_v17  ;;  %v9041_v48 = vrot.slane %v6911_v13, 9  ;;  %v20050_v19 = vld [vmem:[#allocation81_spill] sm:$0xff]  ;;  %20051 = vst [vmem:[#allocation48_spill] sm:$0xff] %v16751_v57  ;;  %v6137_v35 = vrot.slane %v5992_v49, 6  ;;  %v16758_v42 = vpop.f32.mrb[10].mxu1 }
 0x532   : > { %v5993_v21 = vmax.bf16 %v5945_v40, %v20050_v19  ;;  %v8981_v17 = vrot.slane %v5991_v11, 10  ;;  %v7060_v16 = vrot.slane %v6913_v56, 5  ;;  %v2279_v5 = vsel %vm10803_vm2, %v2274_v31, %v2278_v4  ;;  %20053 = vst [vmem:[#allocation187_spill] sm:$0xff] %v16758_v42  ;;  %v16763_v11 = vpop.f32.mrb[11].mxu1 }
 0x533   : > { %v7057_v36 = vrot.slane %v6912_v58, 5  ;;  %v18464_v40 = vshll.u32 %v16744_v60, 16  ;;  %20055 = vst [vmem:[#allocation109_spill] sm:$0xff] %v16763_v11  ;;  %v6139_v49 = vrot.slane %v6137_v35, 4  ;;  %v2282_v31 = vrot.slane %v18463_v51, 4  ;;  %v16770_v57 = vpop.f32.mrb[12].mxu1 }
 0x534   : > { %v6140_v32 = vrot.slane %v5993_v21, 6  ;;  %v6138_v56 = vsel %vm11111_vm11, %v8981_v17, %v6137_v35  ;;  %v2290_v19 = vshrl.u32 %v16744_v60, 16  ;;  %20056 = vst [vmem:[#allocation212_spill] sm:$0xff] %v16770_v57  ;;  %v2296_v21 = vshll.u32 %v16753_v33, 16  ;;  %v16778_v42 = vpop.f32.mrb[13].mxu1  ;;  %v20164_v27 = vld [vmem:[#allocation88_spill] sm:$0xff] }
 0x535   : > { %v7058_v13 = vsel %vm10899_vm5, %v9041_v48, %v7057_v36  ;;  %v7059_v58 = vrot.slane %v7057_v36, 4  ;;  %v2288_v36 = vrot.slane %v18464_v40, 5  ;;  %v2300_v11 = vshrl.u32 %v16753_v33, 16  ;;  %20057 = vst [vmem:[#allocation209_spill] sm:$0xff] %v16778_v42  ;;  %v16782_v57 = vpop.f32.mrb[14].mxu1 }
 0x536   : > { %v6141_v35 = vsel %vm11111_vm11, %v6139_v49, %v6140_v32  ;;  %v2283_v51 = vor.u32 %v2282_v31, %v2278_v4  ;;  %v2292_v39 = vrot.slane %v2290_v19, 4  ;;  %20058 = vst [vmem:[#allocation160_spill] sm:$0xff] %v16782_v57  ;;  %v16785_v40 = vmax.bf16 %v2279_v5, %v16683_v38  ;;  %v16787_v47 = vpop.f32.mrb[15].mxu1  ;;  %v1251_v38 = vld [vmem:[#allocation2 + $0x19c] sm:$0x1] }
 0x537   : > { %v7061_v48 = vsel %vm10899_vm5, %v7059_v58, %v7060_v16  ;;  %v8997_v2 = vcombine.low %v6138_v56, %v6141_v35  ;;  %v2298_v16 = vrot.slane %v2296_v21, 5  ;;  %v2302_v58 = vrot.slane %v2300_v11, 4  ;;  %20059 = vst [vmem:[#allocation208_spill] sm:$0xff] %v16787_v47  ;;  %v16790_v32 = vpop.f32.mrb[16].mxu1 }
 0x538   : > { %v9057_v17 = vcombine.low %v7058_v13, %v7061_v48  ;;  %v2284_v22 = vrot.slane %v2283_v51, 4  ;;  %v2293_v42 = vor.u32 %v2292_v39, %v2288_v36  ;;  %v8906_v13 = vrot.slane %v2632_v23, 9  ;;  %20060 = vst [vmem:[#allocation34_spill] sm:$0xff] %v16790_v32  ;;  %v16794_v31 = vpop.f32.mrb[17].mxu1 }
 0x539   : > { %v3027_v48 = vrot.slane %v16718_v52, 5  ;;  %v2303_v4 = vor.u32 %v2302_v58, %v2298_v16  ;;  %v3030_v49 = vrot.slane %v16744_v60, 5  ;;  %v3033_v56 = vrot.slane %v16753_v33, 5  ;;  %20061 = vst [vmem:[#allocation135_spill] sm:$0xff] %v16794_v31 }
 0x53a   : > { %7968 = vmatprep.mubr.bf16.mxu1 %v9057_v17  ;;  %v4039_v11 = vshrl.u32 %v2632_v23, 16  ;;  %v2289_v5 = vsel %vm10803_vm2, %v2284_v22, %v2288_v36  ;;  %v2294_v51 = vrot.slane %v2293_v42, 4  ;;  %v16800_v17 = vpop.f32.mrb[18].mxu1  ;;  %v3307_v36 = vld [vmem:[#allocation2 + $0x19c] sm:$0x7] }
 0x53b   : > { %7969 = vmatmul.mubr.bf16.gmra.mrb[48].mxu1 %v8997_v2  ;;  %v3028_v39 = vsel %vm10899_vm5, %v8906_v13, %v3027_v48  ;;  %v3029_v21 = vrot.slane %v3027_v48, 4  ;;  %20062 = vst [vmem:[#allocation38_spill] sm:$0xff] %v16800_v17  ;;  %v2304_v2 = vrot.slane %v2303_v4, 4  ;;  %v2596_v35 = vmax.bf16 %v2289_v5, %v16718_v52  ;;  %v16803_v33 = vpop.f32.mrb[19].mxu1 }
 0x53c   : > { %v3032_v58 = vrot.slane %v3030_v49, 4  ;;  %v3035_v32 = vrot.slane %v3033_v56, 4  ;;  %20063 = vst [vmem:[#allocation111_spill] sm:$0xff] %v16803_v33  ;;  %v2299_v31 = vsel %vm10803_vm2, %v2294_v51, %v2298_v16  ;;  %v3270_v42 = vmax.bf16 %v3028_v39, %v16785_v40  ;;  %v16810_v48 = vpop.f32.mrb[20].mxu1  ;;  %v4374_v33 = vld [vmem:[#allocation2 + $0x190] sm:$0xc] }
 0x53d   : > { %v3031_v22 = vsel %vm10899_vm5, %v3029_v21, %v3030_v49  ;;  %v4041_v13 = vrot.slane %v4039_v11, 5  ;;  %20064 = vst [vmem:[#allocation108_spill] sm:$0xff] %v16810_v48  ;;  %v2597_v4 = vmax.bf16 %v2299_v31, %v16744_v60  ;;  %v2598_v17 = vmax.bf16 %v2304_v2, %v1251_v38  ;;  %v16815_v57 = vpop.f32.mrb[21].mxu1 }
 0x53e   : > { %v3034_v5 = vsel %vm10899_vm5, %v3032_v58, %v3033_v56  ;;  %v3271_v47 = vmax.bf16 %v3031_v22, %v2596_v35  ;;  %20065 = vst [vmem:[#allocation70_spill] sm:$0xff] %v16815_v57  ;;  %v4042_v16 = vshll.u32 %v2632_v23, 16  ;;  %v20066_v51 = vshrl.u32 %v16718_v52, 16  ;;  %v16821_v21 = vpop.f32.mrb[22].mxu1 }
 0x53f   : > { %v20067_v40 = vshll.u32 %v16718_v52, 16  ;;  %v4052_v11 = vrot.slane %v2290_v19, 5  ;;  %20068 = vst [vmem:[#allocation17_spill] sm:$0xff] %v16821_v21  ;;  %v3272_v48 = vmax.bf16 %v3034_v5, %v2597_v4  ;;  %v3273_v31 = vmax.bf16 %v3035_v32, %v2598_v17  ;;  %v16825_v35 = vpop.f32.mrb[23].mxu1  ;;  %v16835_v52 = vpop.f32.mrb[65].mxu0 }
 0x540   : > { %v4047_v49 = vrot.slane %v20066_v51, 5  ;;  %v20069_v38 = vshll.u32 %v16744_v60, 16  ;;  %v4058_v56 = vshrl.u32 %v3307_v36, 16  ;;  %20070 = vst [vmem:[#allocation107_spill] sm:$0xff] %v16825_v35  ;;  %v4044_v58 = vrot.slane %v4042_v16, 6  ;;  %20071 = vst [vmem:[#allocation104_spill] sm:$0xff] %v16835_v52 }
 0x541   : > { %v4048_v39 = vrot.slane %v20067_v40, 6  ;;  %v4061_v23 = vshll.u32 %v3307_v36, 16  ;;  %v8934_v57 = vrot.slane %v4374_v33, 10  ;;  %v4716_v19 = vrot.slane %v16744_v60, 6  ;;  %v20108_v52 = vld [vmem:[#allocation79_spill] sm:$0xff] }
 0x542   : > { %v4053_v2 = vrot.slane %v20069_v38, 6  ;;  %v4060_v51 = vrot.slane %v4058_v56, 5  ;;  %v4045_v40 = vor.u32 %v4044_v58, %v4041_v13  ;;  %v4719_v32 = vrot.slane %v3307_v36, 6 }
 0x543   : > { %v4049_v22 = vor.u32 %v4048_v39, %v4047_v49  ;;  %v4063_v4 = vrot.slane %v4061_v23, 6  ;;  %v4714_v5 = vsel %vm11111_vm11, %v8934_v57, %v4713_v50  ;;  %v4715_v38 = vrot.slane %v4713_v50, 4 }
 0x544   : > { %v4054_v28 = vor.u32 %v4053_v2, %v4052_v11  ;;  %v4718_v35 = vrot.slane %v4716_v19, 4  ;;  %v4046_v16 = vrot.slane %v4045_v40, 4  ;;  %v16833_v39 = vrot.slane %v4719_v32, 4 }
 0x545   : > { %v4051_v21 = vrot.slane %v4049_v22, 4  ;;  %v4064_v49 = vor.u32 %v4063_v4, %v4060_v51  ;;  %v4717_v13 = vsel %vm11111_vm11, %v4715_v38, %v4716_v19  ;;  %v6602_v50 = vmax.bf16 %v16478_v0, %v16375_v18  ;;  %v20072_v51 = vld [vmem:[#allocation27_spill] sm:$0xff]  ;;  %v20078_v38 = vld [vmem:[#allocation121_spill] sm:$0xff] }
 0x546   : > { %v4056_v17 = vrot.slane %v4054_v28, 4  ;;  %v4720_v36 = vsel %vm11111_vm11, %v4718_v35, %v4719_v32  ;;  %v4050_v57 = vsel %vm10967_vm8, %v4046_v16, %v4049_v22  ;;  %v6604_v58 = vmax.bf16 %v16488_v24, %v16402_v12  ;;  %v20073_v22 = vld [vmem:[#allocation206_spill] sm:$0xff] }
 0x547   : > { %v4055_v33 = vsel %vm10967_vm8, %v4051_v21, %v4054_v28  ;;  %v4066_v11 = vrot.slane %v4064_v49, 4  ;;  %v6603_v21 = vmax.bf16 %v16485_v41, %v16379_v54  ;;  %v6674_v23 = vmax.bf16 %v6602_v50, %v16520_v62 }
 0x548   : > { %v4338_v60 = vmax.bf16 %v4055_v33, %v3271_v47  ;;  %v4065_v28 = vsel %vm10967_vm8, %v4056_v17, %v4064_v49  ;;  %v4337_v47 = vmax.bf16 %v4050_v57, %v3270_v42  ;;  %v6676_v54 = vmax.bf16 %v6604_v58, %v16564_v59  ;;  %v16860_v42 = vpop.f32.mrb[66].mxu0  ;;  %v20077_v17 = vld [vmem:[#allocation52_spill] sm:$0xff]  ;;  %v20083_v57 = vld [vmem:[#allocation15_spill] sm:$0xff] }
 0x549   : > { %v4339_v2 = vmax.bf16 %v4065_v28, %v3272_v48  ;;  %v4340_v35 = vmax.bf16 %v4066_v11, %v3273_v31  ;;  %v6675_v18 = vmax.bf16 %v6603_v21, %v16524_v1  ;;  %20076 = vst [vmem:[#allocation155_spill] sm:$0xff] %v16860_v42  ;;  %v6746_v12 = vmax.bf16 %v6674_v23, %v16711_v14  ;;  %v16867_v33 = vpop.f32.mrb[67].mxu0  ;;  %v20084_v11 = vld [vmem:[#allocation61_spill] sm:$0xff] }
 0x54a   : > { %v4957_v56 = vmax.bf16 %v4717_v13, %v4338_v60  ;;  %v16855_v40 = vmax.bf16 %v4714_v5, %v4337_v47  ;;  %v6867_v16 = vmax.bf16 %v20078_v38, %v20077_v17  ;;  %20079 = vst [vmem:[#allocation103_spill] sm:$0xff] %v16867_v33  ;;  %v6748_v13 = vmax.bf16 %v6676_v54, %v16723_v63  ;;  %v16874_v50 = vpop.f32.mrb[68].mxu0  ;;  %v20085_v21 = vld [vmem:[#allocation57_spill] sm:$0xff] }
 0x54b   : > { %v4958_v4 = vmax.bf16 %v4720_v36, %v4339_v2  ;;  %v4959_v48 = vmax.bf16 %v16833_v39, %v4340_v35  ;;  %v6747_v31 = vmax.bf16 %v6675_v18, %v16714_v10  ;;  %v16872_v36 = vpop.f32.mrb[24].mxu1  ;;  %20081 = vst [vmem:[#allocation102_spill] sm:$0xff] %v16874_v50  ;;  %v20082_v39 = vld [vmem:[#allocation134_spill] sm:$0xff]  ;;  %v16880_v47 = vmax.bf16 %v20085_v21, %v20084_v11  ;;  %v16890_v18 = vpop.f32.mrb[69].mxu0  ;;  %v20107_v42 = vld [vmem:[#allocation145_spill] sm:$0xff] }
 0x54c   : > { %20074 = vst [vmem:[#allocation44_spill] sm:$0xff] %v16855_v40  ;;  %v16857_v32 = vrot.slane %v4957_v56, 6  ;;  %v9026_v60 = vrot.slane %v16855_v40, 10  ;;  %20080 = vst [vmem:[#allocation101_spill] sm:$0xff] %v16872_v36  ;;  %v6868_v28 = vmax.bf16 %v20083_v57, %v20082_v39  ;;  %v5766_v2 = vmax.bf16 %v20021_v55, %v19981_v8  ;;  %v16886_v35 = vld [vmem:[#allocation2 + $0x1a0] sm:$0xf] }
 0x54d   : > { %v5568_v49 = vrot.slane %v4958_v4, 6  ;;  %v5767_v58 = vmax.bf16 %v20022_v26, %v19984_v7  ;;  %v16888_v23 = vpop.f32.mrb[25].mxu1  ;;  %20087 = vst [vmem:[#allocation105_spill] sm:$0xff] %v16890_v18  ;;  %v5768_v8 = vmax.bf16 %v20023_v61, %v19986_v6  ;;  %v16901_v7 = vpop.f32.mrb[70].mxu0 }
 0x54e   : > { %20075 = vst [vmem:[#allocation110_spill] sm:$0xff] %v16857_v32  ;;  %v5567_v5 = vrot.slane %v16857_v32, 4  ;;  %20086 = vst [vmem:[#allocation99_spill] sm:$0xff] %v16888_v23  ;;  %v6366_v38 = vsel %vm11111_vm11, %v9026_v60, %v16857_v32  ;;  %v16899_v39 = vpop.f32.mrb[26].mxu1  ;;  %v5826_v21 = vmax.bf16 %v5766_v2, %v16557_v20  ;;  %v16910_v19 = vpop.f32.mrb[71].mxu0  ;;  %v2309_v23 = vshll.u32 %v16886_v35, 16 }
 0x54f   : > { %v5570_v17 = vrot.slane %v5568_v49, 4  ;;  %20088 = vst [vmem:[#allocation115_spill] sm:$0xff] %v16899_v39  ;;  %20089 = vst [vmem:[#allocation162_spill] sm:$0xff] %v16901_v7  ;;  %v6448_v11 = vmax.bf16 %v6366_v38, %v16855_v40  ;;  %v5828_v6 = vmax.bf16 %v5768_v8, %v16369_v44  ;;  %v2306_v39 = vshrl.u32 %v16886_v35, 16  ;;  %v16919_v36 = vpop.f32.mrb[72].mxu0 }
 0x550   : > { %v5569_v54 = vsel %vm11111_vm11, %v5567_v5, %v5568_v49  ;;  %v5827_v5 = vmax.bf16 %v5767_v58, %v16365_v3  ;;  %v16908_v49 = vpop.f32.mrb[27].mxu1  ;;  %20092 = vst [vmem:[#allocation197_spill] sm:$0xff] %v16910_v19  ;;  %20095 = vst [vmem:[#allocation153_spill] sm:$0xff] %v16919_v36  ;;  %v5886_v58 = vmax.bf16 %v5826_v21, %v16679_v25  ;;  %v16932_v19 = vpop.f32.mrb[73].mxu0 }
 0x551   : > { %v16903_v57 = vmax.bf16 %v5569_v54, %v4957_v56  ;;  %20091 = vst [vmem:[#allocation175_spill] sm:$0xff] %v16908_v49  ;;  %v16912_v60 = vmax.bf16 %v5570_v17, %v4958_v4  ;;  %v16917_v54 = vpop.f32.mrb[28].mxu1  ;;  %v16921_v38 = vmax.bf16 %v6448_v11, %v4957_v56  ;;  %v16928_v49 = vld [vmem:[#allocation2 + $0x1a4] sm:$0xf]  ;;  %20097 = vst [vmem:[#allocation122_spill] sm:$0xff] %v16932_v19  ;;  %v2308_v56 = vrot.slane %v2306_v39, 4 }
 0x552   : > { %20094 = vst [vmem:[#allocation152_spill] sm:$0xff] %v16917_v54  ;;  %v5887_v17 = vmax.bf16 %v5827_v5, %v16475_v15  ;;  %v16930_v8 = vpop.f32.mrb[29].mxu1  ;;  %v5888_v54 = vmax.bf16 %v5828_v6, %v19994_v29  ;;  %v2311_v11 = vrot.slane %v2309_v23, 5  ;;  %v5946_v18 = vmax.bf16 %v5886_v58, %v16880_v47  ;;  %v20103_v39 = vld [vmem:[#allocation40_spill] sm:$0xff] }
 0x553   : > { %20090 = vst [vmem:[#allocation163_spill] sm:$0xff] %v16903_v57  ;;  %20093 = vst [vmem:[#allocation157_spill] sm:$0xff] %v16912_v60  ;;  %v16924_v2 = vmax.bf16 %v16903_v57, %v4958_v4  ;;  %v16935_v7 = vmax.bf16 %v16912_v60, %v4959_v48  ;;  %v16938_v36 = vpop.f32.mrb[30].mxu1  ;;  %v16940_v4 = vpop.f32.mrb[74].mxu0  ;;  %v6818_v21 = vmax.bf16 %v6746_v12, %v16921_v38  ;;  %v20112_v60 = vshll.u32 %v16928_v49, 16 }
 0x554   : > { %20096 = vst [vmem:[#allocation214_spill] sm:$0xff] %v16930_v8  ;;  %20098 = vst [vmem:[#allocation204_spill] sm:$0xff] %v16938_v36  ;;  %v20100_v8 = vld [vmem:[#allocation211_spill] sm:$0xff]  ;;  %v16946_v19 = vpop.f32.mrb[31].mxu1  ;;  %v16948_v48 = vpop.f32.mrb[75].mxu0  ;;  %v5948_v23 = vmax.bf16 %v5888_v54, %v20103_v39  ;;  %v2312_v33 = vor.u32 %v2311_v11, %v2308_v56  ;;  %v20111_v11 = vld [vmem:[#allocation41_spill] sm:$0xff] }
 0x555   : > { %20099 = vst [vmem:[#allocation42_spill] sm:$0xff] %v16940_v4  ;;  %v6819_v5 = vmax.bf16 %v6747_v31, %v16924_v2  ;;  %v5947_v50 = vmax.bf16 %v5887_v17, %v20100_v8  ;;  %20101 = vst [vmem:[#allocation148_spill] sm:$0xff] %v16946_v19  ;;  %v6820_v6 = vmax.bf16 %v6748_v13, %v16935_v7  ;;  %v16953_v4 = vpop.f32.mrb[32].mxu1  ;;  %v16955_v12 = vpop.f32.mrb[76].mxu0 }
 0x556   : > { %20102 = vst [vmem:[#allocation149_spill] sm:$0xff] %v16948_v48  ;;  %20104 = vst [vmem:[#allocation114_spill] sm:$0xff] %v16953_v4  ;;  %v20106_v31 = vmax.bf16 %v20073_v22, %v20072_v51  ;;  %v5994_v19 = vmax.bf16 %v5946_v18, %v20107_v42  ;;  %v16964_v13 = vpop.f32.mrb[33].mxu1  ;;  %v16966_v54 = vpop.f32.mrb[77].mxu0  ;;  %v5996_v36 = vmax.bf16 %v5948_v23, %v20111_v11  ;;  %v1286_v4 = vld [vmem:[#allocation2 + $0x1ac] sm:$0x3] }
 0x557   : > { %20105 = vst [vmem:[#allocation113_spill] sm:$0xff] %v16955_v12  ;;  %v6915_v17 = vmax.bf16 %v6867_v16, %v6819_v5  ;;  %v5995_v48 = vmax.bf16 %v5947_v50, %v20108_v52  ;;  %20109 = vst [vmem:[#allocation117_spill] sm:$0xff] %v16964_v13  ;;  %v6916_v56 = vmax.bf16 %v6868_v28, %v6820_v6  ;;  %v2313_v12 = vrot.slane %v2312_v33, 4  ;;  %v16971_v22 = vpop.f32.mrb[34].mxu1 }
 0x558   : > { %v6914_v58 = vmax.bf16 %v20106_v31, %v6818_v21  ;;  %20110 = vst [vmem:[#allocation126_spill] sm:$0xff] %v16966_v54  ;;  %v2317_v51 = vrot.slane %v20112_v60, 5  ;;  %20113 = vst [vmem:[#allocation123_spill] sm:$0xff] %v16971_v22  ;;  %v8982_v18 = vrot.slane %v5994_v19, 10  ;;  %v16973_v50 = vpop.f32.mrb[35].mxu1  ;;  %v6147_v5 = vrot.slane %v5996_v36, 6 }
 0x559   : > { %v7064_v42 = vrot.slane %v6915_v17, 5  ;;  %v6144_v52 = vrot.slane %v5995_v48, 6  ;;  %20114 = vst [vmem:[#allocation130_spill] sm:$0xff] %v16973_v50  ;;  %v7067_v21 = vrot.slane %v6916_v56, 5  ;;  %v2319_v6 = vshrl.u32 %v16928_v49, 16 }
 0x55a   : > { %v9042_v16 = vrot.slane %v6914_v58, 9  ;;  %v2318_v28 = vsel %vm10803_vm2, %v2313_v12, %v2317_v51  ;;  %v2325_v19 = vshll.u32 %v16962_v9, 16  ;;  %v2329_v48 = vshrl.u32 %v16962_v9, 16  ;;  %v2633_v50 = vld [vmem:[#allocation2 + $0x1a0] sm:$0xe] }
 0x55b   : > { %v7066_v23 = vrot.slane %v7064_v42, 4  ;;  %v6145_v60 = vsel %vm11111_vm11, %v8982_v18, %v6144_v52  ;;  %v6146_v31 = vrot.slane %v6144_v52, 4  ;;  %v2321_v58 = vrot.slane %v2319_v6, 4 }
 0x55c   : > { %v7065_v33 = vsel %vm10899_vm5, %v9042_v16, %v7064_v42  ;;  %v2335_v17 = vshll.u32 %v1286_v4, 16  ;;  %v2339_v56 = vshrl.u32 %v1286_v4, 16  ;;  %v16989_v11 = vmax.bf16 %v2318_v28, %v16886_v35 }
 0x55d   : > { %v7068_v36 = vsel %vm10899_vm5, %v7066_v23, %v7067_v21  ;;  %v6148_v12 = vsel %vm11111_vm11, %v6146_v31, %v6147_v5  ;;  %v2322_v18 = vor.u32 %v2321_v58, %v2317_v51  ;;  %v2327_v52 = vrot.slane %v2325_v19, 5 }
 0x55e   : > { %v9058_v16 = vcombine.low %v7065_v33, %v7068_v36  ;;  %v8998_v42 = vcombine.low %v6145_v60, %v6148_v12  ;;  %v2331_v22 = vrot.slane %v2329_v48, 4  ;;  %v2337_v13 = vrot.slane %v2335_v17, 5  ;;  %v1255_v60 = vld [vmem:[#allocation2 + $0x1ac] sm:$0x1] }
 0x55f   : > { %v2341_v54 = vrot.slane %v2339_v56, 4  ;;  %v8907_v57 = vrot.slane %v2633_v50, 9  ;;  %v2323_v32 = vrot.slane %v2322_v18, 4  ;;  %v3038_v21 = vrot.slane %v16928_v49, 5 }
 0x560   : > { %7978 = vmatprep.mubr.bf16.mxu1 %v9058_v16  ;;  %v3041_v23 = vrot.slane %v16962_v9, 5  ;;  %v3044_v5 = vrot.slane %v1286_v4, 5  ;;  %v2332_v31 = vor.u32 %v2331_v22, %v2327_v52  ;;  %v4068_v28 = vshrl.u32 %v2633_v50, 16 }
 0x561   : > { %7979 = vmatmul.mubr.bf16.gmra.mrb[52].mxu1 %v8998_v42  ;;  %v2342_v35 = vor.u32 %v2341_v54, %v2337_v13  ;;  %v4071_v33 = vshll.u32 %v2633_v50, 16  ;;  %v2328_v51 = vsel %vm10803_vm2, %v2323_v32, %v2327_v52  ;;  %v3039_v58 = vsel %vm10899_vm5, %v8907_v57, %v3038_v21  ;;  %v3308_v50 = vld [vmem:[#allocation2 + $0x1ac] sm:$0x7] }
 0x562   : > { %v3040_v17 = vrot.slane %v3038_v21, 4  ;;  %v3043_v36 = vrot.slane %v3041_v23, 4  ;;  %v2333_v12 = vrot.slane %v2332_v31, 4  ;;  %v2600_v16 = vmax.bf16 %v2328_v51, %v16928_v49  ;;  %v4375_v31 = vld [vmem:[#allocation2 + $0x1a0] sm:$0xc] }
 0x563   : > { %v2343_v56 = vrot.slane %v2342_v35, 4  ;;  %v3046_v18 = vrot.slane %v3044_v5, 4  ;;  %v3274_v22 = vmax.bf16 %v3039_v58, %v16989_v11  ;;  %v4070_v32 = vrot.slane %v4068_v28, 5  ;;  %v17005_v35 = vpop.f32.mrb[78].mxu0 }
 0x564   : > { %v3042_v4 = vsel %vm10899_vm5, %v3040_v17, %v3041_v23  ;;  %v3045_v54 = vsel %vm10899_vm5, %v3043_v36, %v3044_v5  ;;  %v2338_v57 = vsel %vm10803_vm2, %v2333_v12, %v2337_v13  ;;  %v4073_v21 = vrot.slane %v4071_v33, 6  ;;  %v17010_v36 = vpop.f32.mrb[79].mxu0  ;;  %v17012_v13 = vpop.f32.mrb[36].mxu1 }
 0x565   : > { %v2602_v42 = vmax.bf16 %v2343_v56, %v1255_v60  ;;  %v3275_v52 = vmax.bf16 %v3042_v4, %v2600_v16  ;;  %v2601_v51 = vmax.bf16 %v2338_v57, %v16962_v9  ;;  %v4076_v40 = vrot.slane %v2319_v6, 5  ;;  %20116 = vst [vmem:[#allocation118_spill] sm:$0xff] %v17012_v13  ;;  %v17014_v60 = vpop.f32.mrb[80].mxu0  ;;  %v17016_v4 = vpop.f32.mrb[37].mxu1 }
 0x566   : > { %v20115_v23 = vshll.u32 %v16928_v49, 16  ;;  %v4081_v5 = vrot.slane %v2329_v48, 5  ;;  %v4074_v28 = vor.u32 %v4073_v21, %v4070_v32  ;;  %v4082_v58 = vrot.slane %v2325_v19, 6  ;;  %20117 = vst [vmem:[#allocation120_spill] sm:$0xff] %v17016_v4  ;;  %v17018_v6 = vpop.f32.mrb[81].mxu0  ;;  %v17021_v32 = vpop.f32.mrb[38].mxu1 }
 0x567   : > { %v3277_v11 = vmax.bf16 %v3046_v18, %v2602_v42  ;;  %v4087_v46 = vshrl.u32 %v3308_v50, 16  ;;  %v3276_v33 = vmax.bf16 %v3045_v54, %v2601_v51  ;;  %v4090_v56 = vshll.u32 %v3308_v50, 16  ;;  %20118 = vst [vmem:[#allocation202_spill] sm:$0xff] %v17021_v32  ;;  %v17023_v19 = vpop.f32.mrb[82].mxu0  ;;  %v17026_v51 = vpop.f32.mrb[39].mxu1 }
 0x568   : > { %v4077_v17 = vrot.slane %v20115_v23, 6  ;;  %v8935_v16 = vrot.slane %v4375_v31, 10  ;;  %v4075_v57 = vrot.slane %v4074_v28, 4  ;;  %v4083_v48 = vor.u32 %v4082_v58, %v4081_v5  ;;  %20119 = vst [vmem:[#allocation203_spill] sm:$0xff] %v17023_v19  ;;  %20120 = vst [vmem:[#allocation60_spill] sm:$0xff] %v17026_v51  ;;  %v17028_v31 = vpop.f32.mrb[83].mxu0 }
 0x569   : > { %v4089_v23 = vrot.slane %v4087_v46, 5  ;;  %v4724_v18 = vrot.slane %v16928_v49, 6  ;;  %v4092_v21 = vrot.slane %v4090_v56, 6  ;;  %v4727_v54 = vrot.slane %v16962_v9, 6  ;;  %20121 = vst [vmem:[#allocation119_spill] sm:$0xff] %v17028_v31  ;;  %v17034_v28 = vpop.f32.mrb[84].mxu0 }
 0x56a   : > { %v4078_v12 = vor.u32 %v4077_v17, %v4076_v40  ;;  %v4730_v40 = vrot.slane %v3308_v50, 6  ;;  %v4085_v5 = vrot.slane %v4083_v48, 4  ;;  %20122 = vst [vmem:[#allocation37_spill] sm:$0xff] %v17034_v28  ;;  %v17038_v32 = vpop.f32.mrb[85].mxu0 }
 0x56b   : > { %v4725_v46 = vsel %vm11111_vm11, %v8935_v16, %v4724_v18  ;;  %v4726_v49 = vrot.slane %v4724_v18, 4  ;;  %v4093_v56 = vor.u32 %v4092_v21, %v4089_v23  ;;  %v4729_v50 = vrot.slane %v4727_v54, 4  ;;  %20123 = vst [vmem:[#allocation84_spill] sm:$0xff] %v17038_v32  ;;  %v17044_v16 = vpop.f32.mrb[86].mxu0  ;;  %v1287_v32 = vld [vmem:[#allocation2 + $0x1bc] sm:$0x3] }
 0x56c   : > { %v4080_v42 = vrot.slane %v4078_v12, 4  ;;  %v4079_v17 = vsel %vm10967_vm8, %v4075_v57, %v4078_v12  ;;  %v4732_v12 = vrot.slane %v4730_v40, 4  ;;  %v6605_v57 = vmax.bf16 %v16520_v62, %v16478_v0  ;;  %20124 = vst [vmem:[#allocation72_spill] sm:$0xff] %v17044_v16  ;;  %v17050_v23 = vpop.f32.mrb[87].mxu0 }
 0x56d   : > { %v4341_v9 = vmax.bf16 %v4079_v17, %v3274_v22  ;;  %v4728_v4 = vsel %vm11111_vm11, %v4726_v49, %v4727_v54  ;;  %v4094_v18 = vsel %vm10967_vm8, %v4085_v5, %v4093_v56  ;;  %v4095_v13 = vrot.slane %v4093_v56, 4  ;;  %20125 = vst [vmem:[#allocation98_spill] sm:$0xff] %v17050_v23  ;;  %v17056_v54 = vpop.f32.mrb[88].mxu0  ;;  %v20128_v56 = vld [vmem:[#allocation31_spill] sm:$0xff] }
 0x56e   : > { %v4084_v58 = vsel %vm10967_vm8, %v4080_v42, %v4083_v48  ;;  %v4731_v22 = vsel %vm11111_vm11, %v4729_v50, %v4730_v40  ;;  %v6606_v21 = vmax.bf16 %v16524_v1, %v16485_v41  ;;  %v6607_v0 = vmax.bf16 %v16564_v59, %v16488_v24  ;;  %20126 = vst [vmem:[#allocation100_spill] sm:$0xff] %v17056_v54  ;;  %v20134_v54 = vld [vmem:[#allocation16_spill] sm:$0xff] }
 0x56f   : > { %v4342_v51 = vmax.bf16 %v4084_v58, %v3275_v52  ;;  %v4960_v48 = vmax.bf16 %v4725_v46, %v4341_v9  ;;  %v4343_v52 = vmax.bf16 %v4094_v18, %v3276_v33  ;;  %v4344_v17 = vmax.bf16 %v4095_v13, %v3277_v11  ;;  %v20127_v58 = vld [vmem:[#allocation180_spill] sm:$0xff]  ;;  %v17061_v46 = vpop.f32.mrb[89].mxu0  ;;  %v20131_v11 = vld [vmem:[#allocation173_spill] sm:$0xff]  ;;  %v20132_v13 = vld [vmem:[#allocation35_spill] sm:$0xff] }
 0x570   : > { %v6677_v5 = vmax.bf16 %v6605_v57, %v16711_v14  ;;  %v6869_v40 = vmax.bf16 %v20128_v56, %v20127_v58  ;;  %20129 = vst [vmem:[#allocation144_spill] sm:$0xff] %v17061_v46  ;;  %v6679_v41 = vmax.bf16 %v6607_v0, %v16723_v63  ;;  %v6870_v18 = vmax.bf16 %v20132_v13, %v20131_v11  ;;  %v20133_v57 = vld [vmem:[#allocation184_spill] sm:$0xff] }
 0x571   : > { %v4961_v42 = vmax.bf16 %v4728_v4, %v4342_v51  ;;  %v9027_v49 = vrot.slane %v4960_v48, 10  ;;  %v4962_v9 = vmax.bf16 %v4731_v22, %v4343_v52  ;;  %v6678_v4 = vmax.bf16 %v6606_v21, %v16714_v10  ;;  %v17065_v51 = vpop.f32.mrb[90].mxu0  ;;  %v17075_v56 = vld [vmem:[#allocation2 + $0x1b0] sm:$0xf] }
 0x572   : > { %20130 = vst [vmem:[#allocation133_spill] sm:$0xff] %v17065_v51  ;;  %v4963_v24 = vmax.bf16 %v4732_v12, %v4344_v17  ;;  %v6749_v50 = vmax.bf16 %v6677_v5, %v16921_v38  ;;  %v6871_v23 = vmax.bf16 %v20134_v54, %v20133_v57  ;;  %v6751_v12 = vmax.bf16 %v6679_v41, %v16935_v7  ;;  %v17096_v57 = vld [vmem:[#allocation2 + $0x1b4] sm:$0xf] }
 0x573   : > { %v6369_v33 = vrot.slane %v4961_v42, 6  ;;  %v6372_v52 = vrot.slane %v4962_v9, 6  ;;  %v6750_v21 = vmax.bf16 %v6678_v4, %v16924_v2  ;;  %v17080_v17 = vmax.bf16 %v16663_v37, %v16661_v45 }
 0x574   : > { %v5769_v5 = vmax.bf16 %v16557_v20, %v20021_v55  ;;  %v5771_v4 = vmax.bf16 %v16369_v44, %v20023_v61  ;;  %v2345_v45 = vshrl.u32 %v17075_v56, 16 }
 0x575   : > { %v6370_v58 = vsel %vm11111_vm11, %v9027_v49, %v6369_v33  ;;  %v6371_v22 = vrot.slane %v6369_v33, 4  ;;  %v6374_v49 = vrot.slane %v6372_v52, 4  ;;  %v5770_v33 = vmax.bf16 %v16365_v3, %v20022_v26 }
 0x576   : > { %v6449_v0 = vmax.bf16 %v6370_v58, %v4960_v48  ;;  %v5829_v41 = vmax.bf16 %v5769_v5, %v16679_v25  ;;  %v5831_v13 = vmax.bf16 %v5771_v4, %v19994_v29  ;;  %v2348_v58 = vshll.u32 %v17075_v56, 16 }
 0x577   : > { %v6373_v54 = vsel %vm11111_vm11, %v6371_v22, %v6372_v52  ;;  %v6451_v37 = vmax.bf16 %v6374_v49, %v4962_v9  ;;  %v5830_v55 = vmax.bf16 %v5770_v33, %v16475_v15  ;;  %v2347_v22 = vrot.slane %v2345_v45, 4 }
 0x578   : > { %v6450_v48 = vmax.bf16 %v6373_v54, %v4961_v42  ;;  %v17090_v11 = vmax.bf16 %v6449_v0, %v4961_v42  ;;  %v5889_v42 = vmax.bf16 %v5829_v41, %v16880_v47  ;;  %v5891_v5 = vmax.bf16 %v5831_v13, %v20103_v39 }
 0x579   : > { %v17103_v52 = vmax.bf16 %v6451_v37, %v4963_v24  ;;  %v5890_v0 = vmax.bf16 %v5830_v55, %v20100_v8  ;;  %v2350_v54 = vrot.slane %v2348_v58, 5  ;;  %v17113_v24 = vld [vmem:[#allocation2 + $0x1b8] sm:$0xf]  ;;  %v17115_v37 = vpop.f32.mrb[91].mxu0  ;;  %v20136_v58 = vld [vmem:[#allocation47_spill] sm:$0xff] }
 0x57a   : > { %v17099_v26 = vmax.bf16 %v6450_v48, %v4962_v9  ;;  %v6821_v61 = vmax.bf16 %v6749_v50, %v17090_v11  ;;  %v5949_v4 = vmax.bf16 %v5889_v42, %v17080_v17  ;;  %v18471_v9 = vshll.u32 %v17096_v57, 16  ;;  %20135 = vst [vmem:[#allocation112_spill] sm:$0xff] %v17115_v37  ;;  %v20137_v42 = vld [vmem:[#allocation196_spill] sm:$0xff] }
 0x57b   : > { %v6823_v48 = vmax.bf16 %v6751_v12, %v17103_v52  ;;  %v5950_v50 = vmax.bf16 %v5890_v0, %v16696_v30  ;;  %v5951_v41 = vmax.bf16 %v5891_v5, %v16704_v43  ;;  %v2351_v45 = vor.u32 %v2350_v54, %v2347_v22  ;;  %v20138_v12 = vld [vmem:[#allocation124_spill] sm:$0xff] }
 0x57c   : > { %v6822_v49 = vmax.bf16 %v6750_v21, %v17099_v26  ;;  %v6917_v33 = vmax.bf16 %v6869_v40, %v6821_v61  ;;  %v5997_v21 = vmax.bf16 %v5949_v4, %v20136_v58  ;;  %v2356_v40 = vrot.slane %v18471_v9, 5  ;;  %v20161_v58 = vld [vmem:[#allocation132_spill] sm:$0xff] }
 0x57d   : > { %v6919_v61 = vmax.bf16 %v6871_v23, %v6823_v48  ;;  %v5998_v51 = vmax.bf16 %v5950_v50, %v20137_v42  ;;  %v5999_v46 = vmax.bf16 %v5951_v41, %v20138_v12  ;;  %v2352_v0 = vrot.slane %v2351_v45, 4  ;;  %v17130_v45 = vpop.f32.mrb[92].mxu0 }
 0x57e   : > { %v6918_v55 = vmax.bf16 %v6870_v18, %v6822_v49  ;;  %v9043_v13 = vrot.slane %v6917_v33, 9  ;;  %v8983_v5 = vrot.slane %v5997_v21, 10  ;;  %v2358_v22 = vshrl.u32 %v17096_v57, 16  ;;  %20140 = vst [vmem:[#allocation82_spill] sm:$0xff] %v17130_v45  ;;  %v2634_v45 = vld [vmem:[#allocation2 + $0x1b0] sm:$0xe] }
 0x57f   : > { %v18470_v54 = vshll.u32 %v17113_v24, 16  ;;  %v7074_v18 = vrot.slane %v6919_v61, 5  ;;  %v6151_v49 = vrot.slane %v5998_v51, 6  ;;  %v6154_v33 = vrot.slane %v5999_v46, 6  ;;  %v17135_v61 = vpop.f32.mrb[93].mxu0 }
 0x580   : > { %v7071_v16 = vrot.slane %v6918_v55, 5  ;;  %v2357_v4 = vsel %vm10803_vm2, %v2352_v0, %v2356_v40  ;;  %v2360_v50 = vrot.slane %v2358_v22, 4  ;;  %v2368_v51 = vshrl.u32 %v17113_v24, 16  ;;  %20141 = vst [vmem:[#allocation83_spill] sm:$0xff] %v17135_v61  ;;  %v17142_v0 = vpop.f32.mrb[94].mxu0 }
 0x581   : > { %v2366_v41 = vrot.slane %v18470_v54, 5  ;;  %v6152_v55 = vsel %vm11111_vm11, %v8983_v5, %v6151_v49  ;;  %v6153_v21 = vrot.slane %v6151_v49, 4  ;;  %v2374_v46 = vshll.u32 %v1287_v32, 16  ;;  %20142 = vst [vmem:[#allocation73_spill] sm:$0xff] %v17142_v0  ;;  %v17146_v37 = vpop.f32.mrb[95].mxu0 }
 0x582   : > { %v7072_v23 = vsel %vm10899_vm5, %v9043_v13, %v7071_v16  ;;  %v7073_v48 = vrot.slane %v7071_v16, 4  ;;  %v2361_v13 = vor.u32 %v2360_v50, %v2356_v40  ;;  %v2378_v16 = vshrl.u32 %v1287_v32, 16  ;;  %20143 = vst [vmem:[#allocation54_spill] sm:$0xff] %v17146_v37 }
 0x583   : > { %v17140_v12 = vmax.bf16 %v2357_v4, %v17075_v56  ;;  %v6155_v5 = vsel %vm11111_vm11, %v6153_v21, %v6154_v33  ;;  %v2370_v49 = vrot.slane %v2368_v51, 4  ;;  %v2376_v9 = vrot.slane %v2374_v46, 5  ;;  %v1259_v46 = vld [vmem:[#allocation2 + $0x1bc] sm:$0x1] }
 0x584   : > { %v7075_v42 = vsel %vm10899_vm5, %v7073_v48, %v7074_v18  ;;  %v8999_v61 = vcombine.low %v6152_v55, %v6155_v5  ;;  %v2362_v28 = vrot.slane %v2361_v13, 4  ;;  %v2380_v31 = vrot.slane %v2378_v16, 4 }
 0x585   : > { %v9059_v54 = vcombine.low %v7072_v23, %v7075_v42  ;;  %v8908_v18 = vrot.slane %v2634_v45, 9  ;;  %v2371_v40 = vor.u32 %v2370_v49, %v2366_v41  ;;  %v3049_v56 = vrot.slane %v17096_v57, 5 }
 0x586   : > { %v3052_v4 = vrot.slane %v17113_v24, 5  ;;  %v3055_v48 = vrot.slane %v1287_v32, 5  ;;  %v2367_v33 = vsel %vm10803_vm2, %v2362_v28, %v2366_v41  ;;  %v2381_v23 = vor.u32 %v2380_v31, %v2376_v9  ;;  %v3309_v28 = vld [vmem:[#allocation2 + $0x1bc] sm:$0x7] }
 0x587   : > { %7988 = vmatprep.mubr.bf16.mxu1 %v9059_v54  ;;  %v4097_v50 = vshrl.u32 %v2634_v45, 16  ;;  %v4100_v21 = vshll.u32 %v2634_v45, 16  ;;  %v2372_v42 = vrot.slane %v2371_v40, 4  ;;  %v2604_v55 = vmax.bf16 %v2367_v33, %v17096_v57 }
 0x588   : > { %7989 = vmatmul.mubr.bf16.gmra.mrb[56].mxu1 %v8999_v61  ;;  %v3050_v54 = vsel %vm10899_vm5, %v8908_v18, %v3049_v56  ;;  %v3051_v13 = vrot.slane %v3049_v56, 4  ;;  %v2382_v16 = vrot.slane %v2381_v23, 4  ;;  %v3054_v5 = vrot.slane %v3052_v4, 4  ;;  %v4376_v23 = vld [vmem:[#allocation2 + $0x1b0] sm:$0xc] }
 0x589   : > { %v3057_v49 = vrot.slane %v3055_v48, 4  ;;  %v3278_v32 = vmax.bf16 %v3050_v54, %v17140_v12  ;;  %v2377_v61 = vsel %vm10803_vm2, %v2372_v42, %v2376_v9  ;;  %v4099_v41 = vrot.slane %v4097_v50, 5 }
 0x58a   : > { %v3053_v31 = vsel %vm10899_vm5, %v3051_v13, %v3052_v4  ;;  %v4102_v45 = vrot.slane %v4100_v21, 6  ;;  %v2605_v40 = vmax.bf16 %v2377_v61, %v17113_v24  ;;  %v2606_v33 = vmax.bf16 %v2382_v16, %v1259_v46 }
 0x58b   : > { %v3056_v18 = vsel %vm10899_vm5, %v3054_v5, %v3055_v48  ;;  %v3279_v56 = vmax.bf16 %v3053_v31, %v2604_v55  ;;  %v4105_v0 = vrot.slane %v2358_v22, 5  ;;  %v20144_v12 = vshll.u32 %v17096_v57, 16 }
 0x58c   : > { %v4103_v37 = vor.u32 %v4102_v45, %v4099_v41  ;;  %v4110_v9 = vrot.slane %v2368_v51, 5  ;;  %v3280_v42 = vmax.bf16 %v3056_v18, %v2605_v40  ;;  %v3281_v54 = vmax.bf16 %v3057_v49, %v2606_v33 }
 0x58d   : > { %v4106_v53 = vrot.slane %v20144_v12, 6  ;;  %v20145_v4 = vshll.u32 %v17113_v24, 16  ;;  %v4116_v21 = vshrl.u32 %v3309_v28, 16  ;;  %v4119_v46 = vshll.u32 %v3309_v28, 16 }
 0x58e   : > { %v4104_v13 = vrot.slane %v4103_v37, 4  ;;  %v8936_v16 = vrot.slane %v4376_v23, 10  ;;  %v4735_v55 = vrot.slane %v17096_v57, 6  ;;  %v4738_v22 = vrot.slane %v17113_v24, 6 }
 0x58f   : > { %v4111_v50 = vrot.slane %v20145_v4, 6  ;;  %v4107_v61 = vor.u32 %v4106_v53, %v4105_v0  ;;  %v4118_v48 = vrot.slane %v4116_v21, 5  ;;  %v4121_v31 = vrot.slane %v4119_v46, 6  ;;  %v20146_v46 = vld [vmem:[#allocation128_spill] sm:$0xff] }
 0x590   : > { %v4741_v49 = vrot.slane %v3309_v28, 6  ;;  %v4736_v37 = vsel %vm11111_vm11, %v8936_v16, %v4735_v55  ;;  %v4737_v0 = vrot.slane %v4735_v55, 4  ;;  %v4740_v18 = vrot.slane %v4738_v22, 4  ;;  %v20147_v16 = vld [vmem:[#allocation85_spill] sm:$0xff] }
 0x591   : > { %v4112_v19 = vor.u32 %v4111_v50, %v4110_v9  ;;  %v4108_v5 = vsel %vm10967_vm8, %v4104_v13, %v4107_v61  ;;  %v4109_v51 = vrot.slane %v4107_v61, 4  ;;  %v4122_v33 = vor.u32 %v4121_v31, %v4118_v48  ;;  %v20151_v31 = vld [vmem:[#allocation110_spill] sm:$0xff] }
 0x592   : > { %v4345_v45 = vmax.bf16 %v4108_v5, %v3278_v32  ;;  %v4743_v57 = vrot.slane %v4741_v49, 4  ;;  %v4739_v24 = vsel %vm11111_vm11, %v4737_v0, %v4738_v22  ;;  %v6608_v28 = vmax.bf16 %v16711_v14, %v16520_v62 }
 0x593   : > { %v4114_v41 = vrot.slane %v4112_v19, 4  ;;  %v4113_v40 = vsel %vm10967_vm8, %v4109_v51, %v4112_v19  ;;  %v4124_v53 = vrot.slane %v4122_v33, 4  ;;  %v4742_v9 = vsel %vm11111_vm11, %v4740_v18, %v4741_v49  ;;  %v20150_v51 = vld [vmem:[#allocation44_spill] sm:$0xff] }
 0x594   : > { %v4346_v23 = vmax.bf16 %v4113_v40, %v3279_v56  ;;  %v4964_v12 = vmax.bf16 %v4736_v37, %v4345_v45  ;;  %v6609_v19 = vmax.bf16 %v16714_v10, %v16524_v1  ;;  %v6610_v21 = vmax.bf16 %v16723_v63, %v16564_v59  ;;  %v20148_v10 = vld [vmem:[#allocation96_spill] sm:$0xff] }
 0x595   : > { %v4123_v32 = vsel %vm10967_vm8, %v4114_v41, %v4122_v33  ;;  %v4348_v13 = vmax.bf16 %v4124_v53, %v3281_v54  ;;  %v6680_v61 = vmax.bf16 %v6608_v28, %v16921_v38  ;;  %v6872_v48 = vmax.bf16 %v20147_v16, %v20146_v46  ;;  %v20153_v28 = vld [vmem:[#allocation67_spill] sm:$0xff] }
 0x596   : > { %v4347_v4 = vmax.bf16 %v4123_v32, %v3280_v42  ;;  %v4965_v50 = vmax.bf16 %v4739_v24, %v4346_v23  ;;  %v9028_v56 = vrot.slane %v4964_v12, 10  ;;  %v6681_v62 = vmax.bf16 %v6609_v19, %v16924_v2  ;;  %v20149_v42 = vld [vmem:[#allocation106_spill] sm:$0xff]  ;;  %v20154_v19 = vld [vmem:[#allocation163_spill] sm:$0xff] }
 0x597   : > { %v4967_v55 = vmax.bf16 %v4743_v57, %v4348_v13  ;;  %v6682_v22 = vmax.bf16 %v6610_v21, %v16935_v7  ;;  %v6752_v1 = vmax.bf16 %v6680_v61, %v17090_v11  ;;  %v6873_v5 = vmax.bf16 %v20149_v42, %v20148_v10  ;;  %v20156_v13 = vld [vmem:[#allocation90_spill] sm:$0xff] }
 0x598   : > { %v4966_v34 = vmax.bf16 %v4742_v9, %v4347_v4  ;;  %v6377_v14 = vrot.slane %v4965_v50, 6  ;;  %v6753_v2 = vmax.bf16 %v6681_v62, %v17099_v26  ;;  %v5712_v49 = vmax.bf16 %v20151_v31, %v20150_v51 }
 0x599   : > { %v5772_v41 = vmax.bf16 %v16679_v25, %v16557_v20  ;;  %v5773_v7 = vmax.bf16 %v16475_v15, %v16365_v3  ;;  %v5774_v37 = vmax.bf16 %v19994_v29, %v16369_v44  ;;  %v7293_v0 = vlaneseq  ;;  %v20152_v29 = vld [vmem:[#allocation18_spill] sm:$0xff] }
 0x59a   : > { %v6378_v59 = vsel %vm11111_vm11, %v9028_v56, %v6377_v14  ;;  %v6379_v63 = vrot.slane %v6377_v14, 4  ;;  %v6380_v38 = vrot.slane %v4966_v34, 6  ;;  %v6754_v20 = vmax.bf16 %v6682_v22, %v17103_v52  ;;  %v20158_v14 = vld [vmem:[#allocation86_spill] sm:$0xff] }
 0x59b   : > { %v6452_v54 = vmax.bf16 %v6378_v59, %v4964_v12  ;;  %v5832_v33 = vmax.bf16 %v5772_v41, %v16880_v47  ;;  %v5833_v18 = vmax.bf16 %v5773_v7, %v20100_v8  ;;  %v5834_v25 = vmax.bf16 %v5774_v37, %v20103_v39  ;;  %v20155_v39 = vld [vmem:[#allocation157_spill] sm:$0xff] }
 0x59c   : > { %v6381_v11 = vsel %vm11111_vm11, %v6379_v63, %v6380_v38  ;;  %v6382_v45 = vrot.slane %v6380_v38, 4  ;;  %v7294_v3 = vshrl.u32 %v7293_v0, 7  ;;  %v6874_v32 = vmax.bf16 %v20153_v28, %v20152_v29  ;;  %v20159_v37 = vld [vmem:[#allocation89_spill] sm:$0xff]  ;;  %v20168_v28 = vld [vmem:[#allocation87_spill] sm:$0xff] }
 0x59d   : > { %v6453_v40 = vmax.bf16 %v6381_v11, %v4965_v50  ;;  %v6536_v26 = vmax.bf16 %v6452_v54, %v4965_v50  ;;  %v5892_v24 = vmax.bf16 %v5832_v33, %v17080_v17  ;;  %v5893_v12 = vmax.bf16 %v5833_v18, %v16696_v30  ;;  %v7291_v30 = vld [vmem:[%s17684_s4] sm:$0x3]  ;;  %v20162_v18 = vld [vmem:[#allocation91_spill] sm:$0xff] }
 0x59e   : > { %v6454_v57 = vmax.bf16 %v6382_v45, %v4966_v34  ;;  %v5894_v47 = vmax.bf16 %v5834_v25, %v16704_v43  ;;  %v7295_v56 = vsub.s32 0, %v7294_v3  ;;  %v7299_v61 = vsub.s32 1, %v7294_v3 }
 0x59f   : > { %v6537_v15 = vmax.bf16 %v6453_v40, %v4966_v34  ;;  %v6824_v23 = vmax.bf16 %v6752_v1, %v6536_v26  ;;  %v5952_v9 = vmax.bf16 %v5892_v24, %v5712_v49  ;;  %v5953_v52 = vmax.bf16 %v5893_v12, %v20154_v19  ;;  %v20157_v34 = vld [vmem:[#allocation93_spill] sm:$0xff]  ;;  %v17227_v42 = vpop.f32.mrb[96].mxu0  ;;  %v20171_v19 = vld [vmem:[#allocation155_spill] sm:$0xff] }
 0x5a0   : > { %v6538_v44 = vmax.bf16 %v6454_v57, %v4967_v55  ;;  %v5954_v50 = vmax.bf16 %v5894_v47, %v20155_v39  ;;  %v17225_v10 = vrot.slane %v7291_v30, %v7295_v56  ;;  %v17231_v38 = vrot.slane %v7291_v30, %v7299_v61  ;;  %v20160_v40 = vld [vmem:[#allocation97_spill] sm:$0xff]  ;;  %v20169_v47 = vld [vmem:[#allocation48_spill] sm:$0xff] }
 0x5a1   : > { %v6825_v53 = vmax.bf16 %v6753_v2, %v6537_v15  ;;  %v6920_v8 = vmax.bf16 %v6872_v48, %v6824_v23  ;;  %v6001_v17 = vmax.bf16 %v5953_v52, %v20156_v13  ;;  %v6000_v43 = vmax.bf16 %v5952_v9, %v20157_v34  ;;  %v17233_v2 = vpop.f32.mrb[97].mxu0  ;;  %v20165_v15 = vld [vmem:[#allocation156_spill] sm:$0xff]  ;;  %v20166_v24 = vld [vmem:[#allocation161_spill] sm:$0xff] }
 0x5a2   : > { %v6826_v4 = vmax.bf16 %v6754_v20, %v6538_v44  ;;  %v6002_v46 = vmax.bf16 %v5954_v50, %v20158_v14  ;;  %v17235_v51 = vpop.f32.mrb[98].mxu0  ;;  %v7658_v0 = vadd.f32 %v20159_v37, %v17225_v10  ;;  %v7660_v26 = vadd.f32 %v20160_v40, %v17231_v38  ;;  %v20163_v20 = vld [vmem:[#allocation94_spill] sm:$0xff]  ;;  %v20167_v44 = vld [vmem:[#allocation21_spill] sm:$0xff]  ;;  %v20173_v50 = vld [vmem:[#allocation187_spill] sm:$0xff] }
 0x5a3   : > { %v6921_v21 = vmax.bf16 %v6873_v5, %v6825_v53  ;;  %v9044_v16 = vrot.slane %v6920_v8, 9  ;;  %v6158_v55 = vrot.slane %v6001_v17, 6  ;;  %v8984_v54 = vrot.slane %v6000_v43, 10  ;;  %v17241_v41 = vpop.f32.mrb[99].mxu0  ;;  %v20170_v8 = vld [vmem:[#allocation104_spill] sm:$0xff]  ;;  %v20176_v14 = vld [vmem:[#allocation102_spill] sm:$0xff] }
 0x5a4   : > { %v6922_v62 = vmax.bf16 %v6874_v32, %v6826_v4  ;;  %v6161_v1 = vrot.slane %v6002_v46, 6  ;;  %v7662_v33 = vadd.f32 %v20161_v58, %v17225_v10  ;;  %v7664_v57 = vadd.f32 %v20162_v18, %v17231_v38  ;;  %v20172_v4 = vld [vmem:[#allocation103_spill] sm:$0xff]  ;;  %v20175_v17 = vld [vmem:[#allocation212_spill] sm:$0xff]  ;;  %v20184_v58 = vld [vmem:[#allocation153_spill] sm:$0xff] }
 0x5a5   : > { %v7078_v48 = vrot.slane %v6921_v21, 5  ;;  %v6160_v63 = vrot.slane %v6158_v55, 4  ;;  %v6159_v11 = vsel %vm11111_vm11, %v8984_v54, %v6158_v55  ;;  %v7668_v25 = vadd.f32 %v20163_v20, %v17225_v10  ;;  %v20174_v21 = vld [vmem:[#allocation109_spill] sm:$0xff]  ;;  %v20178_v55 = vld [vmem:[#allocation162_spill] sm:$0xff]  ;;  %v20181_v54 = vld [vmem:[#allocation160_spill] sm:$0xff] }
 0x5a6   : > { %v7081_v22 = vrot.slane %v6922_v62, 5  ;;  %v7670_v3 = vadd.f32 %v20164_v27, %v17231_v38  ;;  %v7672_v23 = vadd.f32 %v20165_v15, %v17225_v10  ;;  %v7674_v12 = vadd.f32 %v20166_v24, %v17231_v38  ;;  %v20185_v18 = vld [vmem:[#allocation122_spill] sm:$0xff]  ;;  %v20187_v27 = vld [vmem:[#allocation149_spill] sm:$0xff]  ;;  %v20188_v15 = vld [vmem:[#allocation135_spill] sm:$0xff] }
 0x5a7   : > { %v7079_v5 = vsel %vm10899_vm5, %v9044_v16, %v7078_v48  ;;  %v7080_v59 = vrot.slane %v7078_v48, 4  ;;  %v6162_v49 = vsel %vm11111_vm11, %v6160_v63, %v6161_v1  ;;  %v7678_v29 = vadd.f32 %v20167_v44, %v17225_v10  ;;  %v20177_v16 = vld [vmem:[#allocation105_spill] sm:$0xff]  ;;  %v20186_v20 = vld [vmem:[#allocation42_spill] sm:$0xff] }
 0x5a8   : > { %v9000_v45 = vcombine.low %v6159_v11, %v6162_v49  ;;  %v17264_v32 = vadd.f32 %v20168_v28, %v7658_v0  ;;  %v7680_v53 = vadd.f32 %v20169_v47, %v17231_v38  ;;  %v17269_v9 = vadd.f32 %v20170_v8, %v7660_v26  ;;  %v20179_v1 = vld [vmem:[#allocation197_spill] sm:$0xff]  ;;  %v20183_v0 = vld [vmem:[#allocation34_spill] sm:$0xff]  ;;  %v20191_v8 = vld [vmem:[#allocation108_spill] sm:$0xff] }
 0x5a9   : > { %v7082_v31 = vsel %vm10899_vm5, %v7080_v59, %v7081_v22  ;;  %v17272_v52 = vadd.f32 %v20171_v19, %v7662_v33  ;;  %v17275_v39 = vadd.f32 %v20172_v4, %v7664_v57  ;;  %v7682_v56 = vadd.f32 %v20173_v50, %v17225_v10  ;;  %v20180_v59 = vld [vmem:[#allocation209_spill] sm:$0xff]  ;;  %v20189_v24 = vld [vmem:[#allocation38_spill] sm:$0xff] }
 0x5aa   : > { %v9060_v7 = vcombine.low %v7079_v5, %v7082_v31  ;;  %v7684_v13 = vadd.f32 %v20174_v21, %v17231_v38  ;;  %v7688_v30 = vadd.f32 %v20175_v17, %v17225_v10  ;;  %v9125_v61 = vmul.f32 -1.442695, %v17264_v32  ;;  %v20192_v50 = vld [vmem:[#allocation113_spill] sm:$0xff]  ;;  %v20193_v21 = vld [vmem:[#allocation126_spill] sm:$0xff] }
 0x5ab   : > { %v9126_v62 = vmul.f32 -1.442695, %v17269_v9  ;;  %v9127_v34 = vmul.f32 -1.442695, %v17272_v52  ;;  %v9128_v43 = vmul.f32 -1.442695, %v17275_v39  ;;  %v17288_v46 = vadd.f32 %v20176_v14, %v7668_v25 }
 0x5ac   : > { %7998 = vmatprep.mubr.bf16.mxu1 %v9060_v7  ;;  %9880 = vpow2.f32 %v9125_v61  ;;  %v17291_v48 = vadd.f32 %v20177_v16, %v7670_v3  ;;  %v17294_v22 = vadd.f32 %v20178_v55, %v7672_v23  ;;  %v17297_v5 = vadd.f32 %v20179_v1, %v7674_v12  ;;  %v20182_v7 = vld [vmem:[#allocation208_spill] sm:$0xff]  ;;  %v20196_v55 = vld [vmem:[#allocation107_spill] sm:$0xff] }
 0x5ad   : > { %7999 = vmatmul.mubr.bf16.gmra.mrb[60].mxu1 %v9000_v45  ;;  %v7690_v63 = vadd.f32 %v20180_v59, %v17231_v38  ;;  %v7692_v31 = vadd.f32 %v20181_v54, %v17225_v10  ;;  %9882 = vpow2.f32 %v9126_v62  ;;  %v9129_v49 = vmul.f32 -1.442695, %v17288_v46  ;;  %v20194_v62 = vld [vmem:[#allocation70_spill] sm:$0xff]  ;;  %v20197_v59 = vld [vmem:[#allocation101_spill] sm:$0xff] }
 0x5ae   : > { %v7694_v11 = vadd.f32 %v20182_v7, %v17231_v38  ;;  %9884 = vpow2.f32 %v9127_v34  ;;  %v9130_v45 = vmul.f32 -1.442695, %v17291_v48  ;;  %v9131_v37 = vmul.f32 -1.442695, %v17294_v22 }
 0x5af   : > { %v7698_v40 = vadd.f32 %v20183_v0, %v17225_v10  ;;  %9886 = vpow2.f32 %v9128_v43  ;;  %v9132_v26 = vmul.f32 -1.442695, %v17297_v5  ;;  %v17312_v33 = vadd.f32 %v20184_v58, %v7678_v29  ;;  %v20190_v29 = vld [vmem:[#allocation111_spill] sm:$0xff]  ;;  %v20195_v43 = vld [vmem:[#allocation17_spill] sm:$0xff] }
 0x5b0   : > { %9888 = vpow2.f32 %v9129_v49  ;;  %v17315_v57 = vadd.f32 %v20185_v18, %v7680_v53  ;;  %v17318_v25 = vadd.f32 %v20186_v20, %v7682_v56  ;;  %v17321_v3 = vadd.f32 %v20187_v27, %v7684_v13  ;;  %v20199_v49 = vld [vmem:[#allocation115_spill] sm:$0xff] }
 0x5b1   : > { %v7700_v23 = vadd.f32 %v20188_v15, %v17231_v38  ;;  %v7702_v12 = vadd.f32 %v20189_v24, %v17225_v10  ;;  %9890 = vpow2.f32 %v9130_v45  ;;  %v9133_v44 = vmul.f32 -1.442695, %v17312_v33  ;;  %v20201_v27 = vld [vmem:[#allocation203_spill] sm:$0xff] }
 0x5b2   : > { %v7704_v28 = vadd.f32 %v20190_v29, %v17231_v38  ;;  %9892 = vpow2.f32 %v9131_v37  ;;  %v9134_v47 = vmul.f32 -1.442695, %v17315_v57  ;;  %v9135_v53 = vmul.f32 -1.442695, %v17318_v25  ;;  %v20202_v24 = vld [vmem:[#allocation119_spill] sm:$0xff] }
 0x5b3   : > { %v7708_v19 = vadd.f32 %v20191_v8, %v17225_v10  ;;  %9894 = vpow2.f32 %v9132_v26  ;;  %v9136_v4 = vmul.f32 -1.442695, %v17321_v3  ;;  %v17336_v56 = vadd.f32 %v20192_v50, %v7688_v30 }
 0x5b4   : > { %9896 = vpow2.f32 %v9133_v44  ;;  %v17339_v13 = vadd.f32 %v20193_v21, %v7690_v63  ;;  %v17342_v17 = vadd.f32 %v17005_v35, %v7692_v31  ;;  %v17345_v61 = vadd.f32 %v17010_v36, %v7694_v11  ;;  %v20198_v63 = vld [vmem:[#allocation99_spill] sm:$0xff] }
 0x5b5   : > { %v7710_v34 = vadd.f32 %v20194_v62, %v17231_v38  ;;  %v7712_v14 = vadd.f32 %v20195_v43, %v17225_v10  ;;  %9898 = vpow2.f32 %v9134_v47  ;;  %v9137_v30 = vmul.f32 -1.442695, %v17336_v56  ;;  %v20200_v11 = vld [vmem:[#allocation175_spill] sm:$0xff]  ;;  %v20207_v43 = vld [vmem:[#allocation37_spill] sm:$0xff] }
 0x5b6   : > { %v9881_v16 = vpop.eup %9880  ;;  %v7714_v1 = vadd.f32 %v20196_v55, %v17231_v38  ;;  %v7718_v35 = vadd.f32 %v20197_v59, %v17225_v10  ;;  %v7720_v36 = vadd.f32 %v20198_v63, %v17231_v38  ;;  %9900 = vpow2.f32 %v9135_v53  ;;  %v20203_v53 = vld [vmem:[#allocation152_spill] sm:$0xff] }
 0x5b7   : > { %v9883_v54 = vpop.eup %9882  ;;  %v8201_v31 = vadd.f32 1.0, %v9881_v16  ;;  %v7722_v7 = vadd.f32 %v20199_v49, %v17225_v10  ;;  %v7724_v45 = vadd.f32 %v20200_v11, %v17231_v38  ;;  %9902 = vpow2.f32 %v9136_v4  ;;  %v20205_v4 = vld [vmem:[#allocation204_spill] sm:$0xff]  ;;  %v20210_v49 = vld [vmem:[#allocation98_spill] sm:$0xff] }
 0x5b8   : > { %v9885_v37 = vpop.eup %9884  ;;  %v8202_v0 = vadd.f32 1.0, %v9883_v54  ;;  %9904 = vpow2.f32 %v9137_v30  ;;  %v17363_v26 = vadd.f32 %v17014_v60, %v7698_v40  ;;  %v17366_v58 = vadd.f32 %v17018_v6, %v7700_v23  ;;  %v20204_v60 = vld [vmem:[#allocation214_spill] sm:$0xff]  ;;  %v20208_v16 = vld [vmem:[#allocation84_spill] sm:$0xff] }
 0x5b9   : > { %v9887_v18 = vpop.eup %9886  ;;  %9906 = vrcp.f32 %v8201_v31  ;;  %v8203_v20 = vadd.f32 1.0, %v9885_v37  ;;  %v17369_v15 = vadd.f32 %v20201_v27, %v7702_v12  ;;  %v17372_v44 = vadd.f32 %v20202_v24, %v7704_v28  ;;  %v20206_v12 = vld [vmem:[#allocation148_spill] sm:$0xff] }
 0x5ba   : > { %v9889_v29 = vpop.eup %9888  ;;  %9908 = vrcp.f32 %v8202_v0  ;;  %v8204_v47 = vadd.f32 1.0, %v9887_v18  ;;  %v7728_v8 = vadd.f32 %v20203_v53, %v17225_v10  ;;  %v7730_v40 = vadd.f32 %v20204_v60, %v17231_v38  ;;  %v20209_v54 = vld [vmem:[#allocation72_spill] sm:$0xff]  ;;  %v20211_v18 = vld [vmem:[#allocation114_spill] sm:$0xff] }
 0x5bb   : > { %v9891_v6 = vpop.eup %9890  ;;  %9910 = vrcp.f32 %v8203_v20  ;;  %v8205_v23 = vadd.f32 1.0, %v9889_v29  ;;  %v7732_v50 = vadd.f32 %v20205_v4, %v17225_v10  ;;  %v7734_v21 = vadd.f32 %v20206_v12, %v17231_v38  ;;  %v20213_v29 = vld [vmem:[#allocation123_spill] sm:$0xff]  ;;  %v20216_v4 = vld [vmem:[#allocation144_spill] sm:$0xff] }
 0x5bc   : > { %v9893_v28 = vpop.eup %9892  ;;  %9912 = vrcp.f32 %v8204_v47  ;;  %v8206_v62 = vadd.f32 1.0, %v9891_v6  ;;  %v17383_v30 = vadd.f32 %v20207_v43, %v7708_v19  ;;  %v17386_v55 = vadd.f32 %v20208_v16, %v7710_v34  ;;  %v20212_v19 = vld [vmem:[#allocation117_spill] sm:$0xff]  ;;  %v20215_v6 = vld [vmem:[#allocation100_spill] sm:$0xff] }
 0x5bd   : > { %v9895_v59 = vpop.eup %9894  ;;  %9914 = vrcp.f32 %v8205_v23  ;;  %v8207_v63 = vadd.f32 1.0, %v9893_v28  ;;  %v17389_v31 = vadd.f32 %v20209_v54, %v7712_v14  ;;  %v17392_v11 = vadd.f32 %v20210_v49, %v7714_v1  ;;  %v20214_v14 = vld [vmem:[#allocation130_spill] sm:$0xff]  ;;  %v20217_v43 = vld [vmem:[#allocation133_spill] sm:$0xff] }
 0x5be   : > { %v9897_v37 = vpop.eup %9896  ;;  %9916 = vrcp.f32 %v8206_v62  ;;  %v8208_v0 = vadd.f32 1.0, %v9895_v59  ;;  %v7738_v20 = vadd.f32 %v20211_v18, %v17225_v10  ;;  %v7740_v27 = vadd.f32 %v20212_v19, %v17231_v38  ;;  %v20218_v59 = vld [vmem:[#allocation112_spill] sm:$0xff] }
 0x5bf   : > { %v9899_v34 = vpop.eup %9898  ;;  %9918 = vrcp.f32 %v8207_v63  ;;  %v8209_v24 = vadd.f32 1.0, %v9897_v37  ;;  %v7742_v47 = vadd.f32 %v20213_v29, %v17225_v10  ;;  %v17402_v53 = vadd.f32 %v20214_v14, %v17231_v38  ;;  %v20220_v29 = vld [vmem:[#allocation83_spill] sm:$0xff] }
 0x5c0   : > { %v9901_v1 = vpop.eup %9900  ;;  %9920 = vrcp.f32 %v8208_v0  ;;  %v8210_v60 = vadd.f32 1.0, %v9899_v34  ;;  %v17405_v23 = vadd.f32 %v20215_v6, %v7718_v35  ;;  %v17408_v12 = vadd.f32 %v20216_v4, %v7720_v36  ;;  %v20221_v6 = vld [vmem:[#allocation73_spill] sm:$0xff] }
 0x5c1   : > { %v9903_v28 = vpop.eup %9902  ;;  %9922 = vrcp.f32 %v8209_v24  ;;  %v8211_v62 = vadd.f32 1.0, %v9901_v1  ;;  %v17411_v16 = vadd.f32 %v20217_v43, %v7722_v7  ;;  %v17414_v63 = vadd.f32 %v20218_v59, %v7724_v45  ;;  %v20219_v45 = vld [vmem:[#allocation82_spill] sm:$0xff] }
 0x5c2   : > { %v9905_v54 = vpop.eup %9904  ;;  %9924 = vrcp.f32 %v8210_v60  ;;  %v8212_v49 = vadd.f32 1.0, %v9903_v28  ;;  %v9138_v37 = vmul.f32 -1.442695, %v17339_v13  ;;  %v9139_v35 = vmul.f32 -1.442695, %v17342_v17  ;;  %v20222_v28 = vld [vmem:[#allocation54_spill] sm:$0xff] }
 0x5c3   : > { %v9907_v0 = vpop.eup %9906  ;;  %9926 = vrcp.f32 %v8211_v62  ;;  %v8213_v36 = vadd.f32 1.0, %v9905_v54  ;;  %v9140_v18 = vmul.f32 -1.442695, %v17345_v61  ;;  %v9141_v19 = vmul.f32 -1.442695, %v17363_v26 }
 0x5c4   : > { %v9909_v7 = vpop.eup %9908  ;;  %v8393_v34 = vmul.f32 %v9907_v0, %v17264_v32  ;;  %9928 = vrcp.f32 %v8212_v49  ;;  %v17423_v24 = vadd.f32 %v20219_v45, %v7728_v8  ;;  %v17426_v14 = vadd.f32 %v20220_v29, %v7730_v40 }
 0x5c5   : > { %v9911_v1 = vpop.eup %9910  ;;  %v8394_v60 = vmul.f32 %v9909_v7, %v17269_v9  ;;  %9930 = vrcp.f32 %v8213_v36  ;;  %v17430_v4 = vadd.f32 %v20221_v6, %v7732_v50  ;;  %v17433_v62 = vadd.f32 %v20222_v28, %v7734_v21 }
 0x5c6   : > { %v9913_v43 = vpop.eup %9912  ;;  %v8395_v32 = vmul.f32 %v9911_v1, %v17272_v52  ;;  %9932 = vpow2.f32 %v9138_v37  ;;  %v9142_v8 = vmul.f32 -1.442695, %v17366_v58  ;;  %v9143_v40 = vmul.f32 -1.442695, %v17369_v15 }
 0x5c7   : > { %v9915_v59 = vpop.eup %9914  ;;  %v9259_v54 = vpack.c.bf16 %v8394_v60, %v8393_v34  ;;  %v8396_v9 = vmul.f32 %v9913_v43, %v17275_v39  ;;  %9934 = vpow2.f32 %v9139_v35  ;;  %v9144_v50 = vmul.f32 -1.442695, %v17372_v44 }
 0x5c8   : > { %v9917_v49 = vpop.eup %9916  ;;  %v8397_v21 = vmul.f32 %v9915_v59, %v17288_v46  ;;  %9936 = vpow2.f32 %v9140_v18  ;;  %v9145_v0 = vmul.f32 -1.442695, %v17383_v30  ;;  %v17443_v52 = vadd.f32 %v17227_v42, %v7738_v20 }
 0x5c9   : > { %v9919_v37 = vpop.eup %9918  ;;  %8649 = vst [vmem:[%s17447_s11] sm:$0xff] %v9259_v54  ;;  %v9260_v39 = vpack.c.bf16 %v8396_v9, %v8395_v32  ;;  %v8398_v35 = vmul.f32 %v9917_v49, %v17291_v48  ;;  %9938 = vpow2.f32 %v9141_v19  ;;  %v17452_v36 = vadd.f32 %v17233_v2, %v7740_v27  ;;  %v20226_v54 = vld [vmem:[#allocation60_spill] sm:$0xff] }
 0x5ca   : > { %v9921_v46 = vpop.eup %9920  ;;  %v8399_v18 = vmul.f32 %v9919_v37, %v17294_v22  ;;  %9940 = vpow2.f32 %v9142_v8  ;;  %v9146_v42 = vmul.f32 -1.442695, %v17386_v55  ;;  %v17457_v20 = vadd.f32 %v17235_v51, %v7742_v47 }
 0x5cb   : > { %v9923_v7 = vpop.eup %9922  ;;  %8650 = vst [vmem:[%s17447_s11 + $0x8] sm:$0xff] %v9260_v39  ;;  %v9261_v34 = vpack.c.bf16 %v8398_v35, %v8397_v21  ;;  %v8400_v45 = vmul.f32 %v9921_v46, %v17297_v5  ;;  %9942 = vpow2.f32 %v9143_v40  ;;  %v9147_v48 = vmul.f32 -1.442695, %v17389_v31 }
 0x5cc   : > { %v9925_v2 = vpop.eup %9924  ;;  %v8401_v27 = vmul.f32 %v9923_v7, %v17312_v33  ;;  %9944 = vpow2.f32 %v9144_v50  ;;  %v9148_v22 = vmul.f32 -1.442695, %v17392_v11  ;;  %v17466_v19 = vadd.f32 %v17241_v41, %v17402_v53  ;;  %v20223_v33 = vld [vmem:[#allocation118_spill] sm:$0xff] }
 0x5cd   : > { %v9927_v51 = vpop.eup %9926  ;;  %8651 = vst [vmem:[%s17447_s11 + $0x10] sm:$0xff] %v9261_v34  ;;  %v9262_v47 = vpack.c.bf16 %v8400_v45, %v8399_v18  ;;  %v8402_v29 = vmul.f32 %v9925_v2, %v17315_v57  ;;  %9946 = vpow2.f32 %v9145_v0  ;;  %v9149_v5 = vmul.f32 -1.442695, %v17405_v23  ;;  %v20224_v57 = vld [vmem:[#allocation120_spill] sm:$0xff]  ;;  %v7940_v8 = vpop.f32.mrb[100].mxu0 }
 0x5ce   : > { %v9929_v1 = vpop.eup %9928  ;;  %v8403_v60 = vmul.f32 %v9927_v51, %v17318_v25  ;;  %v7748_v6 = vadd.f32 %v20223_v33, %v17225_v10  ;;  %9948 = vpow2.f32 %v9146_v42  ;;  %v9150_v28 = vmul.f32 -1.442695, %v17408_v12  ;;  %v20225_v25 = vld [vmem:[#allocation202_spill] sm:$0xff]  ;;  %v7942_v49 = vpop.f32.mrb[101].mxu0 }
 0x5cf   : > { %v9931_v41 = vpop.eup %9930  ;;  %8652 = vst [vmem:[%s17447_s11 + $0x18] sm:$0xff] %v9262_v47  ;;  %v9263_v53 = vpack.c.bf16 %v8402_v29, %v8401_v27  ;;  %v8404_v43 = vmul.f32 %v9929_v1, %v17321_v3  ;;  %v7750_v32 = vadd.f32 %v20224_v57, %v17231_v38  ;;  %9950 = vpow2.f32 %v9147_v48  ;;  %v7944_v39 = vpop.f32.mrb[102].mxu0 }
 0x5d0   : > { %v9933_v40 = vpop.eup %9932  ;;  %v7752_v59 = vadd.f32 %v20225_v25, %v17225_v10  ;;  %v7754_v9 = vadd.f32 %v20226_v54, %v17231_v38  ;;  %9952 = vpow2.f32 %v9148_v22  ;;  %v17483_v50 = vadd.f32 %v7940_v8, %v7748_v6  ;;  %v7946_v42 = vpop.f32.mrb[103].mxu0 }
 0x5d1   : > { %v9935_v21 = vpop.eup %9934  ;;  %8653 = vst [vmem:[%s17447_s11 + $0x20] sm:$0xff] %v9263_v53  ;;  %v9264_v3 = vpack.c.bf16 %v8404_v43, %v8403_v60  ;;  %v8214_v0 = vadd.f32 1.0, %v9933_v40  ;;  %9954 = vpow2.f32 %v9149_v5  ;;  %v17486_v37 = vadd.f32 %v7942_v49, %v7750_v32 }
 0x5d2   : > { %v9937_v35 = vpop.eup %9936  ;;  %v8215_v46 = vadd.f32 1.0, %v9935_v21  ;;  %9956 = vpow2.f32 %v9150_v28  ;;  %v17488_v18 = vadd.f32 %v7944_v39, %v7752_v59  ;;  %v17491_v45 = vadd.f32 %v7946_v42, %v7754_v9 }
 0x5d3   : > { %v9939_v7 = vpop.eup %9938  ;;  %8654 = vst [vmem:[%s17447_s11 + $0x28] sm:$0xff] %v9264_v3  ;;  %9958 = vrcp.f32 %v8214_v0  ;;  %v8216_v34 = vadd.f32 1.0, %v9937_v35  ;;  %v8405_v8 = vmul.f32 %v9931_v41, %v17336_v56  ;;  %v9151_v25 = vmul.f32 -1.442695, %v17411_v16 }
 0x5d4   : > { %v9941_v48 = vpop.eup %9940  ;;  %9960 = vrcp.f32 %v8215_v46  ;;  %v8217_v2 = vadd.f32 1.0, %v9939_v7  ;;  %v9152_v49 = vmul.f32 -1.442695, %v17414_v63  ;;  %v9153_v39 = vmul.f32 -1.442695, %v17423_v24 }
 0x5d5   : > { %v9943_v27 = vpop.eup %9942  ;;  %9962 = vrcp.f32 %v8216_v34  ;;  %v8218_v22 = vadd.f32 1.0, %v9941_v48  ;;  %v9154_v46 = vmul.f32 -1.442695, %v17426_v14 }
 0x5d6   : > { %v9945_v51 = vpop.eup %9944  ;;  %9964 = vrcp.f32 %v8217_v2  ;;  %v8219_v47 = vadd.f32 1.0, %v9943_v27 }
 0x5d7   : > { %v9947_v29 = vpop.eup %9946  ;;  %9966 = vrcp.f32 %v8218_v22  ;;  %v8220_v5 = vadd.f32 1.0, %v9945_v51  ;;  %v9156_v22 = vmul.f32 -1.442695, %v17433_v62 }
 0x5d8   : > { %v9949_v1 = vpop.eup %9948  ;;  %9968 = vrcp.f32 %v8219_v47  ;;  %v8221_v60 = vadd.f32 1.0, %v9947_v29  ;;  %v9157_v29 = vmul.f32 -1.442695, %v17443_v52 }
 0x5d9   : > { %v9951_v33 = vpop.eup %9950  ;;  %9970 = vrcp.f32 %v8220_v5  ;;  %v8222_v6 = vadd.f32 1.0, %v9949_v1  ;;  %v9158_v1 = vmul.f32 -1.442695, %v17452_v36 }
 0x5da   : > { %v9953_v28 = vpop.eup %9952  ;;  %9972 = vrcp.f32 %v8221_v60  ;;  %v8223_v53 = vadd.f32 1.0, %v9951_v33 }
 0x5db   : > { %v9955_v43 = vpop.eup %9954  ;;  %9974 = vrcp.f32 %v8222_v6  ;;  %v8224_v57 = vadd.f32 1.0, %v9953_v28  ;;  %v9159_v6 = vmul.f32 -1.442695, %v17457_v20 }
 0x5dc   : > { %v9957_v32 = vpop.eup %9956  ;;  %9976 = vrcp.f32 %v8223_v53  ;;  %v8225_v40 = vadd.f32 1.0, %v9955_v43  ;;  %v17495_v59 = vpop.f32.mrb[40].mxu1  ;;  %v9160_v53 = vmul.f32 -1.442695, %v17466_v19 }
 0x5dd   : > { %v9959_v54 = vpop.eup %9958  ;;  %9978 = vrcp.f32 %v8224_v57  ;;  %v8226_v9 = vadd.f32 1.0, %v9957_v32  ;;  %v17498_v21 = vpop.f32.mrb[41].mxu1  ;;  %v9161_v32 = vmul.f32 -1.442695, %v17483_v50 }
 0x5de   : > { %v9961_v3 = vpop.eup %9960  ;;  %v8406_v0 = vmul.f32 %v9959_v54, %v17339_v13  ;;  %9980 = vrcp.f32 %v8225_v40  ;;  %v17502_v56 = vpop.f32.mrb[42].mxu1  ;;  %v9155_v13 = vmul.f32 -1.442695, %v17430_v4  ;;  %v9162_v40 = vmul.f32 -1.442695, %v17486_v37 }
 0x5df   : > { %v9963_v41 = vpop.eup %9962  ;;  %v8407_v35 = vmul.f32 %v9961_v3, %v17342_v17  ;;  %9982 = vrcp.f32 %v8226_v9  ;;  %v17506_v42 = vpop.f32.mrb[43].mxu1  ;;  %v9163_v9 = vmul.f32 -1.442695, %v17488_v18 }
 0x5e0   : > { %v9965_v7 = vpop.eup %9964  ;;  %v9265_v34 = vpack.c.bf16 %v8406_v0, %v8405_v8  ;;  %v8408_v48 = vmul.f32 %v9963_v41, %v17345_v61  ;;  %9984 = vpow2.f32 %v9151_v25 }
 0x5e1   : > { %v9967_v2 = vpop.eup %9966  ;;  %v8409_v27 = vmul.f32 %v9965_v7, %v17363_v26  ;;  %9986 = vpow2.f32 %v9152_v49 }
 0x5e2   : > { %v9969_v17 = vpop.eup %9968  ;;  %8655 = vst [vmem:[%s17447_s11 + $0x30] sm:$0xff] %v9265_v34  ;;  %v9266_v51 = vpack.c.bf16 %v8408_v48, %v8407_v35  ;;  %v8410_v47 = vmul.f32 %v9967_v2, %v17366_v58  ;;  %9988 = vpow2.f32 %v9153_v39 }
 0x5e3   : > { %v9971_v61 = vpop.eup %9970  ;;  %v8411_v5 = vmul.f32 %v9969_v17, %v17369_v15  ;;  %9990 = vpow2.f32 %v9154_v46 }
 0x5e4   : > { %v9973_v60 = vpop.eup %9972  ;;  %8656 = vst [vmem:[%s17447_s11 + $0x38] sm:$0xff] %v9266_v51  ;;  %v9267_v26 = vpack.c.bf16 %v8410_v47, %v8409_v27  ;;  %v8412_v33 = vmul.f32 %v9971_v61, %v17372_v44  ;;  %9992 = vpow2.f32 %v9155_v13 }
 0x5e5   : > { %v9975_v58 = vpop.eup %9974  ;;  %v8413_v28 = vmul.f32 %v9973_v60, %v17383_v30  ;;  %9994 = vpow2.f32 %v9156_v22 }
 0x5e6   : > { %v9977_v43 = vpop.eup %9976  ;;  %8657 = vst [vmem:[%s17447_s11 + $0x40] sm:$0xff] %v9267_v26  ;;  %v9268_v15 = vpack.c.bf16 %v8412_v33, %v8411_v5  ;;  %v8414_v57 = vmul.f32 %v9975_v58, %v17386_v55  ;;  %9996 = vpow2.f32 %v9157_v29  ;;  %v17537_v33 = vadd.f32 %v17495_v59, %v17225_v10 }
 0x5e7   : > { %v9979_v44 = vpop.eup %9978  ;;  %v8415_v8 = vmul.f32 %v9977_v43, %v17389_v31  ;;  %9998 = vpow2.f32 %v9158_v1  ;;  %v9164_v59 = vmul.f32 -1.442695, %v17491_v45 }
 0x5e8   : > { %v9981_v25 = vpop.eup %9980  ;;  %8658 = vst [vmem:[%s17447_s11 + $0x48] sm:$0xff] %v9268_v15  ;;  %v9269_v30 = vpack.c.bf16 %v8414_v57, %v8413_v28  ;;  %v8416_v54 = vmul.f32 %v9979_v44, %v17392_v11  ;;  %10000 = vpow2.f32 %v9159_v6  ;;  %v17541_v28 = vadd.f32 %v17498_v21, %v17231_v38 }
 0x5e9   : > { %v9983_v55 = vpop.eup %9982  ;;  %v8417_v49 = vmul.f32 %v9981_v25, %v17405_v23  ;;  %10002 = vpow2.f32 %v9160_v53  ;;  %v7960_v3 = vpop.f32.mrb[44].mxu1  ;;  %v17545_v15 = vadd.f32 %v17502_v56, %v17225_v10  ;;  %v17550_v44 = vadd.f32 %v17506_v42, %v17231_v38 }
 0x5ea   : > { %v9985_v0 = vpop.eup %9984  ;;  %8659 = vst [vmem:[%s17447_s11 + $0x50] sm:$0xff] %v9269_v30  ;;  %v9270_v31 = vpack.c.bf16 %v8416_v54, %v8415_v8  ;;  %v8418_v39 = vmul.f32 %v9983_v55, %v17408_v12  ;;  %10004 = vpow2.f32 %v9161_v32  ;;  %v7962_v41 = vpop.f32.mrb[45].mxu1  ;;  %v9165_v21 = vmul.f32 -1.442695, %v17537_v33 }
 0x5eb   : > { %v9987_v35 = vpop.eup %9986  ;;  %v8227_v46 = vadd.f32 1.0, %v9985_v0  ;;  %10006 = vpow2.f32 %v9162_v40  ;;  %v7964_v11 = vpop.f32.mrb[46].mxu1  ;;  %v17554_v40 = vadd.f32 %v7960_v3, %v17225_v10  ;;  %v9166_v30 = vmul.f32 -1.442695, %v17541_v28 }
 0x5ec   : > { %v9989_v7 = vpop.eup %9988  ;;  %8660 = vst [vmem:[%s17447_s11 + $0x58] sm:$0xff] %v9270_v31  ;;  %v9271_v34 = vpack.c.bf16 %v8418_v39, %v8417_v49  ;;  %v8228_v48 = vadd.f32 1.0, %v9987_v35  ;;  %10008 = vpow2.f32 %v9163_v9  ;;  %v7966_v23 = vpop.f32.mrb[47].mxu1  ;;  %v17559_v54 = vadd.f32 %v7962_v41, %v17231_v38 }
 0x5ed   : > { %v9991_v13 = vpop.eup %9990  ;;  %10010 = vrcp.f32 %v8227_v46  ;;  %v8229_v2 = vadd.f32 1.0, %v9989_v7  ;;  %v9167_v55 = vmul.f32 -1.442695, %v17545_v15  ;;  %v17564_v49 = vadd.f32 %v7964_v11, %v17225_v10 }
 0x5ee   : > { %v9993_v27 = vpop.eup %9992  ;;  %8661 = vst [vmem:[%s17447_s11 + $0x60] sm:$0xff] %v9271_v34  ;;  %10012 = vrcp.f32 %v8228_v48  ;;  %v8230_v12 = vadd.f32 1.0, %v9991_v13  ;;  %v17569_v31 = vadd.f32 %v7966_v23, %v17231_v38 }
 0x5ef   : > { %v9995_v22 = vpop.eup %9994  ;;  %10014 = vrcp.f32 %v8229_v2  ;;  %v8231_v17 = vadd.f32 1.0, %v9993_v27  ;;  %v9171_v23 = vmul.f32 -1.442695, %v17564_v49 }
 0x5f0   : > { %v9997_v51 = vpop.eup %9996  ;;  %10016 = vrcp.f32 %v8230_v12  ;;  %v8232_v47 = vadd.f32 1.0, %v9995_v22  ;;  %v9172_v2 = vmul.f32 -1.442695, %v17569_v31 }
 0x5f1   : > { %v9999_v29 = vpop.eup %9998  ;;  %10018 = vrcp.f32 %v8231_v17  ;;  %v8233_v61 = vadd.f32 1.0, %v9997_v51 }
 0x5f2   : > { %v10001_v5 = vpop.eup %10000  ;;  %10020 = vrcp.f32 %v8232_v47  ;;  %v8234_v1 = vadd.f32 1.0, %v9999_v29 }
 0x5f3   : > { %v10003_v60 = vpop.eup %10002  ;;  %10022 = vrcp.f32 %v8233_v61  ;;  %v8235_v26 = vadd.f32 1.0, %v10001_v5 }
 0x5f4   : > { %v10005_v6 = vpop.eup %10004  ;;  %10024 = vrcp.f32 %v8234_v1  ;;  %v8236_v58 = vadd.f32 1.0, %v10003_v60 }
 0x5f5   : > { %v10007_v53 = vpop.eup %10006  ;;  %10026 = vrcp.f32 %v8235_v26  ;;  %v8237_v43 = vadd.f32 1.0, %v10005_v6 }
 0x5f6   : > { %v10009_v57 = vpop.eup %10008  ;;  %10028 = vrcp.f32 %v8236_v58  ;;  %v8238_v32 = vadd.f32 1.0, %v10007_v53 }
 0x5f7   : > { %v10011_v8 = vpop.eup %10010  ;;  %10030 = vrcp.f32 %v8237_v43  ;;  %v8239_v22 = vadd.f32 1.0, %v10009_v57 }
 0x5f8   : > { %v10013_v25 = vpop.eup %10012  ;;  %v8419_v56 = vmul.f32 %v10011_v8, %v17411_v16  ;;  %10032 = vrcp.f32 %v8238_v32  ;;  %v9168_v16 = vmul.f32 -1.442695, %v17550_v44 }
 0x5f9   : > { %v10015_v9 = vpop.eup %10014  ;;  %v8420_v42 = vmul.f32 %v10013_v25, %v17414_v63  ;;  %10034 = vpow2.f32 %v9164_v59  ;;  %v9169_v63 = vmul.f32 -1.442695, %v17554_v40 }
 0x5fa   : > { %v10017_v3 = vpop.eup %10016  ;;  %v8421_v0 = vmul.f32 %v10015_v9, %v17423_v24  ;;  %10036 = vpow2.f32 %v9165_v21  ;;  %v9170_v24 = vmul.f32 -1.442695, %v17559_v54 }
 0x5fb   : > { %v10019_v39 = vpop.eup %10018  ;;  %v9272_v41 = vpack.c.bf16 %v8420_v42, %v8419_v56  ;;  %v8422_v35 = vmul.f32 %v10017_v3, %v17426_v14  ;;  %10038 = vpow2.f32 %v9166_v30 }
 0x5fc   : > { %v10021_v46 = vpop.eup %10020  ;;  %v8423_v11 = vmul.f32 %v10019_v39, %v17430_v4  ;;  %10040 = vpow2.f32 %v9167_v55 }
 0x5fd   : > { %v10023_v7 = vpop.eup %10022  ;;  %8662 = vst [vmem:[%s17447_s11 + $0x68] sm:$0xff] %v9272_v41  ;;  %v9273_v34 = vpack.c.bf16 %v8422_v35, %v8421_v0  ;;  %v8424_v48 = vmul.f32 %v10021_v46, %v17433_v62  ;;  %10042 = vpow2.f32 %v9168_v16 }
 0x5fe   : > { %v10025_v14 = vpop.eup %10024  ;;  %v8425_v13 = vmul.f32 %v10023_v7, %v17443_v52  ;;  %10044 = vpow2.f32 %v9169_v63 }
 0x5ff   : > { %v10027_v27 = vpop.eup %10026  ;;  %8663 = vst [vmem:[%s17447_s11 + $0x70] sm:$0xff] %v9273_v34  ;;  %v9274_v4 = vpack.c.bf16 %v8424_v48, %v8423_v11  ;;  %v8426_v12 = vmul.f32 %v10025_v14, %v17452_v36  ;;  %10046 = vpow2.f32 %v9170_v24 }
 0x600   : > { %v10029_v17 = vpop.eup %10028  ;;  %v8427_v62 = vmul.f32 %v10027_v27, %v17457_v20  ;;  %10048 = vpow2.f32 %v9171_v23 }
 0x601   : > { %v10031_v51 = vpop.eup %10030  ;;  %8664 = vst [vmem:[%s17447_s11 + $0x78] sm:$0xff] %v9274_v4  ;;  %v9275_v47 = vpack.c.bf16 %v8426_v12, %v8425_v13  ;;  %v8428_v52 = vmul.f32 %v10029_v17, %v17466_v19  ;;  %10050 = vpow2.f32 %v9172_v2 }
 0x602   : > { %v10033_v29 = vpop.eup %10032  ;;  %v8429_v61 = vmul.f32 %v10031_v51, %v17483_v50  ;;  %10052 = vrcp.f32 %v8239_v22 }
 0x603   : > { %8665 = vst [vmem:[%s17447_s11 + $0x80] sm:$0xff] %v9275_v47  ;;  %v9276_v36 = vpack.c.bf16 %v8428_v52, %v8427_v62  ;;  %v8430_v5 = vmul.f32 %v10033_v29, %v17486_v37  ;;  %v10035_v1 = vpop.eup %10034 }
 0x604   : > { %v10037_v20 = vpop.eup %10036  ;;  %v8240_v26 = vadd.f32 1.0, %v10035_v1 }
 0x605   : > { %8666 = vst [vmem:[%s17447_s11 + $0x88] sm:$0xff] %v9276_v36  ;;  %v9277_v60 = vpack.c.bf16 %v8430_v5, %v8429_v61  ;;  %v10039_v6 = vpop.eup %10038  ;;  %v8241_v58 = vadd.f32 1.0, %v10037_v20 }
 0x606   : > { %v10041_v53 = vpop.eup %10040  ;;  %10054 = vrcp.f32 %v8240_v26  ;;  %v8242_v19 = vadd.f32 1.0, %v10039_v6 }
 0x607   : > { %8667 = vst [vmem:[%s17447_s11 + $0x90] sm:$0xff] %v9277_v60  ;;  %v10043_v43 = vpop.eup %10042  ;;  %10056 = vrcp.f32 %v8241_v58  ;;  %v8243_v50 = vadd.f32 1.0, %v10041_v53 }
 0x608   : > { %v10045_v57 = vpop.eup %10044  ;;  %10058 = vrcp.f32 %v8242_v19  ;;  %v8244_v32 = vadd.f32 1.0, %v10043_v43 }
 0x609   : > { %v10047_v59 = vpop.eup %10046  ;;  %10060 = vrcp.f32 %v8243_v50  ;;  %v8245_v37 = vadd.f32 1.0, %v10045_v57 }
 0x60a   : > { %v10049_v8 = vpop.eup %10048  ;;  %10062 = vrcp.f32 %v8244_v32  ;;  %v8246_v21 = vadd.f32 1.0, %v10047_v59 }
 0x60b   : > { %v10051_v25 = vpop.eup %10050  ;;  %10064 = vrcp.f32 %v8245_v37  ;;  %v8247_v56 = vadd.f32 1.0, %v10049_v8 }
 0x60c   : > { %v10053_v9 = vpop.eup %10052  ;;  %10066 = vrcp.f32 %v8246_v21  ;;  %v8248_v42 = vadd.f32 1.0, %v10051_v25 }
 0x60d   : > { %10068 = vrcp.f32 %v8247_v56  ;;  %v8431_v63 = vmul.f32 %v10053_v9, %v17488_v18 }
 0x60e   : > { %v7970_v30 = vpop.f32.mrb[48].mxu1  ;;  %10070 = vrcp.f32 %v8248_v42 }
 0x60f   : > { %v9524_v55 = vadd.f32 %v7970_v30, %v17225_v10  ;;  %v7972_v3 = vpop.f32.mrb[49].mxu1 }
 0x610   : > { %v9525_v0 = vadd.f32 %v7972_v3, %v17231_v38  ;;  %v7974_v16 = vpop.f32.mrb[50].mxu1  ;;  %v10055_v24 = vpop.eup %10054 }
 0x611   : > { %v9173_v39 = vmul.f32 -1.442695, %v9524_v55  ;;  %v9526_v41 = vadd.f32 %v7974_v16, %v17225_v10  ;;  %v7976_v35 = vpop.f32.mrb[51].mxu1  ;;  %v10057_v34 = vpop.eup %10056  ;;  %v8432_v48 = vmul.f32 %v10055_v24, %v17491_v45 }
 0x612   : > { %v9174_v46 = vmul.f32 -1.442695, %v9525_v0  ;;  %v9527_v11 = vadd.f32 %v7976_v35, %v17231_v38  ;;  %v10059_v14 = vpop.eup %10058  ;;  %v8433_v13 = vmul.f32 %v10057_v34, %v17537_v33 }
 0x613   : > { %10072 = vpow2.f32 %v9173_v39  ;;  %v9175_v7 = vmul.f32 -1.442695, %v9526_v41  ;;  %v10061_v2 = vpop.eup %10060  ;;  %v9278_v27 = vpack.c.bf16 %v8432_v48, %v8431_v63  ;;  %v8434_v18 = vmul.f32 %v10059_v14, %v17541_v28 }
 0x614   : > { %10074 = vpow2.f32 %v9174_v46  ;;  %v9176_v23 = vmul.f32 -1.442695, %v9527_v11  ;;  %v10063_v4 = vpop.eup %10062  ;;  %v8435_v12 = vmul.f32 %v10061_v2, %v17545_v15 }
 0x615   : > { %10076 = vpow2.f32 %v9175_v7  ;;  %v10065_v22 = vpop.eup %10064  ;;  %8668 = vst [vmem:[%s17447_s11 + $0x98] sm:$0xff] %v9278_v27  ;;  %v9279_v45 = vpack.c.bf16 %v8434_v18, %v8433_v13  ;;  %v8436_v17 = vmul.f32 %v10063_v4, %v17550_v44 }
 0x616   : > { %10078 = vpow2.f32 %v9176_v23  ;;  %v10067_v62 = vpop.eup %10066  ;;  %v8437_v51 = vmul.f32 %v10065_v22, %v17554_v40 }
 0x617   : > { %v10069_v33 = vpop.eup %10068  ;;  %8669 = vst [vmem:[%s17447_s11 + $0xa0] sm:$0xff] %v9279_v45  ;;  %v9280_v47 = vpack.c.bf16 %v8436_v17, %v8435_v12  ;;  %v8438_v28 = vmul.f32 %v10067_v62, %v17559_v54 }
 0x618   : > { %v10071_v52 = vpop.eup %10070  ;;  %v8439_v29 = vmul.f32 %v10069_v33, %v17564_v49 }
 0x619   : > { %8670 = vst [vmem:[%s17447_s11 + $0xa8] sm:$0xff] %v9280_v47  ;;  %v9281_v15 = vpack.c.bf16 %v8438_v28, %v8437_v51  ;;  %v8440_v61 = vmul.f32 %v10071_v52, %v17569_v31 }
 0x61b   : > { %8671 = vst [vmem:[%s17447_s11 + $0xb0] sm:$0xff] %v9281_v15  ;;  %v9282_v44 = vpack.c.bf16 %v8440_v61, %v8439_v29 }
 0x61d   : > { %v10073_v36 = vpop.eup %10072  ;;  %8672 = vst [vmem:[%s17447_s11 + $0xb8] sm:$0xff] %v9282_v44 }
 0x61e   : > { %v10075_v5 = vpop.eup %10074  ;;  %v8249_v1 = vadd.f32 1.0, %v10073_v36 }
 0x61f   : > { %v10077_v20 = vpop.eup %10076  ;;  %v8250_v40 = vadd.f32 1.0, %v10075_v5 }
 0x620   : > { %v10079_v60 = vpop.eup %10078  ;;  %10080 = vrcp.f32 %v8249_v1  ;;  %v8251_v26 = vadd.f32 1.0, %v10077_v20 }
 0x621   : > { %10082 = vrcp.f32 %v8250_v40  ;;  %v8252_v54 = vadd.f32 1.0, %v10079_v60 }
 0x622   : > { %10084 = vrcp.f32 %v8251_v26 }
 0x623   : > { %10086 = vrcp.f32 %v8252_v54 }
 0x62a   : > { %v10081_v49 = vpop.eup %10080 }
 0x62b   : > { %v10083_v6 = vpop.eup %10082  ;;  %v8441_v31 = vmul.f32 %v10081_v49, %v9524_v55 }
 0x62c   : > { %v10085_v58 = vpop.eup %10084  ;;  %v8442_v53 = vmul.f32 %v10083_v6, %v9525_v0 }
 0x62d   : > { %v10087_v19 = vpop.eup %10086  ;;  %v8443_v43 = vmul.f32 %v10085_v58, %v9526_v41 }
 0x62e   : > { %v9283_v50 = vpack.c.bf16 %v8442_v53, %v8441_v31  ;;  %v8444_v57 = vmul.f32 %v10087_v19, %v9527_v11 }
 0x630   : > { %8673 = vst [vmem:[%s17447_s11 + $0xc0] sm:$0xff] %v9283_v50  ;;  %v9284_v32 = vpack.c.bf16 %v8444_v57, %v8443_v43 }
 0x632   : > { %8674 = vst [vmem:[%s17447_s11 + $0xc8] sm:$0xff] %v9284_v32 }
 0x634   : > { %v7980_v59 = vpop.f32.mrb[52].mxu1 }
 0x635   : > { %v9528_v37 = vadd.f32 %v7980_v59, %v17225_v10  ;;  %v7982_v8 = vpop.f32.mrb[53].mxu1 }
 0x636   : > { %v9529_v21 = vadd.f32 %v7982_v8, %v17231_v38  ;;  %v7984_v25 = vpop.f32.mrb[54].mxu1 }
 0x637   : > { %v9177_v56 = vmul.f32 -1.442695, %v9528_v37  ;;  %v9530_v30 = vadd.f32 %v7984_v25, %v17225_v10  ;;  %v7986_v9 = vpop.f32.mrb[55].mxu1 }
 0x638   : > { %v9178_v42 = vmul.f32 -1.442695, %v9529_v21  ;;  %v9531_v55 = vadd.f32 %v7986_v9, %v17231_v38 }
 0x639   : > { %10088 = vpow2.f32 %v9177_v56  ;;  %v9179_v3 = vmul.f32 -1.442695, %v9530_v30 }
 0x63a   : > { %10090 = vpow2.f32 %v9178_v42  ;;  %v9180_v0 = vmul.f32 -1.442695, %v9531_v55 }
 0x63b   : > { %10092 = vpow2.f32 %v9179_v3 }
 0x63c   : > { %10094 = vpow2.f32 %v9180_v0 }
 0x643   : > { %v10089_v16 = vpop.eup %10088 }
 0x644   : > { %v10091_v39 = vpop.eup %10090  ;;  %v8253_v41 = vadd.f32 1.0, %v10089_v16 }
 0x645   : > { %v10093_v35 = vpop.eup %10092  ;;  %v8254_v63 = vadd.f32 1.0, %v10091_v39 }
 0x646   : > { %v10095_v46 = vpop.eup %10094  ;;  %10096 = vrcp.f32 %v8253_v41  ;;  %v8255_v11 = vadd.f32 1.0, %v10093_v35 }
 0x647   : > { %10098 = vrcp.f32 %v8254_v63  ;;  %v8256_v24 = vadd.f32 1.0, %v10095_v46 }
 0x648   : > { %10100 = vrcp.f32 %v8255_v11 }
 0x649   : > { %10102 = vrcp.f32 %v8256_v24 }
 0x650   : > { %v10097_v7 = vpop.eup %10096 }
 0x651   : > { %v10099_v34 = vpop.eup %10098  ;;  %v8445_v48 = vmul.f32 %v10097_v7, %v9528_v37 }
 0x652   : > { %v10101_v23 = vpop.eup %10100  ;;  %v8446_v14 = vmul.f32 %v10099_v34, %v9529_v21 }
 0x653   : > { %v10103_v13 = vpop.eup %10102  ;;  %v8447_v2 = vmul.f32 %v10101_v23, %v9530_v30 }
 0x654   : > { %v9285_v27 = vpack.c.bf16 %v8446_v14, %v8445_v48  ;;  %v8448_v18 = vmul.f32 %v10103_v13, %v9531_v55 }
 0x656   : > { %8675 = vst [vmem:[%s17447_s11 + $0xd0] sm:$0xff] %v9285_v27  ;;  %v9286_v4 = vpack.c.bf16 %v8448_v18, %v8447_v2 }
 0x658   : > { %8676 = vst [vmem:[%s17447_s11 + $0xd8] sm:$0xff] %v9286_v4 }
 0x65b   : > { %v7990_v12 = vpop.f32.mrb[56].mxu1 }
 0x65c   : > { %v9532_v22 = vadd.f32 %v7990_v12, %v17225_v10  ;;  %v7992_v45 = vpop.f32.mrb[57].mxu1 }
 0x65d   : > { %v9533_v17 = vadd.f32 %v7992_v45, %v17231_v38  ;;  %v7994_v62 = vpop.f32.mrb[58].mxu1 }
 0x65e   : > { %v9181_v51 = vmul.f32 -1.442695, %v9532_v22  ;;  %v9534_v33 = vadd.f32 %v7994_v62, %v17225_v10  ;;  %v7996_v47 = vpop.f32.mrb[59].mxu1 }
 0x65f   : > { %v9182_v28 = vmul.f32 -1.442695, %v9533_v17  ;;  %v9535_v52 = vadd.f32 %v7996_v47, %v17231_v38 }
 0x660   : > { %10104 = vpow2.f32 %v9181_v51  ;;  %v9183_v29 = vmul.f32 -1.442695, %v9534_v33 }
 0x661   : > { %10106 = vpow2.f32 %v9182_v28  ;;  %v9184_v15 = vmul.f32 -1.442695, %v9535_v52 }
 0x662   : > { %10108 = vpow2.f32 %v9183_v29 }
 0x663   : > { %10110 = vpow2.f32 %v9184_v15 }
 0x66a   : > { %v10105_v61 = vpop.eup %10104 }
 0x66b   : > { %v10107_v36 = vpop.eup %10106  ;;  %v8257_v5 = vadd.f32 1.0, %v10105_v61 }
 0x66c   : > { %v10109_v44 = vpop.eup %10108  ;;  %v8258_v1 = vadd.f32 1.0, %v10107_v36 }
 0x66d   : > { %v10111_v20 = vpop.eup %10110  ;;  %10112 = vrcp.f32 %v8257_v5  ;;  %v8259_v40 = vadd.f32 1.0, %v10109_v44 }
 0x66e   : > { %10114 = vrcp.f32 %v8258_v1  ;;  %v8260_v60 = vadd.f32 1.0, %v10111_v20 }
 0x66f   : > { %10116 = vrcp.f32 %v8259_v40 }
 0x670   : > { %10118 = vrcp.f32 %v8260_v60 }
 0x677   : > { %v10113_v26 = vpop.eup %10112 }
 0x678   : > { %v10115_v54 = vpop.eup %10114  ;;  %v8449_v49 = vmul.f32 %v10113_v26, %v9532_v22 }
 0x679   : > { %v10117_v6 = vpop.eup %10116  ;;  %v8450_v31 = vmul.f32 %v10115_v54, %v9533_v17 }
 0x67a   : > { %v10119_v58 = vpop.eup %10118  ;;  %v8451_v53 = vmul.f32 %v10117_v6, %v9534_v33 }
 0x67b   : > { %v9287_v19 = vpack.c.bf16 %v8450_v31, %v8449_v49  ;;  %v8452_v43 = vmul.f32 %v10119_v58, %v9535_v52 }
 0x67d   : > { %8677 = vst [vmem:[%s17447_s11 + $0xe0] sm:$0xff] %v9287_v19  ;;  %v9288_v50 = vpack.c.bf16 %v8452_v43, %v8451_v53 }
 0x67f   : > { %8678 = vst [vmem:[%s17447_s11 + $0xe8] sm:$0xff] %v9288_v50 }
 0x680   : > { %v8000_v57 = vpop.f32.mrb[60].mxu1 }
 0x681   : > { %v9536_v32 = vadd.f32 %v8000_v57, %v17225_v10  ;;  %v8002_v59 = vpop.f32.mrb[61].mxu1 }
 0x682   : > { %v9537_v37 = vadd.f32 %v8002_v59, %v17231_v38  ;;  %v8004_v8 = vpop.f32.mrb[62].mxu1 }
 0x683   : > { %v9185_v21 = vmul.f32 -1.442695, %v9536_v32  ;;  %v9538_v25 = vadd.f32 %v8004_v8, %v17225_v10  ;;  %v8006_v56 = vpop.f32.mrb[63].mxu1 }
 0x684   : > { %v9186_v30 = vmul.f32 -1.442695, %v9537_v37  ;;  %v9539_v9 = vadd.f32 %v8006_v56, %v17231_v38 }
 0x685   : > { %10120 = vpow2.f32 %v9185_v21  ;;  %v9187_v42 = vmul.f32 -1.442695, %v9538_v25 }
 0x686   : > { %10122 = vpow2.f32 %v9186_v30  ;;  %v9188_v55 = vmul.f32 -1.442695, %v9539_v9 }
 0x687   : > { %10124 = vpow2.f32 %v9187_v42 }
 0x688   : > { %10126 = vpow2.f32 %v9188_v55 }
 0x68f   : > { %v10121_v3 = vpop.eup %10120 }
 0x690   : > { %v10123_v0 = vpop.eup %10122  ;;  %v8261_v16 = vadd.f32 1.0, %v10121_v3 }
 0x691   : > { %v10125_v39 = vpop.eup %10124  ;;  %v8262_v41 = vadd.f32 1.0, %v10123_v0 }
 0x692   : > { %v10127_v35 = vpop.eup %10126  ;;  %10128 = vrcp.f32 %v8261_v16  ;;  %v8263_v10 = vadd.f32 1.0, %v10125_v39 }
 0x693   : > { %10130 = vrcp.f32 %v8262_v41  ;;  %v8264_v63 = vadd.f32 1.0, %v10127_v35 }
 0x694   : > { %10132 = vrcp.f32 %v8263_v10 }
 0x695   : > { %10134 = vrcp.f32 %v8264_v63 }
 0x69c   : > { %v10129_v38 = vpop.eup %10128 }
 0x69d   : > { %v10131_v46 = vpop.eup %10130  ;;  %v8453_v11 = vmul.f32 %v10129_v38, %v9536_v32 }
 0x69e   : > { %v10133_v24 = vpop.eup %10132  ;;  %v8454_v7 = vmul.f32 %v10131_v46, %v9537_v37 }
 0x69f   : > { %v10135_v34 = vpop.eup %10134  ;;  %v8455_v48 = vmul.f32 %v10133_v24, %v9538_v25 }
 0x6a0   : > { %v9289_v23 = vpack.c.bf16 %v8454_v7, %v8453_v11  ;;  %v8456_v14 = vmul.f32 %v10135_v34, %v9539_v9 }
 0x6a2   : > { %8679 = vst [vmem:[%s17447_s11 + $0xf0] sm:$0xff] %v9289_v23  ;;  %v9290_v13 = vpack.c.bf16 %v8456_v14, %v8455_v48 }
 0x6a4   : > { %8680 = vst [vmem:[%s17447_s11 + $0xf8] sm:$0xff] %v9290_v13 }
 0x6a5   : > { %10286 = shalt.err (!%p10283_p2)
}
 0x6a6   : > { %s10287_s12 = scalar_lea.hbm %s17632_s6, 4096  ;;  %s10291_s8 = scalar_lea.hbm %s17685_s5, 8192 }
 0x6a7   : > { %p10288_p13 = scmp.ne.s32.totalorder %s17632_s6, %s10287_s12  ;;  %p10292_p4 = scmp.lt.u32.totalorder %s17632_s6, %s17685_s5 }
 0x6a8   : > { %p10293_p7 = scmp.lt.u32.totalorder %s10291_s8, %s10287_s12  ;;  %p10295_p11 = scmp.lt.u32.totalorder %s10287_s12, %s17632_s6 }
 0x6a9   : > { %p10289_p6 = pnand %p10288_p13, %p20227_p0 }
 0x6aa   : > { %p10294_p8 = por %p10293_p7, %p10292_p4 }
 0x6ab   : > { %p10290_p10 = pneg %p10289_p6 }
 0x6ac   : > { %p10296_p1 = por %p10295_p11, %p10294_p8 }
 0x6ae   : > { %p10297_p3 = pnand %p10296_p1, %p10290_p10 }
 0x6b0   : > { %10300 = shalt.err (!%p10297_p3)
}
 0x6b1   : > { %s10356_s14 = smov 128   ;;  %s10357_s23 = smov 8  }
 0x6b2   : > { %9574 = dma.vmem_to_hbm [thread:$0]  (%p20227_p0), %s17634_s15, 4096, %s17632_s6, %s8682_s24, %s10356_s14, %s10356_s14, %s10357_s23  }
 0x6b3 PF: > { %s8710_s7 = sand.u32 1, %s10331_s18   ;;  %p20228_p5 = scmp.ne.s32.totalorder %s18473_s25, 0 }
 0x6b4   : > { %p20229_p9 = scmp.ge.s32.totalorder %s10343_s21, 2  ;;  %s8711_s22 = scalar_lea.sflag [#allocation6], %s8710_s7 }
 0x6b6   : > { %p9588_p12 = pnand %p20229_p9, %p20228_p5 }
 0x6b8   : > { %10326 = dma.done.wait (!%p9588_p12), %s8711_s22, 4096  }
 0x6b9   : > { %10328 = vsyncadd (!%p9588_p12), %s8711_s22, 4294963200  ;;  %p19_p2 = scmp.ge.s32.totalorder %s10498_s16, 4   ;;  %s20230_s18 = smov %s10335_s19 }
 0x6ba   : > { %s20231_s19 = smov %s10339_s20  ;;  %s20232_s20 = smov %s10507_s27 }
 0x6bb   : > { %s20233_s21 = smov %s10498_s16  ;;  %21 = sbr.rel (!%p19_p2) target bundleno = 6 (0x6), region = 95 }
 0x6c2   :  { %8716 = vsyncpa [#allocation5], 1 }
 0x6c3   :  { %8718 = vsyncpa [#allocation5 + $0x1], 1 }
 0x6c4   :  { %8719 = vsyncpa [#allocation8], 1 }
 0x6c5   :  { %8720 = vsyncpa [#allocation6], 1 }
 0x6c6   :  { %8722 = vsyncpa [#allocation6 + $0x1], 1 }

</bundles_post_ra>
